<compile_context>
chip_gen: v6e
topology: v6e:2x2x1
jax: 0.10.0
libtpu: 0.0.40
codegen_flags: <defaults>
</compile_context>

<pallas_src>
import functools

import jax
import jax.numpy as jnp
from jax.experimental import pallas as pl
from jax.experimental.pallas import tpu as pltpu


def _round_up(x, m):
    return (x + m - 1) // m * m


# ----------------------------------------------------------------------------
# Tiling heuristics
# ----------------------------------------------------------------------------

def _m_tiling(M):
    if M <= 256:
        Mp = _round_up(M, 8)
        return Mp, Mp
    tm = 256
    return _round_up(M, tm), tm


def _n_tiling(N):
    if N <= 256:
        Np = _round_up(N, 128)
        return Np, Np
    tn = 256
    return _round_up(N, tn), tn


def _k_tiling(K):
    # Small K: pad only to a sublane multiple and do a single K step
    # (avoids conv1's 147 -> 256 padding waste).
    if K <= 640:
        Kp = _round_up(K, 8)
        return Kp, Kp
    Kp = _round_up(K, 128)
    for tk in (512, 384, 256, 128):
        if Kp % tk == 0:
            return Kp, tk
    return Kp, 128


# ----------------------------------------------------------------------------
# Pallas kernels
# ----------------------------------------------------------------------------

def _gemm_kernel_multi_k(a_ref, b_ref, scale_ref, bias_ref, *rest, do_relu,
                         has_residual):
    """acc += A @ B (bf16 in, f32 acc); last-K epilogue: scale/bias(+res)/ReLU."""
    if has_residual:
        res_ref, o_ref, acc_ref = rest
    else:
        o_ref, acc_ref = rest

    k = pl.program_id(2)

    @pl.when(k == 0)
    def _():
        acc_ref[...] = jnp.zeros_like(acc_ref)

    acc_ref[...] += jnp.dot(a_ref[...], b_ref[...],
                            preferred_element_type=jnp.float32)

    @pl.when(k == pl.num_programs(2) - 1)
    def _():
        y = acc_ref[...] * scale_ref[...] + bias_ref[...]
        if has_residual:
            y = y + res_ref[...].astype(jnp.float32)
        if do_relu:
            y = jnp.maximum(y, 0.0)
        o_ref[...] = y.astype(o_ref.dtype)


def _gemm_kernel_single_k(a_ref, b_ref, scale_ref, bias_ref, *rest, do_relu,
                          has_residual):
    """Whole K in one step: no scratch accumulator, straight-line epilogue."""
    if has_residual:
        res_ref, o_ref = rest
    else:
        (o_ref,) = rest
    y = jnp.dot(a_ref[...], b_ref[...], preferred_element_type=jnp.float32)
    y = y * scale_ref[...] + bias_ref[...]
    if has_residual:
        y = y + res_ref[...].astype(jnp.float32)
    if do_relu:
        y = jnp.maximum(y, 0.0)
    o_ref[...] = y.astype(o_ref.dtype)


def gemm_bn_act(A, w, m, residual=None, do_relu=False,
                out_dtype=jnp.bfloat16):
    """(M,K) @ prepared (Kp,Np) weight with fused BN/residual/ReLU epilogue."""
    M, K = A.shape
    Kp, Np, tk, tn = m['Kp'], m['Np'], m['tk'], m['tn']
    N = m['N']
    Mp, tm = _m_tiling(M)

    Ap = jnp.pad(A.astype(jnp.bfloat16), ((0, Mp - M), (0, Kp - K)))
    has_res = residual is not None
    single_k = (Kp // tk) == 1

    args = [Ap, w['w'], w['scale'], w['bias']]
    if has_res:
        rp = jnp.pad(residual.astype(jnp.bfloat16),
                     ((0, Mp - M), (0, Np - N)))
        args.append(rp)

    if single_k:
        grid = (Mp // tm, Np // tn)
        in_specs = [
            pl.BlockSpec((tm, Kp), lambda i, j: (i, 0)),     # A (full K)
            pl.BlockSpec((Kp, tn), lambda i, j: (0, j)),     # B
            pl.BlockSpec((1, tn), lambda i, j: (0, j)),      # scale
            pl.BlockSpec((1, tn), lambda i, j: (0, j)),      # bias
        ]
        if has_res:
            in_specs.append(pl.BlockSpec((tm, tn), lambda i, j: (i, j)))
        out_specs = pl.BlockSpec((tm, tn), lambda i, j: (i, j))
        scratch = []
        kernel = functools.partial(_gemm_kernel_single_k, do_relu=do_relu,
                                   has_residual=has_res)
        dims = ("parallel", "parallel")
    else:
        grid = (Mp // tm, Np // tn, Kp // tk)
        in_specs = [
            pl.BlockSpec((tm, tk), lambda i, j, k: (i, k)),  # A
            pl.BlockSpec((tk, tn), lambda i, j, k: (k, j)),  # B
            pl.BlockSpec((1, tn), lambda i, j, k: (0, j)),   # scale
            pl.BlockSpec((1, tn), lambda i, j, k: (0, j)),   # bias
        ]
        if has_res:
            in_specs.append(pl.BlockSpec((tm, tn), lambda i, j, k: (i, j)))
        out_specs = pl.BlockSpec((tm, tn), lambda i, j, k: (i, j))
        scratch = [pltpu.VMEM((tm, tn), jnp.float32)]
        kernel = functools.partial(_gemm_kernel_multi_k, do_relu=do_relu,
                                   has_residual=has_res)
        dims = ("parallel", "parallel", "arbitrary")

    out = pl.pallas_call(
        kernel,
        out_shape=jax.ShapeDtypeStruct((Mp, Np), out_dtype),
        grid_spec=pltpu.PrefetchScalarGridSpec(
            num_scalar_prefetch=0,
            grid=grid,
            in_specs=in_specs,
            out_specs=out_specs,
            scratch_shapes=scratch,
        ),
        compiler_params=pltpu.CompilerParams(dimension_semantics=dims),
    )(*args)
    return out[:M, :N]


def _max9_kernel(x_ref, o_ref):
    # x: (9, tm, C) -> elementwise max over the 9 shifted windows.
    o_ref[...] = jnp.max(x_ref[...], axis=0)


def maxpool_3x3_s2_p1(x):
    """MaxPool2d(kernel=3, stride=2, padding=1) on NHWC input."""
    N, H, W, C = x.shape
    Ho = (H + 2 - 3) // 2 + 1
    Wo = (W + 2 - 3) // 2 + 1
    xp = jnp.pad(x, ((0, 0), (1, 1), (1, 1), (0, 0)),
                 constant_values=-jnp.inf)
    views = []
    for dy in range(3):
        for dx in range(3):
            views.append(xp[:, dy:dy + 2 * (Ho - 1) + 1:2,
                            dx:dx + 2 * (Wo - 1) + 1:2, :])
    M = N * Ho * Wo
    stacked = jnp.stack(views, axis=0).reshape(9, M, C)

    tm = 512 if M >= 512 else _round_up(M, 8)
    Mp = _round_up(M, tm)
    stacked = jnp.pad(stacked, ((0, 0), (0, Mp - M), (0, 0)))

    out = pl.pallas_call(
        _max9_kernel,
        out_shape=jax.ShapeDtypeStruct((Mp, C), x.dtype),
        grid_spec=pltpu.PrefetchScalarGridSpec(
            num_scalar_prefetch=0,
            grid=(Mp // tm,),
            in_specs=[pl.BlockSpec((9, tm, C), lambda i: (0, i, 0))],
            out_specs=pl.BlockSpec((tm, C), lambda i: (i, 0)),
        ),
        compiler_params=pltpu.CompilerParams(
            dimension_semantics=("parallel",)),
    )(stacked)
    return out[:M].reshape(N, Ho, Wo, C)


def _gap_kernel(x_ref, o_ref):
    x = x_ref[...].astype(jnp.float32)
    o_ref[...] = jnp.mean(x, axis=1).astype(o_ref.dtype)


def global_avgpool(x):
    """AdaptiveAvgPool2d((1,1)) on NHWC input -> (N, C)."""
    N, H, W, C = x.shape
    return pl.pallas_call(
        _gap_kernel,
        out_shape=jax.ShapeDtypeStruct((N, C), x.dtype),
    )(x.reshape(N, H * W, C))


# ----------------------------------------------------------------------------
# Conv via im2col (jit-fused glue) + Pallas GEMM with fused BN/residual/ReLU
# ----------------------------------------------------------------------------

def conv_bn_act(x, w, m, residual=None, do_relu=True):
    """x: NHWC (bf16); w/m: prepared weight arrays + static metadata."""
    N, H, W, Cin = x.shape
    kh, kw, stride, padding = m['kh'], m['kw'], m['stride'], m['pad']
    Cout = m['N']
    Ho = (H + 2 * padding - kh) // stride + 1
    Wo = (W + 2 * padding - kw) // stride + 1
    xp = jnp.pad(x, ((0, 0), (padding, padding), (padding, padding), (0, 0)))

    patches = []
    for dy in range(kh):
        for dx in range(kw):
            patches.append(xp[:, dy:dy + stride * (Ho - 1) + 1:stride,
                              dx:dx + stride * (Wo - 1) + 1:stride, :])
    # (N, Ho, Wo, kh*kw, Cin) -> (M, kh*kw*Cin); ordering matches prepared B.
    A = jnp.stack(patches, axis=3).reshape(N * Ho * Wo, kh * kw * Cin)

    res2d = None
    if residual is not None:
        res2d = residual.reshape(N * Ho * Wo, Cout)

    out = gemm_bn_act(A, w, m, residual=res2d, do_relu=do_relu)
    return out.reshape(N, Ho, Wo, Cout)


# ----------------------------------------------------------------------------
# Deterministic parameter initialization (ResNet-18, fc -> 10)
# ----------------------------------------------------------------------------

def _conv_w(key, cout, cin, kh, kw):
    fan_in = cin * kh * kw
    return jax.random.normal(key, (cout, cin, kh, kw), jnp.float32) * \
        jnp.sqrt(2.0 / fan_in)


def _bn_fold(key, c, eps=1e-5):
    k1, k2 = jax.random.split(key)
    gamma = 1.0 + 0.1 * jax.random.normal(k1, (c,), jnp.float32)
    beta = 0.1 * jax.random.normal(k2, (c,), jnp.float32)
    running_mean = jnp.zeros((c,), jnp.float32)
    running_var = jnp.ones((c,), jnp.float32)
    scale = gamma / jnp.sqrt(running_var + eps)
    bias = beta - running_mean * scale
    return scale, bias


def init_resnet18_params(seed=0):
    base = jax.random.PRNGKey(seed)
    counter = [0]

    def nk():
        counter[0] += 1
        return jax.random.fold_in(base, counter[0])

    p = {}
    p['conv1_w'] = _conv_w(nk(), 64, 3, 7, 7)
    p['bn1'] = _bn_fold(nk(), 64)

    stage_channels = [64, 128, 256, 512]
    in_c = 64
    layers = []
    for si, c in enumerate(stage_channels):
        blocks = []
        for bi in range(2):
            stride = 2 if (si > 0 and bi == 0) else 1
            blk = {
                'stride': stride,
                'conv1_w': _conv_w(nk(), c, in_c, 3, 3),
                'bn1': _bn_fold(nk(), c),
                'conv2_w': _conv_w(nk(), c, c, 3, 3),
                'bn2': _bn_fold(nk(), c),
            }
            if stride != 1 or in_c != c:
                blk['ds_w'] = _conv_w(nk(), c, in_c, 1, 1)
                blk['ds_bn'] = _bn_fold(nk(), c)
            blocks.append(blk)
            in_c = c
        layers.append(blocks)
    p['layers'] = layers

    p['fc_w'] = jax.random.normal(nk(), (10, 512), jnp.float32) * \
        (1.0 / jnp.sqrt(512.0))
    p['fc_b'] = 0.01 * jax.random.normal(nk(), (10,), jnp.float32)
    return p


# ----------------------------------------------------------------------------
# One-time weight preparation: transpose/reshape/pad/bf16-cast + static tiling
# ----------------------------------------------------------------------------

def _prep_conv(w, scale, bias, stride, padding):
    Cout, Cin, kh, kw = w.shape
    K, N = kh * kw * Cin, Cout
    Kp, tk = _k_tiling(K)
    Np, tn = _n_tiling(N)
    Bm = jnp.transpose(w, (2, 3, 1, 0)).reshape(K, N)
    Bp = jnp.pad(Bm, ((0, Kp - K), (0, Np - N))).astype(jnp.bfloat16)
    sp = jnp.pad(scale.reshape(1, -1).astype(jnp.float32),
                 ((0, 0), (0, Np - N)))
    bp = jnp.pad(bias.reshape(1, -1).astype(jnp.float32),
                 ((0, 0), (0, Np - N)))
    arrays = {'w': Bp, 'scale': sp, 'bias': bp}
    meta = {'K': K, 'N': N, 'Kp': Kp, 'Np': Np, 'tk': tk, 'tn': tn,
            'kh': kh, 'kw': kw, 'stride': stride, 'pad': padding}
    return arrays, meta


def prepare_params(raw):
    """Split into (weights: arrays-only pytree, meta: static Python ints)."""
    weights, meta = {}, {}
    s1, b1 = raw['bn1']
    weights['conv1'], meta['conv1'] = _prep_conv(raw['conv1_w'], s1, b1,
                                                 stride=2, padding=3)

    w_layers, m_layers = [], []
    for blocks in raw['layers']:
        wb_list, mb_list = [], []
        for blk in blocks:
            bs1, bb1 = blk['bn1']
            bs2, bb2 = blk['bn2']
            wc1, mc1 = _prep_conv(blk['conv1_w'], bs1, bb1, blk['stride'], 1)
            wc2, mc2 = _prep_conv(blk['conv2_w'], bs2, bb2, 1, 1)
            wb = {'conv1': wc1, 'conv2': wc2}
            mb = {'conv1': mc1, 'conv2': mc2, 'has_ds': False}
            if 'ds_w' in blk:
                ds_s, ds_b = blk['ds_bn']
                wds, mds = _prep_conv(blk['ds_w'], ds_s, ds_b,
                                      blk['stride'], 0)
                wb['ds'], mb['ds'] = wds, mds
                mb['has_ds'] = True
            wb_list.append(wb)
            mb_list.append(mb)
        w_layers.append(wb_list)
        m_layers.append(mb_list)
    weights['layers'], meta['layers'] = w_layers, m_layers

    # fc: Linear(512, 10)
    K, N = 512, 10
    Kp, tk = _k_tiling(K)
    Np, tn = _n_tiling(N)
    Bp = jnp.pad(raw['fc_w'].T, ((0, Kp - K), (0, Np - N))).astype(jnp.bfloat16)
    sp = jnp.pad(jnp.ones((1, N), jnp.float32), ((0, 0), (0, Np - N)))
    bp = jnp.pad(raw['fc_b'].reshape(1, -1).astype(jnp.float32),
                 ((0, 0), (0, Np - N)))
    weights['fc'] = {'w': Bp, 'scale': sp, 'bias': bp}
    meta['fc'] = {'K': K, 'N': N, 'Kp': Kp, 'Np': Np, 'tk': tk, 'tn': tn}
    return weights, meta


# ----------------------------------------------------------------------------
# Forward pass (matches torchvision resnet18 with fc replaced by Linear(512,10))
# ----------------------------------------------------------------------------

def basic_block(x, wb, mb):
    out = conv_bn_act(x, wb['conv1'], mb['conv1'], do_relu=True)
    if mb['has_ds']:
        identity = conv_bn_act(x, wb['ds'], mb['ds'], do_relu=False)
    else:
        identity = x
    # relu(bn2(conv2(out)) + identity): residual add + relu fused in epilogue.
    out = conv_bn_act(out, wb['conv2'], mb['conv2'], residual=identity,
                      do_relu=True)
    return out


def student_net_resp_forward(weights, x_nchw, meta):
    x = jnp.transpose(x_nchw, (0, 2, 3, 1)).astype(jnp.bfloat16)  # NCHW->NHWC
    x = conv_bn_act(x, weights['conv1'], meta['conv1'], do_relu=True)
    x = maxpool_3x3_s2_p1(x)
    for wb_list, mb_list in zip(weights['layers'], meta['layers']):
        for wb, mb in zip(wb_list, mb_list):
            x = basic_block(x, wb, mb)
    feat = global_avgpool(x)                                   # (N, 512)
    logits = gemm_bn_act(feat, weights['fc'], meta['fc'],
                         do_relu=False, out_dtype=jnp.float32)  # (N, 10)
    return logits


if __name__ == "__main__":
    key = jax.random.PRNGKey(0)
    x = jax.random.normal(key, (2, 3, 32, 32), jnp.float32)  # CIFAR10-sized

    raw = init_resnet18_params(seed=0)
    weights, meta = prepare_params(raw)

    fwd = jax.jit(functools.partial(student_net_resp_forward, meta=meta))
    out = jax.block_until_ready(fwd(weights, x))

    assert out.shape == (2, 10)
    assert bool(jnp.all(jnp.isfinite(out)))
    print("KERNEL_OK")
</pallas_src>

<mosaic_0001>
module attributes {stable_mosaic.version = 11 : i64} {
  func.func @_gemm_kernel_single_k(%arg0: i32, %arg1: i32, %arg2: memref<256x152xbf16, #tpu.memory_space<vmem>>, %arg3: memref<152x128xbf16, #tpu.memory_space<vmem>>, %arg4: memref<1x128xf32, #tpu.memory_space<vmem>>, %arg5: memref<1x128xf32, #tpu.memory_space<vmem>>, %arg6: memref<256x128xbf16, #tpu.memory_space<vmem>>) attributes {dimension_semantics = [#tpu.dimension_semantics<parallel>, #tpu.dimension_semantics<parallel>], iteration_bounds = array<i64: 2, 1>, scalar_prefetch = 0 : i64, scratch_operands = 0 : i64, tpu.core_type = #tpu.core_type<tc>, window_params = [{transform_indices = @transform_0, window_bounds = array<i64: 256, 152>}, {transform_indices = @transform_1, window_bounds = array<i64: 152, 128>}, {transform_indices = @transform_2, window_bounds = array<i64: 1, 128>}, {transform_indices = @transform_3, window_bounds = array<i64: 1, 128>}, {transform_indices = @transform_4, window_bounds = array<i64: 256, 128>}]} {
    %c0 = arith.constant 0 : index
    %c0_0 = arith.constant 0 : index
    %0 = vector.load %arg2[%c0, %c0_0] : memref<256x152xbf16, #tpu.memory_space<vmem>>, vector<256x152xbf16>
    %c0_1 = arith.constant 0 : index
    %c0_2 = arith.constant 0 : index
    %1 = vector.load %arg3[%c0_1, %c0_2] : memref<152x128xbf16, #tpu.memory_space<vmem>>, vector<152x128xbf16>
    %cst = arith.constant dense<0.000000e+00> : vector<256x128xf32>
    %2 = tpu.matmul %0, %1, %cst {dimension_numbers = #tpu.dot_dimension_numbers<[1], [0], [0], [1], [0, 0, 1, 1], [], []>} : vector<256x152xbf16>, vector<152x128xbf16>, vector<256x128xf32> -> vector<256x128xf32>
    %c0_3 = arith.constant 0 : index
    %c0_4 = arith.constant 0 : index
    %3 = vector.load %arg4[%c0_3, %c0_4] : memref<1x128xf32, #tpu.memory_space<vmem>>, vector<1x128xf32>
    %4 = vector.broadcast %3 : vector<1x128xf32> to vector<256x128xf32>
    %5 = arith.mulf %2, %4 : vector<256x128xf32>
    %c0_5 = arith.constant 0 : index
    %c0_6 = arith.constant 0 : index
    %6 = vector.load %arg5[%c0_5, %c0_6] : memref<1x128xf32, #tpu.memory_space<vmem>>, vector<1x128xf32>
    %7 = vector.broadcast %6 : vector<1x128xf32> to vector<256x128xf32>
    %8 = arith.addf %5, %7 : vector<256x128xf32>
    %cst_7 = arith.constant 0.000000e+00 : f32
    %9 = vector.broadcast %cst_7 : f32 to vector<256x128xf32>
    %10 = arith.maximumf %8, %9 : vector<256x128xf32>
    %11 = arith.truncf %10 : vector<256x128xf32> to vector<256x128xbf16>
    %c0_8 = arith.constant 0 : index
    %c0_9 = arith.constant 0 : index
    %12 = vector.load %arg6[%c0_8, %c0_9] : memref<256x128xbf16, #tpu.memory_space<vmem>>, vector<256x128xbf16>
    tpu.vector_store %arg6[%c0_8, %c0_9], %11 {strides = array<i32>} : memref<256x128xbf16, #tpu.memory_space<vmem>>, vector<256x128xbf16>,
    return
  }
  func.func @transform_0(%arg0: i32, %arg1: i32) -> (i32, i32) {
    %c0_i32 = arith.constant 0 : i32
    %c0_i32_0 = arith.constant 0 : i32
    return %arg0, %c0_i32 : i32, i32
  }
  func.func @transform_1(%arg0: i32, %arg1: i32) -> (i32, i32) {
    %c0_i32 = arith.constant 0 : i32
    %c0_i32_0 = arith.constant 0 : i32
    return %c0_i32, %arg1 : i32, i32
  }
  func.func @transform_2(%arg0: i32, %arg1: i32) -> (i32, i32) {
    %c0_i32 = arith.constant 0 : i32
    %c0_i32_0 = arith.constant 0 : i32
    return %c0_i32, %arg1 : i32, i32
  }
  func.func @transform_3(%arg0: i32, %arg1: i32) -> (i32, i32) {
    %c0_i32 = arith.constant 0 : i32
    %c0_i32_0 = arith.constant 0 : i32
    return %c0_i32, %arg1 : i32, i32
  }
  func.func @transform_4(%arg0: i32, %arg1: i32) -> (i32, i32) {
    %c0_i32 = arith.constant 0 : i32
    return %arg0, %arg1 : i32, i32
  }
}

module attributes {stable_mosaic.version = 11 : i64} {
  func.func @_max9_kernel(%arg0: i32, %arg1: memref<9x128x64xbf16, #tpu.memory_space<vmem>>, %arg2: memref<128x64xbf16, #tpu.memory_space<vmem>>) attributes {dimension_semantics = [#tpu.dimension_semantics<parallel>], iteration_bounds = array<i64: 1>, scalar_prefetch = 0 : i64, scratch_operands = 0 : i64, tpu.core_type = #tpu.core_type<tc>, window_params = [{transform_indices = @transform_0, window_bounds = array<i64: 9, 128, 64>}, {transform_indices = @transform_1, window_bounds = array<i64: 128, 64>}]} {
    %c0 = arith.constant 0 : index
    %c0_0 = arith.constant 0 : index
    %c0_1 = arith.constant 0 : index
    %0 = vector.load %arg1[%c0, %c0_0, %c0_1] : memref<9x128x64xbf16, #tpu.memory_space<vmem>>, vector<9x128x64xbf16>
    %cst = arith.constant dense<0xFF80> : vector<128x64xbf16>
    %1 = vector.multi_reduction <maximumf>, %0, %cst [0] : vector<9x128x64xbf16> to vector<128x64xbf16>
    %c0_2 = arith.constant 0 : index
    %c0_3 = arith.constant 0 : index
    %2 = vector.load %arg2[%c0_2, %c0_3] : memref<128x64xbf16, #tpu.memory_space<vmem>>, vector<128x64xbf16>
    tpu.vector_store %arg2[%c0_2, %c0_3], %1 {strides = array<i32>} : memref<128x64xbf16, #tpu.memory_space<vmem>>, vector<128x64xbf16>,
    return
  }
  func.func @transform_0(%arg0: i32) -> (i32, i32, i32) {
    %c0_i32 = arith.constant 0 : i32
    %c0_i32_0 = arith.constant 0 : i32
    %c0_i32_1 = arith.constant 0 : i32
    return %c0_i32, %arg0, %c0_i32_0 : i32, i32, i32
  }
  func.func @transform_1(%arg0: i32) -> (i32, i32) {
    %c0_i32 = arith.constant 0 : i32
    %c0_i32_0 = arith.constant 0 : i32
    return %arg0, %c0_i32 : i32, i32
  }
}

module attributes {stable_mosaic.version = 11 : i64} {
  func.func @_gemm_kernel_single_k(%arg0: i32, %arg1: i32, %arg2: memref<128x576xbf16, #tpu.memory_space<vmem>>, %arg3: memref<576x128xbf16, #tpu.memory_space<vmem>>, %arg4: memref<1x128xf32, #tpu.memory_space<vmem>>, %arg5: memref<1x128xf32, #tpu.memory_space<vmem>>, %arg6: memref<128x128xbf16, #tpu.memory_space<vmem>>) attributes {dimension_semantics = [#tpu.dimension_semantics<parallel>, #tpu.dimension_semantics<parallel>], iteration_bounds = array<i64: 1, 1>, scalar_prefetch = 0 : i64, scratch_operands = 0 : i64, tpu.core_type = #tpu.core_type<tc>, window_params = [{transform_indices = @transform_0, window_bounds = array<i64: 128, 576>}, {transform_indices = @transform_1, window_bounds = array<i64: 576, 128>}, {transform_indices = @transform_2, window_bounds = array<i64: 1, 128>}, {transform_indices = @transform_3, window_bounds = array<i64: 1, 128>}, {transform_indices = @transform_4, window_bounds = array<i64: 128, 128>}]} {
    %c0 = arith.constant 0 : index
    %c0_0 = arith.constant 0 : index
    %0 = vector.load %arg2[%c0, %c0_0] : memref<128x576xbf16, #tpu.memory_space<vmem>>, vector<128x576xbf16>
    %c0_1 = arith.constant 0 : index
    %c0_2 = arith.constant 0 : index
    %1 = vector.load %arg3[%c0_1, %c0_2] : memref<576x128xbf16, #tpu.memory_space<vmem>>, vector<576x128xbf16>
    %cst = arith.constant dense<0.000000e+00> : vector<128x128xf32>
    %2 = tpu.matmul %0, %1, %cst {dimension_numbers = #tpu.dot_dimension_numbers<[1], [0], [0], [1], [0, 0, 1, 1], [], []>} : vector<128x576xbf16>, vector<576x128xbf16>, vector<128x128xf32> -> vector<128x128xf32>
    %c0_3 = arith.constant 0 : index
    %c0_4 = arith.constant 0 : index
    %3 = vector.load %arg4[%c0_3, %c0_4] : memref<1x128xf32, #tpu.memory_space<vmem>>, vector<1x128xf32>
    %4 = vector.broadcast %3 : vector<1x128xf32> to vector<128x128xf32>
    %5 = arith.mulf %2, %4 : vector<128x128xf32>
    %c0_5 = arith.constant 0 : index
    %c0_6 = arith.constant 0 : index
    %6 = vector.load %arg5[%c0_5, %c0_6] : memref<1x128xf32, #tpu.memory_space<vmem>>, vector<1x128xf32>
    %7 = vector.broadcast %6 : vector<1x128xf32> to vector<128x128xf32>
    %8 = arith.addf %5, %7 : vector<128x128xf32>
    %cst_7 = arith.constant 0.000000e+00 : f32
    %9 = vector.broadcast %cst_7 : f32 to vector<128x128xf32>
    %10 = arith.maximumf %8, %9 : vector<128x128xf32>
    %11 = arith.truncf %10 : vector<128x128xf32> to vector<128x128xbf16>
    %c0_8 = arith.constant 0 : index
    %c0_9 = arith.constant 0 : index
    %12 = vector.load %arg6[%c0_8, %c0_9] : memref<128x128xbf16, #tpu.memory_space<vmem>>, vector<128x128xbf16>
    tpu.vector_store %arg6[%c0_8, %c0_9], %11 {strides = array<i32>} : memref<128x128xbf16, #tpu.memory_space<vmem>>, vector<128x128xbf16>,
    return
  }
  func.func @transform_0(%arg0: i32, %arg1: i32) -> (i32, i32) {
    %c0_i32 = arith.constant 0 : i32
    %c0_i32_0 = arith.constant 0 : i32
    return %arg0, %c0_i32 : i32, i32
  }
  func.func @transform_1(%arg0: i32, %arg1: i32) -> (i32, i32) {
    %c0_i32 = arith.constant 0 : i32
    %c0_i32_0 = arith.constant 0 : i32
    return %c0_i32, %arg1 : i32, i32
  }
  func.func @transform_2(%arg0: i32, %arg1: i32) -> (i32, i32) {
    %c0_i32 = arith.constant 0 : i32
    %c0_i32_0 = arith.constant 0 : i32
    return %c0_i32, %arg1 : i32, i32
  }
  func.func @transform_3(%arg0: i32, %arg1: i32) -> (i32, i32) {
    %c0_i32 = arith.constant 0 : i32
    %c0_i32_0 = arith.constant 0 : i32
    return %c0_i32, %arg1 : i32, i32
  }
  func.func @transform_4(%arg0: i32, %arg1: i32) -> (i32, i32) {
    %c0_i32 = arith.constant 0 : i32
    return %arg0, %arg1 : i32, i32
  }
}

module attributes {stable_mosaic.version = 11 : i64} {
  func.func @_gemm_kernel_single_k(%arg0: i32, %arg1: i32, %arg2: memref<128x576xbf16, #tpu.memory_space<vmem>>, %arg3: memref<576x128xbf16, #tpu.memory_space<vmem>>, %arg4: memref<1x128xf32, #tpu.memory_space<vmem>>, %arg5: memref<1x128xf32, #tpu.memory_space<vmem>>, %arg6: memref<128x128xbf16, #tpu.memory_space<vmem>>, %arg7: memref<128x128xbf16, #tpu.memory_space<vmem>>) attributes {dimension_semantics = [#tpu.dimension_semantics<parallel>, #tpu.dimension_semantics<parallel>], iteration_bounds = array<i64: 1, 1>, scalar_prefetch = 0 : i64, scratch_operands = 0 : i64, tpu.core_type = #tpu.core_type<tc>, window_params = [{transform_indices = @transform_0, window_bounds = array<i64: 128, 576>}, {transform_indices = @transform_1, window_bounds = array<i64: 576, 128>}, {transform_indices = @transform_2, window_bounds = array<i64: 1, 128>}, {transform_indices = @transform_3, window_bounds = array<i64: 1, 128>}, {transform_indices = @transform_4, window_bounds = array<i64: 128, 128>}, {transform_indices = @transform_5, window_bounds = array<i64: 128, 128>}]} {
    %c0 = arith.constant 0 : index
    %c0_0 = arith.constant 0 : index
    %0 = vector.load %arg2[%c0, %c0_0] : memref<128x576xbf16, #tpu.memory_space<vmem>>, vector<128x576xbf16>
    %c0_1 = arith.constant 0 : index
    %c0_2 = arith.constant 0 : index
    %1 = vector.load %arg3[%c0_1, %c0_2] : memref<576x128xbf16, #tpu.memory_space<vmem>>, vector<576x128xbf16>
    %cst = arith.constant dense<0.000000e+00> : vector<128x128xf32>
    %2 = tpu.matmul %0, %1, %cst {dimension_numbers = #tpu.dot_dimension_numbers<[1], [0], [0], [1], [0, 0, 1, 1], [], []>} : vector<128x576xbf16>, vector<576x128xbf16>, vector<128x128xf32> -> vector<128x128xf32>
    %c0_3 = arith.constant 0 : index
    %c0_4 = arith.constant 0 : index
    %3 = vector.load %arg4[%c0_3, %c0_4] : memref<1x128xf32, #tpu.memory_space<vmem>>, vector<1x128xf32>
    %4 = vector.broadcast %3 : vector<1x128xf32> to vector<128x128xf32>
    %5 = arith.mulf %2, %4 : vector<128x128xf32>
    %c0_5 = arith.constant 0 : index
    %c0_6 = arith.constant 0 : index
    %6 = vector.load %arg5[%c0_5, %c0_6] : memref<1x128xf32, #tpu.memory_space<vmem>>, vector<1x128xf32>
    %7 = vector.broadcast %6 : vector<1x128xf32> to vector<128x128xf32>
    %8 = arith.addf %5, %7 : vector<128x128xf32>
    %c0_7 = arith.constant 0 : index
    %c0_8 = arith.constant 0 : index
    %9 = vector.load %arg6[%c0_7, %c0_8] : memref<128x128xbf16, #tpu.memory_space<vmem>>, vector<128x128xbf16>
    %10 = arith.extf %9 : vector<128x128xbf16> to vector<128x128xf32>
    %11 = arith.addf %8, %10 : vector<128x128xf32>
    %cst_9 = arith.constant 0.000000e+00 : f32
    %12 = vector.broadcast %cst_9 : f32 to vector<128x128xf32>
    %13 = arith.maximumf %11, %12 : vector<128x128xf32>
    %14 = arith.truncf %13 : vector<128x128xf32> to vector<128x128xbf16>
    %c0_10 = arith.constant 0 : index
    %c0_11 = arith.constant 0 : index
    %15 = vector.load %arg7[%c0_10, %c0_11] : memref<128x128xbf16, #tpu.memory_space<vmem>>, vector<128x128xbf16>
    tpu.vector_store %arg7[%c0_10, %c0_11], %14 {strides = array<i32>} : memref<128x128xbf16, #tpu.memory_space<vmem>>, vector<128x128xbf16>,
    return
  }
  func.func @transform_0(%arg0: i32, %arg1: i32) -> (i32, i32) {
    %c0_i32 = arith.constant 0 : i32
    %c0_i32_0 = arith.constant 0 : i32
    return %arg0, %c0_i32 : i32, i32
  }
  func.func @transform_1(%arg0: i32, %arg1: i32) -> (i32, i32) {
    %c0_i32 = arith.constant 0 : i32
    %c0_i32_0 = arith.constant 0 : i32
    return %c0_i32, %arg1 : i32, i32
  }
  func.func @transform_2(%arg0: i32, %arg1: i32) -> (i32, i32) {
    %c0_i32 = arith.constant 0 : i32
    %c0_i32_0 = arith.constant 0 : i32
    return %c0_i32, %arg1 : i32, i32
  }
  func.func @transform_3(%arg0: i32, %arg1: i32) -> (i32, i32) {
    %c0_i32 = arith.constant 0 : i32
    %c0_i32_0 = arith.constant 0 : i32
    return %c0_i32, %arg1 : i32, i32
  }
  func.func @transform_4(%arg0: i32, %arg1: i32) -> (i32, i32) {
    %c0_i32 = arith.constant 0 : i32
    return %arg0, %arg1 : i32, i32
  }
  func.func @transform_5(%arg0: i32, %arg1: i32) -> (i32, i32) {
    %c0_i32 = arith.constant 0 : i32
    return %arg0, %arg1 : i32, i32
  }
}

module attributes {stable_mosaic.version = 11 : i64} {
  func.func @_gemm_kernel_single_k(%arg0: i32, %arg1: i32, %arg2: memref<32x576xbf16, #tpu.memory_space<vmem>>, %arg3: memref<576x128xbf16, #tpu.memory_space<vmem>>, %arg4: memref<1x128xf32, #tpu.memory_space<vmem>>, %arg5: memref<1x128xf32, #tpu.memory_space<vmem>>, %arg6: memref<32x128xbf16, #tpu.memory_space<vmem>>) attributes {dimension_semantics = [#tpu.dimension_semantics<parallel>, #tpu.dimension_semantics<parallel>], iteration_bounds = array<i64: 1, 1>, scalar_prefetch = 0 : i64, scratch_operands = 0 : i64, tpu.core_type = #tpu.core_type<tc>, window_params = [{transform_indices = @transform_0, window_bounds = array<i64: 32, 576>}, {transform_indices = @transform_1, window_bounds = array<i64: 576, 128>}, {transform_indices = @transform_2, window_bounds = array<i64: 1, 128>}, {transform_indices = @transform_3, window_bounds = array<i64: 1, 128>}, {transform_indices = @transform_4, window_bounds = array<i64: 32, 128>}]} {
    %c0 = arith.constant 0 : index
    %c0_0 = arith.constant 0 : index
    %0 = vector.load %arg2[%c0, %c0_0] : memref<32x576xbf16, #tpu.memory_space<vmem>>, vector<32x576xbf16>
    %c0_1 = arith.constant 0 : index
    %c0_2 = arith.constant 0 : index
    %1 = vector.load %arg3[%c0_1, %c0_2] : memref<576x128xbf16, #tpu.memory_space<vmem>>, vector<576x128xbf16>
    %cst = arith.constant dense<0.000000e+00> : vector<32x128xf32>
    %2 = tpu.matmul %0, %1, %cst {dimension_numbers = #tpu.dot_dimension_numbers<[1], [0], [0], [1], [0, 0, 1, 1], [], []>} : vector<32x576xbf16>, vector<576x128xbf16>, vector<32x128xf32> -> vector<32x128xf32>
    %c0_3 = arith.constant 0 : index
    %c0_4 = arith.constant 0 : index
    %3 = vector.load %arg4[%c0_3, %c0_4] : memref<1x128xf32, #tpu.memory_space<vmem>>, vector<1x128xf32>
    %4 = vector.broadcast %3 : vector<1x128xf32> to vector<32x128xf32>
    %5 = arith.mulf %2, %4 : vector<32x128xf32>
    %c0_5 = arith.constant 0 : index
    %c0_6 = arith.constant 0 : index
    %6 = vector.load %arg5[%c0_5, %c0_6] : memref<1x128xf32, #tpu.memory_space<vmem>>, vector<1x128xf32>
    %7 = vector.broadcast %6 : vector<1x128xf32> to vector<32x128xf32>
    %8 = arith.addf %5, %7 : vector<32x128xf32>
    %cst_7 = arith.constant 0.000000e+00 : f32
    %9 = vector.broadcast %cst_7 : f32 to vector<32x128xf32>
    %10 = arith.maximumf %8, %9 : vector<32x128xf32>
    %11 = arith.truncf %10 : vector<32x128xf32> to vector<32x128xbf16>
    %c0_8 = arith.constant 0 : index
    %c0_9 = arith.constant 0 : index
    %12 = vector.load %arg6[%c0_8, %c0_9] : memref<32x128xbf16, #tpu.memory_space<vmem>>, vector<32x128xbf16>
    tpu.vector_store %arg6[%c0_8, %c0_9], %11 {strides = array<i32>} : memref<32x128xbf16, #tpu.memory_space<vmem>>, vector<32x128xbf16>,
    return
  }
  func.func @transform_0(%arg0: i32, %arg1: i32) -> (i32, i32) {
    %c0_i32 = arith.constant 0 : i32
    %c0_i32_0 = arith.constant 0 : i32
    return %arg0, %c0_i32 : i32, i32
  }
  func.func @transform_1(%arg0: i32, %arg1: i32) -> (i32, i32) {
    %c0_i32 = arith.constant 0 : i32
    %c0_i32_0 = arith.constant 0 : i32
    return %c0_i32, %arg1 : i32, i32
  }
  func.func @transform_2(%arg0: i32, %arg1: i32) -> (i32, i32) {
    %c0_i32 = arith.constant 0 : i32
    %c0_i32_0 = arith.constant 0 : i32
    return %c0_i32, %arg1 : i32, i32
  }
  func.func @transform_3(%arg0: i32, %arg1: i32) -> (i32, i32) {
    %c0_i32 = arith.constant 0 : i32
    %c0_i32_0 = arith.constant 0 : i32
    return %c0_i32, %arg1 : i32, i32
  }
  func.func @transform_4(%arg0: i32, %arg1: i32) -> (i32, i32) {
    %c0_i32 = arith.constant 0 : i32
    return %arg0, %arg1 : i32, i32
  }
}

module attributes {stable_mosaic.version = 11 : i64} {
  func.func @_gemm_kernel_single_k(%arg0: i32, %arg1: i32, %arg2: memref<32x64xbf16, #tpu.memory_space<vmem>>, %arg3: memref<64x128xbf16, #tpu.memory_space<vmem>>, %arg4: memref<1x128xf32, #tpu.memory_space<vmem>>, %arg5: memref<1x128xf32, #tpu.memory_space<vmem>>, %arg6: memref<32x128xbf16, #tpu.memory_space<vmem>>) attributes {dimension_semantics = [#tpu.dimension_semantics<parallel>, #tpu.dimension_semantics<parallel>], iteration_bounds = array<i64: 1, 1>, scalar_prefetch = 0 : i64, scratch_operands = 0 : i64, tpu.core_type = #tpu.core_type<tc>, window_params = [{transform_indices = @transform_0, window_bounds = array<i64: 32, 64>}, {transform_indices = @transform_1, window_bounds = array<i64: 64, 128>}, {transform_indices = @transform_2, window_bounds = array<i64: 1, 128>}, {transform_indices = @transform_3, window_bounds = array<i64: 1, 128>}, {transform_indices = @transform_4, window_bounds = array<i64: 32, 128>}]} {
    %c0 = arith.constant 0 : index
    %c0_0 = arith.constant 0 : index
    %0 = vector.load %arg2[%c0, %c0_0] : memref<32x64xbf16, #tpu.memory_space<vmem>>, vector<32x64xbf16>
    %c0_1 = arith.constant 0 : index
    %c0_2 = arith.constant 0 : index
    %1 = vector.load %arg3[%c0_1, %c0_2] : memref<64x128xbf16, #tpu.memory_space<vmem>>, vector<64x128xbf16>
    %cst = arith.constant dense<0.000000e+00> : vector<32x128xf32>
    %2 = tpu.matmul %0, %1, %cst {dimension_numbers = #tpu.dot_dimension_numbers<[1], [0], [0], [1], [0, 0, 1, 1], [], []>} : vector<32x64xbf16>, vector<64x128xbf16>, vector<32x128xf32> -> vector<32x128xf32>
    %c0_3 = arith.constant 0 : index
    %c0_4 = arith.constant 0 : index
    %3 = vector.load %arg4[%c0_3, %c0_4] : memref<1x128xf32, #tpu.memory_space<vmem>>, vector<1x128xf32>
    %4 = vector.broadcast %3 : vector<1x128xf32> to vector<32x128xf32>
    %5 = arith.mulf %2, %4 : vector<32x128xf32>
    %c0_5 = arith.constant 0 : index
    %c0_6 = arith.constant 0 : index
    %6 = vector.load %arg5[%c0_5, %c0_6] : memref<1x128xf32, #tpu.memory_space<vmem>>, vector<1x128xf32>
    %7 = vector.broadcast %6 : vector<1x128xf32> to vector<32x128xf32>
    %8 = arith.addf %5, %7 : vector<32x128xf32>
    %9 = arith.truncf %8 : vector<32x128xf32> to vector<32x128xbf16>
    %c0_7 = arith.constant 0 : index
    %c0_8 = arith.constant 0 : index
    %10 = vector.load %arg6[%c0_7, %c0_8] : memref<32x128xbf16, #tpu.memory_space<vmem>>, vector<32x128xbf16>
    tpu.vector_store %arg6[%c0_7, %c0_8], %9 {strides = array<i32>} : memref<32x128xbf16, #tpu.memory_space<vmem>>, vector<32x128xbf16>,
    return
  }
  func.func @transform_0(%arg0: i32, %arg1: i32) -> (i32, i32) {
    %c0_i32 = arith.constant 0 : i32
    %c0_i32_0 = arith.constant 0 : i32
    return %arg0, %c0_i32 : i32, i32
  }
  func.func @transform_1(%arg0: i32, %arg1: i32) -> (i32, i32) {
    %c0_i32 = arith.constant 0 : i32
    %c0_i32_0 = arith.constant 0 : i32
    return %c0_i32, %arg1 : i32, i32
  }
  func.func @transform_2(%arg0: i32, %arg1: i32) -> (i32, i32) {
    %c0_i32 = arith.constant 0 : i32
    %c0_i32_0 = arith.constant 0 : i32
    return %c0_i32, %arg1 : i32, i32
  }
  func.func @transform_3(%arg0: i32, %arg1: i32) -> (i32, i32) {
    %c0_i32 = arith.constant 0 : i32
    %c0_i32_0 = arith.constant 0 : i32
    return %c0_i32, %arg1 : i32, i32
  }
  func.func @transform_4(%arg0: i32, %arg1: i32) -> (i32, i32) {
    %c0_i32 = arith.constant 0 : i32
    return %arg0, %arg1 : i32, i32
  }
}

module attributes {stable_mosaic.version = 11 : i64} {
  func.func @_gemm_kernel_multi_k(%arg0: i32, %arg1: i32, %arg2: i32, %arg3: memref<32x384xbf16, #tpu.memory_space<vmem>>, %arg4: memref<384x128xbf16, #tpu.memory_space<vmem>>, %arg5: memref<1x128xf32, #tpu.memory_space<vmem>>, %arg6: memref<1x128xf32, #tpu.memory_space<vmem>>, %arg7: memref<32x128xbf16, #tpu.memory_space<vmem>>, %arg8: memref<32x128xbf16, #tpu.memory_space<vmem>>, %arg9: memref<32x128xf32, #tpu.memory_space<vmem>>) attributes {dimension_semantics = [#tpu.dimension_semantics<parallel>, #tpu.dimension_semantics<parallel>, #tpu.dimension_semantics<arbitrary>], iteration_bounds = array<i64: 1, 1, 3>, scalar_prefetch = 0 : i64, scratch_operands = 1 : i64, tpu.core_type = #tpu.core_type<tc>, window_params = [{transform_indices = @transform_0, window_bounds = array<i64: 32, 384>}, {transform_indices = @transform_1, window_bounds = array<i64: 384, 128>}, {transform_indices = @transform_2, window_bounds = array<i64: 1, 128>}, {transform_indices = @transform_3, window_bounds = array<i64: 1, 128>}, {transform_indices = @transform_4, window_bounds = array<i64: 32, 128>}, {transform_indices = @transform_5, window_bounds = array<i64: 32, 128>}]} {
    %c0_i32 = arith.constant 0 : i32
    %0 = arith.cmpi eq, %arg2, %c0_i32 : i32
    %1 = arith.extui %0 : i1 to i32
    %c0_i32_0 = arith.constant 0 : i32
    %2 = arith.cmpi ne, %1, %c0_i32_0 : i32
    scf.if %2 {
      %cst_9 = arith.constant 0.000000e+00 : f32
      %12 = vector.broadcast %cst_9 : f32 to vector<32x128xf32>
      %c0_10 = arith.constant 0 : index
      %c0_11 = arith.constant 0 : index
      %13 = vector.load %arg9[%c0_10, %c0_11] : memref<32x128xf32, #tpu.memory_space<vmem>>, vector<32x128xf32>
      tpu.vector_store %arg9[%c0_10, %c0_11], %12 {strides = array<i32>} : memref<32x128xf32, #tpu.memory_space<vmem>>, vector<32x128xf32>,
    } else {
    }
    %c0 = arith.constant 0 : index
    %c0_1 = arith.constant 0 : index
    %3 = vector.load %arg9[%c0, %c0_1] : memref<32x128xf32, #tpu.memory_space<vmem>>, vector<32x128xf32>
    %c0_2 = arith.constant 0 : index
    %c0_3 = arith.constant 0 : index
    %4 = vector.load %arg3[%c0_2, %c0_3] : memref<32x384xbf16, #tpu.memory_space<vmem>>, vector<32x384xbf16>
    %c0_4 = arith.constant 0 : index
    %c0_5 = arith.constant 0 : index
    %5 = vector.load %arg4[%c0_4, %c0_5] : memref<384x128xbf16, #tpu.memory_space<vmem>>, vector<384x128xbf16>
    %cst = arith.constant dense<0.000000e+00> : vector<32x128xf32>
    %6 = tpu.matmul %4, %5, %cst {dimension_numbers = #tpu.dot_dimension_numbers<[1], [0], [0], [1], [0, 0, 1, 1], [], []>} : vector<32x384xbf16>, vector<384x128xbf16>, vector<32x128xf32> -> vector<32x128xf32>
    %7 = arith.addf %3, %6 : vector<32x128xf32>
    %c0_6 = arith.constant 0 : index
    %c0_7 = arith.constant 0 : index
    %8 = vector.load %arg9[%c0_6, %c0_7] : memref<32x128xf32, #tpu.memory_space<vmem>>, vector<32x128xf32>
    tpu.vector_store %arg9[%c0_6, %c0_7], %7 {strides = array<i32>} : memref<32x128xf32, #tpu.memory_space<vmem>>, vector<32x128xf32>,
    %c2_i32 = arith.constant 2 : i32
    %9 = arith.cmpi eq, %arg2, %c2_i32 : i32
    %10 = arith.extui %9 : i1 to i32
    %c0_i32_8 = arith.constant 0 : i32
    %11 = arith.cmpi ne, %10, %c0_i32_8 : i32
    scf.if %11 {
      %c0_9 = arith.constant 0 : index
      %c0_10 = arith.constant 0 : index
      %12 = vector.load %arg9[%c0_9, %c0_10] : memref<32x128xf32, #tpu.memory_space<vmem>>, vector<32x128xf32>
      %c0_11 = arith.constant 0 : index
      %c0_12 = arith.constant 0 : index
      %13 = vector.load %arg5[%c0_11, %c0_12] : memref<1x128xf32, #tpu.memory_space<vmem>>, vector<1x128xf32>
      %14 = vector.broadcast %13 : vector<1x128xf32> to vector<32x128xf32>
      %15 = arith.mulf %12, %14 : vector<32x128xf32>
      %c0_13 = arith.constant 0 : index
      %c0_14 = arith.constant 0 : index
      %16 = vector.load %arg6[%c0_13, %c0_14] : memref<1x128xf32, #tpu.memory_space<vmem>>, vector<1x128xf32>
      %17 = vector.broadcast %16 : vector<1x128xf32> to vector<32x128xf32>
      %18 = arith.addf %15, %17 : vector<32x128xf32>
      %c0_15 = arith.constant 0 : index
      %c0_16 = arith.constant 0 : index
      %19 = vector.load %arg7[%c0_15, %c0_16] : memref<32x128xbf16, #tpu.memory_space<vmem>>, vector<32x128xbf16>
      %20 = arith.extf %19 : vector<32x128xbf16> to vector<32x128xf32>
      %21 = arith.addf %18, %20 : vector<32x128xf32>
      %cst_17 = arith.constant 0.000000e+00 : f32
      %22 = vector.broadcast %cst_17 : f32 to vector<32x128xf32>
      %23 = arith.maximumf %21, %22 : vector<32x128xf32>
      %24 = arith.truncf %23 : vector<32x128xf32> to vector<32x128xbf16>
      %c0_18 = arith.constant 0 : index
      %c0_19 = arith.constant 0 : index
      %25 = vector.load %arg8[%c0_18, %c0_19] : memref<32x128xbf16, #tpu.memory_space<vmem>>, vector<32x128xbf16>
      tpu.vector_store %arg8[%c0_18, %c0_19], %24 {strides = array<i32>} : memref<32x128xbf16, #tpu.memory_space<vmem>>, vector<32x128xbf16>,
    } else {
    }
    return
  }
  func.func @transform_0(%arg0: i32, %arg1: i32, %arg2: i32) -> (i32, i32) {
    %c0_i32 = arith.constant 0 : i32
    return %arg0, %arg2 : i32, i32
  }
  func.func @transform_1(%arg0: i32, %arg1: i32, %arg2: i32) -> (i32, i32) {
    %c0_i32 = arith.constant 0 : i32
    return %arg2, %arg1 : i32, i32
  }
  func.func @transform_2(%arg0: i32, %arg1: i32, %arg2: i32) -> (i32, i32) {
    %c0_i32 = arith.constant 0 : i32
    %c0_i32_0 = arith.constant 0 : i32
    return %c0_i32, %arg1 : i32, i32
  }
  func.func @transform_3(%arg0: i32, %arg1: i32, %arg2: i32) -> (i32, i32) {
    %c0_i32 = arith.constant 0 : i32
    %c0_i32_0 = arith.constant 0 : i32
    return %c0_i32, %arg1 : i32, i32
  }
  func.func @transform_4(%arg0: i32, %arg1: i32, %arg2: i32) -> (i32, i32) {
    %c0_i32 = arith.constant 0 : i32
    return %arg0, %arg1 : i32, i32
  }
  func.func @transform_5(%arg0: i32, %arg1: i32, %arg2: i32) -> (i32, i32) {
    %c0_i32 = arith.constant 0 : i32
    return %arg0, %arg1 : i32, i32
  }
}

module attributes {stable_mosaic.version = 11 : i64} {
  func.func @_gemm_kernel_multi_k(%arg0: i32, %arg1: i32, %arg2: i32, %arg3: memref<32x384xbf16, #tpu.memory_space<vmem>>, %arg4: memref<384x128xbf16, #tpu.memory_space<vmem>>, %arg5: memref<1x128xf32, #tpu.memory_space<vmem>>, %arg6: memref<1x128xf32, #tpu.memory_space<vmem>>, %arg7: memref<32x128xbf16, #tpu.memory_space<vmem>>, %arg8: memref<32x128xf32, #tpu.memory_space<vmem>>) attributes {dimension_semantics = [#tpu.dimension_semantics<parallel>, #tpu.dimension_semantics<parallel>, #tpu.dimension_semantics<arbitrary>], iteration_bounds = array<i64: 1, 1, 3>, scalar_prefetch = 0 : i64, scratch_operands = 1 : i64, tpu.core_type = #tpu.core_type<tc>, window_params = [{transform_indices = @transform_0, window_bounds = array<i64: 32, 384>}, {transform_indices = @transform_1, window_bounds = array<i64: 384, 128>}, {transform_indices = @transform_2, window_bounds = array<i64: 1, 128>}, {transform_indices = @transform_3, window_bounds = array<i64: 1, 128>}, {transform_indices = @transform_4, window_bounds = array<i64: 32, 128>}]} {
    %c0_i32 = arith.constant 0 : i32
    %0 = arith.cmpi eq, %arg2, %c0_i32 : i32
    %1 = arith.extui %0 : i1 to i32
    %c0_i32_0 = arith.constant 0 : i32
    %2 = arith.cmpi ne, %1, %c0_i32_0 : i32
    scf.if %2 {
      %cst_9 = arith.constant 0.000000e+00 : f32
      %12 = vector.broadcast %cst_9 : f32 to vector<32x128xf32>
      %c0_10 = arith.constant 0 : index
      %c0_11 = arith.constant 0 : index
      %13 = vector.load %arg8[%c0_10, %c0_11] : memref<32x128xf32, #tpu.memory_space<vmem>>, vector<32x128xf32>
      tpu.vector_store %arg8[%c0_10, %c0_11], %12 {strides = array<i32>} : memref<32x128xf32, #tpu.memory_space<vmem>>, vector<32x128xf32>,
    } else {
    }
    %c0 = arith.constant 0 : index
    %c0_1 = arith.constant 0 : index
    %3 = vector.load %arg8[%c0, %c0_1] : memref<32x128xf32, #tpu.memory_space<vmem>>, vector<32x128xf32>
    %c0_2 = arith.constant 0 : index
    %c0_3 = arith.constant 0 : index
    %4 = vector.load %arg3[%c0_2, %c0_3] : memref<32x384xbf16, #tpu.memory_space<vmem>>, vector<32x384xbf16>
    %c0_4 = arith.constant 0 : index
    %c0_5 = arith.constant 0 : index
    %5 = vector.load %arg4[%c0_4, %c0_5] : memref<384x128xbf16, #tpu.memory_space<vmem>>, vector<384x128xbf16>
    %cst = arith.constant dense<0.000000e+00> : vector<32x128xf32>
    %6 = tpu.matmul %4, %5, %cst {dimension_numbers = #tpu.dot_dimension_numbers<[1], [0], [0], [1], [0, 0, 1, 1], [], []>} : vector<32x384xbf16>, vector<384x128xbf16>, vector<32x128xf32> -> vector<32x128xf32>
    %7 = arith.addf %3, %6 : vector<32x128xf32>
    %c0_6 = arith.constant 0 : index
    %c0_7 = arith.constant 0 : index
    %8 = vector.load %arg8[%c0_6, %c0_7] : memref<32x128xf32, #tpu.memory_space<vmem>>, vector<32x128xf32>
    tpu.vector_store %arg8[%c0_6, %c0_7], %7 {strides = array<i32>} : memref<32x128xf32, #tpu.memory_space<vmem>>, vector<32x128xf32>,
    %c2_i32 = arith.constant 2 : i32
    %9 = arith.cmpi eq, %arg2, %c2_i32 : i32
    %10 = arith.extui %9 : i1 to i32
    %c0_i32_8 = arith.constant 0 : i32
    %11 = arith.cmpi ne, %10, %c0_i32_8 : i32
    scf.if %11 {
      %c0_9 = arith.constant 0 : index
      %c0_10 = arith.constant 0 : index
      %12 = vector.load %arg8[%c0_9, %c0_10] : memref<32x128xf32, #tpu.memory_space<vmem>>, vector<32x128xf32>
      %c0_11 = arith.constant 0 : index
      %c0_12 = arith.constant 0 : index
      %13 = vector.load %arg5[%c0_11, %c0_12] : memref<1x128xf32, #tpu.memory_space<vmem>>, vector<1x128xf32>
      %14 = vector.broadcast %13 : vector<1x128xf32> to vector<32x128xf32>
      %15 = arith.mulf %12, %14 : vector<32x128xf32>
      %c0_13 = arith.constant 0 : index
      %c0_14 = arith.constant 0 : index
      %16 = vector.load %arg6[%c0_13, %c0_14] : memref<1x128xf32, #tpu.memory_space<vmem>>, vector<1x128xf32>
      %17 = vector.broadcast %16 : vector<1x128xf32> to vector<32x128xf32>
      %18 = arith.addf %15, %17 : vector<32x128xf32>
      %cst_15 = arith.constant 0.000000e+00 : f32
      %19 = vector.broadcast %cst_15 : f32 to vector<32x128xf32>
      %20 = arith.maximumf %18, %19 : vector<32x128xf32>
      %21 = arith.truncf %20 : vector<32x128xf32> to vector<32x128xbf16>
      %c0_16 = arith.constant 0 : index
      %c0_17 = arith.constant 0 : index
      %22 = vector.load %arg7[%c0_16, %c0_17] : memref<32x128xbf16, #tpu.memory_space<vmem>>, vector<32x128xbf16>
      tpu.vector_store %arg7[%c0_16, %c0_17], %21 {strides = array<i32>} : memref<32x128xbf16, #tpu.memory_space<vmem>>, vector<32x128xbf16>,
    } else {
    }
    return
  }
  func.func @transform_0(%arg0: i32, %arg1: i32, %arg2: i32) -> (i32, i32) {
    %c0_i32 = arith.constant 0 : i32
    return %arg0, %arg2 : i32, i32
  }
  func.func @transform_1(%arg0: i32, %arg1: i32, %arg2: i32) -> (i32, i32) {
    %c0_i32 = arith.constant 0 : i32
    return %arg2, %arg1 : i32, i32
  }
  func.func @transform_2(%arg0: i32, %arg1: i32, %arg2: i32) -> (i32, i32) {
    %c0_i32 = arith.constant 0 : i32
    %c0_i32_0 = arith.constant 0 : i32
    return %c0_i32, %arg1 : i32, i32
  }
  func.func @transform_3(%arg0: i32, %arg1: i32, %arg2: i32) -> (i32, i32) {
    %c0_i32 = arith.constant 0 : i32
    %c0_i32_0 = arith.constant 0 : i32
    return %c0_i32, %arg1 : i32, i32
  }
  func.func @transform_4(%arg0: i32, %arg1: i32, %arg2: i32) -> (i32, i32) {
    %c0_i32 = arith.constant 0 : i32
    return %arg0, %arg1 : i32, i32
  }
}

module attributes {stable_mosaic.version = 11 : i64} {
  func.func @_gemm_kernel_multi_k(%arg0: i32, %arg1: i32, %arg2: i32, %arg3: memref<8x384xbf16, #tpu.memory_space<vmem>>, %arg4: memref<384x256xbf16, #tpu.memory_space<vmem>>, %arg5: memref<1x256xf32, #tpu.memory_space<vmem>>, %arg6: memref<1x256xf32, #tpu.memory_space<vmem>>, %arg7: memref<8x256xbf16, #tpu.memory_space<vmem>>, %arg8: memref<8x256xf32, #tpu.memory_space<vmem>>) attributes {dimension_semantics = [#tpu.dimension_semantics<parallel>, #tpu.dimension_semantics<parallel>, #tpu.dimension_semantics<arbitrary>], iteration_bounds = array<i64: 1, 1, 3>, scalar_prefetch = 0 : i64, scratch_operands = 1 : i64, tpu.core_type = #tpu.core_type<tc>, window_params = [{transform_indices = @transform_0, window_bounds = array<i64: 8, 384>}, {transform_indices = @transform_1, window_bounds = array<i64: 384, 256>}, {transform_indices = @transform_2, window_bounds = array<i64: 1, 256>}, {transform_indices = @transform_3, window_bounds = array<i64: 1, 256>}, {transform_indices = @transform_4, window_bounds = array<i64: 8, 256>}]} {
    %c0_i32 = arith.constant 0 : i32
    %0 = arith.cmpi eq, %arg2, %c0_i32 : i32
    %1 = arith.extui %0 : i1 to i32
    %c0_i32_0 = arith.constant 0 : i32
    %2 = arith.cmpi ne, %1, %c0_i32_0 : i32
    scf.if %2 {
      %cst_9 = arith.constant 0.000000e+00 : f32
      %12 = vector.broadcast %cst_9 : f32 to vector<8x256xf32>
      %c0_10 = arith.constant 0 : index
      %c0_11 = arith.constant 0 : index
      %13 = vector.load %arg8[%c0_10, %c0_11] : memref<8x256xf32, #tpu.memory_space<vmem>>, vector<8x256xf32>
      tpu.vector_store %arg8[%c0_10, %c0_11], %12 {strides = array<i32>} : memref<8x256xf32, #tpu.memory_space<vmem>>, vector<8x256xf32>,
    } else {
    }
    %c0 = arith.constant 0 : index
    %c0_1 = arith.constant 0 : index
    %3 = vector.load %arg8[%c0, %c0_1] : memref<8x256xf32, #tpu.memory_space<vmem>>, vector<8x256xf32>
    %c0_2 = arith.constant 0 : index
    %c0_3 = arith.constant 0 : index
    %4 = vector.load %arg3[%c0_2, %c0_3] : memref<8x384xbf16, #tpu.memory_space<vmem>>, vector<8x384xbf16>
    %c0_4 = arith.constant 0 : index
    %c0_5 = arith.constant 0 : index
    %5 = vector.load %arg4[%c0_4, %c0_5] : memref<384x256xbf16, #tpu.memory_space<vmem>>, vector<384x256xbf16>
    %cst = arith.constant dense<0.000000e+00> : vector<8x256xf32>
    %6 = tpu.matmul %4, %5, %cst {dimension_numbers = #tpu.dot_dimension_numbers<[1], [0], [0], [1], [0, 0, 1, 1], [], []>} : vector<8x384xbf16>, vector<384x256xbf16>, vector<8x256xf32> -> vector<8x256xf32>
    %7 = arith.addf %3, %6 : vector<8x256xf32>
    %c0_6 = arith.constant 0 : index
    %c0_7 = arith.constant 0 : index
    %8 = vector.load %arg8[%c0_6, %c0_7] : memref<8x256xf32, #tpu.memory_space<vmem>>, vector<8x256xf32>
    tpu.vector_store %arg8[%c0_6, %c0_7], %7 {strides = array<i32>} : memref<8x256xf32, #tpu.memory_space<vmem>>, vector<8x256xf32>,
    %c2_i32 = arith.constant 2 : i32
    %9 = arith.cmpi eq, %arg2, %c2_i32 : i32
    %10 = arith.extui %9 : i1 to i32
    %c0_i32_8 = arith.constant 0 : i32
    %11 = arith.cmpi ne, %10, %c0_i32_8 : i32
    scf.if %11 {
      %c0_9 = arith.constant 0 : index
      %c0_10 = arith.constant 0 : index
      %12 = vector.load %arg8[%c0_9, %c0_10] : memref<8x256xf32, #tpu.memory_space<vmem>>, vector<8x256xf32>
      %c0_11 = arith.constant 0 : index
      %c0_12 = arith.constant 0 : index
      %13 = vector.load %arg5[%c0_11, %c0_12] : memref<1x256xf32, #tpu.memory_space<vmem>>, vector<1x256xf32>
      %14 = vector.broadcast %13 : vector<1x256xf32> to vector<8x256xf32>
      %15 = arith.mulf %12, %14 : vector<8x256xf32>
      %c0_13 = arith.constant 0 : index
      %c0_14 = arith.constant 0 : index
      %16 = vector.load %arg6[%c0_13, %c0_14] : memref<1x256xf32, #tpu.memory_space<vmem>>, vector<1x256xf32>
      %17 = vector.broadcast %16 : vector<1x256xf32> to vector<8x256xf32>
      %18 = arith.addf %15, %17 : vector<8x256xf32>
      %cst_15 = arith.constant 0.000000e+00 : f32
      %19 = vector.broadcast %cst_15 : f32 to vector<8x256xf32>
      %20 = arith.maximumf %18, %19 : vector<8x256xf32>
      %21 = arith.truncf %20 : vector<8x256xf32> to vector<8x256xbf16>
      %c0_16 = arith.constant 0 : index
      %c0_17 = arith.constant 0 : index
      %22 = vector.load %arg7[%c0_16, %c0_17] : memref<8x256xbf16, #tpu.memory_space<vmem>>, vector<8x256xbf16>
      tpu.vector_store %arg7[%c0_16, %c0_17], %21 {strides = array<i32>} : memref<8x256xbf16, #tpu.memory_space<vmem>>, vector<8x256xbf16>,
    } else {
    }
    return
  }
  func.func @transform_0(%arg0: i32, %arg1: i32, %arg2: i32) -> (i32, i32) {
    %c0_i32 = arith.constant 0 : i32
    return %arg0, %arg2 : i32, i32
  }
  func.func @transform_1(%arg0: i32, %arg1: i32, %arg2: i32) -> (i32, i32) {
    %c0_i32 = arith.constant 0 : i32
    return %arg2, %arg1 : i32, i32
  }
  func.func @transform_2(%arg0: i32, %arg1: i32, %arg2: i32) -> (i32, i32) {
    %c0_i32 = arith.constant 0 : i32
    %c0_i32_0 = arith.constant 0 : i32
    return %c0_i32, %arg1 : i32, i32
  }
  func.func @transform_3(%arg0: i32, %arg1: i32, %arg2: i32) -> (i32, i32) {
    %c0_i32 = arith.constant 0 : i32
    %c0_i32_0 = arith.constant 0 : i32
    return %c0_i32, %arg1 : i32, i32
  }
  func.func @transform_4(%arg0: i32, %arg1: i32, %arg2: i32) -> (i32, i32) {
    %c0_i32 = arith.constant 0 : i32
    return %arg0, %arg1 : i32, i32
  }
}

module attributes {stable_mosaic.version = 11 : i64} {
  func.func @_gemm_kernel_multi_k(%arg0: i32, %arg1: i32, %arg2: i32, %arg3: memref<8x384xbf16, #tpu.memory_space<vmem>>, %arg4: memref<384x256xbf16, #tpu.memory_space<vmem>>, %arg5: memref<1x256xf32, #tpu.memory_space<vmem>>, %arg6: memref<1x256xf32, #tpu.memory_space<vmem>>, %arg7: memref<8x256xbf16, #tpu.memory_space<vmem>>, %arg8: memref<8x256xbf16, #tpu.memory_space<vmem>>, %arg9: memref<8x256xf32, #tpu.memory_space<vmem>>) attributes {dimension_semantics = [#tpu.dimension_semantics<parallel>, #tpu.dimension_semantics<parallel>, #tpu.dimension_semantics<arbitrary>], iteration_bounds = array<i64: 1, 1, 6>, scalar_prefetch = 0 : i64, scratch_operands = 1 : i64, tpu.core_type = #tpu.core_type<tc>, window_params = [{transform_indices = @transform_0, window_bounds = array<i64: 8, 384>}, {transform_indices = @transform_1, window_bounds = array<i64: 384, 256>}, {transform_indices = @transform_2, window_bounds = array<i64: 1, 256>}, {transform_indices = @transform_3, window_bounds = array<i64: 1, 256>}, {transform_indices = @transform_4, window_bounds = array<i64: 8, 256>}, {transform_indices = @transform_5, window_bounds = array<i64: 8, 256>}]} {
    %c0_i32 = arith.constant 0 : i32
    %0 = arith.cmpi eq, %arg2, %c0_i32 : i32
    %1 = arith.extui %0 : i1 to i32
    %c0_i32_0 = arith.constant 0 : i32
    %2 = arith.cmpi ne, %1, %c0_i32_0 : i32
    scf.if %2 {
      %cst_9 = arith.constant 0.000000e+00 : f32
      %12 = vector.broadcast %cst_9 : f32 to vector<8x256xf32>
      %c0_10 = arith.constant 0 : index
      %c0_11 = arith.constant 0 : index
      %13 = vector.load %arg9[%c0_10, %c0_11] : memref<8x256xf32, #tpu.memory_space<vmem>>, vector<8x256xf32>
      tpu.vector_store %arg9[%c0_10, %c0_11], %12 {strides = array<i32>} : memref<8x256xf32, #tpu.memory_space<vmem>>, vector<8x256xf32>,
    } else {
    }
    %c0 = arith.constant 0 : index
    %c0_1 = arith.constant 0 : index
    %3 = vector.load %arg9[%c0, %c0_1] : memref<8x256xf32, #tpu.memory_space<vmem>>, vector<8x256xf32>
    %c0_2 = arith.constant 0 : index
    %c0_3 = arith.constant 0 : index
    %4 = vector.load %arg3[%c0_2, %c0_3] : memref<8x384xbf16, #tpu.memory_space<vmem>>, vector<8x384xbf16>
    %c0_4 = arith.constant 0 : index
    %c0_5 = arith.constant 0 : index
    %5 = vector.load %arg4[%c0_4, %c0_5] : memref<384x256xbf16, #tpu.memory_space<vmem>>, vector<384x256xbf16>
    %cst = arith.constant dense<0.000000e+00> : vector<8x256xf32>
    %6 = tpu.matmul %4, %5, %cst {dimension_numbers = #tpu.dot_dimension_numbers<[1], [0], [0], [1], [0, 0, 1, 1], [], []>} : vector<8x384xbf16>, vector<384x256xbf16>, vector<8x256xf32> -> vector<8x256xf32>
    %7 = arith.addf %3, %6 : vector<8x256xf32>
    %c0_6 = arith.constant 0 : index
    %c0_7 = arith.constant 0 : index
    %8 = vector.load %arg9[%c0_6, %c0_7] : memref<8x256xf32, #tpu.memory_space<vmem>>, vector<8x256xf32>
    tpu.vector_store %arg9[%c0_6, %c0_7], %7 {strides = array<i32>} : memref<8x256xf32, #tpu.memory_space<vmem>>, vector<8x256xf32>,
    %c5_i32 = arith.constant 5 : i32
    %9 = arith.cmpi eq, %arg2, %c5_i32 : i32
    %10 = arith.extui %9 : i1 to i32
    %c0_i32_8 = arith.constant 0 : i32
    %11 = arith.cmpi ne, %10, %c0_i32_8 : i32
    scf.if %11 {
      %c0_9 = arith.constant 0 : index
      %c0_10 = arith.constant 0 : index
      %12 = vector.load %arg9[%c0_9, %c0_10] : memref<8x256xf32, #tpu.memory_space<vmem>>, vector<8x256xf32>
      %c0_11 = arith.constant 0 : index
      %c0_12 = arith.constant 0 : index
      %13 = vector.load %arg5[%c0_11, %c0_12] : memref<1x256xf32, #tpu.memory_space<vmem>>, vector<1x256xf32>
      %14 = vector.broadcast %13 : vector<1x256xf32> to vector<8x256xf32>
      %15 = arith.mulf %12, %14 : vector<8x256xf32>
      %c0_13 = arith.constant 0 : index
      %c0_14 = arith.constant 0 : index
      %16 = vector.load %arg6[%c0_13, %c0_14] : memref<1x256xf32, #tpu.memory_space<vmem>>, vector<1x256xf32>
      %17 = vector.broadcast %16 : vector<1x256xf32> to vector<8x256xf32>
      %18 = arith.addf %15, %17 : vector<8x256xf32>
      %c0_15 = arith.constant 0 : index
      %c0_16 = arith.constant 0 : index
      %19 = vector.load %arg7[%c0_15, %c0_16] : memref<8x256xbf16, #tpu.memory_space<vmem>>, vector<8x256xbf16>
      %20 = arith.extf %19 : vector<8x256xbf16> to vector<8x256xf32>
      %21 = arith.addf %18, %20 : vector<8x256xf32>
      %cst_17 = arith.constant 0.000000e+00 : f32
      %22 = vector.broadcast %cst_17 : f32 to vector<8x256xf32>
      %23 = arith.maximumf %21, %22 : vector<8x256xf32>
      %24 = arith.truncf %23 : vector<8x256xf32> to vector<8x256xbf16>
      %c0_18 = arith.constant 0 : index
      %c0_19 = arith.constant 0 : index
      %25 = vector.load %arg8[%c0_18, %c0_19] : memref<8x256xbf16, #tpu.memory_space<vmem>>, vector<8x256xbf16>
      tpu.vector_store %arg8[%c0_18, %c0_19], %24 {strides = array<i32>} : memref<8x256xbf16, #tpu.memory_space<vmem>>, vector<8x256xbf16>,
    } else {
    }
    return
  }
  func.func @transform_0(%arg0: i32, %arg1: i32, %arg2: i32) -> (i32, i32) {
    %c0_i32 = arith.constant 0 : i32
    return %arg0, %arg2 : i32, i32
  }
  func.func @transform_1(%arg0: i32, %arg1: i32, %arg2: i32) -> (i32, i32) {
    %c0_i32 = arith.constant 0 : i32
    return %arg2, %arg1 : i32, i32
  }
  func.func @transform_2(%arg0: i32, %arg1: i32, %arg2: i32) -> (i32, i32) {
    %c0_i32 = arith.constant 0 : i32
    %c0_i32_0 = arith.constant 0 : i32
    return %c0_i32, %arg1 : i32, i32
  }
  func.func @transform_3(%arg0: i32, %arg1: i32, %arg2: i32) -> (i32, i32) {
    %c0_i32 = arith.constant 0 : i32
    %c0_i32_0 = arith.constant 0 : i32
    return %c0_i32, %arg1 : i32, i32
  }
  func.func @transform_4(%arg0: i32, %arg1: i32, %arg2: i32) -> (i32, i32) {
    %c0_i32 = arith.constant 0 : i32
    return %arg0, %arg1 : i32, i32
  }
  func.func @transform_5(%arg0: i32, %arg1: i32, %arg2: i32) -> (i32, i32) {
    %c0_i32 = arith.constant 0 : i32
    return %arg0, %arg1 : i32, i32
  }
}

module attributes {stable_mosaic.version = 11 : i64} {
  func.func @_gemm_kernel_multi_k(%arg0: i32, %arg1: i32, %arg2: i32, %arg3: memref<8x384xbf16, #tpu.memory_space<vmem>>, %arg4: memref<384x256xbf16, #tpu.memory_space<vmem>>, %arg5: memref<1x256xf32, #tpu.memory_space<vmem>>, %arg6: memref<1x256xf32, #tpu.memory_space<vmem>>, %arg7: memref<8x256xbf16, #tpu.memory_space<vmem>>, %arg8: memref<8x256xf32, #tpu.memory_space<vmem>>) attributes {dimension_semantics = [#tpu.dimension_semantics<parallel>, #tpu.dimension_semantics<parallel>, #tpu.dimension_semantics<arbitrary>], iteration_bounds = array<i64: 1, 1, 6>, scalar_prefetch = 0 : i64, scratch_operands = 1 : i64, tpu.core_type = #tpu.core_type<tc>, window_params = [{transform_indices = @transform_0, window_bounds = array<i64: 8, 384>}, {transform_indices = @transform_1, window_bounds = array<i64: 384, 256>}, {transform_indices = @transform_2, window_bounds = array<i64: 1, 256>}, {transform_indices = @transform_3, window_bounds = array<i64: 1, 256>}, {transform_indices = @transform_4, window_bounds = array<i64: 8, 256>}]} {
    %c0_i32 = arith.constant 0 : i32
    %0 = arith.cmpi eq, %arg2, %c0_i32 : i32
    %1 = arith.extui %0 : i1 to i32
    %c0_i32_0 = arith.constant 0 : i32
    %2 = arith.cmpi ne, %1, %c0_i32_0 : i32
    scf.if %2 {
      %cst_9 = arith.constant 0.000000e+00 : f32
      %12 = vector.broadcast %cst_9 : f32 to vector<8x256xf32>
      %c0_10 = arith.constant 0 : index
      %c0_11 = arith.constant 0 : index
      %13 = vector.load %arg8[%c0_10, %c0_11] : memref<8x256xf32, #tpu.memory_space<vmem>>, vector<8x256xf32>
      tpu.vector_store %arg8[%c0_10, %c0_11], %12 {strides = array<i32>} : memref<8x256xf32, #tpu.memory_space<vmem>>, vector<8x256xf32>,
    } else {
    }
    %c0 = arith.constant 0 : index
    %c0_1 = arith.constant 0 : index
    %3 = vector.load %arg8[%c0, %c0_1] : memref<8x256xf32, #tpu.memory_space<vmem>>, vector<8x256xf32>
    %c0_2 = arith.constant 0 : index
    %c0_3 = arith.constant 0 : index
    %4 = vector.load %arg3[%c0_2, %c0_3] : memref<8x384xbf16, #tpu.memory_space<vmem>>, vector<8x384xbf16>
    %c0_4 = arith.constant 0 : index
    %c0_5 = arith.constant 0 : index
    %5 = vector.load %arg4[%c0_4, %c0_5] : memref<384x256xbf16, #tpu.memory_space<vmem>>, vector<384x256xbf16>
    %cst = arith.constant dense<0.000000e+00> : vector<8x256xf32>
    %6 = tpu.matmul %4, %5, %cst {dimension_numbers = #tpu.dot_dimension_numbers<[1], [0], [0], [1], [0, 0, 1, 1], [], []>} : vector<8x384xbf16>, vector<384x256xbf16>, vector<8x256xf32> -> vector<8x256xf32>
    %7 = arith.addf %3, %6 : vector<8x256xf32>
    %c0_6 = arith.constant 0 : index
    %c0_7 = arith.constant 0 : index
    %8 = vector.load %arg8[%c0_6, %c0_7] : memref<8x256xf32, #tpu.memory_space<vmem>>, vector<8x256xf32>
    tpu.vector_store %arg8[%c0_6, %c0_7], %7 {strides = array<i32>} : memref<8x256xf32, #tpu.memory_space<vmem>>, vector<8x256xf32>,
    %c5_i32 = arith.constant 5 : i32
    %9 = arith.cmpi eq, %arg2, %c5_i32 : i32
    %10 = arith.extui %9 : i1 to i32
    %c0_i32_8 = arith.constant 0 : i32
    %11 = arith.cmpi ne, %10, %c0_i32_8 : i32
    scf.if %11 {
      %c0_9 = arith.constant 0 : index
      %c0_10 = arith.constant 0 : index
      %12 = vector.load %arg8[%c0_9, %c0_10] : memref<8x256xf32, #tpu.memory_space<vmem>>, vector<8x256xf32>
      %c0_11 = arith.constant 0 : index
      %c0_12 = arith.constant 0 : index
      %13 = vector.load %arg5[%c0_11, %c0_12] : memref<1x256xf32, #tpu.memory_space<vmem>>, vector<1x256xf32>
      %14 = vector.broadcast %13 : vector<1x256xf32> to vector<8x256xf32>
      %15 = arith.mulf %12, %14 : vector<8x256xf32>
      %c0_13 = arith.constant 0 : index
      %c0_14 = arith.constant 0 : index
      %16 = vector.load %arg6[%c0_13, %c0_14] : memref<1x256xf32, #tpu.memory_space<vmem>>, vector<1x256xf32>
      %17 = vector.broadcast %16 : vector<1x256xf32> to vector<8x256xf32>
      %18 = arith.addf %15, %17 : vector<8x256xf32>
      %cst_15 = arith.constant 0.000000e+00 : f32
      %19 = vector.broadcast %cst_15 : f32 to vector<8x256xf32>
      %20 = arith.maximumf %18, %19 : vector<8x256xf32>
      %21 = arith.truncf %20 : vector<8x256xf32> to vector<8x256xbf16>
      %c0_16 = arith.constant 0 : index
      %c0_17 = arith.constant 0 : index
      %22 = vector.load %arg7[%c0_16, %c0_17] : memref<8x256xbf16, #tpu.memory_space<vmem>>, vector<8x256xbf16>
      tpu.vector_store %arg7[%c0_16, %c0_17], %21 {strides = array<i32>} : memref<8x256xbf16, #tpu.memory_space<vmem>>, vector<8x256xbf16>,
    } else {
    }
    return
  }
  func.func @transform_0(%arg0: i32, %arg1: i32, %arg2: i32) -> (i32, i32) {
    %c0_i32 = arith.constant 0 : i32
    return %arg0, %arg2 : i32, i32
  }
  func.func @transform_1(%arg0: i32, %arg1: i32, %arg2: i32) -> (i32, i32) {
    %c0_i32 = arith.constant 0 : i32
    return %arg2, %arg1 : i32, i32
  }
  func.func @transform_2(%arg0: i32, %arg1: i32, %arg2: i32) -> (i32, i32) {
    %c0_i32 = arith.constant 0 : i32
    %c0_i32_0 = arith.constant 0 : i32
    return %c0_i32, %arg1 : i32, i32
  }
  func.func @transform_3(%arg0: i32, %arg1: i32, %arg2: i32) -> (i32, i32) {
    %c0_i32 = arith.constant 0 : i32
    %c0_i32_0 = arith.constant 0 : i32
    return %c0_i32, %arg1 : i32, i32
  }
  func.func @transform_4(%arg0: i32, %arg1: i32, %arg2: i32) -> (i32, i32) {
    %c0_i32 = arith.constant 0 : i32
    return %arg0, %arg1 : i32, i32
  }
}

module attributes {stable_mosaic.version = 11 : i64} {
  func.func @_gemm_kernel_single_k(%arg0: i32, %arg1: i32, %arg2: memref<8x128xbf16, #tpu.memory_space<vmem>>, %arg3: memref<128x256xbf16, #tpu.memory_space<vmem>>, %arg4: memref<1x256xf32, #tpu.memory_space<vmem>>, %arg5: memref<1x256xf32, #tpu.memory_space<vmem>>, %arg6: memref<8x256xbf16, #tpu.memory_space<vmem>>) attributes {dimension_semantics = [#tpu.dimension_semantics<parallel>, #tpu.dimension_semantics<parallel>], iteration_bounds = array<i64: 1, 1>, scalar_prefetch = 0 : i64, scratch_operands = 0 : i64, tpu.core_type = #tpu.core_type<tc>, window_params = [{transform_indices = @transform_0, window_bounds = array<i64: 8, 128>}, {transform_indices = @transform_1, window_bounds = array<i64: 128, 256>}, {transform_indices = @transform_2, window_bounds = array<i64: 1, 256>}, {transform_indices = @transform_3, window_bounds = array<i64: 1, 256>}, {transform_indices = @transform_4, window_bounds = array<i64: 8, 256>}]} {
    %c0 = arith.constant 0 : index
    %c0_0 = arith.constant 0 : index
    %0 = vector.load %arg2[%c0, %c0_0] : memref<8x128xbf16, #tpu.memory_space<vmem>>, vector<8x128xbf16>
    %c0_1 = arith.constant 0 : index
    %c0_2 = arith.constant 0 : index
    %1 = vector.load %arg3[%c0_1, %c0_2] : memref<128x256xbf16, #tpu.memory_space<vmem>>, vector<128x256xbf16>
    %cst = arith.constant dense<0.000000e+00> : vector<8x256xf32>
    %2 = tpu.matmul %0, %1, %cst {dimension_numbers = #tpu.dot_dimension_numbers<[1], [0], [0], [1], [0, 0, 1, 1], [], []>} : vector<8x128xbf16>, vector<128x256xbf16>, vector<8x256xf32> -> vector<8x256xf32>
    %c0_3 = arith.constant 0 : index
    %c0_4 = arith.constant 0 : index
    %3 = vector.load %arg4[%c0_3, %c0_4] : memref<1x256xf32, #tpu.memory_space<vmem>>, vector<1x256xf32>
    %4 = vector.broadcast %3 : vector<1x256xf32> to vector<8x256xf32>
    %5 = arith.mulf %2, %4 : vector<8x256xf32>
    %c0_5 = arith.constant 0 : index
    %c0_6 = arith.constant 0 : index
    %6 = vector.load %arg5[%c0_5, %c0_6] : memref<1x256xf32, #tpu.memory_space<vmem>>, vector<1x256xf32>
    %7 = vector.broadcast %6 : vector<1x256xf32> to vector<8x256xf32>
    %8 = arith.addf %5, %7 : vector<8x256xf32>
    %9 = arith.truncf %8 : vector<8x256xf32> to vector<8x256xbf16>
    %c0_7 = arith.constant 0 : index
    %c0_8 = arith.constant 0 : index
    %10 = vector.load %arg6[%c0_7, %c0_8] : memref<8x256xbf16, #tpu.memory_space<vmem>>, vector<8x256xbf16>
    tpu.vector_store %arg6[%c0_7, %c0_8], %9 {strides = array<i32>} : memref<8x256xbf16, #tpu.memory_space<vmem>>, vector<8x256xbf16>,
    return
  }
  func.func @transform_0(%arg0: i32, %arg1: i32) -> (i32, i32) {
    %c0_i32 = arith.constant 0 : i32
    %c0_i32_0 = arith.constant 0 : i32
    return %arg0, %c0_i32 : i32, i32
  }
  func.func @transform_1(%arg0: i32, %arg1: i32) -> (i32, i32) {
    %c0_i32 = arith.constant 0 : i32
    %c0_i32_0 = arith.constant 0 : i32
    return %c0_i32, %arg1 : i32, i32
  }
  func.func @transform_2(%arg0: i32, %arg1: i32) -> (i32, i32) {
    %c0_i32 = arith.constant 0 : i32
    %c0_i32_0 = arith.constant 0 : i32
    return %c0_i32, %arg1 : i32, i32
  }
  func.func @transform_3(%arg0: i32, %arg1: i32) -> (i32, i32) {
    %c0_i32 = arith.constant 0 : i32
    %c0_i32_0 = arith.constant 0 : i32
    return %c0_i32, %arg1 : i32, i32
  }
  func.func @transform_4(%arg0: i32, %arg1: i32) -> (i32, i32) {
    %c0_i32 = arith.constant 0 : i32
    return %arg0, %arg1 : i32, i32
  }
}

module attributes {stable_mosaic.version = 11 : i64} {
  func.func @_gemm_kernel_multi_k(%arg0: i32, %arg1: i32, %arg2: i32, %arg3: memref<8x384xbf16, #tpu.memory_space<vmem>>, %arg4: memref<384x256xbf16, #tpu.memory_space<vmem>>, %arg5: memref<1x256xf32, #tpu.memory_space<vmem>>, %arg6: memref<1x256xf32, #tpu.memory_space<vmem>>, %arg7: memref<8x256xbf16, #tpu.memory_space<vmem>>, %arg8: memref<8x256xf32, #tpu.memory_space<vmem>>) attributes {dimension_semantics = [#tpu.dimension_semantics<parallel>, #tpu.dimension_semantics<parallel>, #tpu.dimension_semantics<arbitrary>], iteration_bounds = array<i64: 1, 2, 6>, scalar_prefetch = 0 : i64, scratch_operands = 1 : i64, tpu.core_type = #tpu.core_type<tc>, window_params = [{transform_indices = @transform_0, window_bounds = array<i64: 8, 384>}, {transform_indices = @transform_1, window_bounds = array<i64: 384, 256>}, {transform_indices = @transform_2, window_bounds = array<i64: 1, 256>}, {transform_indices = @transform_3, window_bounds = array<i64: 1, 256>}, {transform_indices = @transform_4, window_bounds = array<i64: 8, 256>}]} {
    %c0_i32 = arith.constant 0 : i32
    %0 = arith.cmpi eq, %arg2, %c0_i32 : i32
    %1 = arith.extui %0 : i1 to i32
    %c0_i32_0 = arith.constant 0 : i32
    %2 = arith.cmpi ne, %1, %c0_i32_0 : i32
    scf.if %2 {
      %cst_9 = arith.constant 0.000000e+00 : f32
      %12 = vector.broadcast %cst_9 : f32 to vector<8x256xf32>
      %c0_10 = arith.constant 0 : index
      %c0_11 = arith.constant 0 : index
      %13 = vector.load %arg8[%c0_10, %c0_11] : memref<8x256xf32, #tpu.memory_space<vmem>>, vector<8x256xf32>
      tpu.vector_store %arg8[%c0_10, %c0_11], %12 {strides = array<i32>} : memref<8x256xf32, #tpu.memory_space<vmem>>, vector<8x256xf32>,
    } else {
    }
    %c0 = arith.constant 0 : index
    %c0_1 = arith.constant 0 : index
    %3 = vector.load %arg8[%c0, %c0_1] : memref<8x256xf32, #tpu.memory_space<vmem>>, vector<8x256xf32>
    %c0_2 = arith.constant 0 : index
    %c0_3 = arith.constant 0 : index
    %4 = vector.load %arg3[%c0_2, %c0_3] : memref<8x384xbf16, #tpu.memory_space<vmem>>, vector<8x384xbf16>
    %c0_4 = arith.constant 0 : index
    %c0_5 = arith.constant 0 : index
    %5 = vector.load %arg4[%c0_4, %c0_5] : memref<384x256xbf16, #tpu.memory_space<vmem>>, vector<384x256xbf16>
    %cst = arith.constant dense<0.000000e+00> : vector<8x256xf32>
    %6 = tpu.matmul %4, %5, %cst {dimension_numbers = #tpu.dot_dimension_numbers<[1], [0], [0], [1], [0, 0, 1, 1], [], []>} : vector<8x384xbf16>, vector<384x256xbf16>, vector<8x256xf32> -> vector<8x256xf32>
    %7 = arith.addf %3, %6 : vector<8x256xf32>
    %c0_6 = arith.constant 0 : index
    %c0_7 = arith.constant 0 : index
    %8 = vector.load %arg8[%c0_6, %c0_7] : memref<8x256xf32, #tpu.memory_space<vmem>>, vector<8x256xf32>
    tpu.vector_store %arg8[%c0_6, %c0_7], %7 {strides = array<i32>} : memref<8x256xf32, #tpu.memory_space<vmem>>, vector<8x256xf32>,
    %c5_i32 = arith.constant 5 : i32
    %9 = arith.cmpi eq, %arg2, %c5_i32 : i32
    %10 = arith.extui %9 : i1 to i32
    %c0_i32_8 = arith.constant 0 : i32
    %11 = arith.cmpi ne, %10, %c0_i32_8 : i32
    scf.if %11 {
      %c0_9 = arith.constant 0 : index
      %c0_10 = arith.constant 0 : index
      %12 = vector.load %arg8[%c0_9, %c0_10] : memref<8x256xf32, #tpu.memory_space<vmem>>, vector<8x256xf32>
      %c0_11 = arith.constant 0 : index
      %c0_12 = arith.constant 0 : index
      %13 = vector.load %arg5[%c0_11, %c0_12] : memref<1x256xf32, #tpu.memory_space<vmem>>, vector<1x256xf32>
      %14 = vector.broadcast %13 : vector<1x256xf32> to vector<8x256xf32>
      %15 = arith.mulf %12, %14 : vector<8x256xf32>
      %c0_13 = arith.constant 0 : index
      %c0_14 = arith.constant 0 : index
      %16 = vector.load %arg6[%c0_13, %c0_14] : memref<1x256xf32, #tpu.memory_space<vmem>>, vector<1x256xf32>
      %17 = vector.broadcast %16 : vector<1x256xf32> to vector<8x256xf32>
      %18 = arith.addf %15, %17 : vector<8x256xf32>
      %cst_15 = arith.constant 0.000000e+00 : f32
      %19 = vector.broadcast %cst_15 : f32 to vector<8x256xf32>
      %20 = arith.maximumf %18, %19 : vector<8x256xf32>
      %21 = arith.truncf %20 : vector<8x256xf32> to vector<8x256xbf16>
      %c0_16 = arith.constant 0 : index
      %c0_17 = arith.constant 0 : index
      %22 = vector.load %arg7[%c0_16, %c0_17] : memref<8x256xbf16, #tpu.memory_space<vmem>>, vector<8x256xbf16>
      tpu.vector_store %arg7[%c0_16, %c0_17], %21 {strides = array<i32>} : memref<8x256xbf16, #tpu.memory_space<vmem>>, vector<8x256xbf16>,
    } else {
    }
    return
  }
  func.func @transform_0(%arg0: i32, %arg1: i32, %arg2: i32) -> (i32, i32) {
    %c0_i32 = arith.constant 0 : i32
    return %arg0, %arg2 : i32, i32
  }
  func.func @transform_1(%arg0: i32, %arg1: i32, %arg2: i32) -> (i32, i32) {
    %c0_i32 = arith.constant 0 : i32
    return %arg2, %arg1 : i32, i32
  }
  func.func @transform_2(%arg0: i32, %arg1: i32, %arg2: i32) -> (i32, i32) {
    %c0_i32 = arith.constant 0 : i32
    %c0_i32_0 = arith.constant 0 : i32
    return %c0_i32, %arg1 : i32, i32
  }
  func.func @transform_3(%arg0: i32, %arg1: i32, %arg2: i32) -> (i32, i32) {
    %c0_i32 = arith.constant 0 : i32
    %c0_i32_0 = arith.constant 0 : i32
    return %c0_i32, %arg1 : i32, i32
  }
  func.func @transform_4(%arg0: i32, %arg1: i32, %arg2: i32) -> (i32, i32) {
    %c0_i32 = arith.constant 0 : i32
    return %arg0, %arg1 : i32, i32
  }
}

module attributes {stable_mosaic.version = 11 : i64} {
  func.func @_gemm_kernel_single_k(%arg0: i32, %arg1: i32, %arg2: memref<8x256xbf16, #tpu.memory_space<vmem>>, %arg3: memref<256x256xbf16, #tpu.memory_space<vmem>>, %arg4: memref<1x256xf32, #tpu.memory_space<vmem>>, %arg5: memref<1x256xf32, #tpu.memory_space<vmem>>, %arg6: memref<8x256xbf16, #tpu.memory_space<vmem>>) attributes {dimension_semantics = [#tpu.dimension_semantics<parallel>, #tpu.dimension_semantics<parallel>], iteration_bounds = array<i64: 1, 2>, scalar_prefetch = 0 : i64, scratch_operands = 0 : i64, tpu.core_type = #tpu.core_type<tc>, window_params = [{transform_indices = @transform_0, window_bounds = array<i64: 8, 256>}, {transform_indices = @transform_1, window_bounds = array<i64: 256, 256>}, {transform_indices = @transform_2, window_bounds = array<i64: 1, 256>}, {transform_indices = @transform_3, window_bounds = array<i64: 1, 256>}, {transform_indices = @transform_4, window_bounds = array<i64: 8, 256>}]} {
    %c0 = arith.constant 0 : index
    %c0_0 = arith.constant 0 : index
    %0 = vector.load %arg2[%c0, %c0_0] : memref<8x256xbf16, #tpu.memory_space<vmem>>, vector<8x256xbf16>
    %c0_1 = arith.constant 0 : index
    %c0_2 = arith.constant 0 : index
    %1 = vector.load %arg3[%c0_1, %c0_2] : memref<256x256xbf16, #tpu.memory_space<vmem>>, vector<256x256xbf16>
    %cst = arith.constant dense<0.000000e+00> : vector<8x256xf32>
    %2 = tpu.matmul %0, %1, %cst {dimension_numbers = #tpu.dot_dimension_numbers<[1], [0], [0], [1], [0, 0, 1, 1], [], []>} : vector<8x256xbf16>, vector<256x256xbf16>, vector<8x256xf32> -> vector<8x256xf32>
    %c0_3 = arith.constant 0 : index
    %c0_4 = arith.constant 0 : index
    %3 = vector.load %arg4[%c0_3, %c0_4] : memref<1x256xf32, #tpu.memory_space<vmem>>, vector<1x256xf32>
    %4 = vector.broadcast %3 : vector<1x256xf32> to vector<8x256xf32>
    %5 = arith.mulf %2, %4 : vector<8x256xf32>
    %c0_5 = arith.constant 0 : index
    %c0_6 = arith.constant 0 : index
    %6 = vector.load %arg5[%c0_5, %c0_6] : memref<1x256xf32, #tpu.memory_space<vmem>>, vector<1x256xf32>
    %7 = vector.broadcast %6 : vector<1x256xf32> to vector<8x256xf32>
    %8 = arith.addf %5, %7 : vector<8x256xf32>
    %9 = arith.truncf %8 : vector<8x256xf32> to vector<8x256xbf16>
    %c0_7 = arith.constant 0 : index
    %c0_8 = arith.constant 0 : index
    %10 = vector.load %arg6[%c0_7, %c0_8] : memref<8x256xbf16, #tpu.memory_space<vmem>>, vector<8x256xbf16>
    tpu.vector_store %arg6[%c0_7, %c0_8], %9 {strides = array<i32>} : memref<8x256xbf16, #tpu.memory_space<vmem>>, vector<8x256xbf16>,
    return
  }
  func.func @transform_0(%arg0: i32, %arg1: i32) -> (i32, i32) {
    %c0_i32 = arith.constant 0 : i32
    %c0_i32_0 = arith.constant 0 : i32
    return %arg0, %c0_i32 : i32, i32
  }
  func.func @transform_1(%arg0: i32, %arg1: i32) -> (i32, i32) {
    %c0_i32 = arith.constant 0 : i32
    %c0_i32_0 = arith.constant 0 : i32
    return %c0_i32, %arg1 : i32, i32
  }
  func.func @transform_2(%arg0: i32, %arg1: i32) -> (i32, i32) {
    %c0_i32 = arith.constant 0 : i32
    %c0_i32_0 = arith.constant 0 : i32
    return %c0_i32, %arg1 : i32, i32
  }
  func.func @transform_3(%arg0: i32, %arg1: i32) -> (i32, i32) {
    %c0_i32 = arith.constant 0 : i32
    %c0_i32_0 = arith.constant 0 : i32
    return %c0_i32, %arg1 : i32, i32
  }
  func.func @transform_4(%arg0: i32, %arg1: i32) -> (i32, i32) {
    %c0_i32 = arith.constant 0 : i32
    return %arg0, %arg1 : i32, i32
  }
}

module attributes {stable_mosaic.version = 11 : i64} {
  func.func @_gemm_kernel_multi_k(%arg0: i32, %arg1: i32, %arg2: i32, %arg3: memref<8x512xbf16, #tpu.memory_space<vmem>>, %arg4: memref<512x256xbf16, #tpu.memory_space<vmem>>, %arg5: memref<1x256xf32, #tpu.memory_space<vmem>>, %arg6: memref<1x256xf32, #tpu.memory_space<vmem>>, %arg7: memref<8x256xbf16, #tpu.memory_space<vmem>>, %arg8: memref<8x256xbf16, #tpu.memory_space<vmem>>, %arg9: memref<8x256xf32, #tpu.memory_space<vmem>>) attributes {dimension_semantics = [#tpu.dimension_semantics<parallel>, #tpu.dimension_semantics<parallel>, #tpu.dimension_semantics<arbitrary>], iteration_bounds = array<i64: 1, 2, 9>, scalar_prefetch = 0 : i64, scratch_operands = 1 : i64, tpu.core_type = #tpu.core_type<tc>, window_params = [{transform_indices = @transform_0, window_bounds = array<i64: 8, 512>}, {transform_indices = @transform_1, window_bounds = array<i64: 512, 256>}, {transform_indices = @transform_2, window_bounds = array<i64: 1, 256>}, {transform_indices = @transform_3, window_bounds = array<i64: 1, 256>}, {transform_indices = @transform_4, window_bounds = array<i64: 8, 256>}, {transform_indices = @transform_5, window_bounds = array<i64: 8, 256>}]} {
    %c0_i32 = arith.constant 0 : i32
    %0 = arith.cmpi eq, %arg2, %c0_i32 : i32
    %1 = arith.extui %0 : i1 to i32
    %c0_i32_0 = arith.constant 0 : i32
    %2 = arith.cmpi ne, %1, %c0_i32_0 : i32
    scf.if %2 {
      %cst_9 = arith.constant 0.000000e+00 : f32
      %12 = vector.broadcast %cst_9 : f32 to vector<8x256xf32>
      %c0_10 = arith.constant 0 : index
      %c0_11 = arith.constant 0 : index
      %13 = vector.load %arg9[%c0_10, %c0_11] : memref<8x256xf32, #tpu.memory_space<vmem>>, vector<8x256xf32>
      tpu.vector_store %arg9[%c0_10, %c0_11], %12 {strides = array<i32>} : memref<8x256xf32, #tpu.memory_space<vmem>>, vector<8x256xf32>,
    } else {
    }
    %c0 = arith.constant 0 : index
    %c0_1 = arith.constant 0 : index
    %3 = vector.load %arg9[%c0, %c0_1] : memref<8x256xf32, #tpu.memory_space<vmem>>, vector<8x256xf32>
    %c0_2 = arith.constant 0 : index
    %c0_3 = arith.constant 0 : index
    %4 = vector.load %arg3[%c0_2, %c0_3] : memref<8x512xbf16, #tpu.memory_space<vmem>>, vector<8x512xbf16>
    %c0_4 = arith.constant 0 : index
    %c0_5 = arith.constant 0 : index
    %5 = vector.load %arg4[%c0_4, %c0_5] : memref<512x256xbf16, #tpu.memory_space<vmem>>, vector<512x256xbf16>
    %cst = arith.constant dense<0.000000e+00> : vector<8x256xf32>
    %6 = tpu.matmul %4, %5, %cst {dimension_numbers = #tpu.dot_dimension_numbers<[1], [0], [0], [1], [0, 0, 1, 1], [], []>} : vector<8x512xbf16>, vector<512x256xbf16>, vector<8x256xf32> -> vector<8x256xf32>
    %7 = arith.addf %3, %6 : vector<8x256xf32>
    %c0_6 = arith.constant 0 : index
    %c0_7 = arith.constant 0 : index
    %8 = vector.load %arg9[%c0_6, %c0_7] : memref<8x256xf32, #tpu.memory_space<vmem>>, vector<8x256xf32>
    tpu.vector_store %arg9[%c0_6, %c0_7], %7 {strides = array<i32>} : memref<8x256xf32, #tpu.memory_space<vmem>>, vector<8x256xf32>,
    %c8_i32 = arith.constant 8 : i32
    %9 = arith.cmpi eq, %arg2, %c8_i32 : i32
    %10 = arith.extui %9 : i1 to i32
    %c0_i32_8 = arith.constant 0 : i32
    %11 = arith.cmpi ne, %10, %c0_i32_8 : i32
    scf.if %11 {
      %c0_9 = arith.constant 0 : index
      %c0_10 = arith.constant 0 : index
      %12 = vector.load %arg9[%c0_9, %c0_10] : memref<8x256xf32, #tpu.memory_space<vmem>>, vector<8x256xf32>
      %c0_11 = arith.constant 0 : index
      %c0_12 = arith.constant 0 : index
      %13 = vector.load %arg5[%c0_11, %c0_12] : memref<1x256xf32, #tpu.memory_space<vmem>>, vector<1x256xf32>
      %14 = vector.broadcast %13 : vector<1x256xf32> to vector<8x256xf32>
      %15 = arith.mulf %12, %14 : vector<8x256xf32>
      %c0_13 = arith.constant 0 : index
      %c0_14 = arith.constant 0 : index
      %16 = vector.load %arg6[%c0_13, %c0_14] : memref<1x256xf32, #tpu.memory_space<vmem>>, vector<1x256xf32>
      %17 = vector.broadcast %16 : vector<1x256xf32> to vector<8x256xf32>
      %18 = arith.addf %15, %17 : vector<8x256xf32>
      %c0_15 = arith.constant 0 : index
      %c0_16 = arith.constant 0 : index
      %19 = vector.load %arg7[%c0_15, %c0_16] : memref<8x256xbf16, #tpu.memory_space<vmem>>, vector<8x256xbf16>
      %20 = arith.extf %19 : vector<8x256xbf16> to vector<8x256xf32>
      %21 = arith.addf %18, %20 : vector<8x256xf32>
      %cst_17 = arith.constant 0.000000e+00 : f32
      %22 = vector.broadcast %cst_17 : f32 to vector<8x256xf32>
      %23 = arith.maximumf %21, %22 : vector<8x256xf32>
      %24 = arith.truncf %23 : vector<8x256xf32> to vector<8x256xbf16>
      %c0_18 = arith.constant 0 : index
      %c0_19 = arith.constant 0 : index
      %25 = vector.load %arg8[%c0_18, %c0_19] : memref<8x256xbf16, #tpu.memory_space<vmem>>, vector<8x256xbf16>
      tpu.vector_store %arg8[%c0_18, %c0_19], %24 {strides = array<i32>} : memref<8x256xbf16, #tpu.memory_space<vmem>>, vector<8x256xbf16>,
    } else {
    }
    return
  }
  func.func @transform_0(%arg0: i32, %arg1: i32, %arg2: i32) -> (i32, i32) {
    %c0_i32 = arith.constant 0 : i32
    return %arg0, %arg2 : i32, i32
  }
  func.func @transform_1(%arg0: i32, %arg1: i32, %arg2: i32) -> (i32, i32) {
    %c0_i32 = arith.constant 0 : i32
    return %arg2, %arg1 : i32, i32
  }
  func.func @transform_2(%arg0: i32, %arg1: i32, %arg2: i32) -> (i32, i32) {
    %c0_i32 = arith.constant 0 : i32
    %c0_i32_0 = arith.constant 0 : i32
    return %c0_i32, %arg1 : i32, i32
  }
  func.func @transform_3(%arg0: i32, %arg1: i32, %arg2: i32) -> (i32, i32) {
    %c0_i32 = arith.constant 0 : i32
    %c0_i32_0 = arith.constant 0 : i32
    return %c0_i32, %arg1 : i32, i32
  }
  func.func @transform_4(%arg0: i32, %arg1: i32, %arg2: i32) -> (i32, i32) {
    %c0_i32 = arith.constant 0 : i32
    return %arg0, %arg1 : i32, i32
  }
  func.func @transform_5(%arg0: i32, %arg1: i32, %arg2: i32) -> (i32, i32) {
    %c0_i32 = arith.constant 0 : i32
    return %arg0, %arg1 : i32, i32
  }
}

module attributes {stable_mosaic.version = 11 : i64} {
  func.func @_gemm_kernel_multi_k(%arg0: i32, %arg1: i32, %arg2: i32, %arg3: memref<8x512xbf16, #tpu.memory_space<vmem>>, %arg4: memref<512x256xbf16, #tpu.memory_space<vmem>>, %arg5: memref<1x256xf32, #tpu.memory_space<vmem>>, %arg6: memref<1x256xf32, #tpu.memory_space<vmem>>, %arg7: memref<8x256xbf16, #tpu.memory_space<vmem>>, %arg8: memref<8x256xf32, #tpu.memory_space<vmem>>) attributes {dimension_semantics = [#tpu.dimension_semantics<parallel>, #tpu.dimension_semantics<parallel>, #tpu.dimension_semantics<arbitrary>], iteration_bounds = array<i64: 1, 2, 9>, scalar_prefetch = 0 : i64, scratch_operands = 1 : i64, tpu.core_type = #tpu.core_type<tc>, window_params = [{transform_indices = @transform_0, window_bounds = array<i64: 8, 512>}, {transform_indices = @transform_1, window_bounds = array<i64: 512, 256>}, {transform_indices = @transform_2, window_bounds = array<i64: 1, 256>}, {transform_indices = @transform_3, window_bounds = array<i64: 1, 256>}, {transform_indices = @transform_4, window_bounds = array<i64: 8, 256>}]} {
    %c0_i32 = arith.constant 0 : i32
    %0 = arith.cmpi eq, %arg2, %c0_i32 : i32
    %1 = arith.extui %0 : i1 to i32
    %c0_i32_0 = arith.constant 0 : i32
    %2 = arith.cmpi ne, %1, %c0_i32_0 : i32
    scf.if %2 {
      %cst_9 = arith.constant 0.000000e+00 : f32
      %12 = vector.broadcast %cst_9 : f32 to vector<8x256xf32>
      %c0_10 = arith.constant 0 : index
      %c0_11 = arith.constant 0 : index
      %13 = vector.load %arg8[%c0_10, %c0_11] : memref<8x256xf32, #tpu.memory_space<vmem>>, vector<8x256xf32>
      tpu.vector_store %arg8[%c0_10, %c0_11], %12 {strides = array<i32>} : memref<8x256xf32, #tpu.memory_space<vmem>>, vector<8x256xf32>,
    } else {
    }
    %c0 = arith.constant 0 : index
    %c0_1 = arith.constant 0 : index
    %3 = vector.load %arg8[%c0, %c0_1] : memref<8x256xf32, #tpu.memory_space<vmem>>, vector<8x256xf32>
    %c0_2 = arith.constant 0 : index
    %c0_3 = arith.constant 0 : index
    %4 = vector.load %arg3[%c0_2, %c0_3] : memref<8x512xbf16, #tpu.memory_space<vmem>>, vector<8x512xbf16>
    %c0_4 = arith.constant 0 : index
    %c0_5 = arith.constant 0 : index
    %5 = vector.load %arg4[%c0_4, %c0_5] : memref<512x256xbf16, #tpu.memory_space<vmem>>, vector<512x256xbf16>
    %cst = arith.constant dense<0.000000e+00> : vector<8x256xf32>
    %6 = tpu.matmul %4, %5, %cst {dimension_numbers = #tpu.dot_dimension_numbers<[1], [0], [0], [1], [0, 0, 1, 1], [], []>} : vector<8x512xbf16>, vector<512x256xbf16>, vector<8x256xf32> -> vector<8x256xf32>
    %7 = arith.addf %3, %6 : vector<8x256xf32>
    %c0_6 = arith.constant 0 : index
    %c0_7 = arith.constant 0 : index
    %8 = vector.load %arg8[%c0_6, %c0_7] : memref<8x256xf32, #tpu.memory_space<vmem>>, vector<8x256xf32>
    tpu.vector_store %arg8[%c0_6, %c0_7], %7 {strides = array<i32>} : memref<8x256xf32, #tpu.memory_space<vmem>>, vector<8x256xf32>,
    %c8_i32 = arith.constant 8 : i32
    %9 = arith.cmpi eq, %arg2, %c8_i32 : i32
    %10 = arith.extui %9 : i1 to i32
    %c0_i32_8 = arith.constant 0 : i32
    %11 = arith.cmpi ne, %10, %c0_i32_8 : i32
    scf.if %11 {
      %c0_9 = arith.constant 0 : index
      %c0_10 = arith.constant 0 : index
      %12 = vector.load %arg8[%c0_9, %c0_10] : memref<8x256xf32, #tpu.memory_space<vmem>>, vector<8x256xf32>
      %c0_11 = arith.constant 0 : index
      %c0_12 = arith.constant 0 : index
      %13 = vector.load %arg5[%c0_11, %c0_12] : memref<1x256xf32, #tpu.memory_space<vmem>>, vector<1x256xf32>
      %14 = vector.broadcast %13 : vector<1x256xf32> to vector<8x256xf32>
      %15 = arith.mulf %12, %14 : vector<8x256xf32>
      %c0_13 = arith.constant 0 : index
      %c0_14 = arith.constant 0 : index
      %16 = vector.load %arg6[%c0_13, %c0_14] : memref<1x256xf32, #tpu.memory_space<vmem>>, vector<1x256xf32>
      %17 = vector.broadcast %16 : vector<1x256xf32> to vector<8x256xf32>
      %18 = arith.addf %15, %17 : vector<8x256xf32>
      %cst_15 = arith.constant 0.000000e+00 : f32
      %19 = vector.broadcast %cst_15 : f32 to vector<8x256xf32>
      %20 = arith.maximumf %18, %19 : vector<8x256xf32>
      %21 = arith.truncf %20 : vector<8x256xf32> to vector<8x256xbf16>
      %c0_16 = arith.constant 0 : index
      %c0_17 = arith.constant 0 : index
      %22 = vector.load %arg7[%c0_16, %c0_17] : memref<8x256xbf16, #tpu.memory_space<vmem>>, vector<8x256xbf16>
      tpu.vector_store %arg7[%c0_16, %c0_17], %21 {strides = array<i32>} : memref<8x256xbf16, #tpu.memory_space<vmem>>, vector<8x256xbf16>,
    } else {
    }
    return
  }
  func.func @transform_0(%arg0: i32, %arg1: i32, %arg2: i32) -> (i32, i32) {
    %c0_i32 = arith.constant 0 : i32
    return %arg0, %arg2 : i32, i32
  }
  func.func @transform_1(%arg0: i32, %arg1: i32, %arg2: i32) -> (i32, i32) {
    %c0_i32 = arith.constant 0 : i32
    return %arg2, %arg1 : i32, i32
  }
  func.func @transform_2(%arg0: i32, %arg1: i32, %arg2: i32) -> (i32, i32) {
    %c0_i32 = arith.constant 0 : i32
    %c0_i32_0 = arith.constant 0 : i32
    return %c0_i32, %arg1 : i32, i32
  }
  func.func @transform_3(%arg0: i32, %arg1: i32, %arg2: i32) -> (i32, i32) {
    %c0_i32 = arith.constant 0 : i32
    %c0_i32_0 = arith.constant 0 : i32
    return %c0_i32, %arg1 : i32, i32
  }
  func.func @transform_4(%arg0: i32, %arg1: i32, %arg2: i32) -> (i32, i32) {
    %c0_i32 = arith.constant 0 : i32
    return %arg0, %arg1 : i32, i32
  }
}

module attributes {stable_mosaic.version = 11 : i64} {
  func.func @_gap_kernel(%arg0: memref<2x1x512xbf16, #tpu.memory_space<vmem>>, %arg1: memref<2x512xbf16, #tpu.memory_space<vmem>>) attributes {dimension_semantics = [], scalar_prefetch = 0 : i64, scratch_operands = 0 : i64, tpu.core_type = #tpu.core_type<tc>} {
    %c0 = arith.constant 0 : index
    %c0_0 = arith.constant 0 : index
    %c0_1 = arith.constant 0 : index
    %0 = vector.load %arg0[%c0, %c0_0, %c0_1] : memref<2x1x512xbf16, #tpu.memory_space<vmem>>, vector<2x1x512xbf16>
    %1 = arith.extf %0 : vector<2x1x512xbf16> to vector<2x1x512xf32>
    %cst = arith.constant dense<0.000000e+00> : vector<2x512xf32>
    %2 = vector.multi_reduction <add>, %1, %cst [1] : vector<2x1x512xf32> to vector<2x512xf32>
    %cst_2 = arith.constant 1.000000e+00 : f32
    %3 = vector.broadcast %cst_2 : f32 to vector<2x512xf32>
    %4 = arith.divf %2, %3 : vector<2x512xf32>
    %5 = arith.truncf %4 : vector<2x512xf32> to vector<2x512xbf16>
    %c0_3 = arith.constant 0 : index
    %c0_4 = arith.constant 0 : index
    %6 = vector.load %arg1[%c0_3, %c0_4] : memref<2x512xbf16, #tpu.memory_space<vmem>>, vector<2x512xbf16>
    tpu.vector_store %arg1[%c0_3, %c0_4], %5 {strides = array<i32>} : memref<2x512xbf16, #tpu.memory_space<vmem>>, vector<2x512xbf16>,
    return
  }
}

module attributes {stable_mosaic.version = 11 : i64} {
  func.func @_gemm_kernel_single_k(%arg0: i32, %arg1: i32, %arg2: memref<8x512xbf16, #tpu.memory_space<vmem>>, %arg3: memref<512x128xbf16, #tpu.memory_space<vmem>>, %arg4: memref<1x128xf32, #tpu.memory_space<vmem>>, %arg5: memref<1x128xf32, #tpu.memory_space<vmem>>, %arg6: memref<8x128xf32, #tpu.memory_space<vmem>>) attributes {dimension_semantics = [#tpu.dimension_semantics<parallel>, #tpu.dimension_semantics<parallel>], iteration_bounds = array<i64: 1, 1>, scalar_prefetch = 0 : i64, scratch_operands = 0 : i64, tpu.core_type = #tpu.core_type<tc>, window_params = [{transform_indices = @transform_0, window_bounds = array<i64: 8, 512>}, {transform_indices = @transform_1, window_bounds = array<i64: 512, 128>}, {transform_indices = @transform_2, window_bounds = array<i64: 1, 128>}, {transform_indices = @transform_3, window_bounds = array<i64: 1, 128>}, {transform_indices = @transform_4, window_bounds = array<i64: 8, 128>}]} {
    %c0 = arith.constant 0 : index
    %c0_0 = arith.constant 0 : index
    %0 = vector.load %arg2[%c0, %c0_0] : memref<8x512xbf16, #tpu.memory_space<vmem>>, vector<8x512xbf16>
    %c0_1 = arith.constant 0 : index
    %c0_2 = arith.constant 0 : index
    %1 = vector.load %arg3[%c0_1, %c0_2] : memref<512x128xbf16, #tpu.memory_space<vmem>>, vector<512x128xbf16>
    %cst = arith.constant dense<0.000000e+00> : vector<8x128xf32>
    %2 = tpu.matmul %0, %1, %cst {dimension_numbers = #tpu.dot_dimension_numbers<[1], [0], [0], [1], [0, 0, 1, 1], [], []>} : vector<8x512xbf16>, vector<512x128xbf16>, vector<8x128xf32> -> vector<8x128xf32>
    %c0_3 = arith.constant 0 : index
    %c0_4 = arith.constant 0 : index
    %3 = vector.load %arg4[%c0_3, %c0_4] : memref<1x128xf32, #tpu.memory_space<vmem>>, vector<1x128xf32>
    %4 = vector.broadcast %3 : vector<1x128xf32> to vector<8x128xf32>
    %5 = arith.mulf %2, %4 : vector<8x128xf32>
    %c0_5 = arith.constant 0 : index
    %c0_6 = arith.constant 0 : index
    %6 = vector.load %arg5[%c0_5, %c0_6] : memref<1x128xf32, #tpu.memory_space<vmem>>, vector<1x128xf32>
    %7 = vector.broadcast %6 : vector<1x128xf32> to vector<8x128xf32>
    %8 = arith.addf %5, %7 : vector<8x128xf32>
    %c0_7 = arith.constant 0 : index
    %c0_8 = arith.constant 0 : index
    %9 = vector.load %arg6[%c0_7, %c0_8] : memref<8x128xf32, #tpu.memory_space<vmem>>, vector<8x128xf32>
    tpu.vector_store %arg6[%c0_7, %c0_8], %8 {strides = array<i32>} : memref<8x128xf32, #tpu.memory_space<vmem>>, vector<8x128xf32>,
    return
  }
  func.func @transform_0(%arg0: i32, %arg1: i32) -> (i32, i32) {
    %c0_i32 = arith.constant 0 : i32
    %c0_i32_0 = arith.constant 0 : i32
    return %arg0, %c0_i32 : i32, i32
  }
  func.func @transform_1(%arg0: i32, %arg1: i32) -> (i32, i32) {
    %c0_i32 = arith.constant 0 : i32
    %c0_i32_0 = arith.constant 0 : i32
    return %c0_i32, %arg1 : i32, i32
  }
  func.func @transform_2(%arg0: i32, %arg1: i32) -> (i32, i32) {
    %c0_i32 = arith.constant 0 : i32
    %c0_i32_0 = arith.constant 0 : i32
    return %c0_i32, %arg1 : i32, i32
  }
  func.func @transform_3(%arg0: i32, %arg1: i32) -> (i32, i32) {
    %c0_i32 = arith.constant 0 : i32
    %c0_i32_0 = arith.constant 0 : i32
    return %c0_i32, %arg1 : i32, i32
  }
  func.func @transform_4(%arg0: i32, %arg1: i32) -> (i32, i32) {
    %c0_i32 = arith.constant 0 : i32
    return %arg0, %arg1 : i32, i32
  }
}

</mosaic_0001>

<bundles_post_ra>
// kernel: student_net_resp_forward.23
= control target key start
LH: loop header
LB: loop body
LE: loop exit
PB: predicated region body
PF: predicated region fallthrough
CT: control target
= control target key end

     0   :  { %s1508_s15 = smov 0   ;;  %s1510_s16 = smov 0   ;;  %s1717_s0 = inlined_call_operand.vmem [shape: bf16[512,152], index: 0, kind: input, shape index: {}]   ;;  %s1718_s1 = inlined_call_operand.vmem [shape: bf16[152,128], index: 1, kind: input, shape index: {}]   ;;  %s1719_s2 = inlined_call_operand.vmem [shape: f32[1,128], index: 2, kind: input, shape index: {}]   ;;  %s1720_s3 = inlined_call_operand.vmem [shape: f32[1,128], index: 3, kind: input, shape index: {}]   ;;  %s1721_s4 = inlined_call_operand.vmem [shape: bf16[512,128], index: 4, kind: output, shape index: {}]  }
   0x1   :  { %s1512_s17 = smov 0  }
   0x2 LB: > { %s26_s18 = sadd.s32 1, %s1476_s16  ;;  %p1127_p0 = scmp.ge.s32.totalorder %s1480_s17, 1  ;;  %s1480_s17 = sphi %s1512_s17, %s14_s17   ;;  %s1476_s16 = sphi %s1510_s16, %s1723_s16   ;;  %s1472_s15 = sphi %s1508_s15, %s1722_s15  }
   0x3   : > { %p28_p1 = scmp.ge.s32.totalorder %s26_s18, 2  ;;  %p203_p2 = scmp.lt.s32.totalorder %s1480_s17, 3 }
   0x5   : > { %s1725_s18 = smov (%p28_p1, %s26_s18), 0  ;;  %p204_p3 = pnand %p1127_p0, %p203_p2 }
   0x6   : > { %s1128_s23 = sshll.u32 (!%p204_p3), %s1472_s15, 5 }
   0x7   : > { %207 = sbr.rel (%p204_p3) target bundleno = 315 (0x13b), region = 36  ;;  %p244_p4 = scmp.lt.s32.totalorder (!%p204_p3), %s1128_s23, 63 }
   0xc   : > { %v1400_v0 = vld [vmem:[%s1718_s1 + $0x38] sm:$0xff]   ;;  %v1482_v1 = vmov 0   ;;  %v1401_v2 = vld [vmem:[%s1718_s1 + $0x30] sm:$0xff]   ;;  %s1727_s23 = smov (!%p244_p4, %s1128_s23), 63  ;;  %v1402_v3 = vld [vmem:[%s1718_s1 + $0x28] sm:$0xff]   ;;  %vm522_vm0 = vcmask 195584  }
   0xd   : > { %575 = vmatprep.subr.bf16.mxu0 %v1482_v1  ;;  %1355 = vmatprep.subr.bf16.mxu1 %v1482_v1  ;;  %s1227_s26 = sshll.u32 %s1727_s23, 3  ;;  %v1403_v4 = vld [vmem:[%s1718_s1 + $0x20] sm:$0xff]   ;;  %v1404_v7 = vld [vmem:[%s1718_s1 + $0x18] sm:$0xff]   ;;  %v1405_v8 = vld [vmem:[%s1718_s1 + $0x10] sm:$0xff]   ;;  %vm571_vm1 = vcmask 1043456  }
   0xe   : > { %576 = vmatpush1.bf16.msra.mxu0 %v1400_v0  ;;  %1365 = vmatpush1.bf16.msra.mxu1 %v1400_v0  ;;  %s1541_s29 = scalar_lea.vmem %s1717_s0, %s1227_s26  ;;  %v1406_v9 = vld [vmem:[%s1718_s1 + $0x8] sm:$0xff]   ;;  %v1407_v10 = vld [vmem:[%s1718_s1] sm:$0xff]   ;;  %s1132_s26 = sshll.u32 %s1727_s23, 2 }
   0xf   : > { %577 = vmatprep.subr.bf16.mxu0 %v1482_v1  ;;  %1356 = vmatprep.subr.bf16.mxu1 %v1482_v1  ;;  %v1412_v5 = vld [vmem:[%s1541_s29 + $0x4] ss:$8 sps:$4 sm:$0xff]   ;;  %v1408_v11 = vld [vmem:[%s1718_s1 + $0x48] ss:$0 sps:$4 sm:$0xff]   ;;  %v1416_v16 = vld [vmem:[%s1541_s29 + $0x14] ss:$8 sps:$4 sm:$0xff]  }
  0x10   : > { %1175 = vmatprep.mubr.msk.bf16.mxu0 %vm522_vm0, %v1412_v5  ;;  %v1415_v6 = vld [vmem:[%s1541_s29 + $0x84] ss:$8 sps:$4 sm:$0xff]   ;;  %v573_v12 = vsel %vm571_vm1, %v1408_v11, 0  ;;  %v1410_v14 = vld [vmem:[%s1541_s29] ss:$8 sps:$4 sm:$0xff]  }
  0x11   : > { %1183 = vmatprep.mubr.msk.bf16.mxu1 %vm522_vm0, %v1415_v6  ;;  %v1409_v13 = vld [vmem:[%s1718_s1 + $0x40] sm:$0xff]   ;;  %v1418_v17 = vld [vmem:[%s1541_s29 + $0x94] ss:$8 sps:$4 sm:$0xff]   ;;  %v1420_v18 = vld [vmem:[%s1541_s29 + $0x10] ss:$8 sps:$4 sm:$0xff]  }
  0x12   : > { %578 = vmatpush1.bf16.msra.mxu0 %v1401_v2  ;;  %1366 = vmatpush1.bf16.msra.mxu1 %v1401_v2  ;;  %v1413_v15 = vld [vmem:[%s1541_s29 + $0x80] ss:$8 sps:$4 sm:$0xff]   ;;  %v1421_v19 = vld [vmem:[%s1541_s29 + $0x90] ss:$8 sps:$4 sm:$0xff]   ;;  %v1422_v20 = vld [vmem:[%s1541_s29 + $0x24] ss:$8 sps:$4 sm:$0xff]  }
  0x13   : > { %579 = vmatprep.subr.bf16.mxu0 %v1482_v1  ;;  %1357 = vmatprep.subr.bf16.mxu1 %v1482_v1  ;;  %v1424_v21 = vld [vmem:[%s1541_s29 + $0xa4] ss:$8 sps:$4 sm:$0xff]   ;;  %v1426_v22 = vld [vmem:[%s1541_s29 + $0x20] ss:$8 sps:$4 sm:$0xff]   ;;  %v1428_v24 = vld [vmem:[%s1541_s29 + $0x34] ss:$8 sps:$4 sm:$0xff]  }
  0x14   : > { %v1427_v23 = vld [vmem:[%s1541_s29 + $0xa0] ss:$8 sps:$4 sm:$0xff]   ;;  %v1430_v25 = vld [vmem:[%s1541_s29 + $0xb4] ss:$8 sps:$4 sm:$0xff]   ;;  %v1432_v26 = vld [vmem:[%s1541_s29 + $0x30] ss:$8 sps:$4 sm:$0xff]  }
  0x15   : > { %v1433_v27 = vld [vmem:[%s1541_s29 + $0xb0] ss:$8 sps:$4 sm:$0xff]   ;;  %v1434_v28 = vld [vmem:[%s1541_s29 + $0x44] ss:$8 sps:$4 sm:$0xff]   ;;  %v1438_v30 = vld [vmem:[%s1541_s29 + $0x40] ss:$8 sps:$4 sm:$0xff]  }
  0x16   : > { %580 = vmatpush1.bf16.msra.mxu0 %v1402_v3  ;;  %1367 = vmatpush1.bf16.msra.mxu1 %v1402_v3  ;;  %v1436_v29 = vld [vmem:[%s1541_s29 + $0xc4] ss:$8 sps:$4 sm:$0xff]   ;;  %v1439_v31 = vld [vmem:[%s1541_s29 + $0xc0] ss:$8 sps:$4 sm:$0xff]   ;;  %v1440_v32 = vld [vmem:[%s1541_s29 + $0x54] ss:$8 sps:$4 sm:$0xff]  }
  0x17   : > { %581 = vmatprep.subr.bf16.mxu0 %v1482_v1  ;;  %1358 = vmatprep.subr.bf16.mxu1 %v1482_v1  ;;  %v1442_v33 = vld [vmem:[%s1541_s29 + $0xd4] ss:$8 sps:$4 sm:$0xff]   ;;  %v1444_v34 = vld [vmem:[%s1541_s29 + $0x50] ss:$8 sps:$4 sm:$0xff]   ;;  %v1446_v36 = vld [vmem:[%s1541_s29 + $0x64] ss:$8 sps:$4 sm:$0xff]  }
  0x18   : > { %v1445_v35 = vld [vmem:[%s1541_s29 + $0xd0] ss:$8 sps:$4 sm:$0xff]   ;;  %v1448_v37 = vld [vmem:[%s1541_s29 + $0xe4] ss:$8 sps:$4 sm:$0xff]   ;;  %v1450_v38 = vld [vmem:[%s1541_s29 + $0x60] ss:$8 sps:$4 sm:$0xff]  }
  0x19   : > { %v1451_v39 = vld [vmem:[%s1541_s29 + $0xe0] ss:$8 sps:$4 sm:$0xff]   ;;  %v1452_v40 = vld [vmem:[%s1541_s29 + $0x74] ss:$8 sps:$4 sm:$0xff]   ;;  %v1456_v42 = vld [vmem:[%s1541_s29 + $0x70] ss:$8 sps:$4 sm:$0xff]  }
  0x1a   : > { %582 = vmatpush1.bf16.msra.mxu0 %v1403_v4  ;;  %1368 = vmatpush1.bf16.msra.mxu1 %v1403_v4  ;;  %v1454_v41 = vld [vmem:[%s1541_s29 + $0xf4] ss:$8 sps:$4 sm:$0xff]   ;;  %v1457_v43 = vld [vmem:[%s1541_s29 + $0xf0] ss:$8 sps:$4 sm:$0xff]   ;;  %v1615_v44 = vld [vmem:[%s1719_s2] ss:$0 sm:$0xff]  ;;  %s1636_s29 = scalar_lea.vmem %s1721_s4, %s1132_s26 }
  0x1b   : > { %583 = vmatprep.subr.bf16.mxu0 %v1482_v1  ;;  %1359 = vmatprep.subr.bf16.mxu1 %v1482_v1  ;;  %v1621_v48 = vld [vmem:[%s1720_s3] ss:$0 sm:$0xff] }
  0x1e   : > { %584 = vmatpush1.bf16.msra.mxu0 %v1404_v7  ;;  %1369 = vmatpush1.bf16.msra.mxu1 %v1404_v7 }
  0x1f   : > { %585 = vmatprep.subr.bf16.mxu0 %v1482_v1  ;;  %1360 = vmatprep.subr.bf16.mxu1 %v1482_v1 }
  0x22   : > { %586 = vmatpush1.bf16.msra.mxu0 %v1405_v8  ;;  %1370 = vmatpush1.bf16.msra.mxu1 %v1405_v8 }
  0x23   : > { %587 = vmatprep.subr.bf16.mxu0 %v1482_v1  ;;  %1361 = vmatprep.subr.bf16.mxu1 %v1482_v1 }
  0x26   : > { %588 = vmatpush1.bf16.msra.mxu0 %v1406_v9  ;;  %1371 = vmatpush1.bf16.msra.mxu1 %v1406_v9 }
  0x27   : > { %589 = vmatprep.subr.bf16.mxu0 %v1482_v1  ;;  %1362 = vmatprep.subr.bf16.mxu1 %v1482_v1 }
  0x2a   : > { %590 = vmatpush1.bf16.msra.mxu0 %v1407_v10  ;;  %1372 = vmatpush1.bf16.msra.mxu1 %v1407_v10 }
  0x2b   : > { %603 = vmatprep.subr.bf16.mxu0 %v1482_v1  ;;  %1363 = vmatprep.subr.bf16.mxu1 %v1482_v1 }
  0x2e   : > { %604 = vmatpush2.bf16.msra.mxu0 %v573_v12  ;;  %1373 = vmatpush2.bf16.msra.mxu1 %v573_v12 }
  0x2f   : > { %605 = vmatprep.subr.bf16.mxu0 %v1482_v1  ;;  %1364 = vmatprep.subr.bf16.mxu1 %v1482_v1 }
  0x32   : > { %606 = vmatpush2.bf16.msra.mxu0 %v1409_v13  ;;  %1374 = vmatpush2.bf16.msra.mxu1 %v1409_v13 }
  0x35   : > { %608 = vmatmul.mubr.bf16.vlgmr.msra.gmra.mxu0 %v1410_v14  ;;  %672 = vmatmul.mubr.bf16.vlgmr.msra.gmra.mxu1 %v1413_v15 }
  0x36   : > { %1176 = vmatprep.mubr.msk.bf16.mxu0 %vm522_vm0, %v1416_v16  ;;  %1184 = vmatprep.mubr.msk.bf16.mxu1 %vm522_vm0, %v1418_v17 }
  0x3d   : > { %616 = vmatmul.mubr.bf16.gmra.mxu0 %v1420_v18  ;;  %680 = vmatmul.mubr.bf16.gmra.mxu1 %v1421_v19 }
  0x3e   : > { %1177 = vmatprep.mubr.msk.bf16.mxu0 %vm522_vm0, %v1422_v20  ;;  %1185 = vmatprep.mubr.msk.bf16.mxu1 %vm522_vm0, %v1424_v21 }
  0x45   : > { %624 = vmatmul.mubr.bf16.gmra.mxu0 %v1426_v22  ;;  %688 = vmatmul.mubr.bf16.gmra.mxu1 %v1427_v23 }
  0x46   : > { %1178 = vmatprep.mubr.msk.bf16.mxu0 %vm522_vm0, %v1428_v24  ;;  %1186 = vmatprep.mubr.msk.bf16.mxu1 %vm522_vm0, %v1430_v25 }
  0x4d   : > { %632 = vmatmul.mubr.bf16.gmra.mxu0 %v1432_v26  ;;  %696 = vmatmul.mubr.bf16.gmra.mxu1 %v1433_v27 }
  0x4e   : > { %1179 = vmatprep.mubr.msk.bf16.mxu0 %vm522_vm0, %v1434_v28  ;;  %1187 = vmatprep.mubr.msk.bf16.mxu1 %vm522_vm0, %v1436_v29 }
  0x55   : > { %640 = vmatmul.mubr.bf16.gmra.mxu0 %v1438_v30  ;;  %704 = vmatmul.mubr.bf16.gmra.mxu1 %v1439_v31 }
  0x56   : > { %1180 = vmatprep.mubr.msk.bf16.mxu0 %vm522_vm0, %v1440_v32  ;;  %1188 = vmatprep.mubr.msk.bf16.mxu1 %vm522_vm0, %v1442_v33 }
  0x5d   : > { %648 = vmatmul.mubr.bf16.gmra.mxu0 %v1444_v34  ;;  %712 = vmatmul.mubr.bf16.gmra.mxu1 %v1445_v35 }
  0x5e   : > { %1181 = vmatprep.mubr.msk.bf16.mxu0 %vm522_vm0, %v1446_v36  ;;  %1189 = vmatprep.mubr.msk.bf16.mxu1 %vm522_vm0, %v1448_v37 }
  0x65   : > { %656 = vmatmul.mubr.bf16.gmra.mxu0 %v1450_v38  ;;  %720 = vmatmul.mubr.bf16.gmra.mxu1 %v1451_v39 }
  0x66   : > { %1182 = vmatprep.mubr.msk.bf16.mxu0 %vm522_vm0, %v1452_v40  ;;  %1190 = vmatprep.mubr.msk.bf16.mxu1 %vm522_vm0, %v1454_v41 }
  0x6d   : > { %664 = vmatmul.mubr.bf16.gmra.mxu0 %v1456_v42  ;;  %728 = vmatmul.mubr.bf16.gmra.mxu1 %v1457_v43 }
  0xf5   : > { %v609_v45 = vpop.f32.mrf.mxu0  ;;  %v673_v46 = vpop.f32.mrf.mxu1 }
  0xf6   : > { %v743_v47 = vmul.f32 %v1615_v44, %v609_v45  ;;  %v759_v49 = vmul.f32 %v1615_v44, %v673_v46 }
  0xf7   : > { %v611_v50 = vpop.f32.mrf.mxu0  ;;  %v675_v51 = vpop.f32.mrf.mxu1 }
  0xf8   : > { %v782_v52 = vadd.f32 %v1621_v48, %v743_v47  ;;  %v798_v53 = vadd.f32 %v1621_v48, %v759_v49 }
  0xf9   : > { %v612_v54 = vpop.f32.mrf.mxu0  ;;  %v676_v55 = vpop.f32.mrf.mxu1 }
  0xfa   : > { %v744_v56 = vmul.f32 %v1615_v44, %v612_v54  ;;  %v760_v57 = vmul.f32 %v1615_v44, %v676_v55  ;;  %v814_v62 = vmax.f32 %v782_v52, 0.0  ;;  %v830_v63 = vmax.f32 %v798_v53, 0.0 }
  0xfb   : > { %v614_v58 = vpop.f32.mrf.mxu0  ;;  %v678_v59 = vpop.f32.mrf.mxu1 }
  0xfc   : > { %v783_v60 = vadd.f32 %v1621_v48, %v744_v56  ;;  %v799_v61 = vadd.f32 %v1621_v48, %v760_v57 }
  0xfd   : > { %v617_v0 = vpop.f32.mrf.mxu0  ;;  %v681_v1 = vpop.f32.mrf.mxu1 }
  0xfe   : > { %v815_v2 = vmax.f32 %v783_v60, 0.0  ;;  %v831_v3 = vmax.f32 %v799_v61, 0.0  ;;  %v745_v4 = vmul.f32 %v1615_v44, %v617_v0  ;;  %v761_v5 = vmul.f32 %v1615_v44, %v681_v1 }
  0xff   : > { %v619_v6 = vpop.f32.mrf.mxu0  ;;  %v683_v7 = vpop.f32.mrf.mxu1 }
 0x100   : > { %v1263_v8 = vpack.c.bf16 %v815_v2, %v814_v62  ;;  %v1303_v9 = vpack.c.bf16 %v831_v3, %v830_v63  ;;  %v784_v10 = vadd.f32 %v1621_v48, %v745_v4  ;;  %v800_v11 = vadd.f32 %v1621_v48, %v761_v5 }
 0x101   : > { %v620_v12 = vpop.f32.mrf.mxu0  ;;  %v684_v13 = vpop.f32.mrf.mxu1 }
 0x102   : > { %1264 = vst [vmem:[%s1636_s29] sm:$0xff] %v1263_v8   ;;  %1347 = vst [vmem:[%s1636_s29 + $0x40] sm:$0xff] %v1303_v9   ;;  %v746_v14 = vmul.f32 %v1615_v44, %v620_v12  ;;  %v762_v15 = vmul.f32 %v1615_v44, %v684_v13  ;;  %v816_v20 = vmax.f32 %v784_v10, 0.0  ;;  %v832_v21 = vmax.f32 %v800_v11, 0.0 }
 0x103   : > { %v622_v16 = vpop.f32.mrf.mxu0  ;;  %v686_v17 = vpop.f32.mrf.mxu1 }
 0x104   : > { %v785_v18 = vadd.f32 %v1621_v48, %v746_v14  ;;  %v801_v19 = vadd.f32 %v1621_v48, %v762_v15 }
 0x105   : > { %v625_v22 = vpop.f32.mrf.mxu0  ;;  %v689_v23 = vpop.f32.mrf.mxu1 }
 0x106   : > { %v817_v24 = vmax.f32 %v785_v18, 0.0  ;;  %v833_v25 = vmax.f32 %v801_v19, 0.0  ;;  %v747_v26 = vmul.f32 %v1615_v44, %v625_v22  ;;  %v763_v27 = vmul.f32 %v1615_v44, %v689_v23 }
 0x107   : > { %v627_v28 = vpop.f32.mrf.mxu0  ;;  %v691_v29 = vpop.f32.mrf.mxu1 }
 0x108   : > { %v1268_v30 = vpack.c.bf16 %v817_v24, %v816_v20  ;;  %v1308_v31 = vpack.c.bf16 %v833_v25, %v832_v21  ;;  %v786_v32 = vadd.f32 %v1621_v48, %v747_v26  ;;  %v802_v33 = vadd.f32 %v1621_v48, %v763_v27 }
 0x109   : > { %v628_v34 = vpop.f32.mrf.mxu0  ;;  %v692_v35 = vpop.f32.mrf.mxu1 }
 0x10a   : > { %1340 = vst [vmem:[%s1636_s29 + $0x8] sm:$0xff] %v1268_v30   ;;  %1348 = vst [vmem:[%s1636_s29 + $0x48] sm:$0xff] %v1308_v31   ;;  %v748_v36 = vmul.f32 %v1615_v44, %v628_v34  ;;  %v764_v37 = vmul.f32 %v1615_v44, %v692_v35  ;;  %v818_v42 = vmax.f32 %v786_v32, 0.0  ;;  %v834_v43 = vmax.f32 %v802_v33, 0.0 }
 0x10b   : > { %v630_v38 = vpop.f32.mrf.mxu0  ;;  %v694_v39 = vpop.f32.mrf.mxu1 }
 0x10c   : > { %v787_v40 = vadd.f32 %v1621_v48, %v748_v36  ;;  %v803_v41 = vadd.f32 %v1621_v48, %v764_v37 }
 0x10d   : > { %v633_v45 = vpop.f32.mrf.mxu0  ;;  %v697_v46 = vpop.f32.mrf.mxu1 }
 0x10e   : > { %v819_v47 = vmax.f32 %v787_v40, 0.0  ;;  %v835_v49 = vmax.f32 %v803_v41, 0.0  ;;  %v749_v50 = vmul.f32 %v1615_v44, %v633_v45  ;;  %v765_v51 = vmul.f32 %v1615_v44, %v697_v46 }
 0x10f   : > { %v635_v52 = vpop.f32.mrf.mxu0  ;;  %v699_v53 = vpop.f32.mrf.mxu1 }
 0x110   : > { %v1273_v54 = vpack.c.bf16 %v819_v47, %v818_v42  ;;  %v1313_v55 = vpack.c.bf16 %v835_v49, %v834_v43  ;;  %v788_v56 = vadd.f32 %v1621_v48, %v749_v50  ;;  %v804_v57 = vadd.f32 %v1621_v48, %v765_v51 }
 0x111   : > { %v636_v58 = vpop.f32.mrf.mxu0  ;;  %v700_v59 = vpop.f32.mrf.mxu1 }
 0x112   : > { %1341 = vst [vmem:[%s1636_s29 + $0x10] sm:$0xff] %v1273_v54   ;;  %1349 = vst [vmem:[%s1636_s29 + $0x50] sm:$0xff] %v1313_v55   ;;  %v750_v60 = vmul.f32 %v1615_v44, %v636_v58  ;;  %v766_v61 = vmul.f32 %v1615_v44, %v700_v59  ;;  %v820_v2 = vmax.f32 %v788_v56, 0.0  ;;  %v836_v3 = vmax.f32 %v804_v57, 0.0 }
 0x113   : > { %v638_v62 = vpop.f32.mrf.mxu0  ;;  %v702_v63 = vpop.f32.mrf.mxu1 }
 0x114   : > { %v789_v0 = vadd.f32 %v1621_v48, %v750_v60  ;;  %v805_v1 = vadd.f32 %v1621_v48, %v766_v61 }
 0x115   : > { %v641_v4 = vpop.f32.mrf.mxu0  ;;  %v705_v5 = vpop.f32.mrf.mxu1 }
 0x116   : > { %v821_v6 = vmax.f32 %v789_v0, 0.0  ;;  %v837_v7 = vmax.f32 %v805_v1, 0.0  ;;  %v751_v8 = vmul.f32 %v1615_v44, %v641_v4  ;;  %v767_v9 = vmul.f32 %v1615_v44, %v705_v5 }
 0x117   : > { %v643_v10 = vpop.f32.mrf.mxu0  ;;  %v707_v11 = vpop.f32.mrf.mxu1 }
 0x118   : > { %v1278_v12 = vpack.c.bf16 %v821_v6, %v820_v2  ;;  %v1318_v13 = vpack.c.bf16 %v837_v7, %v836_v3  ;;  %v790_v14 = vadd.f32 %v1621_v48, %v751_v8  ;;  %v806_v15 = vadd.f32 %v1621_v48, %v767_v9 }
 0x119   : > { %v644_v16 = vpop.f32.mrf.mxu0  ;;  %v708_v17 = vpop.f32.mrf.mxu1 }
 0x11a   : > { %1342 = vst [vmem:[%s1636_s29 + $0x18] sm:$0xff] %v1278_v12   ;;  %1350 = vst [vmem:[%s1636_s29 + $0x58] sm:$0xff] %v1318_v13   ;;  %v752_v18 = vmul.f32 %v1615_v44, %v644_v16  ;;  %v768_v19 = vmul.f32 %v1615_v44, %v708_v17  ;;  %v822_v24 = vmax.f32 %v790_v14, 0.0  ;;  %v838_v25 = vmax.f32 %v806_v15, 0.0 }
 0x11b   : > { %v646_v20 = vpop.f32.mrf.mxu0  ;;  %v710_v21 = vpop.f32.mrf.mxu1 }
 0x11c   : > { %v791_v22 = vadd.f32 %v1621_v48, %v752_v18  ;;  %v807_v23 = vadd.f32 %v1621_v48, %v768_v19 }
 0x11d   : > { %v649_v26 = vpop.f32.mrf.mxu0  ;;  %v713_v27 = vpop.f32.mrf.mxu1 }
 0x11e   : > { %v823_v28 = vmax.f32 %v791_v22, 0.0  ;;  %v839_v29 = vmax.f32 %v807_v23, 0.0  ;;  %v753_v30 = vmul.f32 %v1615_v44, %v649_v26  ;;  %v769_v31 = vmul.f32 %v1615_v44, %v713_v27 }
 0x11f   : > { %v651_v32 = vpop.f32.mrf.mxu0  ;;  %v715_v33 = vpop.f32.mrf.mxu1 }
 0x120   : > { %v1283_v34 = vpack.c.bf16 %v823_v28, %v822_v24  ;;  %v1323_v35 = vpack.c.bf16 %v839_v29, %v838_v25  ;;  %v792_v36 = vadd.f32 %v1621_v48, %v753_v30  ;;  %v808_v37 = vadd.f32 %v1621_v48, %v769_v31 }
 0x121   : > { %v652_v38 = vpop.f32.mrf.mxu0  ;;  %v716_v39 = vpop.f32.mrf.mxu1 }
 0x122   : > { %1343 = vst [vmem:[%s1636_s29 + $0x20] sm:$0xff] %v1283_v34   ;;  %1351 = vst [vmem:[%s1636_s29 + $0x60] sm:$0xff] %v1323_v35   ;;  %v754_v40 = vmul.f32 %v1615_v44, %v652_v38  ;;  %v770_v41 = vmul.f32 %v1615_v44, %v716_v39  ;;  %v824_v47 = vmax.f32 %v792_v36, 0.0  ;;  %v840_v49 = vmax.f32 %v808_v37, 0.0 }
 0x123   : > { %v654_v42 = vpop.f32.mrf.mxu0  ;;  %v718_v43 = vpop.f32.mrf.mxu1 }
 0x124   : > { %v793_v45 = vadd.f32 %v1621_v48, %v754_v40  ;;  %v809_v46 = vadd.f32 %v1621_v48, %v770_v41 }
 0x125   : > { %v657_v50 = vpop.f32.mrf.mxu0  ;;  %v721_v51 = vpop.f32.mrf.mxu1 }
 0x126   : > { %v825_v52 = vmax.f32 %v793_v45, 0.0  ;;  %v841_v53 = vmax.f32 %v809_v46, 0.0  ;;  %v755_v54 = vmul.f32 %v1615_v44, %v657_v50  ;;  %v771_v55 = vmul.f32 %v1615_v44, %v721_v51 }
 0x127   : > { %v659_v56 = vpop.f32.mrf.mxu0  ;;  %v723_v57 = vpop.f32.mrf.mxu1 }
 0x128   : > { %v1288_v58 = vpack.c.bf16 %v825_v52, %v824_v47  ;;  %v1328_v59 = vpack.c.bf16 %v841_v53, %v840_v49  ;;  %v794_v60 = vadd.f32 %v1621_v48, %v755_v54  ;;  %v810_v61 = vadd.f32 %v1621_v48, %v771_v55 }
 0x129   : > { %v660_v62 = vpop.f32.mrf.mxu0  ;;  %v724_v63 = vpop.f32.mrf.mxu1 }
 0x12a   : > { %1344 = vst [vmem:[%s1636_s29 + $0x28] sm:$0xff] %v1288_v58   ;;  %1352 = vst [vmem:[%s1636_s29 + $0x68] sm:$0xff] %v1328_v59   ;;  %v756_v0 = vmul.f32 %v1615_v44, %v660_v62  ;;  %v772_v1 = vmul.f32 %v1615_v44, %v724_v63  ;;  %v826_v6 = vmax.f32 %v794_v60, 0.0  ;;  %v842_v7 = vmax.f32 %v810_v61, 0.0 }
 0x12b   : > { %v662_v2 = vpop.f32.mrf.mxu0  ;;  %v726_v3 = vpop.f32.mrf.mxu1 }
 0x12c   : > { %v795_v4 = vadd.f32 %v1621_v48, %v756_v0  ;;  %v811_v5 = vadd.f32 %v1621_v48, %v772_v1 }
 0x12d   : > { %v665_v8 = vpop.f32.mrf.mxu0  ;;  %v729_v9 = vpop.f32.mrf.mxu1 }
 0x12e   : > { %v827_v10 = vmax.f32 %v795_v4, 0.0  ;;  %v843_v11 = vmax.f32 %v811_v5, 0.0  ;;  %v757_v12 = vmul.f32 %v1615_v44, %v665_v8  ;;  %v773_v13 = vmul.f32 %v1615_v44, %v729_v9 }
 0x12f   : > { %v667_v14 = vpop.f32.mrf.mxu0  ;;  %v731_v15 = vpop.f32.mrf.mxu1 }
 0x130   : > { %v1293_v16 = vpack.c.bf16 %v827_v10, %v826_v6  ;;  %v1333_v17 = vpack.c.bf16 %v843_v11, %v842_v7  ;;  %v796_v20 = vadd.f32 %v1621_v48, %v757_v12  ;;  %v812_v21 = vadd.f32 %v1621_v48, %v773_v13 }
 0x131   : > { %v668_v18 = vpop.f32.mrf.mxu0  ;;  %v732_v19 = vpop.f32.mrf.mxu1 }
 0x132   : > { %1345 = vst [vmem:[%s1636_s29 + $0x30] sm:$0xff] %v1293_v16   ;;  %1353 = vst [vmem:[%s1636_s29 + $0x70] sm:$0xff] %v1333_v17   ;;  %v758_v22 = vmul.f32 %v1615_v44, %v668_v18  ;;  %v774_v23 = vmul.f32 %v1615_v44, %v732_v19  ;;  %v828_v28 = vmax.f32 %v796_v20, 0.0  ;;  %v844_v29 = vmax.f32 %v812_v21, 0.0 }
 0x133   : > { %v670_v24 = vpop.f32.mrf.mxu0  ;;  %v734_v25 = vpop.f32.mrf.mxu1 }
 0x134   : > { %v797_v26 = vadd.f32 %v1621_v48, %v758_v22  ;;  %v813_v27 = vadd.f32 %v1621_v48, %v774_v23 }
 0x136   : > { %v829_v30 = vmax.f32 %v797_v26, 0.0  ;;  %v845_v31 = vmax.f32 %v813_v27, 0.0 }
 0x138   : > { %v1298_v32 = vpack.c.bf16 %v829_v30, %v828_v28  ;;  %v1338_v33 = vpack.c.bf16 %v845_v31, %v844_v29 }
 0x13a   : > { %1346 = vst [vmem:[%s1636_s29 + $0x38] sm:$0xff] %v1298_v32   ;;  %1354 = vst [vmem:[%s1636_s29 + $0x78] sm:$0xff] %v1338_v33  }
 0x13b PF: > { %s14_s17 = sadd.s32 1, %s1480_s17   ;;  %s1722_s15 = smov %s1476_s16 }
 0x13c   : > { %p11_p5 = scmp.ge.s32.totalorder %s14_s17, 4   ;;  %s1723_s16 = smov %s1725_s18 }
 0x13e   :  { %13 = sbr.rel (!%p11_p5) target bundleno = 2 (0x2), region = 75 }

// kernel: student_net_resp_forward.24
= control target key start
LH: loop header
LB: loop body
LE: loop exit
PB: predicated region body
PF: predicated region fallthrough
CT: control target
= control target key end

     0   :  { %vm153_vm0 = vcmask 519168   ;;  %s1385_s0 = inlined_call_operand.vmem [shape: bf16[9,128,64], index: 0, kind: input, shape index: {}]   ;;  %s1386_s1 = inlined_call_operand.vmem [shape: bf16[128,64], index: 1, kind: output, shape index: {}]  }
   0x1   :  { %v9_v0 = vld [vmem:[%s1385_s0] sm:$0xf]  ;;  %v10_v12 = vld [vmem:[%s1385_s0 + $0x4] sm:$0xf]  ;;  %v11_v33 = vld [vmem:[%s1385_s0 + $0x8] sm:$0xf] }
   0x2   :  { %v25_v1 = vld [vmem:[%s1385_s0 + $0x40] sm:$0xf]  ;;  %v156_v4 = vsel %vm153_vm0, %v9_v0, 4286644096  ;;  %v26_v13 = vld [vmem:[%s1385_s0 + $0x44] sm:$0xf] }
   0x3   :  { %v41_v2 = vld [vmem:[%s1385_s0 + $0x80] sm:$0xf]  ;;  %v159_v5 = vsel %vm153_vm0, %v25_v1, 4286644096  ;;  %v42_v14 = vld [vmem:[%s1385_s0 + $0x84] sm:$0xf] }
   0x4   :  { %v57_v3 = vld [vmem:[%s1385_s0 + $0xc0] sm:$0xf]  ;;  %v163_v6 = vsel %vm153_vm0, %v41_v2, 4286644096  ;;  %v161_v8 = vmax.bf16 %v159_v5, %v156_v4  ;;  %v58_v19 = vld [vmem:[%s1385_s0 + $0xc4] sm:$0xf] }
   0x5   :  { %v73_v7 = vld [vmem:[%s1385_s0 + $0x100] sm:$0xf]  ;;  %v167_v10 = vsel %vm153_vm0, %v57_v3, 4286644096  ;;  %v191_v20 = vsel %vm153_vm0, %v10_v12, 4286644096 }
   0x6   :  { %v89_v9 = vld [vmem:[%s1385_s0 + $0x140] sm:$0xf]  ;;  %v165_v11 = vmax.bf16 %v163_v6, %v161_v8  ;;  %v171_v15 = vsel %vm153_vm0, %v73_v7, 4286644096  ;;  %v194_v21 = vsel %vm153_vm0, %v26_v13, 4286644096 }
   0x7   :  { %v105_v16 = vld [vmem:[%s1385_s0 + $0x180] sm:$0xf]  ;;  %v175_v18 = vsel %vm153_vm0, %v89_v9, 4286644096  ;;  %v198_v22 = vsel %vm153_vm0, %v42_v14, 4286644096  ;;  %v196_v27 = vmax.bf16 %v194_v21, %v191_v20 }
   0x8   :  { %v169_v17 = vmax.bf16 %v167_v10, %v165_v11  ;;  %v121_v23 = vld [vmem:[%s1385_s0 + $0x1c0] sm:$0xf]  ;;  %v74_v26 = vld [vmem:[%s1385_s0 + $0x104] sm:$0xf]  ;;  %v179_v28 = vsel %vm153_vm0, %v105_v16, 4286644096 }
   0x9   :  { %v137_v24 = vld [vmem:[%s1385_s0 + $0x200] sm:$0xf]  ;;  %v90_v29 = vld [vmem:[%s1385_s0 + $0x144] sm:$0xf]  ;;  %v202_v30 = vsel %vm153_vm0, %v58_v19, 4286644096  ;;  %v200_v32 = vmax.bf16 %v198_v22, %v196_v27 }
   0xa   :  { %v173_v25 = vmax.bf16 %v171_v15, %v169_v17  ;;  %v27_v34 = vld [vmem:[%s1385_s0 + $0x48] sm:$0xf]  ;;  %v183_v36 = vsel %vm153_vm0, %v121_v23, 4286644096  ;;  %v187_v37 = vsel %vm153_vm0, %v137_v24, 4286644096 }
   0xb   :  { %v43_v35 = vld [vmem:[%s1385_s0 + $0x88] sm:$0xf]  ;;  %v206_v38 = vsel %vm153_vm0, %v74_v26, 4286644096  ;;  %v106_v40 = vld [vmem:[%s1385_s0 + $0x184] sm:$0xf]  ;;  %v204_v41 = vmax.bf16 %v202_v30, %v200_v32 }
   0xc   :  { %v177_v31 = vmax.bf16 %v175_v18, %v173_v25  ;;  %v210_v42 = vsel %vm153_vm0, %v90_v29, 4286644096  ;;  %v59_v43 = vld [vmem:[%s1385_s0 + $0xc8] sm:$0xf]  ;;  %v226_v44 = vsel %vm153_vm0, %v11_v33, 4286644096 }
   0xd   :  { %v229_v45 = vsel %vm153_vm0, %v27_v34, 4286644096  ;;  %v233_v46 = vsel %vm153_vm0, %v43_v35, 4286644096  ;;  %v122_v48 = vld [vmem:[%s1385_s0 + $0x1c4] sm:$0xf]  ;;  %v208_v50 = vmax.bf16 %v206_v38, %v204_v41 }
   0xe   :  { %v181_v39 = vmax.bf16 %v179_v28, %v177_v31  ;;  %v138_v49 = vld [vmem:[%s1385_s0 + $0x204] sm:$0xf]  ;;  %v75_v51 = vld [vmem:[%s1385_s0 + $0x108] sm:$0xf]  ;;  %v231_v52 = vmax.bf16 %v229_v45, %v226_v44  ;;  %v214_v53 = vsel %vm153_vm0, %v106_v40, 4286644096 }
   0xf   :  { %v91_v54 = vld [vmem:[%s1385_s0 + $0x148] sm:$0xf]  ;;  %v237_v55 = vsel %vm153_vm0, %v59_v43, 4286644096  ;;  %v212_v57 = vmax.bf16 %v210_v42, %v208_v50  ;;  %v12_v59 = vld [vmem:[%s1385_s0 + $0xc] sm:$0xf] }
  0x10   :  { %v185_v47 = vmax.bf16 %v183_v36, %v181_v39  ;;  %v235_v58 = vmax.bf16 %v233_v46, %v231_v52  ;;  %v28_v60 = vld [vmem:[%s1385_s0 + $0x4c] sm:$0xf]  ;;  %v218_v62 = vsel %vm153_vm0, %v122_v48, 4286644096  ;;  %v222_v63 = vsel %vm153_vm0, %v138_v49, 4286644096 }
  0x11   :  { %v44_v61 = vld [vmem:[%s1385_s0 + $0x8c] sm:$0xf]  ;;  %v241_v0 = vsel %vm153_vm0, %v75_v51, 4286644096  ;;  %v216_v1 = vmax.bf16 %v214_v53, %v212_v57  ;;  %v107_v2 = vld [vmem:[%s1385_s0 + $0x188] sm:$0xf] }
  0x12   :  { %v189_v56 = vmax.bf16 %v187_v37, %v185_v47  ;;  %v239_v3 = vmax.bf16 %v237_v55, %v235_v58  ;;  %v245_v4 = vsel %vm153_vm0, %v91_v54, 4286644096  ;;  %v60_v5 = vld [vmem:[%s1385_s0 + $0xcc] sm:$0xf]  ;;  %v261_v6 = vsel %vm153_vm0, %v12_v59, 4286644096 }
  0x13   :  { %v264_v7 = vsel %vm153_vm0, %v28_v60, 4286644096  ;;  %v268_v8 = vsel %vm153_vm0, %v44_v61, 4286644096  ;;  %v220_v9 = vmax.bf16 %v218_v62, %v216_v1  ;;  %v123_v10 = vld [vmem:[%s1385_s0 + $0x1c8] sm:$0xf] }
  0x14   :  { %715 = vst.msk [vmem:[%s1386_s1] sm:$0xf] %vm153_vm0, %v189_v56  ;;  %v139_v11 = vld [vmem:[%s1385_s0 + $0x208] sm:$0xf]  ;;  %v243_v12 = vmax.bf16 %v241_v0, %v239_v3  ;;  %v76_v13 = vld [vmem:[%s1385_s0 + $0x10c] sm:$0xf]  ;;  %v266_v14 = vmax.bf16 %v264_v7, %v261_v6 }
  0x15   :  { %v249_v15 = vsel %vm153_vm0, %v107_v2, 4286644096  ;;  %v92_v16 = vld [vmem:[%s1385_s0 + $0x14c] sm:$0xf]  ;;  %v272_v17 = vsel %vm153_vm0, %v60_v5, 4286644096  ;;  %v224_v18 = vmax.bf16 %v222_v63, %v220_v9 }
  0x16   :  { %v247_v19 = vmax.bf16 %v245_v4, %v243_v12  ;;  %v270_v20 = vmax.bf16 %v268_v8, %v266_v14  ;;  %v13_v21 = vld [vmem:[%s1385_s0 + $0x10] sm:$0xf]  ;;  %v253_v24 = vsel %vm153_vm0, %v123_v10, 4286644096  ;;  %v257_v25 = vsel %vm153_vm0, %v139_v11, 4286644096 }
  0x17   :  { %v29_v22 = vld [vmem:[%s1385_s0 + $0x50] sm:$0xf]  ;;  %v276_v26 = vsel %vm153_vm0, %v76_v13, 4286644096  ;;  %716 = vst.msk [vmem:[%s1386_s1 + $0x4] sm:$0xf] %vm153_vm0, %v224_v18 }
  0x18   :  { %v45_v23 = vld [vmem:[%s1385_s0 + $0x90] sm:$0xf]  ;;  %v251_v27 = vmax.bf16 %v249_v15, %v247_v19  ;;  %v108_v28 = vld [vmem:[%s1385_s0 + $0x18c] sm:$0xf]  ;;  %v274_v29 = vmax.bf16 %v272_v17, %v270_v20  ;;  %v280_v30 = vsel %vm153_vm0, %v92_v16, 4286644096 }
  0x19   :  { %v61_v31 = vld [vmem:[%s1385_s0 + $0xd0] sm:$0xf]  ;;  %v296_v32 = vsel %vm153_vm0, %v13_v21, 4286644096  ;;  %v299_v33 = vsel %vm153_vm0, %v29_v22, 4286644096 }
  0x1a   :  { %v303_v34 = vsel %vm153_vm0, %v45_v23, 4286644096  ;;  %v255_v35 = vmax.bf16 %v253_v24, %v251_v27  ;;  %v124_v36 = vld [vmem:[%s1385_s0 + $0x1cc] sm:$0xf]  ;;  %v278_v38 = vmax.bf16 %v276_v26, %v274_v29  ;;  %v77_v39 = vld [vmem:[%s1385_s0 + $0x110] sm:$0xf]  ;;  %v301_v40 = vmax.bf16 %v299_v33, %v296_v32 }
  0x1b   :  { %v140_v37 = vld [vmem:[%s1385_s0 + $0x20c] sm:$0xf]  ;;  %v284_v41 = vsel %vm153_vm0, %v108_v28, 4286644096  ;;  %v93_v42 = vld [vmem:[%s1385_s0 + $0x150] sm:$0xf] }
  0x1c   :  { %v307_v43 = vsel %vm153_vm0, %v61_v31, 4286644096  ;;  %v259_v44 = vmax.bf16 %v257_v25, %v255_v35  ;;  %v282_v45 = vmax.bf16 %v280_v30, %v278_v38  ;;  %v305_v46 = vmax.bf16 %v303_v34, %v301_v40  ;;  %v14_v47 = vld [vmem:[%s1385_s0 + $0x14] sm:$0xf]  ;;  %v109_v54 = vld [vmem:[%s1385_s0 + $0x190] sm:$0xf] }
  0x1d   :  { %v30_v48 = vld [vmem:[%s1385_s0 + $0x54] sm:$0xf]  ;;  %v288_v50 = vsel %vm153_vm0, %v124_v36, 4286644096  ;;  %v292_v51 = vsel %vm153_vm0, %v140_v37, 4286644096 }
  0x1e   :  { %v46_v49 = vld [vmem:[%s1385_s0 + $0x94] sm:$0xf]  ;;  %v311_v52 = vsel %vm153_vm0, %v77_v39, 4286644096  ;;  %717 = vst.msk [vmem:[%s1386_s1 + $0x8] sm:$0xf] %vm153_vm0, %v259_v44  ;;  %v286_v53 = vmax.bf16 %v284_v41, %v282_v45  ;;  %v309_v55 = vmax.bf16 %v307_v43, %v305_v46 }
  0x1f   :  { %v315_v56 = vsel %vm153_vm0, %v93_v42, 4286644096  ;;  %v62_v57 = vld [vmem:[%s1385_s0 + $0xd4] sm:$0xf]  ;;  %v331_v58 = vsel %vm153_vm0, %v14_v47, 4286644096 }
  0x20   :  { %v334_v59 = vsel %vm153_vm0, %v30_v48, 4286644096  ;;  %v338_v60 = vsel %vm153_vm0, %v46_v49, 4286644096  ;;  %v290_v61 = vmax.bf16 %v288_v50, %v286_v53  ;;  %v125_v62 = vld [vmem:[%s1385_s0 + $0x1d0] sm:$0xf]  ;;  %v313_v0 = vmax.bf16 %v311_v52, %v309_v55 }
  0x21   :  { %v141_v63 = vld [vmem:[%s1385_s0 + $0x210] sm:$0xf]  ;;  %v78_v1 = vld [vmem:[%s1385_s0 + $0x114] sm:$0xf]  ;;  %v336_v2 = vmax.bf16 %v334_v59, %v331_v58  ;;  %v319_v3 = vsel %vm153_vm0, %v109_v54, 4286644096 }
  0x22   :  { %v94_v4 = vld [vmem:[%s1385_s0 + $0x154] sm:$0xf]  ;;  %v342_v5 = vsel %vm153_vm0, %v62_v57, 4286644096  ;;  %v294_v6 = vmax.bf16 %v292_v51, %v290_v61  ;;  %v317_v7 = vmax.bf16 %v315_v56, %v313_v0  ;;  %v15_v9 = vld [vmem:[%s1385_s0 + $0x18] sm:$0xf] }
  0x23   :  { %v340_v8 = vmax.bf16 %v338_v60, %v336_v2  ;;  %v31_v10 = vld [vmem:[%s1385_s0 + $0x58] sm:$0xf]  ;;  %v323_v12 = vsel %vm153_vm0, %v125_v62, 4286644096  ;;  %v327_v13 = vsel %vm153_vm0, %v141_v63, 4286644096 }
  0x24   :  { %v47_v11 = vld [vmem:[%s1385_s0 + $0x98] sm:$0xf]  ;;  %v346_v14 = vsel %vm153_vm0, %v78_v1, 4286644096  ;;  %718 = vst.msk [vmem:[%s1386_s1 + $0xc] sm:$0xf] %vm153_vm0, %v294_v6  ;;  %v321_v15 = vmax.bf16 %v319_v3, %v317_v7 }
  0x25   :  { %v110_v16 = vld [vmem:[%s1385_s0 + $0x194] sm:$0xf]  ;;  %v344_v17 = vmax.bf16 %v342_v5, %v340_v8  ;;  %v350_v18 = vsel %vm153_vm0, %v94_v4, 4286644096  ;;  %v63_v19 = vld [vmem:[%s1385_s0 + $0xd8] sm:$0xf] }
  0x26   :  { %v366_v20 = vsel %vm153_vm0, %v15_v9, 4286644096  ;;  %v369_v21 = vsel %vm153_vm0, %v31_v10, 4286644096  ;;  %v373_v22 = vsel %vm153_vm0, %v47_v11, 4286644096  ;;  %v325_v23 = vmax.bf16 %v323_v12, %v321_v15 }
  0x27   :  { %v126_v24 = vld [vmem:[%s1385_s0 + $0x1d4] sm:$0xf]  ;;  %v348_v26 = vmax.bf16 %v346_v14, %v344_v17  ;;  %v79_v27 = vld [vmem:[%s1385_s0 + $0x118] sm:$0xf]  ;;  %v371_v28 = vmax.bf16 %v369_v21, %v366_v20  ;;  %v354_v29 = vsel %vm153_vm0, %v110_v16, 4286644096 }
  0x28   :  { %v142_v25 = vld [vmem:[%s1385_s0 + $0x214] sm:$0xf]  ;;  %v95_v30 = vld [vmem:[%s1385_s0 + $0x158] sm:$0xf]  ;;  %v377_v31 = vsel %vm153_vm0, %v63_v19, 4286644096  ;;  %v329_v32 = vmax.bf16 %v327_v13, %v325_v23 }
  0x29   :  { %v352_v33 = vmax.bf16 %v350_v18, %v348_v26  ;;  %v375_v34 = vmax.bf16 %v373_v22, %v371_v28  ;;  %v16_v35 = vld [vmem:[%s1385_s0 + $0x1c] sm:$0xf]  ;;  %v358_v38 = vsel %vm153_vm0, %v126_v24, 4286644096  ;;  %v362_v39 = vsel %vm153_vm0, %v142_v25, 4286644096 }
  0x2a   :  { %v32_v36 = vld [vmem:[%s1385_s0 + $0x5c] sm:$0xf]  ;;  %v381_v40 = vsel %vm153_vm0, %v79_v27, 4286644096  ;;  %719 = vst.msk [vmem:[%s1386_s1 + $0x10] sm:$0xf] %vm153_vm0, %v329_v32 }
  0x2b   :  { %v48_v37 = vld [vmem:[%s1385_s0 + $0x9c] sm:$0xf]  ;;  %v356_v41 = vmax.bf16 %v354_v29, %v352_v33  ;;  %v111_v42 = vld [vmem:[%s1385_s0 + $0x198] sm:$0xf]  ;;  %v379_v43 = vmax.bf16 %v377_v31, %v375_v34  ;;  %v385_v44 = vsel %vm153_vm0, %v95_v30, 4286644096 }
  0x2c   :  { %v64_v45 = vld [vmem:[%s1385_s0 + $0xdc] sm:$0xf]  ;;  %v401_v46 = vsel %vm153_vm0, %v16_v35, 4286644096  ;;  %v404_v47 = vsel %vm153_vm0, %v32_v36, 4286644096 }
  0x2d   :  { %v408_v48 = vsel %vm153_vm0, %v48_v37, 4286644096  ;;  %v360_v49 = vmax.bf16 %v358_v38, %v356_v41  ;;  %v127_v50 = vld [vmem:[%s1385_s0 + $0x1d8] sm:$0xf]  ;;  %v383_v52 = vmax.bf16 %v381_v40, %v379_v43  ;;  %v80_v53 = vld [vmem:[%s1385_s0 + $0x11c] sm:$0xf]  ;;  %v406_v54 = vmax.bf16 %v404_v47, %v401_v46 }
  0x2e   :  { %v143_v51 = vld [vmem:[%s1385_s0 + $0x218] sm:$0xf]  ;;  %v389_v55 = vsel %vm153_vm0, %v111_v42, 4286644096  ;;  %v96_v56 = vld [vmem:[%s1385_s0 + $0x15c] sm:$0xf] }
  0x2f   :  { %v412_v57 = vsel %vm153_vm0, %v64_v45, 4286644096  ;;  %v364_v58 = vmax.bf16 %v362_v39, %v360_v49  ;;  %v387_v59 = vmax.bf16 %v385_v44, %v383_v52  ;;  %v410_v60 = vmax.bf16 %v408_v48, %v406_v54  ;;  %v17_v61 = vld [vmem:[%s1385_s0 + $0x20] sm:$0xf]  ;;  %v112_v4 = vld [vmem:[%s1385_s0 + $0x19c] sm:$0xf] }
  0x30   :  { %v33_v62 = vld [vmem:[%s1385_s0 + $0x60] sm:$0xf]  ;;  %v393_v0 = vsel %vm153_vm0, %v127_v50, 4286644096  ;;  %v397_v1 = vsel %vm153_vm0, %v143_v51, 4286644096 }
  0x31   :  { %v49_v63 = vld [vmem:[%s1385_s0 + $0xa0] sm:$0xf]  ;;  %v416_v2 = vsel %vm153_vm0, %v80_v53, 4286644096  ;;  %720 = vst.msk [vmem:[%s1386_s1 + $0x14] sm:$0xf] %vm153_vm0, %v364_v58  ;;  %v391_v3 = vmax.bf16 %v389_v55, %v387_v59  ;;  %v414_v5 = vmax.bf16 %v412_v57, %v410_v60 }
  0x32   :  { %v420_v6 = vsel %vm153_vm0, %v96_v56, 4286644096  ;;  %v65_v7 = vld [vmem:[%s1385_s0 + $0xe0] sm:$0xf]  ;;  %v436_v8 = vsel %vm153_vm0, %v17_v61, 4286644096 }
  0x33   :  { %v439_v9 = vsel %vm153_vm0, %v33_v62, 4286644096  ;;  %v443_v10 = vsel %vm153_vm0, %v49_v63, 4286644096  ;;  %v395_v11 = vmax.bf16 %v393_v0, %v391_v3  ;;  %v128_v12 = vld [vmem:[%s1385_s0 + $0x1dc] sm:$0xf]  ;;  %v418_v14 = vmax.bf16 %v416_v2, %v414_v5 }
  0x34   :  { %v144_v13 = vld [vmem:[%s1385_s0 + $0x21c] sm:$0xf]  ;;  %v81_v15 = vld [vmem:[%s1385_s0 + $0x120] sm:$0xf]  ;;  %v441_v16 = vmax.bf16 %v439_v9, %v436_v8  ;;  %v424_v17 = vsel %vm153_vm0, %v112_v4, 4286644096 }
  0x35   :  { %v97_v18 = vld [vmem:[%s1385_s0 + $0x160] sm:$0xf]  ;;  %v447_v19 = vsel %vm153_vm0, %v65_v7, 4286644096  ;;  %v399_v20 = vmax.bf16 %v397_v1, %v395_v11  ;;  %v422_v21 = vmax.bf16 %v420_v6, %v418_v14  ;;  %v18_v23 = vld [vmem:[%s1385_s0 + $0x24] sm:$0xf] }
  0x36   :  { %v445_v22 = vmax.bf16 %v443_v10, %v441_v16  ;;  %v34_v24 = vld [vmem:[%s1385_s0 + $0x64] sm:$0xf]  ;;  %v428_v26 = vsel %vm153_vm0, %v128_v12, 4286644096  ;;  %v432_v27 = vsel %vm153_vm0, %v144_v13, 4286644096 }
  0x37   :  { %v50_v25 = vld [vmem:[%s1385_s0 + $0xa4] sm:$0xf]  ;;  %v451_v28 = vsel %vm153_vm0, %v81_v15, 4286644096  ;;  %721 = vst.msk [vmem:[%s1386_s1 + $0x18] sm:$0xf] %vm153_vm0, %v399_v20  ;;  %v426_v29 = vmax.bf16 %v424_v17, %v422_v21 }
  0x38   :  { %v113_v30 = vld [vmem:[%s1385_s0 + $0x1a0] sm:$0xf]  ;;  %v449_v31 = vmax.bf16 %v447_v19, %v445_v22  ;;  %v455_v32 = vsel %vm153_vm0, %v97_v18, 4286644096  ;;  %v66_v33 = vld [vmem:[%s1385_s0 + $0xe4] sm:$0xf] }
  0x39   :  { %v471_v34 = vsel %vm153_vm0, %v18_v23, 4286644096  ;;  %v474_v35 = vsel %vm153_vm0, %v34_v24, 4286644096  ;;  %v478_v36 = vsel %vm153_vm0, %v50_v25, 4286644096  ;;  %v430_v37 = vmax.bf16 %v428_v26, %v426_v29 }
  0x3a   :  { %v129_v38 = vld [vmem:[%s1385_s0 + $0x1e0] sm:$0xf]  ;;  %v453_v40 = vmax.bf16 %v451_v28, %v449_v31  ;;  %v82_v41 = vld [vmem:[%s1385_s0 + $0x124] sm:$0xf]  ;;  %v476_v42 = vmax.bf16 %v474_v35, %v471_v34  ;;  %v459_v43 = vsel %vm153_vm0, %v113_v30, 4286644096 }
  0x3b   :  { %v145_v39 = vld [vmem:[%s1385_s0 + $0x220] sm:$0xf]  ;;  %v98_v44 = vld [vmem:[%s1385_s0 + $0x164] sm:$0xf]  ;;  %v482_v45 = vsel %vm153_vm0, %v66_v33, 4286644096  ;;  %v434_v46 = vmax.bf16 %v432_v27, %v430_v37 }
  0x3c   :  { %v457_v47 = vmax.bf16 %v455_v32, %v453_v40  ;;  %v480_v48 = vmax.bf16 %v478_v36, %v476_v42  ;;  %v19_v49 = vld [vmem:[%s1385_s0 + $0x28] sm:$0xf]  ;;  %v463_v52 = vsel %vm153_vm0, %v129_v38, 4286644096  ;;  %v467_v53 = vsel %vm153_vm0, %v145_v39, 4286644096 }
  0x3d   :  { %v35_v50 = vld [vmem:[%s1385_s0 + $0x68] sm:$0xf]  ;;  %v486_v54 = vsel %vm153_vm0, %v82_v41, 4286644096  ;;  %722 = vst.msk [vmem:[%s1386_s1 + $0x1c] sm:$0xf] %vm153_vm0, %v434_v46 }
  0x3e   :  { %v51_v51 = vld [vmem:[%s1385_s0 + $0xa8] sm:$0xf]  ;;  %v461_v55 = vmax.bf16 %v459_v43, %v457_v47  ;;  %v114_v56 = vld [vmem:[%s1385_s0 + $0x1a4] sm:$0xf]  ;;  %v484_v57 = vmax.bf16 %v482_v45, %v480_v48  ;;  %v490_v58 = vsel %vm153_vm0, %v98_v44, 4286644096 }
  0x3f   :  { %v67_v59 = vld [vmem:[%s1385_s0 + $0xe8] sm:$0xf]  ;;  %v506_v60 = vsel %vm153_vm0, %v19_v49, 4286644096  ;;  %v509_v61 = vsel %vm153_vm0, %v35_v50, 4286644096 }
  0x40   :  { %v513_v62 = vsel %vm153_vm0, %v51_v51, 4286644096  ;;  %v465_v63 = vmax.bf16 %v463_v52, %v461_v55  ;;  %v130_v0 = vld [vmem:[%s1385_s0 + $0x1e4] sm:$0xf]  ;;  %v488_v2 = vmax.bf16 %v486_v54, %v484_v57  ;;  %v83_v3 = vld [vmem:[%s1385_s0 + $0x128] sm:$0xf]  ;;  %v511_v4 = vmax.bf16 %v509_v61, %v506_v60 }
  0x41   :  { %v146_v1 = vld [vmem:[%s1385_s0 + $0x224] sm:$0xf]  ;;  %v494_v5 = vsel %vm153_vm0, %v114_v56, 4286644096  ;;  %v99_v6 = vld [vmem:[%s1385_s0 + $0x168] sm:$0xf] }
  0x42   :  { %v517_v7 = vsel %vm153_vm0, %v67_v59, 4286644096  ;;  %v469_v8 = vmax.bf16 %v467_v53, %v465_v63  ;;  %v492_v9 = vmax.bf16 %v490_v58, %v488_v2  ;;  %v515_v10 = vmax.bf16 %v513_v62, %v511_v4  ;;  %v20_v11 = vld [vmem:[%s1385_s0 + $0x2c] sm:$0xf]  ;;  %v115_v18 = vld [vmem:[%s1385_s0 + $0x1a8] sm:$0xf] }
  0x43   :  { %v36_v12 = vld [vmem:[%s1385_s0 + $0x6c] sm:$0xf]  ;;  %v498_v14 = vsel %vm153_vm0, %v130_v0, 4286644096  ;;  %v502_v15 = vsel %vm153_vm0, %v146_v1, 4286644096 }
  0x44   :  { %v52_v13 = vld [vmem:[%s1385_s0 + $0xac] sm:$0xf]  ;;  %v521_v16 = vsel %vm153_vm0, %v83_v3, 4286644096  ;;  %723 = vst.msk [vmem:[%s1386_s1 + $0x20] sm:$0xf] %vm153_vm0, %v469_v8  ;;  %v496_v17 = vmax.bf16 %v494_v5, %v492_v9  ;;  %v519_v19 = vmax.bf16 %v517_v7, %v515_v10 }
  0x45   :  { %v525_v20 = vsel %vm153_vm0, %v99_v6, 4286644096  ;;  %v68_v21 = vld [vmem:[%s1385_s0 + $0xec] sm:$0xf]  ;;  %v541_v22 = vsel %vm153_vm0, %v20_v11, 4286644096 }
  0x46   :  { %v544_v23 = vsel %vm153_vm0, %v36_v12, 4286644096  ;;  %v548_v24 = vsel %vm153_vm0, %v52_v13, 4286644096  ;;  %v500_v25 = vmax.bf16 %v498_v14, %v496_v17  ;;  %v131_v26 = vld [vmem:[%s1385_s0 + $0x1e8] sm:$0xf]  ;;  %v523_v28 = vmax.bf16 %v521_v16, %v519_v19 }
  0x47   :  { %v147_v27 = vld [vmem:[%s1385_s0 + $0x228] sm:$0xf]  ;;  %v84_v29 = vld [vmem:[%s1385_s0 + $0x12c] sm:$0xf]  ;;  %v546_v30 = vmax.bf16 %v544_v23, %v541_v22  ;;  %v529_v31 = vsel %vm153_vm0, %v115_v18, 4286644096 }
  0x48   :  { %v100_v32 = vld [vmem:[%s1385_s0 + $0x16c] sm:$0xf]  ;;  %v552_v33 = vsel %vm153_vm0, %v68_v21, 4286644096  ;;  %v504_v34 = vmax.bf16 %v502_v15, %v500_v25  ;;  %v527_v35 = vmax.bf16 %v525_v20, %v523_v28  ;;  %v21_v37 = vld [vmem:[%s1385_s0 + $0x30] sm:$0xf] }
  0x49   :  { %v550_v36 = vmax.bf16 %v548_v24, %v546_v30  ;;  %v37_v38 = vld [vmem:[%s1385_s0 + $0x70] sm:$0xf]  ;;  %v533_v40 = vsel %vm153_vm0, %v131_v26, 4286644096  ;;  %v537_v41 = vsel %vm153_vm0, %v147_v27, 4286644096 }
  0x4a   :  { %v53_v39 = vld [vmem:[%s1385_s0 + $0xb0] sm:$0xf]  ;;  %v556_v42 = vsel %vm153_vm0, %v84_v29, 4286644096  ;;  %724 = vst.msk [vmem:[%s1386_s1 + $0x24] sm:$0xf] %vm153_vm0, %v504_v34  ;;  %v531_v43 = vmax.bf16 %v529_v31, %v527_v35 }
  0x4b   :  { %v116_v44 = vld [vmem:[%s1385_s0 + $0x1ac] sm:$0xf]  ;;  %v554_v45 = vmax.bf16 %v552_v33, %v550_v36  ;;  %v560_v46 = vsel %vm153_vm0, %v100_v32, 4286644096  ;;  %v69_v47 = vld [vmem:[%s1385_s0 + $0xf0] sm:$0xf] }
  0x4c   :  { %v576_v48 = vsel %vm153_vm0, %v21_v37, 4286644096  ;;  %v579_v49 = vsel %vm153_vm0, %v37_v38, 4286644096  ;;  %v583_v50 = vsel %vm153_vm0, %v53_v39, 4286644096  ;;  %v535_v51 = vmax.bf16 %v533_v40, %v531_v43 }
  0x4d   :  { %v132_v52 = vld [vmem:[%s1385_s0 + $0x1ec] sm:$0xf]  ;;  %v558_v54 = vmax.bf16 %v556_v42, %v554_v45  ;;  %v85_v55 = vld [vmem:[%s1385_s0 + $0x130] sm:$0xf]  ;;  %v581_v56 = vmax.bf16 %v579_v49, %v576_v48  ;;  %v564_v57 = vsel %vm153_vm0, %v116_v44, 4286644096 }
  0x4e   :  { %v148_v53 = vld [vmem:[%s1385_s0 + $0x22c] sm:$0xf]  ;;  %v101_v58 = vld [vmem:[%s1385_s0 + $0x170] sm:$0xf]  ;;  %v587_v59 = vsel %vm153_vm0, %v69_v47, 4286644096  ;;  %v539_v60 = vmax.bf16 %v537_v41, %v535_v51 }
  0x4f   :  { %v562_v61 = vmax.bf16 %v560_v46, %v558_v54  ;;  %v585_v62 = vmax.bf16 %v583_v50, %v581_v56  ;;  %v22_v63 = vld [vmem:[%s1385_s0 + $0x34] sm:$0xf]  ;;  %v568_v2 = vsel %vm153_vm0, %v132_v52, 4286644096  ;;  %v572_v3 = vsel %vm153_vm0, %v148_v53, 4286644096 }
  0x50   :  { %v38_v0 = vld [vmem:[%s1385_s0 + $0x74] sm:$0xf]  ;;  %v591_v4 = vsel %vm153_vm0, %v85_v55, 4286644096  ;;  %725 = vst.msk [vmem:[%s1386_s1 + $0x28] sm:$0xf] %vm153_vm0, %v539_v60 }
  0x51   :  { %v54_v1 = vld [vmem:[%s1385_s0 + $0xb4] sm:$0xf]  ;;  %v566_v5 = vmax.bf16 %v564_v57, %v562_v61  ;;  %v117_v6 = vld [vmem:[%s1385_s0 + $0x1b0] sm:$0xf]  ;;  %v589_v7 = vmax.bf16 %v587_v59, %v585_v62  ;;  %v595_v8 = vsel %vm153_vm0, %v101_v58, 4286644096 }
  0x52   :  { %v70_v9 = vld [vmem:[%s1385_s0 + $0xf4] sm:$0xf]  ;;  %v611_v10 = vsel %vm153_vm0, %v22_v63, 4286644096  ;;  %v614_v11 = vsel %vm153_vm0, %v38_v0, 4286644096 }
  0x53   :  { %v618_v12 = vsel %vm153_vm0, %v54_v1, 4286644096  ;;  %v570_v13 = vmax.bf16 %v568_v2, %v566_v5  ;;  %v133_v14 = vld [vmem:[%s1385_s0 + $0x1f0] sm:$0xf]  ;;  %v593_v16 = vmax.bf16 %v591_v4, %v589_v7  ;;  %v86_v17 = vld [vmem:[%s1385_s0 + $0x134] sm:$0xf]  ;;  %v616_v18 = vmax.bf16 %v614_v11, %v611_v10 }
  0x54   :  { %v149_v15 = vld [vmem:[%s1385_s0 + $0x230] sm:$0xf]  ;;  %v599_v19 = vsel %vm153_vm0, %v117_v6, 4286644096  ;;  %v102_v20 = vld [vmem:[%s1385_s0 + $0x174] sm:$0xf] }
  0x55   :  { %v622_v21 = vsel %vm153_vm0, %v70_v9, 4286644096  ;;  %v574_v22 = vmax.bf16 %v572_v3, %v570_v13  ;;  %v597_v23 = vmax.bf16 %v595_v8, %v593_v16  ;;  %v620_v24 = vmax.bf16 %v618_v12, %v616_v18  ;;  %v23_v25 = vld [vmem:[%s1385_s0 + $0x38] sm:$0xf]  ;;  %v118_v32 = vld [vmem:[%s1385_s0 + $0x1b4] sm:$0xf] }
  0x56   :  { %v39_v26 = vld [vmem:[%s1385_s0 + $0x78] sm:$0xf]  ;;  %v603_v28 = vsel %vm153_vm0, %v133_v14, 4286644096  ;;  %v607_v29 = vsel %vm153_vm0, %v149_v15, 4286644096 }
  0x57   :  { %v55_v27 = vld [vmem:[%s1385_s0 + $0xb8] sm:$0xf]  ;;  %v626_v30 = vsel %vm153_vm0, %v86_v17, 4286644096  ;;  %726 = vst.msk [vmem:[%s1386_s1 + $0x2c] sm:$0xf] %vm153_vm0, %v574_v22  ;;  %v601_v31 = vmax.bf16 %v599_v19, %v597_v23  ;;  %v624_v33 = vmax.bf16 %v622_v21, %v620_v24 }
  0x58   :  { %v630_v34 = vsel %vm153_vm0, %v102_v20, 4286644096  ;;  %v71_v35 = vld [vmem:[%s1385_s0 + $0xf8] sm:$0xf]  ;;  %v646_v36 = vsel %vm153_vm0, %v23_v25, 4286644096 }
  0x59   :  { %v649_v37 = vsel %vm153_vm0, %v39_v26, 4286644096  ;;  %v653_v38 = vsel %vm153_vm0, %v55_v27, 4286644096  ;;  %v605_v39 = vmax.bf16 %v603_v28, %v601_v31  ;;  %v134_v40 = vld [vmem:[%s1385_s0 + $0x1f4] sm:$0xf]  ;;  %v628_v42 = vmax.bf16 %v626_v30, %v624_v33 }
  0x5a   :  { %v150_v41 = vld [vmem:[%s1385_s0 + $0x234] sm:$0xf]  ;;  %v87_v43 = vld [vmem:[%s1385_s0 + $0x138] sm:$0xf]  ;;  %v651_v44 = vmax.bf16 %v649_v37, %v646_v36  ;;  %v634_v45 = vsel %vm153_vm0, %v118_v32, 4286644096 }
  0x5b   :  { %v103_v46 = vld [vmem:[%s1385_s0 + $0x178] sm:$0xf]  ;;  %v657_v47 = vsel %vm153_vm0, %v71_v35, 4286644096  ;;  %v609_v48 = vmax.bf16 %v607_v29, %v605_v39  ;;  %v632_v49 = vmax.bf16 %v630_v34, %v628_v42  ;;  %v24_v51 = vld [vmem:[%s1385_s0 + $0x3c] sm:$0xf] }
  0x5c   :  { %v655_v50 = vmax.bf16 %v653_v38, %v651_v44  ;;  %v40_v52 = vld [vmem:[%s1385_s0 + $0x7c] sm:$0xf]  ;;  %v638_v54 = vsel %vm153_vm0, %v134_v40, 4286644096  ;;  %v642_v55 = vsel %vm153_vm0, %v150_v41, 4286644096 }
  0x5d   :  { %v56_v53 = vld [vmem:[%s1385_s0 + $0xbc] sm:$0xf]  ;;  %v661_v56 = vsel %vm153_vm0, %v87_v43, 4286644096  ;;  %727 = vst.msk [vmem:[%s1386_s1 + $0x30] sm:$0xf] %vm153_vm0, %v609_v48  ;;  %v636_v57 = vmax.bf16 %v634_v45, %v632_v49 }
  0x5e   :  { %v119_v58 = vld [vmem:[%s1385_s0 + $0x1b8] sm:$0xf]  ;;  %v659_v59 = vmax.bf16 %v657_v47, %v655_v50  ;;  %v665_v60 = vsel %vm153_vm0, %v103_v46, 4286644096  ;;  %v72_v61 = vld [vmem:[%s1385_s0 + $0xfc] sm:$0xf] }
  0x5f   :  { %v681_v62 = vsel %vm153_vm0, %v24_v51, 4286644096  ;;  %v684_v63 = vsel %vm153_vm0, %v40_v52, 4286644096  ;;  %v688_v0 = vsel %vm153_vm0, %v56_v53, 4286644096  ;;  %v640_v1 = vmax.bf16 %v638_v54, %v636_v57 }
  0x60   :  { %v135_v2 = vld [vmem:[%s1385_s0 + $0x1f8] sm:$0xf]  ;;  %v663_v3 = vmax.bf16 %v661_v56, %v659_v59  ;;  %v88_v4 = vld [vmem:[%s1385_s0 + $0x13c] sm:$0xf]  ;;  %v686_v5 = vmax.bf16 %v684_v63, %v681_v62  ;;  %v669_v6 = vsel %vm153_vm0, %v119_v58, 4286644096 }
  0x61   :  { %v692_v7 = vsel %vm153_vm0, %v72_v61, 4286644096  ;;  %v644_v8 = vmax.bf16 %v642_v55, %v640_v1  ;;  %v151_v9 = vld [vmem:[%s1385_s0 + $0x238] sm:$0xf]  ;;  %v104_v11 = vld [vmem:[%s1385_s0 + $0x17c] sm:$0xf] }
  0x62   :  { %v667_v10 = vmax.bf16 %v665_v60, %v663_v3  ;;  %v690_v12 = vmax.bf16 %v688_v0, %v686_v5  ;;  %v673_v13 = vsel %vm153_vm0, %v135_v2, 4286644096  ;;  %v696_v14 = vsel %vm153_vm0, %v88_v4, 4286644096  ;;  %v120_v16 = vld [vmem:[%s1385_s0 + $0x1bc] sm:$0xf] }
  0x63   :  { %728 = vst.msk [vmem:[%s1386_s1 + $0x34] sm:$0xf] %vm153_vm0, %v644_v8  ;;  %v677_v18 = vsel %vm153_vm0, %v151_v9, 4286644096  ;;  %v700_v19 = vsel %vm153_vm0, %v104_v11, 4286644096 }
  0x64   :  { %v671_v15 = vmax.bf16 %v669_v6, %v667_v10  ;;  %v694_v17 = vmax.bf16 %v692_v7, %v690_v12  ;;  %v136_v21 = vld [vmem:[%s1385_s0 + $0x1fc] sm:$0xf]  ;;  %v704_v23 = vsel %vm153_vm0, %v120_v16, 4286644096 }
  0x65   :  { %v152_v25 = vld [vmem:[%s1385_s0 + $0x23c] sm:$0xf]  ;;  %v708_v27 = vsel %vm153_vm0, %v136_v21, 4286644096 }
  0x66   :  { %v675_v20 = vmax.bf16 %v673_v13, %v671_v15  ;;  %v698_v22 = vmax.bf16 %v696_v14, %v694_v17  ;;  %v712_v29 = vsel %vm153_vm0, %v152_v25, 4286644096 }
  0x68   :  { %v679_v24 = vmax.bf16 %v677_v18, %v675_v20  ;;  %v702_v26 = vmax.bf16 %v700_v19, %v698_v22 }
  0x6a   :  { %729 = vst.msk [vmem:[%s1386_s1 + $0x38] sm:$0xf] %vm153_vm0, %v679_v24  ;;  %v706_v28 = vmax.bf16 %v704_v23, %v702_v26 }
  0x6c   :  { %v710_v30 = vmax.bf16 %v708_v27, %v706_v28 }
  0x6e   :  { %v714_v31 = vmax.bf16 %v712_v29, %v710_v30 }
  0x70   :  { %730 = vst.msk [vmem:[%s1386_s1 + $0x3c] sm:$0xf] %vm153_vm0, %v714_v31 }

// kernel: student_net_resp_forward.25
= control target key start
LH: loop header
LB: loop body
LE: loop exit
PB: predicated region body
PF: predicated region fallthrough
CT: control target
= control target key end

     0   :  { %vm554_vm0 = vcmask 523264   ;;  %s1793_s1 = inlined_call_operand.vmem [shape: bf16[576,128], index: 1, kind: input, shape index: {}]   ;;  %s1794_s0 = inlined_call_operand.vmem [shape: bf16[128,576], index: 0, kind: input, shape index: {}]   ;;  %s1795_s2 = inlined_call_operand.vmem [shape: f32[1,128], index: 2, kind: input, shape index: {}]   ;;  %s1796_s3 = inlined_call_operand.vmem [shape: f32[1,128], index: 3, kind: input, shape index: {}]   ;;  %s1797_s4 = inlined_call_operand.vmem [shape: bf16[128,128], index: 4, kind: output, shape index: {}]  }
   0x1   :  { %v1353_v0 = vld [vmem:[%s1793_s1 + $0x78] sm:$0xff]   ;;  %v1357_v4 = vld [vmem:[%s1793_s1 + $0x70] sm:$0xff]   ;;  %v1361_v8 = vld [vmem:[%s1793_s1 + $0x68] sm:$0xff]  }
   0x2   :  { %v1354_v1 = vld [vmem:[%s1793_s1 + $0xf8] sm:$0xff]   ;;  %1181 = vmatprep.subr.bf16.mxu0 %v1353_v0  ;;  %v1358_v5 = vld [vmem:[%s1793_s1 + $0xf0] sm:$0xff]   ;;  %v1362_v9 = vld [vmem:[%s1793_s1 + $0xe8] sm:$0xff]  }
   0x3   :  { %v1355_v2 = vld [vmem:[%s1793_s1 + $0x38] sm:$0xff]   ;;  %1245 = vmatprep.subr.bf16.mxu1 %v1354_v1  ;;  %v1359_v6 = vld [vmem:[%s1793_s1 + $0x30] sm:$0xff]   ;;  %v1363_v10 = vld [vmem:[%s1793_s1 + $0x28] sm:$0xff]  }
   0x4   :  { %v1356_v3 = vld [vmem:[%s1793_s1 + $0xb8] sm:$0xff]   ;;  %1182 = vmatpush3.bf16.msra.mxu0 %v1355_v2  ;;  %v1360_v7 = vld [vmem:[%s1793_s1 + $0xb0] sm:$0xff]   ;;  %v1364_v11 = vld [vmem:[%s1793_s1 + $0xa8] sm:$0xff]  }
   0x5   :  { %1246 = vmatpush3.bf16.msra.mxu1 %v1356_v3  ;;  %1183 = vmatprep.subr.bf16.mxu0 %v1357_v4  ;;  %v1365_v12 = vld [vmem:[%s1793_s1 + $0x60] sm:$0xff]   ;;  %v1369_v16 = vld [vmem:[%s1793_s1 + $0x58] sm:$0xff]   ;;  %v1373_v20 = vld [vmem:[%s1793_s1 + $0x50] sm:$0xff]  }
   0x6   :  { %1247 = vmatprep.subr.bf16.mxu1 %v1358_v5  ;;  %v1366_v13 = vld [vmem:[%s1793_s1 + $0xe0] sm:$0xff]   ;;  %v1370_v17 = vld [vmem:[%s1793_s1 + $0xd8] sm:$0xff]   ;;  %v1374_v21 = vld [vmem:[%s1793_s1 + $0xd0] sm:$0xff]  }
   0x7   :  { %v1367_v14 = vld [vmem:[%s1793_s1 + $0x20] sm:$0xff]   ;;  %v1371_v18 = vld [vmem:[%s1793_s1 + $0x18] sm:$0xff]   ;;  %v1375_v22 = vld [vmem:[%s1793_s1 + $0x10] sm:$0xff]  }
   0x8   :  { %1184 = vmatpush3.bf16.msra.mxu0 %v1359_v6  ;;  %v1368_v15 = vld [vmem:[%s1793_s1 + $0xa0] sm:$0xff]   ;;  %v1372_v19 = vld [vmem:[%s1793_s1 + $0x98] sm:$0xff]   ;;  %v1376_v23 = vld [vmem:[%s1793_s1 + $0x90] sm:$0xff]  }
   0x9   :  { %1248 = vmatpush3.bf16.msra.mxu1 %v1360_v7  ;;  %1185 = vmatprep.subr.bf16.mxu0 %v1361_v8  ;;  %v1377_v24 = vld [vmem:[%s1793_s1 + $0x48] sm:$0xff]   ;;  %v1381_v28 = vld [vmem:[%s1793_s1 + $0x40] sm:$0xff]   ;;  %v1391_v36 = vld [vmem:[%s1793_s1 + $0x118] sm:$0xff]  }
   0xa   :  { %1249 = vmatprep.subr.bf16.mxu1 %v1362_v9  ;;  %v1378_v25 = vld [vmem:[%s1793_s1 + $0xc8] sm:$0xff]   ;;  %v1382_v29 = vld [vmem:[%s1793_s1 + $0xc0] sm:$0xff]   ;;  %v1404_v42 = vld [vmem:[%s1793_s1 + $0x110] sm:$0xff]  }
   0xb   :  { %v1379_v26 = vld [vmem:[%s1793_s1 + $0x8] sm:$0xff]   ;;  %v1383_v30 = vld [vmem:[%s1793_s1] sm:$0xff]   ;;  %v1400_v43 = vld [vmem:[%s1794_s0 + $0x5c] ss:$20 sps:$4 sm:$0xff]  }
   0xc   :  { %1186 = vmatpush3.bf16.msra.mxu0 %v1363_v10  ;;  %v1380_v27 = vld [vmem:[%s1793_s1 + $0x88] sm:$0xff]   ;;  %v1384_v31 = vld [vmem:[%s1793_s1 + $0x80] sm:$0xff]   ;;  %v1405_v47 = vld [vmem:[%s1794_s0 + $0x7c] ss:$20 sps:$4 sm:$0xff]  }
   0xd   :  { %1250 = vmatpush3.bf16.msra.mxu1 %v1364_v11  ;;  %1187 = vmatprep.subr.bf16.mxu0 %v1365_v12  ;;  %v1385_v32 = vld [vmem:[%s1794_s0] ss:$20 sps:$4 sm:$0xff]   ;;  %v1387_v33 = vld [vmem:[%s1794_s0 + $0x4] ss:$20 sps:$4 sm:$0xff]   ;;  %v1388_v34 = vld [vmem:[%s1794_s0 + $0x8] ss:$20 sps:$4 sm:$0xff]  }
   0xe   :  { %1251 = vmatprep.subr.bf16.mxu1 %v1366_v13  ;;  %v1390_v35 = vld [vmem:[%s1794_s0 + $0xc] ss:$20 sps:$4 sm:$0xff]   ;;  %611 = vmatprep.mubr.bf16.mxu0 %v1387_v33  ;;  %v1394_v38 = vld [vmem:[%s1794_s0 + $0x34] ss:$20 sps:$4 sm:$0xff]   ;;  %v1397_v40 = vld [vmem:[%s1794_s0 + $0x30] ss:$20 sps:$4 sm:$0xff]  }
   0xf   :  { %708 = vmatprep.mubr.bf16.mxu1 %v1390_v35  ;;  %v1392_v37 = vld [vmem:[%s1794_s0 + $0x2c] ss:$20 sps:$4 sm:$0xff]   ;;  %v1396_v39 = vld [vmem:[%s1794_s0 + $0x28] ss:$20 sps:$4 sm:$0xff]   ;;  %v1402_v44 = vld [vmem:[%s1794_s0 + $0x50] ss:$20 sps:$4 sm:$0xff]  }
  0x10   :  { %1188 = vmatpush3.bf16.msra.mxu0 %v1367_v14  ;;  %v1398_v41 = vld [vmem:[%s1794_s0 + $0x54] ss:$20 sps:$4 sm:$0xff]   ;;  %v1403_v45 = vld [vmem:[%s1794_s0 + $0x58] ss:$20 sps:$4 sm:$0xff]   ;;  %v1430_v49 = vld [vmem:[%s1793_s1 + $0x100] sm:$0xff]  }
  0x11   :  { %1252 = vmatpush3.bf16.msra.mxu1 %v1368_v15  ;;  %1189 = vmatprep.subr.bf16.mxu0 %v1369_v16  ;;  %v1417_v46 = vld [vmem:[%s1793_s1 + $0x108] sm:$0xff]   ;;  %v1407_v48 = vld [vmem:[%s1794_s0 + $0x84] ss:$20 sps:$4 sm:$0xff]   ;;  %v1410_v51 = vld [vmem:[%s1794_s0 + $0x80] ss:$20 sps:$4 sm:$0xff]  }
  0x12   :  { %1253 = vmatprep.subr.bf16.mxu1 %v1370_v17  ;;  %v1409_v50 = vld [vmem:[%s1794_s0 + $0x78] ss:$20 sps:$4 sm:$0xff]   ;;  %v1415_v54 = vld [vmem:[%s1794_s0 + $0xa0] ss:$20 sps:$4 sm:$0xff]   ;;  %v1416_v55 = vld [vmem:[%s1794_s0 + $0xa8] ss:$20 sps:$4 sm:$0xff]  }
  0x13   :  { %v1411_v52 = vld [vmem:[%s1794_s0 + $0xa4] ss:$20 sps:$4 sm:$0xff]   ;;  %v1413_v53 = vld [vmem:[%s1794_s0 + $0xac] ss:$20 sps:$4 sm:$0xff]   ;;  %v1420_v57 = vld [vmem:[%s1794_s0 + $0xd4] ss:$20 sps:$4 sm:$0xff]  }
  0x14   :  { %1190 = vmatpush3.bf16.msra.mxu0 %v1371_v18  ;;  %v1418_v56 = vld [vmem:[%s1794_s0 + $0xcc] ss:$20 sps:$4 sm:$0xff]   ;;  %v1422_v58 = vld [vmem:[%s1794_s0 + $0xc8] ss:$20 sps:$4 sm:$0xff]   ;;  %v1423_v59 = vld [vmem:[%s1794_s0 + $0xd0] ss:$20 sps:$4 sm:$0xff]  }
  0x15   :  { %1254 = vmatpush3.bf16.msra.mxu1 %v1372_v19  ;;  %1191 = vmatprep.subr.bf16.mxu0 %v1373_v20  ;;  %v1424_v60 = vld [vmem:[%s1794_s0 + $0xf4] ss:$20 sps:$4 sm:$0xff]   ;;  %v1426_v61 = vld [vmem:[%s1794_s0 + $0xfc] ss:$20 sps:$4 sm:$0xff]   ;;  %v1429_v63 = vld [vmem:[%s1794_s0 + $0xf8] ss:$20 sps:$4 sm:$0xff]  }
  0x16   :  { %1255 = vmatprep.subr.bf16.mxu1 %v1374_v21  ;;  %v1428_v62 = vld [vmem:[%s1794_s0 + $0xf0] ss:$20 sps:$4 sm:$0xff]   ;;  %v1435_v2 = vld [vmem:[%s1794_s0 + $0x118] ss:$20 sps:$4 sm:$0xff]   ;;  %v1436_v3 = vld [vmem:[%s1794_s0 + $0x120] ss:$20 sps:$4 sm:$0xff]  }
  0x17   :  { %v1431_v0 = vld [vmem:[%s1794_s0 + $0x11c] ss:$20 sps:$4 sm:$0xff]   ;;  %v1433_v1 = vld [vmem:[%s1794_s0 + $0x124] ss:$20 sps:$4 sm:$0xff]   ;;  %v1441_v8 = vld [vmem:[%s1794_s0 + $0x60] ss:$20 sps:$4 sm:$0xff]  }
  0x18   :  { %1192 = vmatpush3.bf16.msra.mxu0 %v1375_v22  ;;  %v1437_v4 = vld [vmem:[%s1794_s0 + $0x10] ss:$20 sps:$4 sm:$0xff]   ;;  %v1439_v6 = vld [vmem:[%s1794_s0 + $0x38] ss:$20 sps:$4 sm:$0xff]   ;;  %v1442_v9 = vld [vmem:[%s1794_s0 + $0x100] ss:$20 sps:$4 sm:$0xff]  }
  0x19   :  { %1256 = vmatpush3.bf16.msra.mxu1 %v1376_v23  ;;  %1193 = vmatprep.subr.bf16.mxu0 %v1377_v24  ;;  %v1438_v5 = vld [vmem:[%s1794_s0 + $0xb0] ss:$20 sps:$4 sm:$0xff]   ;;  %v1440_v7 = vld [vmem:[%s1794_s0 + $0xd8] ss:$20 sps:$4 sm:$0xff]   ;;  %v1443_v10 = vld [vmem:[%s1794_s0 + $0x88] ss:$20 sps:$4 sm:$0xff]  }
  0x1a   :  { %1257 = vmatprep.subr.bf16.mxu1 %v1378_v25  ;;  %v1444_v11 = vld [vmem:[%s1794_s0 + $0x128] ss:$20 sps:$4 sm:$0xff]  }
  0x1c   :  { %1194 = vmatpush3.bf16.msra.mxu0 %v1379_v26 }
  0x1d   :  { %1258 = vmatpush3.bf16.msra.mxu1 %v1380_v27  ;;  %1195 = vmatprep.subr.bf16.mxu0 %v1381_v28 }
  0x1e   :  { %1259 = vmatprep.subr.bf16.mxu1 %v1382_v29 }
  0x20   :  { %1196 = vmatpush3.bf16.msra.mxu0 %v1383_v30 }
  0x21   :  { %1260 = vmatpush3.bf16.msra.mxu1 %v1384_v31  ;;  %1321 = vmatprep.subr.bf16.mxu0 %v1391_v36 }
  0x22   :  { %1345 = vmatprep.subr.bf16.mxu1 %v1391_v36 }
  0x23   :  { %612 = vmatmul.mubr.bf16.vlgmr.msra.gmra.mxu0 %v1385_v32 }
  0x24   :  { %709 = vmatmul.mubr.bf16.vlgmr.msra.gmra.mxu1 %v1388_v34  ;;  %1322 = vmatpush3.bf16.msra.mxu0 %v1391_v36 }
  0x25   :  { %1349 = vmatpush3.bf16.msra.mxu1 %v1391_v36  ;;  %619 = vmatprep.mubr.bf16.mxu0 %v1392_v37 }
  0x26   :  { %716 = vmatprep.mubr.bf16.mxu1 %v1394_v38  ;;  %1323 = vmatprep.subr.bf16.mxu0 %v1404_v42 }
  0x27   :  { %1346 = vmatprep.subr.bf16.mxu1 %v1404_v42 }
  0x28   :  { %1324 = vmatpush3.bf16.msra.mxu0 %v1404_v42 }
  0x29   :  { %1350 = vmatpush3.bf16.msra.mxu1 %v1404_v42  ;;  %1325 = vmatprep.subr.bf16.mxu0 %v1417_v46 }
  0x2a   :  { %1347 = vmatprep.subr.bf16.mxu1 %v1417_v46 }
  0x2b   :  { %620 = vmatmul.mubr.bf16.gmra.mxu0 %v1396_v39 }
  0x2c   :  { %717 = vmatmul.mubr.bf16.gmra.mxu1 %v1397_v40  ;;  %627 = vmatprep.mubr.bf16.mxu0 %v1398_v41 }
  0x2d   :  { %724 = vmatprep.mubr.bf16.mxu1 %v1400_v43  ;;  %1326 = vmatpush3.bf16.msra.mxu0 %v1417_v46 }
  0x2e   :  { %1351 = vmatpush3.bf16.msra.mxu1 %v1417_v46  ;;  %1327 = vmatprep.subr.bf16.mxu0 %v1430_v49 }
  0x2f   :  { %1348 = vmatprep.subr.bf16.mxu1 %v1430_v49 }
  0x31   :  { %1328 = vmatpush3.bf16.msra.mxu0 %v1430_v49 }
  0x32   :  { %1352 = vmatpush3.bf16.msra.mxu1 %v1430_v49 }
  0x33   :  { %628 = vmatmul.mubr.bf16.gmra.mxu0 %v1402_v44 }
  0x34   :  { %725 = vmatmul.mubr.bf16.gmra.mxu1 %v1403_v45  ;;  %635 = vmatprep.mubr.bf16.mxu0 %v1405_v47 }
  0x35   :  { %732 = vmatprep.mubr.bf16.mxu1 %v1407_v48 }
  0x3b   :  { %636 = vmatmul.mubr.bf16.gmra.mxu0 %v1409_v50 }
  0x3c   :  { %733 = vmatmul.mubr.bf16.gmra.mxu1 %v1410_v51  ;;  %643 = vmatprep.mubr.bf16.mxu0 %v1411_v52 }
  0x3d   :  { %740 = vmatprep.mubr.bf16.mxu1 %v1413_v53 }
  0x43   :  { %644 = vmatmul.mubr.bf16.gmra.mxu0 %v1415_v54 }
  0x44   :  { %741 = vmatmul.mubr.bf16.gmra.mxu1 %v1416_v55  ;;  %651 = vmatprep.mubr.bf16.mxu0 %v1418_v56 }
  0x45   :  { %748 = vmatprep.mubr.bf16.mxu1 %v1420_v57 }
  0x4b   :  { %652 = vmatmul.mubr.bf16.gmra.mxu0 %v1422_v58 }
  0x4c   :  { %749 = vmatmul.mubr.bf16.gmra.mxu1 %v1423_v59  ;;  %659 = vmatprep.mubr.bf16.mxu0 %v1424_v60 }
  0x4d   :  { %756 = vmatprep.mubr.bf16.mxu1 %v1426_v61 }
  0x53   :  { %660 = vmatmul.mubr.bf16.gmra.mxu0 %v1428_v62 }
  0x54   :  { %757 = vmatmul.mubr.bf16.gmra.mxu1 %v1429_v63  ;;  %667 = vmatprep.mubr.bf16.mxu0 %v1431_v0 }
  0x55   :  { %764 = vmatprep.mubr.bf16.mxu1 %v1433_v1 }
  0x5b   :  { %668 = vmatmul.mubr.bf16.gmra.mxu0 %v1435_v2 }
  0x5c   :  { %765 = vmatmul.mubr.bf16.gmra.mxu1 %v1436_v3  ;;  %1329 = vmatprep.mubr.msk.bf16.mxu0 %vm554_vm0, %v1437_v4 }
  0x5d   :  { %1337 = vmatprep.mubr.msk.bf16.mxu1 %vm554_vm0, %v1438_v5 }
  0x63   :  { %1330 = vmatmul.mubr.msk.bf16.vlgmr.msra.gmra.mxu0 %vm554_vm0, %v1439_v6 }
  0x64   :  { %1338 = vmatmul.mubr.msk.bf16.vlgmr.msra.gmra.mxu1 %vm554_vm0, %v1440_v7  ;;  %1333 = vmatprep.mubr.msk.bf16.mxu0 %vm554_vm0, %v1441_v8 }
  0x65   :  { %1341 = vmatprep.mubr.msk.bf16.mxu1 %vm554_vm0, %v1442_v9 }
  0x6b   :  { %1334 = vmatmul.mubr.msk.bf16.gmra.mxu0 %vm554_vm0, %v1443_v10 }
  0x6c   :  { %1342 = vmatmul.mubr.msk.bf16.gmra.mxu1 %vm554_vm0, %v1444_v11 }
  0xe3   :  { %v1197_v12 = vpop.f32.mrf.mxu0 }
  0xe4   :  { %v1261_v13 = vpop.f32.mrf.mxu1 }
  0xe5   :  { %v1198_v14 = vpop.f32.mrf.mxu0 }
  0xe6   :  { %v1199_v15 = vadd.f32 %v1198_v14, %v1197_v12  ;;  %v1262_v16 = vpop.f32.mrf.mxu1 }
  0xe7   :  { %v1263_v17 = vadd.f32 %v1262_v16, %v1261_v13  ;;  %v1200_v18 = vpop.f32.mrf.mxu0 }
  0xe8   :  { %v1264_v19 = vpop.f32.mrf.mxu1 }
  0xe9   :  { %v1201_v20 = vpop.f32.mrf.mxu0  ;;  %v1706_v21 = vadd.f32 %v1263_v17, %v1199_v15 }
  0xea   :  { %v1265_v22 = vpop.f32.mrf.mxu1  ;;  %v1202_v8 = vadd.f32 %v1201_v20, %v1200_v18 }
  0xeb   :  { %1798 = vst [vmem:[#allocation2_spill] sm:$0xff] %v1706_v21  ;;  %v1203_v23 = vpop.f32.mrf.mxu0  ;;  %v1266_v9 = vadd.f32 %v1265_v22, %v1264_v19 }
  0xec   :  { %v1267_v24 = vpop.f32.mrf.mxu1 }
  0xed   :  { %v1204_v25 = vpop.f32.mrf.mxu0 }
  0xee   :  { %v1268_v26 = vpop.f32.mrf.mxu1  ;;  %v1205_v11 = vadd.f32 %v1204_v25, %v1203_v23 }
  0xef   :  { %v1206_v27 = vpop.f32.mrf.mxu0  ;;  %v1269_v12 = vadd.f32 %v1268_v26, %v1267_v24 }
  0xf0   :  { %v1270_v28 = vpop.f32.mrf.mxu1 }
  0xf1   :  { %v1207_v29 = vpop.f32.mrf.mxu0 }
  0xf2   :  { %v1271_v30 = vpop.f32.mrf.mxu1  ;;  %v1208_v13 = vadd.f32 %v1207_v29, %v1206_v27 }
  0xf3   :  { %v1209_v31 = vpop.f32.mrf.mxu0  ;;  %v1272_v14 = vadd.f32 %v1271_v30, %v1270_v28 }
  0xf4   :  { %v1273_v32 = vpop.f32.mrf.mxu1 }
  0xf5   :  { %v1210_v33 = vpop.f32.mrf.mxu0 }
  0xf6   :  { %v1274_v34 = vpop.f32.mrf.mxu1  ;;  %v1211_v16 = vadd.f32 %v1210_v33, %v1209_v31 }
  0xf7   :  { %v1212_v35 = vpop.f32.mrf.mxu0  ;;  %v1275_v17 = vadd.f32 %v1274_v34, %v1273_v32  ;;  %v719_v32 = vadd.f32 %v1269_v12, %v1205_v11  ;;  %v722_v34 = vadd.f32 %v1272_v14, %v1208_v13 }
  0xf8   :  { %v1276_v36 = vpop.f32.mrf.mxu1 }
  0xf9   :  { %v1213_v37 = vpop.f32.mrf.mxu0 }
  0xfa   :  { %v1277_v38 = vpop.f32.mrf.mxu1  ;;  %v1214_v21 = vadd.f32 %v1213_v37, %v1212_v35  ;;  %v714_v35 = vadd.f32 %v1266_v9, %v1202_v8  ;;  %v1719_v37 = vld [vmem:[%s1795_s2] ss:$0 sm:$0xff] }
  0xfb   :  { %v1215_v39 = vpop.f32.mrf.mxu0 }
  0xfc   :  { %v1279_v40 = vpop.f32.mrf.mxu1 }
  0xfd   :  { %v1216_v41 = vpop.f32.mrf.mxu0 }
  0xfe   :  { %v1280_v42 = vpop.f32.mrf.mxu1 }
  0xff   :  { %v1218_v43 = vpop.f32.mrf.mxu0 }
 0x100   :  { %v1282_v44 = vpop.f32.mrf.mxu1 }
 0x101   :  { %v1219_v45 = vpop.f32.mrf.mxu0 }
 0x102   :  { %v1283_v46 = vpop.f32.mrf.mxu1  ;;  %v1220_v22 = vadd.f32 %v1219_v45, %v1218_v43 }
 0x103   :  { %v1221_v47 = vpop.f32.mrf.mxu0  ;;  %v1284_v23 = vadd.f32 %v1283_v46, %v1282_v44 }
 0x104   :  { %v1285_v48 = vpop.f32.mrf.mxu1 }
 0x105   :  { %v1222_v49 = vpop.f32.mrf.mxu0  ;;  %v1723_v46 = vadd.f32 %v1284_v23, %v1220_v22 }
 0x106   :  { %v1286_v50 = vpop.f32.mrf.mxu1  ;;  %v1223_v25 = vadd.f32 %v1222_v49, %v1221_v47 }
 0x107   :  { %v1224_v51 = vpop.f32.mrf.mxu0  ;;  %v1287_v24 = vadd.f32 %v1286_v50, %v1285_v48 }
 0x108   :  { %v1288_v52 = vpop.f32.mrf.mxu1 }
 0x109   :  { %v1225_v53 = vpop.f32.mrf.mxu0  ;;  %v743_v49 = vadd.f32 %v1287_v24, %v1223_v25 }
 0x10a   :  { %v1289_v54 = vpop.f32.mrf.mxu1  ;;  %v1226_v27 = vadd.f32 %v1225_v53, %v1224_v51 }
 0x10b   :  { %v1227_v55 = vpop.f32.mrf.mxu0  ;;  %v1290_v29 = vadd.f32 %v1289_v54, %v1288_v52 }
 0x10c   :  { %v1291_v56 = vpop.f32.mrf.mxu1 }
 0x10d   :  { %v1228_v57 = vpop.f32.mrf.mxu0  ;;  %v746_v51 = vadd.f32 %v1290_v29, %v1226_v27 }
 0x10e   :  { %v1292_v58 = vpop.f32.mrf.mxu1  ;;  %v1229_v18 = vadd.f32 %v1228_v57, %v1227_v55  ;;  %v1803_v55 = vld [vmem:[#allocation2_spill] sm:$0xff] }
 0x10f   :  { %v1230_v59 = vpop.f32.mrf.mxu0  ;;  %v1293_v20 = vadd.f32 %v1292_v58, %v1291_v56 }
 0x110   :  { %v1294_v60 = vpop.f32.mrf.mxu1 }
 0x111   :  { %v1231_v61 = vpop.f32.mrf.mxu0 }
 0x112   :  { %v1295_v62 = vpop.f32.mrf.mxu1  ;;  %v1232_v28 = vadd.f32 %v1231_v61, %v1230_v59 }
 0x113   :  { %v1233_v63 = vpop.f32.mrf.mxu0  ;;  %v1296_v30 = vadd.f32 %v1295_v62, %v1294_v60 }
 0x114   :  { %v1297_v0 = vpop.f32.mrf.mxu1 }
 0x115   :  { %v1234_v1 = vpop.f32.mrf.mxu0  ;;  %v754_v50 = vadd.f32 %v1296_v30, %v1232_v28 }
 0x116   :  { %v1298_v2 = vpop.f32.mrf.mxu1 }
 0x117   :  { %v1708_v3 = vpop.f32.mrf.mxu0  ;;  %v1299_v43 = vadd.f32 %v1298_v2, %v1297_v0 }
 0x118   :  { %1799 = vst [vmem:[#allocation3_spill] sm:$0xff] %v1708_v3  ;;  %v1710_v4 = vpop.f32.mrf.mxu1  ;;  %v1278_v3 = vadd.f32 %v1277_v38, %v1276_v36  ;;  %v751_v38 = vadd.f32 %v1293_v20, %v1229_v18 }
 0x119   :  { %1800 = vst [vmem:[#allocation4_spill] sm:$0xff] %v1710_v4  ;;  %v1712_v5 = vpop.f32.mrf.mxu0 }
 0x11a   :  { %1801 = vst [vmem:[#allocation5_spill] sm:$0xff] %v1712_v5  ;;  %v1714_v6 = vpop.f32.mrf.mxu1  ;;  %v1217_v5 = vadd.f32 %v1216_v41, %v1215_v39  ;;  %v1721_v41 = vadd.f32 %v1278_v3, %v1214_v21  ;;  %v1729_v21 = vld [vmem:[%s1796_s3] ss:$0 sm:$0xff] }
 0x11b   :  { %1802 = vst [vmem:[#allocation6_spill] sm:$0xff] %v1714_v6  ;;  %v1239_v7 = vpop.f32.mrf.mxu0  ;;  %v1281_v6 = vadd.f32 %v1280_v42, %v1279_v40  ;;  %v727_v40 = vadd.f32 %v1275_v17, %v1211_v16  ;;  %v1235_v42 = vadd.f32 %v1234_v1, %v1233_v63 }
 0x11c   :  { %v1303_v10 = vpop.f32.mrf.mxu1 }
 0x11d   :  { %v1240_v15 = vpop.f32.mrf.mxu0  ;;  %v735_v39 = vadd.f32 %v1281_v6, %v1217_v5  ;;  %v759_v5 = vadd.f32 %v1299_v43, %v1235_v42 }
 0x11e   :  { %v1304_v4 = vpop.f32.mrf.mxu1  ;;  %v1241_v52 = vadd.f32 %v1240_v15, %v1239_v7 }
 0x11f   :  { %v1242_v19 = vpop.f32.mrf.mxu0  ;;  %v1305_v53 = vadd.f32 %v1304_v4, %v1303_v10  ;;  %v1804_v63 = vld [vmem:[#allocation3_spill] sm:$0xff] }
 0x120   :  { %v1306_v26 = vpop.f32.mrf.mxu1  ;;  %v1806_v6 = vld [vmem:[#allocation4_spill] sm:$0xff] }
 0x121   :  { %v1243_v31 = vpop.f32.mrf.mxu0  ;;  %v1805_v0 = vld [vmem:[#allocation5_spill] sm:$0xff]  ;;  %v767_v17 = vadd.f32 %v1305_v53, %v1241_v52 }
 0x122   :  { %v1307_v33 = vpop.f32.mrf.mxu1  ;;  %v1244_v58 = vadd.f32 %v1243_v31, %v1242_v19  ;;  %v1238_v1 = vadd.f32 %v1805_v0, %v1804_v63  ;;  %v1807_v7 = vld [vmem:[#allocation6_spill] sm:$0xff] }
 0x123   :  { %v1331_v36 = vpop.f32.mrf.mxu0  ;;  %v1308_v59 = vadd.f32 %v1307_v33, %v1306_v26  ;;  %v1302_v8 = vadd.f32 %v1807_v7, %v1806_v6 }
 0x124   :  { %v816_v44 = vadd.f32 %v1331_v36, %v719_v32  ;;  %v1339_v45 = vpop.f32.mrf.mxu1 }
 0x125   :  { %v848_v47 = vadd.f32 %v1339_v45, %v751_v38  ;;  %v807_v48 = vpop.f32.mrf.mxu0  ;;  %v770_v23 = vadd.f32 %v1308_v59, %v1244_v58 }
 0x126   :  { %v879_v54 = vmul.f32 %v1719_v37, %v816_v44  ;;  %v808_v56 = vadd.f32 %v807_v48, %v1803_v55  ;;  %v839_v57 = vpop.f32.mrf.mxu1 }
 0x127   :  { %v887_v60 = vmul.f32 %v1719_v37, %v848_v47  ;;  %v840_v61 = vadd.f32 %v839_v57, %v743_v49  ;;  %v1332_v62 = vpop.f32.mrf.mxu0 }
 0x128   :  { %v877_v2 = vmul.f32 %v1719_v37, %v808_v56  ;;  %v819_v3 = vadd.f32 %v1332_v62, %v722_v34  ;;  %v1340_v4 = vpop.f32.mrf.mxu1  ;;  %v902_v9 = vadd.f32 %v1729_v21, %v879_v54 }
 0x129   :  { %v885_v10 = vmul.f32 %v1719_v37, %v840_v61  ;;  %v851_v11 = vadd.f32 %v1340_v4, %v754_v50  ;;  %v810_v12 = vpop.f32.mrf.mxu0  ;;  %v910_v13 = vadd.f32 %v1729_v21, %v887_v60  ;;  %v762_v60 = vadd.f32 %v1302_v8, %v1238_v1 }
 0x12a   :  { %v880_v14 = vmul.f32 %v1719_v37, %v819_v3  ;;  %v811_v15 = vadd.f32 %v810_v12, %v714_v35  ;;  %v842_v16 = vpop.f32.mrf.mxu1  ;;  %v900_v18 = vadd.f32 %v1729_v21, %v877_v2  ;;  %v918_v28 = vmax.f32 %v902_v9, 0.0 }
 0x12b   :  { %v888_v20 = vmul.f32 %v1719_v37, %v851_v11  ;;  %v843_v19 = vadd.f32 %v842_v16, %v746_v51  ;;  %v1335_v22 = vpop.f32.mrf.mxu0  ;;  %v908_v25 = vadd.f32 %v1729_v21, %v885_v10  ;;  %v926_v34 = vmax.f32 %v910_v13, 0.0 }
 0x12c   :  { %v903_v24 = vadd.f32 %v1729_v21, %v880_v14  ;;  %v878_v26 = vmul.f32 %v1719_v37, %v811_v15  ;;  %v832_v27 = vadd.f32 %v1335_v22, %v735_v39  ;;  %v1343_v29 = vpop.f32.mrf.mxu1  ;;  %v916_v43 = vmax.f32 %v900_v18, 0.0 }
 0x12d   :  { %v911_v30 = vadd.f32 %v1729_v21, %v888_v20  ;;  %v886_v31 = vmul.f32 %v1719_v37, %v843_v19  ;;  %v864_v33 = vadd.f32 %v1343_v29, %v767_v17  ;;  %v823_v32 = vpop.f32.mrf.mxu0  ;;  %v924_v48 = vmax.f32 %v908_v25, 0.0 }
 0x12e   :  { %v919_v35 = vmax.f32 %v903_v24, 0.0  ;;  %v901_v36 = vadd.f32 %v1729_v21, %v878_v26  ;;  %v824_v38 = vadd.f32 %v823_v32, %v727_v40  ;;  %v855_v42 = vpop.f32.mrf.mxu1  ;;  %v883_v51 = vmul.f32 %v1719_v37, %v832_v27 }
 0x12f   :  { %v927_v44 = vmax.f32 %v911_v30, 0.0  ;;  %v909_v45 = vadd.f32 %v1729_v21, %v886_v31  ;;  %v856_v47 = vadd.f32 %v855_v42, %v759_v5  ;;  %v1336_v39 = vpop.f32.mrf.mxu0  ;;  %v891_v55 = vmul.f32 %v1719_v37, %v864_v33 }
 0x130   :  { %v1142_v49 = vpack.c.bf16 %v919_v35, %v918_v28  ;;  %v917_v50 = vmax.f32 %v901_v36, 0.0  ;;  %v1344_v52 = vpop.f32.mrf.mxu1  ;;  %v881_v56 = vmul.f32 %v1719_v37, %v824_v38  ;;  %v835_v59 = vadd.f32 %v1336_v39, %v1723_v46 }
 0x131   :  { %v1162_v53 = vpack.c.bf16 %v927_v44, %v926_v34  ;;  %v925_v54 = vmax.f32 %v909_v45, 0.0  ;;  %v826_v40 = vpop.f32.mrf.mxu0  ;;  %v889_v58 = vmul.f32 %v1719_v37, %v856_v47  ;;  %v867_v63 = vadd.f32 %v1344_v52, %v770_v23 }
 0x132   :  { %1174 = vst [vmem:[%s1797_s4 + $0x8] sm:$0xff] %v1142_v49   ;;  %v1137_v57 = vpack.c.bf16 %v917_v50, %v916_v43  ;;  %v858_v61 = vpop.f32.mrf.mxu1  ;;  %v906_v0 = vadd.f32 %v1729_v21, %v883_v51  ;;  %v884_v2 = vmul.f32 %v1719_v37, %v835_v59  ;;  %v827_v3 = vadd.f32 %v826_v40, %v1721_v41 }
 0x133   :  { %1178 = vst [vmem:[%s1797_s4 + $0x28] sm:$0xff] %v1162_v53   ;;  %v1157_v62 = vpack.c.bf16 %v925_v54, %v924_v48  ;;  %v859_v4 = vadd.f32 %v858_v61, %v762_v60  ;;  %v914_v46 = vadd.f32 %v1729_v21, %v891_v55  ;;  %v904_v1 = vadd.f32 %v1729_v21, %v881_v56 }
 0x134   :  { %1138 = vst [vmem:[%s1797_s4] sm:$0xff] %v1137_v57   ;;  %v892_v5 = vmul.f32 %v1719_v37, %v867_v63  ;;  %v912_v6 = vadd.f32 %v1729_v21, %v889_v58  ;;  %v907_v7 = vadd.f32 %v1729_v21, %v884_v2  ;;  %v882_v8 = vmul.f32 %v1719_v37, %v827_v3 }
 0x135   :  { %1177 = vst [vmem:[%s1797_s4 + $0x20] sm:$0xff] %v1157_v62   ;;  %v890_v9 = vmul.f32 %v1719_v37, %v859_v4  ;;  %v922_v10 = vmax.f32 %v906_v0, 0.0  ;;  %v930_v14 = vmax.f32 %v914_v46, 0.0  ;;  %v920_v15 = vmax.f32 %v904_v1, 0.0 }
 0x136   :  { %v915_v41 = vadd.f32 %v1729_v21, %v892_v5  ;;  %v923_v11 = vmax.f32 %v907_v7, 0.0  ;;  %v905_v12 = vadd.f32 %v1729_v21, %v882_v8  ;;  %v928_v17 = vmax.f32 %v912_v6, 0.0 }
 0x137   :  { %v913_v13 = vadd.f32 %v1729_v21, %v890_v9 }
 0x138   :  { %v931_v16 = vmax.f32 %v915_v41, 0.0  ;;  %v1152_v18 = vpack.c.bf16 %v923_v11, %v922_v10  ;;  %v921_v20 = vmax.f32 %v905_v12, 0.0 }
 0x139   :  { %v929_v19 = vmax.f32 %v913_v13, 0.0 }
 0x13a   :  { %v1172_v22 = vpack.c.bf16 %v931_v16, %v930_v14  ;;  %1176 = vst [vmem:[%s1797_s4 + $0x18] sm:$0xff] %v1152_v18   ;;  %v1147_v37 = vpack.c.bf16 %v921_v20, %v920_v15 }
 0x13b   :  { %v1167_v23 = vpack.c.bf16 %v929_v19, %v928_v17 }
 0x13c   :  { %1180 = vst [vmem:[%s1797_s4 + $0x38] sm:$0xff] %v1172_v22   ;;  %1175 = vst [vmem:[%s1797_s4 + $0x10] sm:$0xff] %v1147_v37  }
 0x13d   :  { %1179 = vst [vmem:[%s1797_s4 + $0x30] sm:$0xff] %v1167_v23  }

// kernel: student_net_resp_forward.26
= control target key start
LH: loop header
LB: loop body
LE: loop exit
PB: predicated region body
PF: predicated region fallthrough
CT: control target
= control target key end

     0   :  { %vm557_vm0 = vcmask 523264   ;;  %s2046_s1 = inlined_call_operand.vmem [shape: bf16[576,128], index: 1, kind: input, shape index: {}]   ;;  %s2047_s0 = inlined_call_operand.vmem [shape: bf16[128,576], index: 0, kind: input, shape index: {}]   ;;  %s2048_s4 = inlined_call_operand.vmem [shape: bf16[128,128], index: 4, kind: input, shape index: {}]   ;;  %s2049_s2 = inlined_call_operand.vmem [shape: f32[1,128], index: 2, kind: input, shape index: {}]   ;;  %s2050_s3 = inlined_call_operand.vmem [shape: f32[1,128], index: 3, kind: input, shape index: {}]   ;;  %s2051_s5 = inlined_call_operand.vmem [shape: bf16[128,128], index: 5, kind: output, shape index: {}]  }
   0x1   :  { %v1443_v0 = vld [vmem:[%s2046_s1 + $0x78] sm:$0xff]   ;;  %v1447_v4 = vld [vmem:[%s2046_s1 + $0x70] sm:$0xff]   ;;  %v1451_v8 = vld [vmem:[%s2046_s1 + $0x68] sm:$0xff]  }
   0x2   :  { %v1444_v1 = vld [vmem:[%s2046_s1 + $0xf8] sm:$0xff]   ;;  %1271 = vmatprep.subr.bf16.mxu0 %v1443_v0  ;;  %v1448_v5 = vld [vmem:[%s2046_s1 + $0xf0] sm:$0xff]   ;;  %v1452_v9 = vld [vmem:[%s2046_s1 + $0xe8] sm:$0xff]  }
   0x3   :  { %v1445_v2 = vld [vmem:[%s2046_s1 + $0x38] sm:$0xff]   ;;  %1335 = vmatprep.subr.bf16.mxu1 %v1444_v1  ;;  %v1449_v6 = vld [vmem:[%s2046_s1 + $0x30] sm:$0xff]   ;;  %v1453_v10 = vld [vmem:[%s2046_s1 + $0x28] sm:$0xff]  }
   0x4   :  { %v1446_v3 = vld [vmem:[%s2046_s1 + $0xb8] sm:$0xff]   ;;  %1272 = vmatpush3.bf16.msra.mxu0 %v1445_v2  ;;  %v1450_v7 = vld [vmem:[%s2046_s1 + $0xb0] sm:$0xff]   ;;  %v1454_v11 = vld [vmem:[%s2046_s1 + $0xa8] sm:$0xff]  }
   0x5   :  { %1336 = vmatpush3.bf16.msra.mxu1 %v1446_v3  ;;  %1273 = vmatprep.subr.bf16.mxu0 %v1447_v4  ;;  %v1455_v12 = vld [vmem:[%s2046_s1 + $0x60] sm:$0xff]   ;;  %v1459_v16 = vld [vmem:[%s2046_s1 + $0x58] sm:$0xff]   ;;  %v1463_v20 = vld [vmem:[%s2046_s1 + $0x50] sm:$0xff]  }
   0x6   :  { %1337 = vmatprep.subr.bf16.mxu1 %v1448_v5  ;;  %v1456_v13 = vld [vmem:[%s2046_s1 + $0xe0] sm:$0xff]   ;;  %v1460_v17 = vld [vmem:[%s2046_s1 + $0xd8] sm:$0xff]   ;;  %v1464_v21 = vld [vmem:[%s2046_s1 + $0xd0] sm:$0xff]  }
   0x7   :  { %v1457_v14 = vld [vmem:[%s2046_s1 + $0x20] sm:$0xff]   ;;  %v1461_v18 = vld [vmem:[%s2046_s1 + $0x18] sm:$0xff]   ;;  %v1465_v22 = vld [vmem:[%s2046_s1 + $0x10] sm:$0xff]  }
   0x8   :  { %1274 = vmatpush3.bf16.msra.mxu0 %v1449_v6  ;;  %v1458_v15 = vld [vmem:[%s2046_s1 + $0xa0] sm:$0xff]   ;;  %v1462_v19 = vld [vmem:[%s2046_s1 + $0x98] sm:$0xff]   ;;  %v1466_v23 = vld [vmem:[%s2046_s1 + $0x90] sm:$0xff]  }
   0x9   :  { %1338 = vmatpush3.bf16.msra.mxu1 %v1450_v7  ;;  %1275 = vmatprep.subr.bf16.mxu0 %v1451_v8  ;;  %v1467_v24 = vld [vmem:[%s2046_s1 + $0x48] sm:$0xff]   ;;  %v1471_v28 = vld [vmem:[%s2046_s1 + $0x40] sm:$0xff]   ;;  %v1481_v36 = vld [vmem:[%s2046_s1 + $0x118] sm:$0xff]  }
   0xa   :  { %1339 = vmatprep.subr.bf16.mxu1 %v1452_v9  ;;  %v1468_v25 = vld [vmem:[%s2046_s1 + $0xc8] sm:$0xff]   ;;  %v1472_v29 = vld [vmem:[%s2046_s1 + $0xc0] sm:$0xff]   ;;  %v1494_v42 = vld [vmem:[%s2046_s1 + $0x110] sm:$0xff]  }
   0xb   :  { %v1469_v26 = vld [vmem:[%s2046_s1 + $0x8] sm:$0xff]   ;;  %v1473_v30 = vld [vmem:[%s2046_s1] sm:$0xff]   ;;  %v1490_v43 = vld [vmem:[%s2047_s0 + $0x5c] ss:$20 sps:$4 sm:$0xff]  }
   0xc   :  { %1276 = vmatpush3.bf16.msra.mxu0 %v1453_v10  ;;  %v1470_v27 = vld [vmem:[%s2046_s1 + $0x88] sm:$0xff]   ;;  %v1474_v31 = vld [vmem:[%s2046_s1 + $0x80] sm:$0xff]   ;;  %v1495_v47 = vld [vmem:[%s2047_s0 + $0x7c] ss:$20 sps:$4 sm:$0xff]  }
   0xd   :  { %1340 = vmatpush3.bf16.msra.mxu1 %v1454_v11  ;;  %1277 = vmatprep.subr.bf16.mxu0 %v1455_v12  ;;  %v1475_v32 = vld [vmem:[%s2047_s0] ss:$20 sps:$4 sm:$0xff]   ;;  %v1477_v33 = vld [vmem:[%s2047_s0 + $0x4] ss:$20 sps:$4 sm:$0xff]   ;;  %v1478_v34 = vld [vmem:[%s2047_s0 + $0x8] ss:$20 sps:$4 sm:$0xff]  }
   0xe   :  { %1341 = vmatprep.subr.bf16.mxu1 %v1456_v13  ;;  %v1480_v35 = vld [vmem:[%s2047_s0 + $0xc] ss:$20 sps:$4 sm:$0xff]   ;;  %614 = vmatprep.mubr.bf16.mxu0 %v1477_v33  ;;  %v1484_v38 = vld [vmem:[%s2047_s0 + $0x34] ss:$20 sps:$4 sm:$0xff]   ;;  %v1487_v40 = vld [vmem:[%s2047_s0 + $0x30] ss:$20 sps:$4 sm:$0xff]  }
   0xf   :  { %711 = vmatprep.mubr.bf16.mxu1 %v1480_v35  ;;  %v1482_v37 = vld [vmem:[%s2047_s0 + $0x2c] ss:$20 sps:$4 sm:$0xff]   ;;  %v1486_v39 = vld [vmem:[%s2047_s0 + $0x28] ss:$20 sps:$4 sm:$0xff]   ;;  %v1492_v44 = vld [vmem:[%s2047_s0 + $0x50] ss:$20 sps:$4 sm:$0xff]  }
  0x10   :  { %1278 = vmatpush3.bf16.msra.mxu0 %v1457_v14  ;;  %v1488_v41 = vld [vmem:[%s2047_s0 + $0x54] ss:$20 sps:$4 sm:$0xff]   ;;  %v1493_v45 = vld [vmem:[%s2047_s0 + $0x58] ss:$20 sps:$4 sm:$0xff]   ;;  %v1520_v49 = vld [vmem:[%s2046_s1 + $0x100] sm:$0xff]  }
  0x11   :  { %1342 = vmatpush3.bf16.msra.mxu1 %v1458_v15  ;;  %1279 = vmatprep.subr.bf16.mxu0 %v1459_v16  ;;  %v1507_v46 = vld [vmem:[%s2046_s1 + $0x108] sm:$0xff]   ;;  %v1497_v48 = vld [vmem:[%s2047_s0 + $0x84] ss:$20 sps:$4 sm:$0xff]   ;;  %v1500_v51 = vld [vmem:[%s2047_s0 + $0x80] ss:$20 sps:$4 sm:$0xff]  }
  0x12   :  { %1343 = vmatprep.subr.bf16.mxu1 %v1460_v17  ;;  %v1499_v50 = vld [vmem:[%s2047_s0 + $0x78] ss:$20 sps:$4 sm:$0xff]   ;;  %v1505_v54 = vld [vmem:[%s2047_s0 + $0xa0] ss:$20 sps:$4 sm:$0xff]   ;;  %v1506_v55 = vld [vmem:[%s2047_s0 + $0xa8] ss:$20 sps:$4 sm:$0xff]  }
  0x13   :  { %v1501_v52 = vld [vmem:[%s2047_s0 + $0xa4] ss:$20 sps:$4 sm:$0xff]   ;;  %v1503_v53 = vld [vmem:[%s2047_s0 + $0xac] ss:$20 sps:$4 sm:$0xff]   ;;  %v1510_v57 = vld [vmem:[%s2047_s0 + $0xd4] ss:$20 sps:$4 sm:$0xff]  }
  0x14   :  { %1280 = vmatpush3.bf16.msra.mxu0 %v1461_v18  ;;  %v1508_v56 = vld [vmem:[%s2047_s0 + $0xcc] ss:$20 sps:$4 sm:$0xff]   ;;  %v1512_v58 = vld [vmem:[%s2047_s0 + $0xc8] ss:$20 sps:$4 sm:$0xff]   ;;  %v1513_v59 = vld [vmem:[%s2047_s0 + $0xd0] ss:$20 sps:$4 sm:$0xff]  }
  0x15   :  { %1344 = vmatpush3.bf16.msra.mxu1 %v1462_v19  ;;  %1281 = vmatprep.subr.bf16.mxu0 %v1463_v20  ;;  %v1514_v60 = vld [vmem:[%s2047_s0 + $0xf4] ss:$20 sps:$4 sm:$0xff]   ;;  %v1516_v61 = vld [vmem:[%s2047_s0 + $0xfc] ss:$20 sps:$4 sm:$0xff]   ;;  %v1519_v63 = vld [vmem:[%s2047_s0 + $0xf8] ss:$20 sps:$4 sm:$0xff]  }
  0x16   :  { %1345 = vmatprep.subr.bf16.mxu1 %v1464_v21  ;;  %v1518_v62 = vld [vmem:[%s2047_s0 + $0xf0] ss:$20 sps:$4 sm:$0xff]   ;;  %v1525_v2 = vld [vmem:[%s2047_s0 + $0x118] ss:$20 sps:$4 sm:$0xff]   ;;  %v1526_v3 = vld [vmem:[%s2047_s0 + $0x120] ss:$20 sps:$4 sm:$0xff]  }
  0x17   :  { %v1521_v0 = vld [vmem:[%s2047_s0 + $0x11c] ss:$20 sps:$4 sm:$0xff]   ;;  %v1523_v1 = vld [vmem:[%s2047_s0 + $0x124] ss:$20 sps:$4 sm:$0xff]   ;;  %v1531_v8 = vld [vmem:[%s2047_s0 + $0x60] ss:$20 sps:$4 sm:$0xff]  }
  0x18   :  { %1282 = vmatpush3.bf16.msra.mxu0 %v1465_v22  ;;  %v1527_v4 = vld [vmem:[%s2047_s0 + $0x10] ss:$20 sps:$4 sm:$0xff]   ;;  %v1529_v6 = vld [vmem:[%s2047_s0 + $0x38] ss:$20 sps:$4 sm:$0xff]   ;;  %v1532_v9 = vld [vmem:[%s2047_s0 + $0x100] ss:$20 sps:$4 sm:$0xff]  }
  0x19   :  { %1346 = vmatpush3.bf16.msra.mxu1 %v1466_v23  ;;  %1283 = vmatprep.subr.bf16.mxu0 %v1467_v24  ;;  %v1528_v5 = vld [vmem:[%s2047_s0 + $0xb0] ss:$20 sps:$4 sm:$0xff]   ;;  %v1530_v7 = vld [vmem:[%s2047_s0 + $0xd8] ss:$20 sps:$4 sm:$0xff]   ;;  %v1533_v10 = vld [vmem:[%s2047_s0 + $0x88] ss:$20 sps:$4 sm:$0xff]  }
  0x1a   :  { %1347 = vmatprep.subr.bf16.mxu1 %v1468_v25  ;;  %v1534_v11 = vld [vmem:[%s2047_s0 + $0x128] ss:$20 sps:$4 sm:$0xff]  }
  0x1c   :  { %1284 = vmatpush3.bf16.msra.mxu0 %v1469_v26 }
  0x1d   :  { %1348 = vmatpush3.bf16.msra.mxu1 %v1470_v27  ;;  %1285 = vmatprep.subr.bf16.mxu0 %v1471_v28 }
  0x1e   :  { %1349 = vmatprep.subr.bf16.mxu1 %v1472_v29 }
  0x20   :  { %1286 = vmatpush3.bf16.msra.mxu0 %v1473_v30 }
  0x21   :  { %1350 = vmatpush3.bf16.msra.mxu1 %v1474_v31  ;;  %1411 = vmatprep.subr.bf16.mxu0 %v1481_v36 }
  0x22   :  { %1435 = vmatprep.subr.bf16.mxu1 %v1481_v36 }
  0x23   :  { %615 = vmatmul.mubr.bf16.vlgmr.msra.gmra.mxu0 %v1475_v32 }
  0x24   :  { %712 = vmatmul.mubr.bf16.vlgmr.msra.gmra.mxu1 %v1478_v34  ;;  %1412 = vmatpush3.bf16.msra.mxu0 %v1481_v36 }
  0x25   :  { %1439 = vmatpush3.bf16.msra.mxu1 %v1481_v36  ;;  %622 = vmatprep.mubr.bf16.mxu0 %v1482_v37 }
  0x26   :  { %719 = vmatprep.mubr.bf16.mxu1 %v1484_v38  ;;  %1413 = vmatprep.subr.bf16.mxu0 %v1494_v42 }
  0x27   :  { %1436 = vmatprep.subr.bf16.mxu1 %v1494_v42 }
  0x28   :  { %1414 = vmatpush3.bf16.msra.mxu0 %v1494_v42 }
  0x29   :  { %1440 = vmatpush3.bf16.msra.mxu1 %v1494_v42  ;;  %1415 = vmatprep.subr.bf16.mxu0 %v1507_v46 }
  0x2a   :  { %1437 = vmatprep.subr.bf16.mxu1 %v1507_v46 }
  0x2b   :  { %623 = vmatmul.mubr.bf16.gmra.mxu0 %v1486_v39 }
  0x2c   :  { %720 = vmatmul.mubr.bf16.gmra.mxu1 %v1487_v40  ;;  %630 = vmatprep.mubr.bf16.mxu0 %v1488_v41 }
  0x2d   :  { %727 = vmatprep.mubr.bf16.mxu1 %v1490_v43  ;;  %1416 = vmatpush3.bf16.msra.mxu0 %v1507_v46 }
  0x2e   :  { %1441 = vmatpush3.bf16.msra.mxu1 %v1507_v46  ;;  %1417 = vmatprep.subr.bf16.mxu0 %v1520_v49 }
  0x2f   :  { %1438 = vmatprep.subr.bf16.mxu1 %v1520_v49 }
  0x31   :  { %1418 = vmatpush3.bf16.msra.mxu0 %v1520_v49 }
  0x32   :  { %1442 = vmatpush3.bf16.msra.mxu1 %v1520_v49 }
  0x33   :  { %631 = vmatmul.mubr.bf16.gmra.mxu0 %v1492_v44 }
  0x34   :  { %728 = vmatmul.mubr.bf16.gmra.mxu1 %v1493_v45  ;;  %638 = vmatprep.mubr.bf16.mxu0 %v1495_v47 }
  0x35   :  { %735 = vmatprep.mubr.bf16.mxu1 %v1497_v48 }
  0x3b   :  { %639 = vmatmul.mubr.bf16.gmra.mxu0 %v1499_v50 }
  0x3c   :  { %736 = vmatmul.mubr.bf16.gmra.mxu1 %v1500_v51  ;;  %646 = vmatprep.mubr.bf16.mxu0 %v1501_v52 }
  0x3d   :  { %743 = vmatprep.mubr.bf16.mxu1 %v1503_v53 }
  0x43   :  { %647 = vmatmul.mubr.bf16.gmra.mxu0 %v1505_v54 }
  0x44   :  { %744 = vmatmul.mubr.bf16.gmra.mxu1 %v1506_v55  ;;  %654 = vmatprep.mubr.bf16.mxu0 %v1508_v56 }
  0x45   :  { %751 = vmatprep.mubr.bf16.mxu1 %v1510_v57 }
  0x4b   :  { %655 = vmatmul.mubr.bf16.gmra.mxu0 %v1512_v58 }
  0x4c   :  { %752 = vmatmul.mubr.bf16.gmra.mxu1 %v1513_v59  ;;  %662 = vmatprep.mubr.bf16.mxu0 %v1514_v60 }
  0x4d   :  { %759 = vmatprep.mubr.bf16.mxu1 %v1516_v61 }
  0x53   :  { %663 = vmatmul.mubr.bf16.gmra.mxu0 %v1518_v62 }
  0x54   :  { %760 = vmatmul.mubr.bf16.gmra.mxu1 %v1519_v63  ;;  %670 = vmatprep.mubr.bf16.mxu0 %v1521_v0 }
  0x55   :  { %767 = vmatprep.mubr.bf16.mxu1 %v1523_v1 }
  0x5b   :  { %671 = vmatmul.mubr.bf16.gmra.mxu0 %v1525_v2 }
  0x5c   :  { %768 = vmatmul.mubr.bf16.gmra.mxu1 %v1526_v3  ;;  %1419 = vmatprep.mubr.msk.bf16.mxu0 %vm557_vm0, %v1527_v4  ;;  %v1850_v3 = vld [vmem:[%s2048_s4 + $0x8] sm:$0xff]  }
  0x5d   :  { %1427 = vmatprep.mubr.msk.bf16.mxu1 %vm557_vm0, %v1528_v5  ;;  %v1857_v5 = vld [vmem:[%s2048_s4 + $0x28] sm:$0xff]  }
  0x63   :  { %1420 = vmatmul.mubr.msk.bf16.vlgmr.msra.gmra.mxu0 %vm557_vm0, %v1529_v6  ;;  %v1862_v6 = vld [vmem:[%s2048_s4] sm:$0xff]  }
  0x64   :  { %1428 = vmatmul.mubr.msk.bf16.vlgmr.msra.gmra.mxu1 %vm557_vm0, %v1530_v7  ;;  %1423 = vmatprep.mubr.msk.bf16.mxu0 %vm557_vm0, %v1531_v8  ;;  %v1867_v7 = vld [vmem:[%s2048_s4 + $0x20] sm:$0xff]  }
  0x65   :  { %1431 = vmatprep.mubr.msk.bf16.mxu1 %vm557_vm0, %v1532_v9  ;;  %v1874_v9 = vld [vmem:[%s2048_s4 + $0x18] sm:$0xff]  }
  0x6b   :  { %1424 = vmatmul.mubr.msk.bf16.gmra.mxu0 %vm557_vm0, %v1533_v10 }
  0x6c   :  { %1432 = vmatmul.mubr.msk.bf16.gmra.mxu1 %vm557_vm0, %v1534_v11 }
  0xe3   :  { %v1287_v12 = vpop.f32.mrf.mxu0 }
  0xe4   :  { %v1351_v13 = vpop.f32.mrf.mxu1 }
  0xe5   :  { %v1288_v14 = vpop.f32.mrf.mxu0 }
  0xe6   :  { %v1289_v15 = vadd.f32 %v1288_v14, %v1287_v12  ;;  %v1352_v16 = vpop.f32.mrf.mxu1  ;;  %v1882_v12 = vld [vmem:[%s2048_s4 + $0x38] sm:$0xff]  }
  0xe7   :  { %v1353_v17 = vadd.f32 %v1352_v16, %v1351_v13  ;;  %v1801_v18 = vpop.f32.mrf.mxu0  ;;  %v1887_v13 = vld [vmem:[%s2048_s4 + $0x10] sm:$0xff]  }
  0xe8   :  { %v1803_v19 = vpop.f32.mrf.mxu1  ;;  %2059 = vst [vmem:[#allocation7_spill] sm:$0xff] %v1887_v13 }
  0xe9   :  { %v1805_v20 = vpop.f32.mrf.mxu0  ;;  %v1807_v21 = vadd.f32 %v1353_v17, %v1289_v15 }
  0xea   :  { %v1809_v22 = vpop.f32.mrf.mxu1 }
  0xeb   :  { %2054 = vst [vmem:[#allocation2_spill] sm:$0xff] %v1807_v21  ;;  %v1811_v23 = vpop.f32.mrf.mxu0  ;;  %v1356_v15 = vadd.f32 %v1809_v22, %v1803_v19 }
  0xec   :  { %v1813_v24 = vpop.f32.mrf.mxu1 }
  0xed   :  { %v1815_v25 = vpop.f32.mrf.mxu0 }
  0xee   :  { %v1817_v26 = vpop.f32.mrf.mxu1  ;;  %v1295_v21 = vadd.f32 %v1815_v25, %v1811_v23 }
  0xef   :  { %v1819_v27 = vpop.f32.mrf.mxu0 }
  0xf0   :  { %v1821_v28 = vpop.f32.mrf.mxu1 }
  0xf1   :  { %v1823_v29 = vpop.f32.mrf.mxu0 }
  0xf2   :  { %v1825_v30 = vpop.f32.mrf.mxu1 }
  0xf3   :  { %v1827_v31 = vpop.f32.mrf.mxu0 }
  0xf4   :  { %v1829_v32 = vpop.f32.mrf.mxu1 }
  0xf5   :  { %v1831_v33 = vpop.f32.mrf.mxu0 }
  0xf6   :  { %v1833_v34 = vpop.f32.mrf.mxu1  ;;  %v1301_v19 = vadd.f32 %v1831_v33, %v1827_v31 }
  0xf7   :  { %v1835_v35 = vpop.f32.mrf.mxu0  ;;  %v1365_v22 = vadd.f32 %v1833_v34, %v1829_v32 }
  0xf8   :  { %v1837_v36 = vpop.f32.mrf.mxu1 }
  0xf9   :  { %v1839_v37 = vpop.f32.mrf.mxu0 }
  0xfa   :  { %v1841_v38 = vpop.f32.mrf.mxu1 }
  0xfb   :  { %2055 = vst [vmem:[#allocation3_spill] sm:$0xff] %v1841_v38  ;;  %v1305_v39 = vpop.f32.mrf.mxu0  ;;  %v1298_v38 = vadd.f32 %v1823_v29, %v1819_v27  ;;  %v1920_v27 = vld [vmem:[%s2048_s4 + $0x30] sm:$0xff]  }
  0xfc   :  { %v1369_v40 = vpop.f32.mrf.mxu1 }
  0xfd   :  { %v1306_v41 = vpop.f32.mrf.mxu0 }
  0xfe   :  { %v1370_v42 = vpop.f32.mrf.mxu1  ;;  %v1307_v11 = vadd.f32 %v1306_v41, %v1305_v39 }
  0xff   :  { %v1308_v43 = vpop.f32.mrf.mxu0  ;;  %v1371_v17 = vadd.f32 %v1370_v42, %v1369_v40 }
 0x100   :  { %v1372_v44 = vpop.f32.mrf.mxu1 }
 0x101   :  { %v1309_v45 = vpop.f32.mrf.mxu0 }
 0x102   :  { %v1373_v46 = vpop.f32.mrf.mxu1  ;;  %v1310_v23 = vadd.f32 %v1309_v45, %v1308_v43 }
 0x103   :  { %v1843_v47 = vpop.f32.mrf.mxu0  ;;  %v1374_v25 = vadd.f32 %v1373_v46, %v1372_v44  ;;  %v1211_v46 = vunpack.c.l.bf16 %v1920_v27 }
 0x104   :  { %v1845_v48 = vpop.f32.mrf.mxu1 }
 0x105   :  { %v1312_v49 = vpop.f32.mrf.mxu0 }
 0x106   :  { %v1376_v50 = vpop.f32.mrf.mxu1 }
 0x107   :  { %v1314_v51 = vpop.f32.mrf.mxu0  ;;  %v1377_v29 = vadd.f32 %v1376_v50, %v1845_v48  ;;  %v1936_v50 = vld [vmem:[%s2049_s2] ss:$0 sm:$0xff] }
 0x108   :  { %v1378_v52 = vpop.f32.mrf.mxu1 }
 0x109   :  { %v1315_v53 = vpop.f32.mrf.mxu0 }
 0x10a   :  { %v1379_v54 = vpop.f32.mrf.mxu1 }
 0x10b   :  { %v1317_v55 = vpop.f32.mrf.mxu0  ;;  %v1380_v31 = vadd.f32 %v1379_v54, %v1378_v52  ;;  %v738_v54 = vadd.f32 %v1371_v17, %v1307_v11 }
 0x10c   :  { %v1381_v56 = vpop.f32.mrf.mxu1 }
 0x10d   :  { %v1318_v57 = vpop.f32.mrf.mxu0 }
 0x10e   :  { %v1382_v58 = vpop.f32.mrf.mxu1  ;;  %v1319_v13 = vadd.f32 %v1318_v57, %v1317_v55  ;;  %v1927_v55 = vadd.f32 %v1839_v37, %v1835_v35  ;;  %v1945_v35 = vld [vmem:[%s2050_s3] ss:$0 sm:$0xff] }
 0x10f   :  { %v1320_v59 = vpop.f32.mrf.mxu0 }
 0x110   :  { %v1384_v60 = vpop.f32.mrf.mxu1 }
 0x111   :  { %v1321_v61 = vpop.f32.mrf.mxu0 }
 0x112   :  { %v1385_v62 = vpop.f32.mrf.mxu1  ;;  %v1322_v33 = vadd.f32 %v1321_v61, %v1320_v59 }
 0x113   :  { %v1323_v63 = vpop.f32.mrf.mxu0  ;;  %v1386_v34 = vadd.f32 %v1385_v62, %v1384_v60 }
 0x114   :  { %v1387_v0 = vpop.f32.mrf.mxu1 }
 0x115   :  { %v1324_v1 = vpop.f32.mrf.mxu0  ;;  %v757_v57 = vadd.f32 %v1386_v34, %v1322_v33 }
 0x116   :  { %v1388_v2 = vpop.f32.mrf.mxu1  ;;  %v1325_v39 = vadd.f32 %v1324_v1, %v1323_v63  ;;  %v2064_v1 = vld [vmem:[#allocation2_spill] sm:$0xff] }
 0x117   :  { %v1852_v4 = vpop.f32.mrf.mxu0  ;;  %v1389_v40 = vadd.f32 %v1388_v2, %v1387_v0 }
 0x118   :  { %2056 = vst [vmem:[#allocation4_spill] sm:$0xff] %v1852_v4  ;;  %v1869_v8 = vpop.f32.mrf.mxu1 }
 0x119   :  { %2057 = vst [vmem:[#allocation5_spill] sm:$0xff] %v1869_v8  ;;  %v1876_v10 = vpop.f32.mrf.mxu0  ;;  %v762_v59 = vadd.f32 %v1389_v40, %v1325_v39  ;;  %v2068_v39 = vunpack.c.l.bf16 %v1857_v5 }
 0x11a   :  { %2058 = vst [vmem:[#allocation6_spill] sm:$0xff] %v1876_v10  ;;  %v1889_v14 = vpop.f32.mrf.mxu1  ;;  %v1359_v10 = vadd.f32 %v1817_v26, %v1813_v24  ;;  %v1383_v24 = vadd.f32 %v1382_v58, %v1381_v56  ;;  %v1940_v56 = vadd.f32 %v1374_v25, %v1310_v23 }
 0x11b   :  { %2060 = vst [vmem:[#allocation8_spill] sm:$0xff] %v1889_v14  ;;  %v1329_v8 = vpop.f32.mrf.mxu0  ;;  %v1292_v14 = vadd.f32 %v1805_v20, %v1801_v18  ;;  %v1362_v18 = vadd.f32 %v1825_v30, %v1821_v28  ;;  %v1313_v28 = vadd.f32 %v1312_v49, %v1843_v47  ;;  %v1316_v30 = vadd.f32 %v1315_v53, %v1314_v51  ;;  %v2061_v47 = vld [vmem:[#allocation3_spill] sm:$0xff] }
 0x11c   :  { %v1393_v16 = vpop.f32.mrf.mxu1  ;;  %v722_v43 = vadd.f32 %v1359_v10, %v1295_v21  ;;  %v1931_v48 = vadd.f32 %v2061_v47, %v1837_v36  ;;  %v754_v51 = vadd.f32 %v1383_v24, %v1319_v13  ;;  %v1938_v21 = vadd.f32 %v1365_v22, %v1301_v19 }
 0x11d   :  { %v1330_v20 = vpop.f32.mrf.mxu0  ;;  %v725_v44 = vadd.f32 %v1362_v18, %v1298_v38  ;;  %v717_v45 = vadd.f32 %v1356_v15, %v1292_v14  ;;  %v746_v53 = vadd.f32 %v1377_v29, %v1313_v28  ;;  %v749_v58 = vadd.f32 %v1380_v31, %v1316_v30 }
 0x11e   :  { %v1394_v4 = vpop.f32.mrf.mxu1  ;;  %v1331_v63 = vadd.f32 %v1330_v20, %v1329_v8  ;;  %v2067_v29 = vunpack.c.l.bf16 %v1850_v3 }
 0x11f   :  { %v1332_v26 = vpop.f32.mrf.mxu0  ;;  %v2062_v60 = vld [vmem:[#allocation4_spill] sm:$0xff]  ;;  %v1395_v11 = vadd.f32 %v1394_v4, %v1393_v16 }
 0x120   :  { %v1396_v32 = vpop.f32.mrf.mxu1  ;;  %v2065_v24 = vld [vmem:[#allocation5_spill] sm:$0xff] }
 0x121   :  { %v1333_v41 = vpop.f32.mrf.mxu0  ;;  %v2063_v61 = vld [vmem:[#allocation6_spill] sm:$0xff] }
 0x122   :  { %v1397_v42 = vpop.f32.mrf.mxu1  ;;  %v1949_v62 = vadd.f32 %v2063_v61, %v2062_v60  ;;  %v1334_v13 = vadd.f32 %v1333_v41, %v1332_v26  ;;  %v2066_v8 = vld [vmem:[#allocation8_spill] sm:$0xff] }
 0x123   :  { %v1421_v49 = vpop.f32.mrf.mxu0  ;;  %v1398_v18 = vadd.f32 %v1397_v42, %v1396_v32  ;;  %v1958_v20 = vadd.f32 %v2066_v8, %v2065_v24  ;;  %v2074_v8 = vunpack.c.h.bf16 %v1867_v7 }
 0x124   :  { %v819_v38 = vadd.f32 %v1421_v49, %v722_v43  ;;  %v1429_v52 = vpop.f32.mrf.mxu1 }
 0x125   :  { %v851_v36 = vadd.f32 %v1429_v52, %v754_v51  ;;  %v810_v37 = vpop.f32.mrf.mxu0  ;;  %v770_v51 = vadd.f32 %v1395_v11, %v1331_v63  ;;  %v773_v52 = vadd.f32 %v1398_v18, %v1334_v13  ;;  %v2071_v63 = vunpack.c.l.bf16 %v1867_v7 }
 0x126   :  { %v882_v0 = vmul.f32 %v1936_v50, %v819_v38  ;;  %v811_v2 = vadd.f32 %v810_v37, %v2064_v1  ;;  %v842_v10 = vpop.f32.mrf.mxu1  ;;  %v2072_v13 = vunpack.c.h.bf16 %v1857_v5 }
 0x127   :  { %v890_v14 = vmul.f32 %v1936_v50, %v851_v36  ;;  %v843_v15 = vadd.f32 %v842_v10, %v746_v53  ;;  %v1422_v17 = vpop.f32.mrf.mxu0 }
 0x128   :  { %v905_v19 = vadd.f32 %v1945_v35, %v882_v0  ;;  %v880_v22 = vmul.f32 %v1936_v50, %v811_v2  ;;  %v822_v23 = vadd.f32 %v1422_v17, %v725_v44  ;;  %v1430_v25 = vpop.f32.mrf.mxu1 }
 0x129   :  { %v913_v28 = vadd.f32 %v1945_v35, %v890_v14  ;;  %v888_v4 = vmul.f32 %v1936_v50, %v843_v15  ;;  %v854_v16 = vadd.f32 %v1430_v25, %v757_v57  ;;  %v813_v26 = vpop.f32.mrf.mxu0 }
 0x12a   :  { %v953_v30 = vadd.f32 %v2067_v29, %v905_v19  ;;  %v903_v31 = vadd.f32 %v1945_v35, %v880_v22  ;;  %v883_v32 = vmul.f32 %v1936_v50, %v822_v23  ;;  %v814_v33 = vadd.f32 %v813_v26, %v717_v45  ;;  %v845_v34 = vpop.f32.mrf.mxu1 }
 0x12b   :  { %v961_v40 = vadd.f32 %v2068_v39, %v913_v28  ;;  %v911_v41 = vadd.f32 %v1945_v35, %v888_v4  ;;  %v891_v42 = vmul.f32 %v1936_v50, %v854_v16  ;;  %v846_v43 = vadd.f32 %v845_v34, %v749_v58  ;;  %v1425_v44 = vpop.f32.mrf.mxu0 }
 0x12c   :  { %v906_v47 = vadd.f32 %v1945_v35, %v883_v32  ;;  %v881_v49 = vmul.f32 %v1936_v50, %v814_v33  ;;  %v1433_v38 = vpop.f32.mrf.mxu1  ;;  %v969_v53 = vmax.f32 %v953_v30, 0.0  ;;  %v2069_v45 = vunpack.c.l.bf16 %v1862_v6 }
 0x12d   :  { %v914_v37 = vadd.f32 %v1945_v35, %v891_v42  ;;  %v889_v57 = vmul.f32 %v1936_v50, %v846_v43  ;;  %v826_v60 = vpop.f32.mrf.mxu0  ;;  %v977_v61 = vmax.f32 %v961_v40, 0.0  ;;  %v2070_v58 = vunpack.c.h.bf16 %v1850_v3 }
 0x12e   :  { %v951_v36 = vadd.f32 %v2069_v45, %v903_v31  ;;  %v904_v1 = vadd.f32 %v1945_v35, %v881_v49  ;;  %v835_v2 = vadd.f32 %v1425_v44, %v738_v54  ;;  %v858_v10 = vpop.f32.mrf.mxu1  ;;  %v959_v11 = vadd.f32 %v2071_v63, %v911_v41 }
 0x12f   :  { %v954_v0 = vadd.f32 %v2070_v58, %v906_v47  ;;  %v962_v14 = vadd.f32 %v2072_v13, %v914_v37  ;;  %v912_v15 = vadd.f32 %v1945_v35, %v889_v57  ;;  %v867_v17 = vadd.f32 %v1433_v38, %v770_v51  ;;  %v1426_v18 = vpop.f32.mrf.mxu0 }
 0x130   :  { %v2073_v22 = vunpack.c.h.bf16 %v1862_v6  ;;  %v886_v3 = vmul.f32 %v1936_v50, %v835_v2  ;;  %v827_v25 = vadd.f32 %v826_v60, %v1938_v21  ;;  %v1434_v54 = vpop.f32.mrf.mxu1  ;;  %v859_v4 = vadd.f32 %v858_v10, %v762_v59 }
 0x131   :  { %v970_v19 = vmax.f32 %v954_v0, 0.0  ;;  %v978_v24 = vmax.f32 %v962_v14, 0.0  ;;  %v960_v28 = vadd.f32 %v2074_v8, %v912_v15  ;;  %v894_v5 = vmul.f32 %v1936_v50, %v867_v17  ;;  %v829_v34 = vpop.f32.mrf.mxu0 }
 0x132   :  { %v952_v23 = vadd.f32 %v2073_v22, %v904_v1  ;;  %v967_v16 = vmax.f32 %v951_v36, 0.0  ;;  %v884_v30 = vmul.f32 %v1936_v50, %v827_v25  ;;  %v975_v31 = vmax.f32 %v959_v11, 0.0  ;;  %v861_v40 = vpop.f32.mrf.mxu1  ;;  %v2076_v36 = vld [vmem:[#allocation7_spill] sm:$0xff] }
 0x133   :  { %v1225_v26 = vpack.c.bf16 %v970_v19, %v969_v53  ;;  %v1245_v6 = vpack.c.bf16 %v978_v24, %v977_v61  ;;  %v976_v32 = vmax.f32 %v960_v28, 0.0  ;;  %v892_v33 = vmul.f32 %v1936_v50, %v859_v4 }
 0x134   :  { %v968_v29 = vmax.f32 %v952_v23, 0.0  ;;  %v909_v21 = vadd.f32 %v1945_v35, %v886_v3  ;;  %v838_v59 = vadd.f32 %v1426_v18, %v1940_v56  ;;  %v733_v39 = vadd.f32 %v1931_v48, %v1927_v55 }
 0x135   :  { %1264 = vst [vmem:[%s2051_s5 + $0x8] sm:$0xff] %v1225_v26   ;;  %1268 = vst [vmem:[%s2051_s5 + $0x28] sm:$0xff] %v1245_v6   ;;  %v1240_v41 = vpack.c.bf16 %v976_v32, %v975_v31  ;;  %v917_v42 = vadd.f32 %v1945_v35, %v894_v5  ;;  %v870_v43 = vadd.f32 %v1434_v54, %v773_v52  ;;  %v1200_v48 = vunpack.c.h.bf16 %v1874_v9 }
 0x136   :  { %v1220_v7 = vpack.c.bf16 %v968_v29, %v967_v16  ;;  %v765_v44 = vadd.f32 %v1958_v20, %v1949_v62  ;;  %v907_v56 = vadd.f32 %v1945_v35, %v884_v30  ;;  %v887_v55 = vmul.f32 %v1936_v50, %v838_v59 }
 0x137   :  { %v830_v47 = vadd.f32 %v829_v34, %v733_v39  ;;  %1267 = vst [vmem:[%s2051_s5 + $0x20] sm:$0xff] %v1240_v41   ;;  %v915_v49 = vadd.f32 %v1945_v35, %v892_v33  ;;  %v895_v51 = vmul.f32 %v1936_v50, %v870_v43  ;;  %v1216_v62 = vunpack.c.h.bf16 %v1882_v12 }
 0x138   :  { %1221 = vst [vmem:[%s2051_s5] sm:$0xff] %v1220_v7   ;;  %v862_v20 = vadd.f32 %v861_v40, %v765_v44  ;;  %v2075_v38 = vunpack.c.l.bf16 %v1874_v9  ;;  %v910_v53 = vadd.f32 %v1945_v35, %v887_v55  ;;  %v1196_v37 = vunpack.c.h.bf16 %v2076_v36 }
 0x139   :  { %v885_v45 = vmul.f32 %v1936_v50, %v830_v47  ;;  %v2077_v57 = vunpack.c.l.bf16 %v1882_v12  ;;  %v918_v61 = vadd.f32 %v1945_v35, %v895_v51  ;;  %v1212_v0 = vunpack.c.h.bf16 %v1920_v27 }
 0x13a   :  { %v957_v52 = vadd.f32 %v2075_v38, %v909_v21  ;;  %v893_v58 = vmul.f32 %v1936_v50, %v862_v20  ;;  %v2078_v1 = vunpack.c.l.bf16 %v2076_v36  ;;  %v958_v9 = vadd.f32 %v1200_v48, %v910_v53 }
 0x13b   :  { %v965_v60 = vadd.f32 %v2077_v57, %v917_v42  ;;  %v908_v10 = vadd.f32 %v1945_v35, %v885_v45  ;;  %v963_v63 = vadd.f32 %v1211_v46, %v915_v49  ;;  %v966_v11 = vadd.f32 %v1216_v62, %v918_v61 }
 0x13c   :  { %v955_v2 = vadd.f32 %v2078_v1, %v907_v56  ;;  %v916_v13 = vadd.f32 %v1945_v35, %v893_v58  ;;  %v973_v12 = vmax.f32 %v957_v52, 0.0  ;;  %v974_v14 = vmax.f32 %v958_v9, 0.0 }
 0x13d   :  { %v956_v15 = vadd.f32 %v1196_v37, %v908_v10  ;;  %v981_v17 = vmax.f32 %v965_v60, 0.0  ;;  %v982_v18 = vmax.f32 %v966_v11, 0.0  ;;  %v979_v3 = vmax.f32 %v963_v63, 0.0 }
 0x13e   :  { %v964_v50 = vadd.f32 %v1212_v0, %v916_v13  ;;  %v971_v19 = vmax.f32 %v955_v2, 0.0  ;;  %v1235_v22 = vpack.c.bf16 %v974_v14, %v973_v12 }
 0x13f   :  { %v972_v23 = vmax.f32 %v956_v15, 0.0  ;;  %v1255_v25 = vpack.c.bf16 %v982_v18, %v981_v17 }
 0x140   :  { %v980_v54 = vmax.f32 %v964_v50, 0.0  ;;  %1266 = vst [vmem:[%s2051_s5 + $0x18] sm:$0xff] %v1235_v22  }
 0x141   :  { %v1230_v27 = vpack.c.bf16 %v972_v23, %v971_v19  ;;  %1270 = vst [vmem:[%s2051_s5 + $0x38] sm:$0xff] %v1255_v25  }
 0x142   :  { %v1250_v46 = vpack.c.bf16 %v980_v54, %v979_v3 }
 0x143   :  { %1265 = vst [vmem:[%s2051_s5 + $0x10] sm:$0xff] %v1230_v27  }
 0x144   :  { %1269 = vst [vmem:[%s2051_s5 + $0x30] sm:$0xff] %v1250_v46  }

// kernel: student_net_resp_forward.29
= control target key start
LH: loop header
LB: loop body
LE: loop exit
PB: predicated region body
PF: predicated region fallthrough
CT: control target
= control target key end

     0   :  { %vm368_vm0 = vcmask 523264   ;;  %s940_s1 = inlined_call_operand.vmem [shape: bf16[576,128], index: 1, kind: input, shape index: {}]   ;;  %s941_s0 = inlined_call_operand.vmem [shape: bf16[32,576], index: 0, kind: input, shape index: {}]   ;;  %s942_s2 = inlined_call_operand.vmem [shape: f32[1,128], index: 2, kind: input, shape index: {}]   ;;  %s943_s3 = inlined_call_operand.vmem [shape: f32[1,128], index: 3, kind: input, shape index: {}]   ;;  %s944_s4 = inlined_call_operand.vmem [shape: bf16[32,128], index: 4, kind: output, shape index: {}]  }
   0x1   :  { %v715_v0 = vld [vmem:[%s940_s1 + $0x78] sm:$0xff]   ;;  %v719_v4 = vld [vmem:[%s940_s1 + $0x70] sm:$0xff]   ;;  %v723_v8 = vld [vmem:[%s940_s1 + $0x68] sm:$0xff]  }
   0x2   :  { %v716_v1 = vld [vmem:[%s940_s1 + $0xf8] sm:$0xff]   ;;  %641 = vmatprep.subr.bf16.mxu0 %v715_v0  ;;  %v720_v5 = vld [vmem:[%s940_s1 + $0xf0] sm:$0xff]   ;;  %v724_v9 = vld [vmem:[%s940_s1 + $0xe8] sm:$0xff]  }
   0x3   :  { %v717_v2 = vld [vmem:[%s940_s1 + $0x38] sm:$0xff]   ;;  %669 = vmatprep.subr.bf16.mxu1 %v716_v1  ;;  %v721_v6 = vld [vmem:[%s940_s1 + $0x30] sm:$0xff]   ;;  %v725_v10 = vld [vmem:[%s940_s1 + $0x28] sm:$0xff]  }
   0x4   :  { %v718_v3 = vld [vmem:[%s940_s1 + $0xb8] sm:$0xff]   ;;  %642 = vmatpush3.bf16.msra.mxu0 %v717_v2  ;;  %v722_v7 = vld [vmem:[%s940_s1 + $0xb0] sm:$0xff]   ;;  %v726_v11 = vld [vmem:[%s940_s1 + $0xa8] sm:$0xff]  }
   0x5   :  { %670 = vmatpush3.bf16.msra.mxu1 %v718_v3  ;;  %643 = vmatprep.subr.bf16.mxu0 %v719_v4  ;;  %v727_v12 = vld [vmem:[%s940_s1 + $0x60] sm:$0xff]   ;;  %v731_v16 = vld [vmem:[%s940_s1 + $0x58] sm:$0xff]   ;;  %v735_v20 = vld [vmem:[%s940_s1 + $0x50] sm:$0xff]  }
   0x6   :  { %671 = vmatprep.subr.bf16.mxu1 %v720_v5  ;;  %v728_v13 = vld [vmem:[%s940_s1 + $0xe0] sm:$0xff]   ;;  %v732_v17 = vld [vmem:[%s940_s1 + $0xd8] sm:$0xff]   ;;  %v736_v21 = vld [vmem:[%s940_s1 + $0xd0] sm:$0xff]  }
   0x7   :  { %v729_v14 = vld [vmem:[%s940_s1 + $0x20] sm:$0xff]   ;;  %v733_v18 = vld [vmem:[%s940_s1 + $0x18] sm:$0xff]   ;;  %v737_v22 = vld [vmem:[%s940_s1 + $0x10] sm:$0xff]  }
   0x8   :  { %644 = vmatpush3.bf16.msra.mxu0 %v721_v6  ;;  %v730_v15 = vld [vmem:[%s940_s1 + $0xa0] sm:$0xff]   ;;  %v734_v19 = vld [vmem:[%s940_s1 + $0x98] sm:$0xff]   ;;  %v738_v23 = vld [vmem:[%s940_s1 + $0x90] sm:$0xff]  }
   0x9   :  { %672 = vmatpush3.bf16.msra.mxu1 %v722_v7  ;;  %645 = vmatprep.subr.bf16.mxu0 %v723_v8  ;;  %v739_v24 = vld [vmem:[%s940_s1 + $0x48] sm:$0xff]   ;;  %v743_v28 = vld [vmem:[%s940_s1 + $0x40] sm:$0xff]   ;;  %v753_v36 = vld [vmem:[%s940_s1 + $0x118] sm:$0xff]  }
   0xa   :  { %673 = vmatprep.subr.bf16.mxu1 %v724_v9  ;;  %v740_v25 = vld [vmem:[%s940_s1 + $0xc8] sm:$0xff]   ;;  %v744_v29 = vld [vmem:[%s940_s1 + $0xc0] sm:$0xff]   ;;  %v754_v37 = vld [vmem:[%s940_s1 + $0x110] sm:$0xff]  }
   0xb   :  { %v741_v26 = vld [vmem:[%s940_s1 + $0x8] sm:$0xff]   ;;  %v745_v30 = vld [vmem:[%s940_s1] sm:$0xff]  }
   0xc   :  { %646 = vmatpush3.bf16.msra.mxu0 %v725_v10  ;;  %v742_v27 = vld [vmem:[%s940_s1 + $0x88] sm:$0xff]   ;;  %v746_v31 = vld [vmem:[%s940_s1 + $0x80] sm:$0xff]  }
   0xd   :  { %674 = vmatpush3.bf16.msra.mxu1 %v726_v11  ;;  %647 = vmatprep.subr.bf16.mxu0 %v727_v12  ;;  %v747_v32 = vld [vmem:[%s941_s0] ss:$20 sps:$4 sm:$0xff]   ;;  %v749_v33 = vld [vmem:[%s941_s0 + $0x4] ss:$20 sps:$4 sm:$0xff]   ;;  %v750_v34 = vld [vmem:[%s941_s0 + $0x8] ss:$20 sps:$4 sm:$0xff]  }
   0xe   :  { %675 = vmatprep.subr.bf16.mxu1 %v728_v13  ;;  %v752_v35 = vld [vmem:[%s941_s0 + $0xc] ss:$20 sps:$4 sm:$0xff]   ;;  %407 = vmatprep.mubr.bf16.mxu0 %v749_v33  ;;  %v757_v39 = vld [vmem:[%s941_s0 + $0x34] ss:$20 sps:$4 sm:$0xff]   ;;  %v760_v42 = vld [vmem:[%s941_s0 + $0x30] ss:$20 sps:$4 sm:$0xff]  }
   0xf   :  { %456 = vmatprep.mubr.bf16.mxu1 %v752_v35  ;;  %v755_v38 = vld [vmem:[%s941_s0 + $0x2c] ss:$20 sps:$4 sm:$0xff]   ;;  %v759_v40 = vld [vmem:[%s941_s0 + $0x28] ss:$20 sps:$4 sm:$0xff]   ;;  %v763_v43 = vld [vmem:[%s941_s0 + $0x10] ss:$20 sps:$4 sm:$0xff]  }
  0x10   :  { %648 = vmatpush3.bf16.msra.mxu0 %v729_v14  ;;  %v761_v41 = vld [vmem:[%s940_s1 + $0x108] sm:$0xff]   ;;  %v762_v44 = vld [vmem:[%s940_s1 + $0x100] sm:$0xff]  }
  0x11   :  { %676 = vmatpush3.bf16.msra.mxu1 %v730_v15  ;;  %649 = vmatprep.subr.bf16.mxu0 %v731_v16  ;;  %v764_v45 = vld [vmem:[%s941_s0 + $0x38] ss:$20 sps:$4 sm:$0xff]   ;;  %v620_v6 = vld [vmem:[%s942_s2] ss:$0 sm:$0xff] }
  0x12   :  { %677 = vmatprep.subr.bf16.mxu1 %v732_v17  ;;  %v621_v15 = vld [vmem:[%s943_s3] ss:$0 sm:$0xff] }
  0x14   :  { %650 = vmatpush3.bf16.msra.mxu0 %v733_v18 }
  0x15   :  { %678 = vmatpush3.bf16.msra.mxu1 %v734_v19  ;;  %651 = vmatprep.subr.bf16.mxu0 %v735_v20 }
  0x16   :  { %679 = vmatprep.subr.bf16.mxu1 %v736_v21 }
  0x18   :  { %652 = vmatpush3.bf16.msra.mxu0 %v737_v22 }
  0x19   :  { %680 = vmatpush3.bf16.msra.mxu1 %v738_v23  ;;  %653 = vmatprep.subr.bf16.mxu0 %v739_v24 }
  0x1a   :  { %681 = vmatprep.subr.bf16.mxu1 %v740_v25 }
  0x1c   :  { %654 = vmatpush3.bf16.msra.mxu0 %v741_v26 }
  0x1d   :  { %682 = vmatpush3.bf16.msra.mxu1 %v742_v27  ;;  %655 = vmatprep.subr.bf16.mxu0 %v743_v28 }
  0x1e   :  { %683 = vmatprep.subr.bf16.mxu1 %v744_v29 }
  0x20   :  { %656 = vmatpush3.bf16.msra.mxu0 %v745_v30 }
  0x21   :  { %684 = vmatpush3.bf16.msra.mxu1 %v746_v31  ;;  %703 = vmatprep.subr.bf16.mxu0 %v753_v36 }
  0x23   :  { %408 = vmatmul.mubr.bf16.vlgmr.msra.gmra.mxu0 %v747_v32 }
  0x24   :  { %457 = vmatmul.mubr.bf16.vlgmr.msra.gmra.mxu1 %v750_v34  ;;  %704 = vmatpush3.bf16.msra.mxu0 %v753_v36 }
  0x25   :  { %705 = vmatprep.subr.bf16.mxu0 %v754_v37  ;;  %415 = vmatprep.mubr.bf16.mxu0 %v755_v38 }
  0x26   :  { %464 = vmatprep.mubr.bf16.mxu1 %v757_v39 }
  0x28   :  { %706 = vmatpush3.bf16.msra.mxu0 %v754_v37 }
  0x29   :  { %707 = vmatprep.subr.bf16.mxu0 %v761_v41 }
  0x2b   :  { %416 = vmatmul.mubr.bf16.gmra.mxu0 %v759_v40 }
  0x2c   :  { %465 = vmatmul.mubr.bf16.gmra.mxu1 %v760_v42  ;;  %711 = vmatprep.mubr.msk.bf16.mxu0 %vm368_vm0, %v763_v43 }
  0x2d   :  { %708 = vmatpush3.bf16.msra.mxu0 %v761_v41 }
  0x2e   :  { %709 = vmatprep.subr.bf16.mxu0 %v762_v44 }
  0x31   :  { %710 = vmatpush3.bf16.msra.mxu0 %v762_v44 }
  0x34   :  { %712 = vmatmul.mubr.msk.bf16.vlgmr.msra.gmra.mxu0 %vm368_vm0, %v764_v45 }
  0xe3   :  { %v657_v46 = vpop.f32.mrf.mxu0 }
  0xe4   :  { %v685_v47 = vpop.f32.mrf.mxu1 }
  0xe5   :  { %v658_v48 = vpop.f32.mrf.mxu0 }
  0xe6   :  { %v686_v49 = vpop.f32.mrf.mxu1  ;;  %v659_v62 = vadd.f32 %v658_v48, %v657_v46 }
  0xe7   :  { %v660_v50 = vpop.f32.mrf.mxu0  ;;  %v687_v63 = vadd.f32 %v686_v49, %v685_v47 }
  0xe8   :  { %v688_v51 = vpop.f32.mrf.mxu1 }
  0xe9   :  { %v661_v52 = vpop.f32.mrf.mxu0  ;;  %v459_v10 = vadd.f32 %v687_v63, %v659_v62 }
  0xea   :  { %v689_v53 = vpop.f32.mrf.mxu1  ;;  %v662_v7 = vadd.f32 %v661_v52, %v660_v50 }
  0xeb   :  { %v663_v54 = vpop.f32.mrf.mxu0  ;;  %v690_v8 = vadd.f32 %v689_v53, %v688_v51 }
  0xec   :  { %v691_v55 = vpop.f32.mrf.mxu1 }
  0xed   :  { %v664_v56 = vpop.f32.mrf.mxu0  ;;  %v462_v19 = vadd.f32 %v690_v8, %v662_v7 }
  0xee   :  { %v692_v57 = vpop.f32.mrf.mxu1  ;;  %v665_v58 = vadd.f32 %v664_v56, %v663_v54 }
  0xef   :  { %v693_v59 = vadd.f32 %v692_v57, %v691_v55  ;;  %v666_v60 = vpop.f32.mrf.mxu0 }
  0xf0   :  { %v694_v61 = vpop.f32.mrf.mxu1 }
  0xf1   :  { %v667_v0 = vpop.f32.mrf.mxu0  ;;  %v467_v4 = vadd.f32 %v693_v59, %v665_v58 }
  0xf2   :  { %v695_v1 = vpop.f32.mrf.mxu1  ;;  %v668_v2 = vadd.f32 %v667_v0, %v666_v60 }
  0xf3   :  { %v696_v3 = vadd.f32 %v695_v1, %v694_v61 }
  0xf4   :  { %v713_v5 = vpop.f32.mrf.mxu0 }
  0xf5   :  { %v516_v9 = vadd.f32 %v713_v5, %v467_v4  ;;  %v470_v14 = vadd.f32 %v696_v3, %v668_v2 }
  0xf6   :  { %v507_v11 = vpop.f32.mrf.mxu0 }
  0xf7   :  { %v531_v12 = vmul.f32 %v620_v6, %v516_v9  ;;  %v508_v13 = vadd.f32 %v507_v11, %v459_v10 }
  0xf8   :  { %v714_v16 = vpop.f32.mrf.mxu0 }
  0xf9   :  { %v529_v17 = vmul.f32 %v620_v6, %v508_v13  ;;  %v519_v18 = vadd.f32 %v714_v16, %v470_v14  ;;  %v542_v21 = vadd.f32 %v621_v15, %v531_v12 }
  0xfa   :  { %v510_v20 = vpop.f32.mrf.mxu0 }
  0xfb   :  { %v532_v22 = vmul.f32 %v620_v6, %v519_v18  ;;  %v511_v23 = vadd.f32 %v510_v20, %v462_v19  ;;  %v540_v24 = vadd.f32 %v621_v15, %v529_v17  ;;  %v546_v27 = vmax.f32 %v542_v21, 0.0 }
  0xfd   :  { %v543_v25 = vadd.f32 %v621_v15, %v532_v22  ;;  %v530_v26 = vmul.f32 %v620_v6, %v511_v23  ;;  %v544_v30 = vmax.f32 %v540_v24, 0.0 }
  0xff   :  { %v547_v28 = vmax.f32 %v543_v25, 0.0  ;;  %v541_v29 = vadd.f32 %v621_v15, %v530_v26 }
 0x101   :  { %v638_v31 = vpack.c.bf16 %v547_v28, %v546_v27  ;;  %v545_v32 = vmax.f32 %v541_v29, 0.0 }
 0x103   :  { %640 = vst [vmem:[%s944_s4 + $0x8] sm:$0xff] %v638_v31   ;;  %v633_v33 = vpack.c.bf16 %v545_v32, %v544_v30 }
 0x105   :  { %634 = vst [vmem:[%s944_s4] sm:$0xff] %v633_v33  }

// kernel: student_net_resp_forward.30
= control target key start
LH: loop header
LB: loop body
LE: loop exit
PB: predicated region body
PF: predicated region fallthrough
CT: control target
= control target key end

     0   :  { %vm64_vm0 = vcmask 523264   ;;  %s274_s1 = inlined_call_operand.vmem [shape: bf16[64,128], index: 1, kind: input, shape index: {}]   ;;  %s275_s0 = inlined_call_operand.vmem [shape: bf16[32,64], index: 0, kind: input, shape index: {}]   ;;  %s276_s2 = inlined_call_operand.vmem [shape: f32[1,128], index: 2, kind: input, shape index: {}]   ;;  %s277_s3 = inlined_call_operand.vmem [shape: f32[1,128], index: 3, kind: input, shape index: {}]   ;;  %s278_s4 = inlined_call_operand.vmem [shape: bf16[32,128], index: 4, kind: output, shape index: {}]  }
   0x1   :  { %v213_v0 = vld [vmem:[%s274_s1 + $0x18] sm:$0xff]   ;;  %v214_v1 = vld [vmem:[%s274_s1 + $0x10] sm:$0xff]   ;;  %v215_v2 = vld [vmem:[%s274_s1 + $0x8] sm:$0xff]  }
   0x2   :  { %201 = vmatprep.subr.bf16.mxu0 %v213_v0  ;;  %v217_v3 = vld [vmem:[%s275_s0] sm:$0xff]   ;;  %v218_v5 = vld [vmem:[%s275_s0 + $0x8] sm:$0xff]  }
   0x3   :  { %202 = vmatpush3.bf16.msra.mxu0 %v213_v0  ;;  %209 = vmatprep.mubr.msk.bf16.mxu0 %vm64_vm0, %v217_v3  ;;  %v216_v4 = vld [vmem:[%s274_s1] sm:$0xff]  }
   0x4   :  { %203 = vmatprep.subr.bf16.mxu0 %v214_v1  ;;  %v174_v7 = vld [vmem:[%s276_s2] ss:$0 sm:$0xff] }
   0x5   :  { %v175_v10 = vld [vmem:[%s277_s3] ss:$0 sm:$0xff] }
   0x7   :  { %204 = vmatpush3.bf16.msra.mxu0 %v214_v1 }
   0x8   :  { %205 = vmatprep.subr.bf16.mxu0 %v215_v2 }
   0xb   :  { %206 = vmatpush3.bf16.msra.mxu0 %v215_v2 }
   0xc   :  { %207 = vmatprep.subr.bf16.mxu0 %v216_v4 }
   0xf   :  { %208 = vmatpush3.bf16.msra.mxu0 %v216_v4 }
  0x12   :  { %210 = vmatmul.mubr.msk.bf16.vlgmr.msra.gmra.mxu0 %vm64_vm0, %v218_v5 }
  0xd2   :  { %v211_v6 = vpop.f32.mrf.mxu0 }
  0xd3   :  { %v129_v9 = vmul.f32 %v211_v6, %v174_v7 }
  0xd4   :  { %v105_v8 = vpop.f32.mrf.mxu0 }
  0xd5   :  { %v127_v12 = vmul.f32 %v174_v7, %v105_v8  ;;  %v140_v15 = vadd.f32 %v175_v10, %v129_v9 }
  0xd6   :  { %v212_v11 = vpop.f32.mrf.mxu0 }
  0xd7   :  { %v130_v13 = vmul.f32 %v212_v11, %v174_v7  ;;  %v138_v18 = vadd.f32 %v175_v10, %v127_v12 }
  0xd8   :  { %v108_v14 = vpop.f32.mrf.mxu0 }
  0xd9   :  { %v141_v16 = vadd.f32 %v175_v10, %v130_v13  ;;  %v128_v17 = vmul.f32 %v174_v7, %v108_v14 }
  0xdb   :  { %v192_v19 = vpack.c.bf16 %v141_v16, %v140_v15  ;;  %v139_v20 = vadd.f32 %v175_v10, %v128_v17 }
  0xdd   :  { %194 = vst [vmem:[%s278_s4 + $0x8] sm:$0xff] %v192_v19   ;;  %v187_v21 = vpack.c.bf16 %v139_v20, %v138_v18 }
  0xdf   :  { %188 = vst [vmem:[%s278_s4] sm:$0xff] %v187_v21  }

// kernel: student_net_resp_forward.31
= control target key start
LH: loop header
LB: loop body
LE: loop exit
PB: predicated region body
PF: predicated region fallthrough
CT: control target
= control target key end

     0   :  { %s1248_s18 = smov 0   ;;  %s1250_s19 = smov 0   ;;  %s1367_s0 = inlined_call_operand.vmem [shape: bf16[32,1152], index: 0, kind: input, shape index: {}]   ;;  %s1368_s1 = inlined_call_operand.vmem [shape: bf16[1152,128], index: 1, kind: input, shape index: {}]   ;;  %s1369_s2 = inlined_call_operand.vmem [shape: f32[1,128], index: 2, kind: input, shape index: {}]   ;;  %s1370_s3 = inlined_call_operand.vmem [shape: f32[1,128], index: 3, kind: input, shape index: {}]   ;;  %s1371_s4 = inlined_call_operand.vmem [shape: bf16[32,128], index: 4, kind: input, shape index: {}]   ;;  %s1372_s5 = inlined_call_operand.vmem [shape: bf16[32,128], index: 5, kind: output, shape index: {}]  }
   0x1   :  { %s1252_s20 = smov 0   ;;  %s1254_s21 = smov 0  }
   0x2   :  { %s1256_s22 = smov 0  }
   0x3 LB: > { %s27_s23 = sadd.s32 1, %s1211_s21  ;;  %p50_p1 = scmp.ne.s32.totalorder %s1203_s19, %s1199_s18  ;;  %s1215_s22 = sphi %s1256_s22, %s15_s22   ;;  %s1211_s21 = sphi %s1254_s21, %s1376_s21   ;;  %s1207_s20 = sphi %s1252_s20, %s1375_s20   ;;  %s1203_s19 = sphi %s1250_s19, %s1374_s19   ;;  %s1199_s18 = sphi %s1248_s18, %s1373_s18  }
   0x4   : > { %p28_p0 = scmp.ge.s32.totalorder %s27_s23, 3  ;;  %p51_p2 = scmp.eq.s32.totalorder %s1215_s22, 0 }
   0x5   : > { %s43_s25 = sadd.s32 1, %s1203_s19  ;;  %p965_p5 = scmp.ge.s32.totalorder %s1215_s22, 3 }
   0x6   : > { %s1378_s23 = smov (%p28_p0, %s27_s23), 0  ;;  %p52_p3 = por %p51_p2, %p50_p1 }
   0x7   : > { %s39_s24 = ssub.s32 %s1211_s21, %s1378_s23  ;;  %236 = sbr.rel (%p965_p5) target bundleno = 21 (0x15), region = 28 }
   0x8   : > { %p41_p4 = scmp.eq.s32.totalorder %s39_s24, 0 }
   0xa   : > { %s1283_s26 = scalar_select %p41_p4, %s1203_s19, %s43_s25  }
   0xc   : > { %239 = sbr.rel (!%p52_p3) target bundleno = 21 (0x15), region = 32  ;;  %s241_s27 = sand.u32 (%p52_p3), 1, %s1203_s19  }
   0xd   : > { %s1019_s28 = smul.u32 (%p52_p3), 12, %s1211_s21 }
   0xe   : > { %s1102_s29 = smul.u32 (%p52_p3), 48, %s241_s27 }
   0xf   : > { %s249_s7 = scalar_lea.vmem (%p52_p3), %s1367_s0, %s1019_s28 }
  0x10   : > { %v264_v0 = vld [vmem:[%s249_s7] sm:$0xff] (%p52_p3)  ;;  %v268_v2 = vld [vmem:[%s249_s7 + $0x48] sm:$0xff] (%p52_p3)  ;;  %s243_s8 = scalar_lea.vmem (%p52_p3), [#allocation3], %s1102_s29  ;;  %v971_v6 = vld [vmem:[%s249_s7 + $0x50] sm:$0xf] (%p52_p3) }
  0x11   : > { %v266_v1 = vld [vmem:[%s249_s7 + $0x24] sm:$0xff]  ;;  %265 = vst [vmem:[%s243_s8] sm:$0xff] %v264_v0  ;;  %269 = vst [vmem:[%s243_s8 + $0x18] sm:$0xff] %v268_v2  ;;  %v270_v3 = vld [vmem:[%s249_s7 + $0x6c] sm:$0xff] }
  0x12   : > { %267 = vst [vmem:[%s243_s8 + $0xc] sm:$0xff] %v266_v1  ;;  %v967_v4 = vld [vmem:[%s249_s7 + $0x8] sm:$0xf]  ;;  %v969_v5 = vld [vmem:[%s249_s7 + $0x2c] sm:$0xf]  ;;  %271 = vst [vmem:[%s243_s8 + $0x24] sm:$0xff] %v270_v3 }
  0x13   : > { %968 = vst [vmem:[%s243_s8 + $0x8] sm:$0xf] %v967_v4  ;;  %970 = vst [vmem:[%s243_s8 + $0x14] sm:$0xf] %v969_v5  ;;  %v973_v7 = vld [vmem:[%s249_s7 + $0x74] sm:$0xf] }
  0x14   : > { %972 = vst [vmem:[%s243_s8 + $0x20] sm:$0xf] %v971_v6  ;;  %974 = vst [vmem:[%s243_s8 + $0x2c] sm:$0xf] %v973_v7 }
  0x15 PF: > { %p975_p6 = scmp.ge.s32.totalorder %s1215_s22, 1  ;;  %p304_p7 = scmp.lt.s32.totalorder %s1215_s22, 4 }
  0x17   : > { %p305_p8 = pnand %p975_p6, %p304_p7 }
  0x18   : > { %s311_s9 = sand.u32 (!%p305_p8), 1, %s1199_s18   ;;  %s365_s10 = smul.u32 (!%p305_p8), 48, %s1207_s20 }
  0x19   : > { %308 = sbr.rel (%p305_p8) target bundleno = 303 (0x12f), region = 62  ;;  %p977_p10 = scmp.ne.s32.totalorder (!%p305_p8), %s1207_s20, 0 }
  0x1a   : > { %s1103_s11 = smul.u32 (!%p305_p8), 48, %s311_s9  ;;  %p366_p9 = scmp.lt.s32.totalorder (!%p305_p8), %s365_s10, 143 }
  0x1c   : > { %s1300_s16 = scalar_lea.vmem (!%p305_p8), [#allocation3], %s1103_s11 }
  0x1e   : > { %s1380_s10 = smov (!%p366_p9, %s365_s10), 143  ;;  %402 = sbr.rel (%p977_p10) target bundleno = 38 (0x26), region = 70 }
  0x1f   : > { %s976_s12 = sshll.u32 %s1380_s10, 2 }
  0x20   : > { %s1298_s15 = scalar_lea.vmem %s1368_s1, %s976_s12 }
  0x23   : > { %v1217_v8 = vmov 0.0  }
  0x24   : > { %403 = vst [vmem:[#allocation2 + $0x10] sm:$0xff] %v1217_v8  ;;  %404 = vst [vmem:[#allocation2] sm:$0xff] %v1217_v8 }
  0x25   : > { %405 = vst [vmem:[#allocation2 + $0x18] sm:$0xff] %v1217_v8  ;;  %406 = vst [vmem:[#allocation2 + $0x8] sm:$0xff] %v1217_v8 }
  0x26 PF: > { %v1145_v9 = vld [vmem:[%s1298_s15 + $0x78] sm:$0xff]   ;;  %v1148_v12 = vld [vmem:[%s1298_s15 + $0x70] sm:$0xff]   ;;  %v1151_v15 = vld [vmem:[%s1298_s15 + $0x68] sm:$0xff]   ;;  %p1008_p11 = scmp.ne.s32.totalorder %s1207_s20, 2 }
  0x27   : > { %v1146_v10 = vld [vmem:[%s1298_s15 + $0x38] sm:$0xff]   ;;  %1044 = vmatprep.subr.bf16.mxu0 %v1145_v9  ;;  %v1149_v13 = vld [vmem:[%s1298_s15 + $0x30] sm:$0xff]   ;;  %v1152_v16 = vld [vmem:[%s1298_s15 + $0x28] sm:$0xff]  }
  0x28   : > { %v1147_v11 = vld [vmem:[%s1298_s15 + $0xb8] sm:$0xff]   ;;  %1045 = vmatpush3.bf16.msra.mxu0 %v1146_v10  ;;  %v1150_v14 = vld [vmem:[%s1298_s15 + $0xb0] sm:$0xff]   ;;  %v1153_v17 = vld [vmem:[%s1298_s15 + $0xa8] sm:$0xff]  }
  0x29   : > { %1082 = vmatprep.subr.bf16.mxu1 %v1147_v11  ;;  %1046 = vmatprep.subr.bf16.mxu0 %v1148_v12  ;;  %v1154_v18 = vld [vmem:[%s1298_s15 + $0x60] sm:$0xff]   ;;  %v1157_v21 = vld [vmem:[%s1298_s15 + $0x58] sm:$0xff]   ;;  %v1160_v24 = vld [vmem:[%s1298_s15 + $0x50] sm:$0xff]  }
  0x2a   : > { %1083 = vmatpush3.bf16.msra.mxu1 %v1147_v11  ;;  %v1155_v19 = vld [vmem:[%s1298_s15 + $0x20] sm:$0xff]   ;;  %v1159_v22 = vld [vmem:[%s1298_s15 + $0x98] sm:$0xff]   ;;  %v1162_v25 = vld [vmem:[%s1298_s15 + $0x90] sm:$0xff]  }
  0x2b   : > { %1084 = vmatprep.subr.bf16.mxu1 %v1150_v14  ;;  %v1156_v20 = vld [vmem:[%s1298_s15 + $0xa0] sm:$0xff]   ;;  %v1158_v23 = vld [vmem:[%s1298_s15 + $0x18] sm:$0xff]   ;;  %v1161_v26 = vld [vmem:[%s1298_s15 + $0x10] sm:$0xff]  }
  0x2c   : > { %1047 = vmatpush3.bf16.msra.mxu0 %v1149_v13  ;;  %v1163_v27 = vld [vmem:[%s1298_s15 + $0x48] sm:$0xff]   ;;  %v1166_v30 = vld [vmem:[%s1298_s15 + $0x40] sm:$0xff]   ;;  %v407_v44 = vld [vmem:[#allocation2 + $0x10] sm:$0xff] }
  0x2d   : > { %1048 = vmatprep.subr.bf16.mxu0 %v1151_v15  ;;  %v1164_v28 = vld [vmem:[%s1298_s15 + $0x8] sm:$0xff]   ;;  %v1168_v31 = vld [vmem:[%s1298_s15 + $0x80] sm:$0xff]   ;;  %v409_v58 = vld [vmem:[#allocation2 + $0x18] sm:$0xff] }
  0x2e   : > { %1085 = vmatpush3.bf16.msra.mxu1 %v1150_v14  ;;  %v1165_v29 = vld [vmem:[%s1298_s15 + $0x88] sm:$0xff]   ;;  %v1171_v32 = vld [vmem:[%s1300_s16 + $0x4] ss:$12 sps:$4 sm:$0xff]  }
  0x2f   : > { %1086 = vmatprep.subr.bf16.mxu1 %v1153_v17  ;;  %v1172_v33 = vld [vmem:[%s1300_s16 + $0x8] ss:$12 sps:$4 sm:$0xff]   ;;  %675 = vmatprep.mubr.bf16.mxu0 %v1171_v32  ;;  %v1169_v35 = vld [vmem:[%s1300_s16] ss:$12 sps:$4 sm:$0xff]   ;;  %v1176_v38 = vld [vmem:[%s1300_s16 + $0x18] ss:$12 sps:$4 sm:$0xff]  }
  0x30   : > { %1049 = vmatpush3.bf16.msra.mxu0 %v1152_v16  ;;  %v1167_v34 = vld [vmem:[%s1298_s15] sm:$0xff]   ;;  %1098 = vmatprep.mubr.bf16.mxu1 %v1172_v33  ;;  %v1174_v36 = vld [vmem:[%s1300_s16 + $0x1c] ss:$12 sps:$4 sm:$0xff]  }
  0x31   : > { %1050 = vmatprep.subr.bf16.mxu0 %v1154_v18  ;;  %v1173_v37 = vld [vmem:[%s1300_s16 + $0x20] ss:$12 sps:$4 sm:$0xff]  }
  0x32   : > { %1087 = vmatpush3.bf16.msra.mxu1 %v1153_v17  ;;  %v408_v52 = vld [vmem:[#allocation2] sm:$0xff]  ;;  %v410_v0 = vld [vmem:[#allocation2 + $0x8] sm:$0xff] }
  0x33   : > { %1088 = vmatprep.subr.bf16.mxu1 %v1156_v20 }
  0x34   : > { %1051 = vmatpush3.bf16.msra.mxu0 %v1155_v19 }
  0x35   : > { %1052 = vmatprep.subr.bf16.mxu0 %v1157_v21 }
  0x36   : > { %1089 = vmatpush3.bf16.msra.mxu1 %v1156_v20 }
  0x37   : > { %1090 = vmatprep.subr.bf16.mxu1 %v1159_v22 }
  0x38   : > { %1053 = vmatpush3.bf16.msra.mxu0 %v1158_v23 }
  0x39   : > { %1054 = vmatprep.subr.bf16.mxu0 %v1160_v24 }
  0x3a   : > { %1091 = vmatpush3.bf16.msra.mxu1 %v1159_v22 }
  0x3b   : > { %1092 = vmatprep.subr.bf16.mxu1 %v1162_v25 }
  0x3c   : > { %1055 = vmatpush3.bf16.msra.mxu0 %v1161_v26 }
  0x3d   : > { %1056 = vmatprep.subr.bf16.mxu0 %v1163_v27 }
  0x3e   : > { %1093 = vmatpush3.bf16.msra.mxu1 %v1162_v25 }
  0x3f   : > { %1094 = vmatprep.subr.bf16.mxu1 %v1165_v29 }
  0x40   : > { %1057 = vmatpush3.bf16.msra.mxu0 %v1164_v28 }
  0x41   : > { %1058 = vmatprep.subr.bf16.mxu0 %v1166_v30 }
  0x42   : > { %1095 = vmatpush3.bf16.msra.mxu1 %v1165_v29 }
  0x43   : > { %1096 = vmatprep.subr.bf16.mxu1 %v1168_v31 }
  0x44   : > { %1059 = vmatpush3.bf16.msra.mxu0 %v1167_v34 }
  0x46   : > { %1097 = vmatpush3.bf16.msra.mxu1 %v1168_v31 }
  0x47   : > { %676 = vmatmul.mubr.bf16.vlgmr.msra.gmra.mxu0 %v1169_v35 }
  0x48   : > { %683 = vmatprep.mubr.bf16.mxu0 %v1174_v36 }
  0x49   : > { %1099 = vmatmul.mubr.bf16.vlgmr.msra.gmra.mxu1 %v1173_v37 }
  0x4f   : > { %684 = vmatmul.mubr.bf16.gmra.mxu0 %v1176_v38 }
 0x107   : > { %v1060_v39 = vpop.f32.mrf.mxu0 }
 0x109   : > { %v1061_v40 = vpop.f32.mrf.mxu0  ;;  %v1100_v41 = vpop.f32.mrf.mxu1 }
 0x10a   : > { %v1062_v42 = vadd.f32 %v1061_v40, %v1060_v39 }
 0x10b   : > { %v1063_v43 = vpop.f32.mrf.mxu0  ;;  %v726_v45 = vpop.f32.mrf.mxu1 }
 0x10c   : > { %v727_v46 = vadd.f32 %v1062_v42, %v726_v45 }
 0x10d   : > { %v1064_v47 = vpop.f32.mrf.mxu0  ;;  %v1101_v48 = vpop.f32.mrf.mxu1 }
 0x10e   : > { %v741_v49 = vadd.f32 %v727_v46, %v407_v44  ;;  %v1065_v50 = vadd.f32 %v1064_v47, %v1063_v43 }
 0x10f   : > { %v1066_v51 = vpop.f32.mrf.mxu0  ;;  %v729_v53 = vpop.f32.mrf.mxu1 }
 0x110   : > { %745 = vst [vmem:[#allocation2 + $0x10] sm:$0xff] %v741_v49  ;;  %v730_v54 = vadd.f32 %v1065_v50, %v729_v53 }
 0x111   : > { %v1067_v55 = vpop.f32.mrf.mxu0 }
 0x112   : > { %v742_v56 = vadd.f32 %v730_v54, %v408_v52  ;;  %v1068_v57 = vadd.f32 %v1067_v55, %v1066_v51 }
 0x113   : > { %v1069_v59 = vpop.f32.mrf.mxu0 }
 0x114   : > { %746 = vst [vmem:[#allocation2] sm:$0xff] %v742_v56  ;;  %v735_v60 = vadd.f32 %v1100_v41, %v1068_v57 }
 0x115   : > { %v1070_v61 = vpop.f32.mrf.mxu0 }
 0x116   : > { %v743_v62 = vadd.f32 %v735_v60, %v409_v58  ;;  %v1071_v63 = vadd.f32 %v1070_v61, %v1069_v59 }
 0x118   : > { %747 = vst [vmem:[#allocation2 + $0x18] sm:$0xff] %v743_v62  ;;  %v738_v1 = vadd.f32 %v1101_v48, %v1071_v63  ;;  %752 = sbr.rel (%p1008_p11) target bundleno = 303 (0x12f), region = 74 }
 0x11a   : > { %v744_v2 = vadd.f32 %v738_v1, %v410_v0 }
 0x11c   : > { %748 = vst [vmem:[#allocation2 + $0x8] sm:$0xff] %v744_v2 }
 0x11d   : > { %v753_v3 = vld [vmem:[#allocation2 + $0x10] sm:$0xff]  ;;  %v754_v4 = vld [vmem:[#allocation2] sm:$0xff]  ;;  %v1042_v15 = vld [vmem:[%s1371_s4 + $0x8] sm:$0xff]  }
 0x11e   : > { %v1009_v5 = vld [vmem:[%s1369_s2] ss:$0 sm:$0xff]  ;;  %v1030_v19 = vunpack.c.l.bf16 %v1042_v15  ;;  %v1031_v21 = vunpack.c.h.bf16 %v1042_v15 }
 0x11f   : > { %v764_v6 = vmul.f32 %v1009_v5, %v753_v3  ;;  %v765_v7 = vmul.f32 %v1009_v5, %v754_v4  ;;  %v1010_v8 = vld [vmem:[%s1370_s3] ss:$0 sm:$0xff]  ;;  %v755_v10 = vld [vmem:[#allocation2 + $0x18] sm:$0xff] }
 0x120   : > { %v1025_v9 = vld [vmem:[%s1371_s4] sm:$0xff]   ;;  %v766_v14 = vmul.f32 %v1009_v5, %v755_v10 }
 0x121   : > { %v1026_v11 = vunpack.c.l.bf16 %v1025_v9  ;;  %v1027_v12 = vunpack.c.h.bf16 %v1025_v9  ;;  %v775_v16 = vadd.f32 %v1010_v8, %v764_v6  ;;  %v776_v17 = vadd.f32 %v1010_v8, %v765_v7 }
 0x122   : > { %v777_v20 = vadd.f32 %v1010_v8, %v766_v14 }
 0x123   : > { %v756_v13 = vld [vmem:[#allocation2 + $0x8] sm:$0xff]  ;;  %v787_v22 = vadd.f32 %v1026_v11, %v775_v16  ;;  %v788_v23 = vadd.f32 %v1027_v12, %v776_v17 }
 0x124   : > { %v767_v18 = vmul.f32 %v1009_v5, %v756_v13  ;;  %v789_v25 = vadd.f32 %v1030_v19, %v777_v20 }
 0x125   : > { %v791_v26 = vmax.f32 %v787_v22, 0.0  ;;  %v792_v27 = vmax.f32 %v788_v23, 0.0 }
 0x126   : > { %v778_v24 = vadd.f32 %v1010_v8, %v767_v18  ;;  %v793_v29 = vmax.f32 %v789_v25, 0.0 }
 0x127   : > { %v1035_v30 = vpack.c.bf16 %v792_v27, %v791_v26 }
 0x128   : > { %v790_v28 = vadd.f32 %v1031_v21, %v778_v24 }
 0x129   : > { %1036 = vst [vmem:[%s1372_s5] sm:$0xff] %v1035_v30  }
 0x12a   : > { %v794_v31 = vmax.f32 %v790_v28, 0.0 }
 0x12c   : > { %v1040_v32 = vpack.c.bf16 %v794_v31, %v793_v29 }
 0x12e   : > { %1043 = vst [vmem:[%s1372_s5 + $0x8] sm:$0xff] %v1040_v32  }
 0x12f PF: > { %s15_s22 = sadd.s32 1, %s1215_s22   ;;  %s1373_s18 = smov %s1203_s19 }
 0x130   : > { %p12_p12 = scmp.ge.s32.totalorder %s15_s22, 5   ;;  %s1374_s19 = smov %s1283_s26 }
 0x131   : > { %s1375_s20 = smov %s1211_s21  ;;  %s1376_s21 = smov %s1378_s23 }
 0x132   :  { %14 = sbr.rel (!%p12_p12) target bundleno = 3 (0x3), region = 127 }

// kernel: student_net_resp_forward.32
= control target key start
LH: loop header
LB: loop body
LE: loop exit
PB: predicated region body
PF: predicated region fallthrough
CT: control target
= control target key end

     0   :  { %s1143_s15 = smov 0   ;;  %s1145_s16 = smov 0   ;;  %s1256_s0 = inlined_call_operand.vmem [shape: bf16[32,1152], index: 0, kind: input, shape index: {}]   ;;  %s1257_s1 = inlined_call_operand.vmem [shape: bf16[1152,128], index: 1, kind: input, shape index: {}]   ;;  %s1258_s2 = inlined_call_operand.vmem [shape: f32[1,128], index: 2, kind: input, shape index: {}]   ;;  %s1259_s3 = inlined_call_operand.vmem [shape: f32[1,128], index: 3, kind: input, shape index: {}]   ;;  %s1260_s4 = inlined_call_operand.vmem [shape: bf16[32,128], index: 4, kind: output, shape index: {}]  }
   0x1   :  { %s1147_s17 = smov 0   ;;  %s1149_s18 = smov 0  }
   0x2   :  { %s1151_s19 = smov 0  }
   0x3 LB: > { %s26_s20 = sadd.s32 1, %s1111_s18  ;;  %p49_p1 = scmp.ne.s32.totalorder %s1103_s16, %s1099_s15  ;;  %s1115_s19 = sphi %s1151_s19, %s14_s19   ;;  %s1111_s18 = sphi %s1149_s18, %s1264_s18   ;;  %s1107_s17 = sphi %s1147_s17, %s1263_s17   ;;  %s1103_s16 = sphi %s1145_s16, %s1262_s16   ;;  %s1099_s15 = sphi %s1143_s15, %s1261_s15  }
   0x4   : > { %p27_p0 = scmp.ge.s32.totalorder %s26_s20, 3  ;;  %p50_p2 = scmp.eq.s32.totalorder %s1115_s19, 0 }
   0x5   : > { %s42_s22 = sadd.s32 1, %s1103_s16  ;;  %p874_p5 = scmp.ge.s32.totalorder %s1115_s19, 3 }
   0x6   : > { %s1266_s20 = smov (%p27_p0, %s26_s20), 0  ;;  %p51_p3 = por %p50_p2, %p49_p1 }
   0x7   : > { %s38_s21 = ssub.s32 %s1111_s18, %s1266_s20  ;;  %195 = sbr.rel (%p874_p5) target bundleno = 21 (0x15), region = 24 }
   0x8   : > { %p40_p4 = scmp.eq.s32.totalorder %s38_s21, 0 }
   0xa   : > { %s1178_s23 = scalar_select %p40_p4, %s1103_s16, %s42_s22  }
   0xc   : > { %198 = sbr.rel (!%p51_p3) target bundleno = 21 (0x15), region = 28  ;;  %s200_s24 = sand.u32 (%p51_p3), 1, %s1103_s16  }
   0xd   : > { %s928_s25 = smul.u32 (%p51_p3), 12, %s1111_s18 }
   0xe   : > { %s1002_s26 = smul.u32 (%p51_p3), 48, %s200_s24 }
   0xf   : > { %s208_s29 = scalar_lea.vmem (%p51_p3), %s1256_s0, %s928_s25 }
  0x10   : > { %v223_v0 = vld [vmem:[%s208_s29] sm:$0xff] (%p51_p3)  ;;  %v227_v2 = vld [vmem:[%s208_s29 + $0x48] sm:$0xff] (%p51_p3)  ;;  %s202_s30 = scalar_lea.vmem (%p51_p3), [#allocation3], %s1002_s26  ;;  %v880_v6 = vld [vmem:[%s208_s29 + $0x50] sm:$0xf] (%p51_p3) }
  0x11   : > { %v225_v1 = vld [vmem:[%s208_s29 + $0x24] sm:$0xff]  ;;  %224 = vst [vmem:[%s202_s30] sm:$0xff] %v223_v0  ;;  %228 = vst [vmem:[%s202_s30 + $0x18] sm:$0xff] %v227_v2  ;;  %v229_v3 = vld [vmem:[%s208_s29 + $0x6c] sm:$0xff] }
  0x12   : > { %226 = vst [vmem:[%s202_s30 + $0xc] sm:$0xff] %v225_v1  ;;  %v876_v4 = vld [vmem:[%s208_s29 + $0x8] sm:$0xf]  ;;  %v878_v5 = vld [vmem:[%s208_s29 + $0x2c] sm:$0xf]  ;;  %230 = vst [vmem:[%s202_s30 + $0x24] sm:$0xff] %v229_v3 }
  0x13   : > { %877 = vst [vmem:[%s202_s30 + $0x8] sm:$0xf] %v876_v4  ;;  %879 = vst [vmem:[%s202_s30 + $0x14] sm:$0xf] %v878_v5  ;;  %v882_v7 = vld [vmem:[%s208_s29 + $0x74] sm:$0xf] }
  0x14   : > { %881 = vst [vmem:[%s202_s30 + $0x20] sm:$0xf] %v880_v6  ;;  %883 = vst [vmem:[%s202_s30 + $0x2c] sm:$0xf] %v882_v7 }
  0x15 PF: > { %p884_p6 = scmp.ge.s32.totalorder %s1115_s19, 1  ;;  %p263_p7 = scmp.lt.s32.totalorder %s1115_s19, 4 }
  0x17   : > { %p264_p8 = pnand %p884_p6, %p263_p7 }
  0x18   : > { %s270_s5 = sand.u32 (!%p264_p8), 1, %s1099_s15   ;;  %s314_s6 = smul.u32 (!%p264_p8), 48, %s1107_s17 }
  0x19   : > { %267 = sbr.rel (%p264_p8) target bundleno = 301 (0x12d), region = 58  ;;  %p886_p10 = scmp.ne.s32.totalorder (!%p264_p8), %s1107_s17, 0 }
  0x1a   : > { %s1003_s7 = smul.u32 (!%p264_p8), 48, %s270_s5  ;;  %p315_p9 = scmp.lt.s32.totalorder (!%p264_p8), %s314_s6, 143 }
  0x1c   : > { %s1195_s12 = scalar_lea.vmem (!%p264_p8), [#allocation3], %s1003_s7 }
  0x1e   : > { %s1268_s6 = smov (!%p315_p9, %s314_s6), 143  ;;  %342 = sbr.rel (%p886_p10) target bundleno = 38 (0x26), region = 66 }
  0x1f   : > { %s885_s8 = sshll.u32 %s1268_s6, 2 }
  0x20   : > { %s1193_s11 = scalar_lea.vmem %s1257_s1, %s885_s8 }
  0x23   : > { %v1117_v8 = vmov 0.0  }
  0x24   : > { %343 = vst [vmem:[#allocation2 + $0x10] sm:$0xff] %v1117_v8  ;;  %344 = vst [vmem:[#allocation2] sm:$0xff] %v1117_v8 }
  0x25   : > { %345 = vst [vmem:[#allocation2 + $0x18] sm:$0xff] %v1117_v8  ;;  %346 = vst [vmem:[#allocation2 + $0x8] sm:$0xff] %v1117_v8 }
  0x26 PF: > { %v1045_v9 = vld [vmem:[%s1193_s11 + $0x78] sm:$0xff]   ;;  %v1048_v12 = vld [vmem:[%s1193_s11 + $0x70] sm:$0xff]   ;;  %v1051_v15 = vld [vmem:[%s1193_s11 + $0x68] sm:$0xff]   ;;  %p917_p11 = scmp.ne.s32.totalorder %s1107_s17, 2 }
  0x27   : > { %v1046_v10 = vld [vmem:[%s1193_s11 + $0x38] sm:$0xff]   ;;  %944 = vmatprep.subr.bf16.mxu0 %v1045_v9  ;;  %v1049_v13 = vld [vmem:[%s1193_s11 + $0x30] sm:$0xff]   ;;  %v1052_v16 = vld [vmem:[%s1193_s11 + $0x28] sm:$0xff]  }
  0x28   : > { %v1047_v11 = vld [vmem:[%s1193_s11 + $0xb8] sm:$0xff]   ;;  %945 = vmatpush3.bf16.msra.mxu0 %v1046_v10  ;;  %v1050_v14 = vld [vmem:[%s1193_s11 + $0xb0] sm:$0xff]   ;;  %v1053_v17 = vld [vmem:[%s1193_s11 + $0xa8] sm:$0xff]  }
  0x29   : > { %982 = vmatprep.subr.bf16.mxu1 %v1047_v11  ;;  %946 = vmatprep.subr.bf16.mxu0 %v1048_v12  ;;  %v1054_v18 = vld [vmem:[%s1193_s11 + $0x60] sm:$0xff]   ;;  %v1057_v21 = vld [vmem:[%s1193_s11 + $0x58] sm:$0xff]   ;;  %v1060_v24 = vld [vmem:[%s1193_s11 + $0x50] sm:$0xff]  }
  0x2a   : > { %983 = vmatpush3.bf16.msra.mxu1 %v1047_v11  ;;  %v1055_v19 = vld [vmem:[%s1193_s11 + $0x20] sm:$0xff]   ;;  %v1059_v22 = vld [vmem:[%s1193_s11 + $0x98] sm:$0xff]   ;;  %v1062_v25 = vld [vmem:[%s1193_s11 + $0x90] sm:$0xff]  }
  0x2b   : > { %984 = vmatprep.subr.bf16.mxu1 %v1050_v14  ;;  %v1056_v20 = vld [vmem:[%s1193_s11 + $0xa0] sm:$0xff]   ;;  %v1058_v23 = vld [vmem:[%s1193_s11 + $0x18] sm:$0xff]   ;;  %v1061_v26 = vld [vmem:[%s1193_s11 + $0x10] sm:$0xff]  }
  0x2c   : > { %947 = vmatpush3.bf16.msra.mxu0 %v1049_v13  ;;  %v1063_v27 = vld [vmem:[%s1193_s11 + $0x48] sm:$0xff]   ;;  %v1066_v30 = vld [vmem:[%s1193_s11 + $0x40] sm:$0xff]   ;;  %v347_v44 = vld [vmem:[#allocation2 + $0x10] sm:$0xff] }
  0x2d   : > { %948 = vmatprep.subr.bf16.mxu0 %v1051_v15  ;;  %v1064_v28 = vld [vmem:[%s1193_s11 + $0x8] sm:$0xff]   ;;  %v1068_v31 = vld [vmem:[%s1193_s11 + $0x80] sm:$0xff]   ;;  %v349_v58 = vld [vmem:[#allocation2 + $0x18] sm:$0xff] }
  0x2e   : > { %985 = vmatpush3.bf16.msra.mxu1 %v1050_v14  ;;  %v1065_v29 = vld [vmem:[%s1193_s11 + $0x88] sm:$0xff]   ;;  %v1071_v32 = vld [vmem:[%s1195_s12 + $0x4] ss:$12 sps:$4 sm:$0xff]  }
  0x2f   : > { %986 = vmatprep.subr.bf16.mxu1 %v1053_v17  ;;  %v1072_v33 = vld [vmem:[%s1195_s12 + $0x8] ss:$12 sps:$4 sm:$0xff]   ;;  %615 = vmatprep.mubr.bf16.mxu0 %v1071_v32  ;;  %v1069_v35 = vld [vmem:[%s1195_s12] ss:$12 sps:$4 sm:$0xff]   ;;  %v1076_v38 = vld [vmem:[%s1195_s12 + $0x18] ss:$12 sps:$4 sm:$0xff]  }
  0x30   : > { %949 = vmatpush3.bf16.msra.mxu0 %v1052_v16  ;;  %v1067_v34 = vld [vmem:[%s1193_s11] sm:$0xff]   ;;  %998 = vmatprep.mubr.bf16.mxu1 %v1072_v33  ;;  %v1074_v36 = vld [vmem:[%s1195_s12 + $0x1c] ss:$12 sps:$4 sm:$0xff]  }
  0x31   : > { %950 = vmatprep.subr.bf16.mxu0 %v1054_v18  ;;  %v1073_v37 = vld [vmem:[%s1195_s12 + $0x20] ss:$12 sps:$4 sm:$0xff]  }
  0x32   : > { %987 = vmatpush3.bf16.msra.mxu1 %v1053_v17  ;;  %v348_v52 = vld [vmem:[#allocation2] sm:$0xff]  ;;  %v350_v0 = vld [vmem:[#allocation2 + $0x8] sm:$0xff] }
  0x33   : > { %988 = vmatprep.subr.bf16.mxu1 %v1056_v20 }
  0x34   : > { %951 = vmatpush3.bf16.msra.mxu0 %v1055_v19 }
  0x35   : > { %952 = vmatprep.subr.bf16.mxu0 %v1057_v21 }
  0x36   : > { %989 = vmatpush3.bf16.msra.mxu1 %v1056_v20 }
  0x37   : > { %990 = vmatprep.subr.bf16.mxu1 %v1059_v22 }
  0x38   : > { %953 = vmatpush3.bf16.msra.mxu0 %v1058_v23 }
  0x39   : > { %954 = vmatprep.subr.bf16.mxu0 %v1060_v24 }
  0x3a   : > { %991 = vmatpush3.bf16.msra.mxu1 %v1059_v22 }
  0x3b   : > { %992 = vmatprep.subr.bf16.mxu1 %v1062_v25 }
  0x3c   : > { %955 = vmatpush3.bf16.msra.mxu0 %v1061_v26 }
  0x3d   : > { %956 = vmatprep.subr.bf16.mxu0 %v1063_v27 }
  0x3e   : > { %993 = vmatpush3.bf16.msra.mxu1 %v1062_v25 }
  0x3f   : > { %994 = vmatprep.subr.bf16.mxu1 %v1065_v29 }
  0x40   : > { %957 = vmatpush3.bf16.msra.mxu0 %v1064_v28 }
  0x41   : > { %958 = vmatprep.subr.bf16.mxu0 %v1066_v30 }
  0x42   : > { %995 = vmatpush3.bf16.msra.mxu1 %v1065_v29 }
  0x43   : > { %996 = vmatprep.subr.bf16.mxu1 %v1068_v31 }
  0x44   : > { %959 = vmatpush3.bf16.msra.mxu0 %v1067_v34 }
  0x46   : > { %997 = vmatpush3.bf16.msra.mxu1 %v1068_v31 }
  0x47   : > { %616 = vmatmul.mubr.bf16.vlgmr.msra.gmra.mxu0 %v1069_v35 }
  0x48   : > { %623 = vmatprep.mubr.bf16.mxu0 %v1074_v36 }
  0x49   : > { %999 = vmatmul.mubr.bf16.vlgmr.msra.gmra.mxu1 %v1073_v37 }
  0x4f   : > { %624 = vmatmul.mubr.bf16.gmra.mxu0 %v1076_v38 }
 0x107   : > { %v960_v39 = vpop.f32.mrf.mxu0 }
 0x109   : > { %v961_v40 = vpop.f32.mrf.mxu0  ;;  %v1000_v41 = vpop.f32.mrf.mxu1 }
 0x10a   : > { %v962_v42 = vadd.f32 %v961_v40, %v960_v39 }
 0x10b   : > { %v963_v43 = vpop.f32.mrf.mxu0  ;;  %v666_v45 = vpop.f32.mrf.mxu1 }
 0x10c   : > { %v667_v46 = vadd.f32 %v962_v42, %v666_v45 }
 0x10d   : > { %v964_v47 = vpop.f32.mrf.mxu0  ;;  %v1001_v48 = vpop.f32.mrf.mxu1 }
 0x10e   : > { %v681_v49 = vadd.f32 %v667_v46, %v347_v44  ;;  %v965_v50 = vadd.f32 %v964_v47, %v963_v43 }
 0x10f   : > { %v966_v51 = vpop.f32.mrf.mxu0  ;;  %v669_v53 = vpop.f32.mrf.mxu1 }
 0x110   : > { %685 = vst [vmem:[#allocation2 + $0x10] sm:$0xff] %v681_v49  ;;  %v670_v54 = vadd.f32 %v965_v50, %v669_v53 }
 0x111   : > { %v967_v55 = vpop.f32.mrf.mxu0 }
 0x112   : > { %v682_v56 = vadd.f32 %v670_v54, %v348_v52  ;;  %v968_v57 = vadd.f32 %v967_v55, %v966_v51 }
 0x113   : > { %v969_v59 = vpop.f32.mrf.mxu0 }
 0x114   : > { %686 = vst [vmem:[#allocation2] sm:$0xff] %v682_v56  ;;  %v675_v60 = vadd.f32 %v1000_v41, %v968_v57 }
 0x115   : > { %v970_v61 = vpop.f32.mrf.mxu0 }
 0x116   : > { %v683_v62 = vadd.f32 %v675_v60, %v349_v58  ;;  %v971_v63 = vadd.f32 %v970_v61, %v969_v59 }
 0x118   : > { %687 = vst [vmem:[#allocation2 + $0x18] sm:$0xff] %v683_v62  ;;  %v678_v1 = vadd.f32 %v1001_v48, %v971_v63  ;;  %692 = sbr.rel (%p917_p11) target bundleno = 301 (0x12d), region = 70 }
 0x11a   : > { %v684_v2 = vadd.f32 %v678_v1, %v350_v0 }
 0x11c   : > { %688 = vst [vmem:[#allocation2 + $0x8] sm:$0xff] %v684_v2 }
 0x11d   : > { %v693_v3 = vld [vmem:[#allocation2 + $0x10] sm:$0xff]  ;;  %v694_v4 = vld [vmem:[#allocation2] sm:$0xff] }
 0x11e   : > { %v918_v5 = vld [vmem:[%s1258_s2] ss:$0 sm:$0xff] }
 0x11f   : > { %v704_v6 = vmul.f32 %v918_v5, %v693_v3  ;;  %v705_v7 = vmul.f32 %v918_v5, %v694_v4  ;;  %v919_v8 = vld [vmem:[%s1259_s3] ss:$0 sm:$0xff]  ;;  %v695_v9 = vld [vmem:[#allocation2 + $0x18] sm:$0xff] }
 0x120   : > { %v706_v11 = vmul.f32 %v918_v5, %v695_v9 }
 0x121   : > { %v715_v13 = vadd.f32 %v919_v8, %v704_v6  ;;  %v716_v14 = vadd.f32 %v919_v8, %v705_v7 }
 0x122   : > { %v717_v15 = vadd.f32 %v919_v8, %v706_v11 }
 0x123   : > { %v696_v10 = vld [vmem:[#allocation2 + $0x8] sm:$0xff]  ;;  %v719_v17 = vmax.f32 %v715_v13, 0.0  ;;  %v720_v18 = vmax.f32 %v716_v14, 0.0 }
 0x124   : > { %v707_v12 = vmul.f32 %v918_v5, %v696_v10  ;;  %v721_v19 = vmax.f32 %v717_v15, 0.0 }
 0x125   : > { %v936_v21 = vpack.c.bf16 %v720_v18, %v719_v17 }
 0x126   : > { %v718_v16 = vadd.f32 %v919_v8, %v707_v12 }
 0x127   : > { %937 = vst [vmem:[%s1260_s4] sm:$0xff] %v936_v21  }
 0x128   : > { %v722_v20 = vmax.f32 %v718_v16, 0.0 }
 0x12a   : > { %v941_v22 = vpack.c.bf16 %v722_v20, %v721_v19 }
 0x12c   : > { %943 = vst [vmem:[%s1260_s4 + $0x8] sm:$0xff] %v941_v22  }
 0x12d PF: > { %s14_s19 = sadd.s32 1, %s1115_s19   ;;  %s1261_s15 = smov %s1103_s16 }
 0x12e   : > { %p11_p12 = scmp.ge.s32.totalorder %s14_s19, 5   ;;  %s1262_s16 = smov %s1178_s23 }
 0x12f   : > { %s1263_s17 = smov %s1111_s18  ;;  %s1264_s18 = smov %s1266_s20 }
 0x130   :  { %13 = sbr.rel (!%p11_p12) target bundleno = 3 (0x3), region = 120 }

// kernel: student_net_resp_forward.34
= control target key start
LH: loop header
LB: loop body
LE: loop exit
PB: predicated region body
PF: predicated region fallthrough
CT: control target
= control target key end

     0   :  { %s1114_s15 = smov 0   ;;  %s1116_s16 = smov 0   ;;  %s1216_s0 = inlined_call_operand.vmem [shape: bf16[8,1152], index: 0, kind: input, shape index: {}]   ;;  %s1217_s1 = inlined_call_operand.vmem [shape: bf16[1152,256], index: 1, kind: input, shape index: {}]   ;;  %s1218_s2 = inlined_call_operand.vmem [shape: f32[1,256], index: 2, kind: input, shape index: {}]   ;;  %s1219_s3 = inlined_call_operand.vmem [shape: f32[1,256], index: 3, kind: input, shape index: {}]   ;;  %s1220_s4 = inlined_call_operand.vmem [shape: bf16[8,256], index: 4, kind: output, shape index: {}]  }
   0x1   :  { %s1118_s17 = smov 0  }
   0x2 LB: > { %s26_s18 = sadd.s32 1, %s1081_s16  ;;  %p898_p0 = scmp.ge.s32.totalorder %s1085_s17, 1  ;;  %s1085_s17 = sphi %s1118_s17, %s14_s17   ;;  %s1081_s16 = sphi %s1116_s16, %s1222_s16   ;;  %s1077_s15 = sphi %s1114_s15, %s1221_s15  }
   0x3   : > { %p27_p1 = scmp.ge.s32.totalorder %s26_s18, 3  ;;  %p229_p2 = scmp.lt.s32.totalorder %s1085_s17, 4 }
   0x5   : > { %s1224_s18 = smov (%p27_p1, %s26_s18), 0  ;;  %p230_p3 = pnand %p898_p0, %p229_p2 }
   0x6   : > { %s281_s19 = smul.u32 (!%p230_p3), 3, %s1077_s15  ;;  %p902_p6 = scmp.ne.s32.totalorder (!%p230_p3), %s1077_s15, 0 }
   0x7   : > { %233 = sbr.rel (%p230_p3) target bundleno = 304 (0x130), region = 36 }
   0x8   : > { %s291_s20 = smul.u32 (!%p230_p3), 48, %s1077_s15  ;;  %p284_p4 = scmp.lt.s32.totalorder (!%p230_p3), %s281_s19, 8 }
   0xa   : > { %p293_p5 = scmp.lt.s32.totalorder (!%p230_p3), %s291_s20, 143 }
   0xc   : > { %s1226_s19 = smov (!%p284_p4, %s281_s19), 8  ;;  %s1228_s20 = smov (!%p293_p5, %s291_s20), 143 }
   0xd   : > { %s899_s21 = sshll.u32 %s1226_s19, 2  ;;  %s960_s25 = sshll.u32 %s1228_s20, 3 }
   0xe   : > { %s1139_s24 = scalar_lea.vmem %s1216_s0, %s899_s21  ;;  %s1144_s28 = scalar_lea.vmem %s1217_s1, %s960_s25 }
   0xf   : > { %327 = sbr.rel (%p902_p6) target bundleno = 22 (0x16), region = 40 }
  0x14   : > { %v1087_v0 = vmov 0.0  }
  0x15   : > { %328 = vst [vmem:[#allocation2] sm:$0xff] %v1087_v0  ;;  %329 = vst [vmem:[#allocation2 + $0x8] sm:$0xff] %v1087_v0 }
  0x16 PF: > { %v988_v1 = vld [vmem:[%s1144_s28 + $0x74] ss:$8 sps:$4 sm:$0xff]   ;;  %v990_v2 = vld [vmem:[%s1144_s28 + $0x70] ss:$8 sps:$4 sm:$0xff]   ;;  %v1088_v3 = vmov 0   ;;  %v332_v34 = vld [vmem:[%s1139_s24] sm:$0xff] }
  0x17   : > { %706 = vmatprep.mubr.bf16.mxu1 %v1088_v3  ;;  %633 = vmatprep.subr.bf16.mxu0 %v988_v1  ;;  %v991_v4 = vld [vmem:[%s1144_s28 + $0x64] ss:$8 sps:$4 sm:$0xff]   ;;  %v993_v5 = vld [vmem:[%s1144_s28 + $0x60] ss:$8 sps:$4 sm:$0xff]   ;;  %v994_v6 = vld [vmem:[%s1144_s28 + $0x54] ss:$8 sps:$4 sm:$0xff]   ;;  %v904_v36 = vcombine.high %v332_v34, %v332_v34  ;;  %v903_v53 = vcombine.low %v332_v34, %v332_v34 }
  0x18   : > { %634 = vmatpush1.bf16.msra.mxu0 %v990_v2  ;;  %v996_v7 = vld [vmem:[%s1144_s28 + $0x50] ss:$8 sps:$4 sm:$0xff]   ;;  %v997_v8 = vld [vmem:[%s1144_s28 + $0x44] ss:$8 sps:$4 sm:$0xff]   ;;  %v1009_v9 = vld [vmem:[%s1144_s28 + $0x174] ss:$8 sps:$4 sm:$0xff]  }
  0x19   : > { %635 = vmatprep.subr.bf16.mxu0 %v991_v4  ;;  %v1011_v10 = vld [vmem:[%s1144_s28 + $0x170] ss:$8 sps:$4 sm:$0xff]   ;;  %v999_v11 = vld [vmem:[%s1144_s28 + $0x40] ss:$8 sps:$4 sm:$0xff]   ;;  %v1000_v12 = vld [vmem:[%s1144_s28 + $0x34] ss:$8 sps:$4 sm:$0xff]   ;;  %674 = vmatprep.subr.bf16.mxu1 %v1009_v9 }
  0x1a   : > { %v1015_v13 = vld [vmem:[%s1144_s28 + $0x164] ss:$8 sps:$4 sm:$0xff]   ;;  %675 = vmatpush1.bf16.msra.mxu1 %v1011_v10  ;;  %v1017_v14 = vld [vmem:[%s1144_s28 + $0x160] ss:$8 sps:$4 sm:$0xff]   ;;  %v1002_v15 = vld [vmem:[%s1144_s28 + $0x30] ss:$8 sps:$4 sm:$0xff]   ;;  %665 = vmatprep.mubr.bf16.mxu0 %v904_v36 }
  0x1b   : > { %676 = vmatprep.subr.bf16.mxu1 %v1015_v13  ;;  %v1021_v16 = vld [vmem:[%s1144_s28 + $0x154] ss:$8 sps:$4 sm:$0xff]   ;;  %v1003_v17 = vld [vmem:[%s1144_s28 + $0x24] ss:$8 sps:$4 sm:$0xff]   ;;  %v1023_v18 = vld [vmem:[%s1144_s28 + $0x150] ss:$8 sps:$4 sm:$0xff]  }
  0x1c   : > { %636 = vmatpush1.bf16.msra.mxu0 %v993_v5  ;;  %v1027_v19 = vld [vmem:[%s1144_s28 + $0x144] ss:$8 sps:$4 sm:$0xff]   ;;  %v1005_v20 = vld [vmem:[%s1144_s28 + $0x20] ss:$8 sps:$4 sm:$0xff]   ;;  %v1006_v21 = vld [vmem:[%s1144_s28 + $0x14] ss:$8 sps:$4 sm:$0xff]  }
  0x1d   : > { %637 = vmatprep.subr.bf16.mxu0 %v994_v6  ;;  %v1029_v22 = vld [vmem:[%s1144_s28 + $0x140] ss:$8 sps:$4 sm:$0xff]   ;;  %v1033_v23 = vld [vmem:[%s1144_s28 + $0x134] ss:$8 sps:$4 sm:$0xff]   ;;  %v1008_v24 = vld [vmem:[%s1144_s28 + $0x10] ss:$8 sps:$4 sm:$0xff]  }
  0x1e   : > { %677 = vmatpush1.bf16.msra.mxu1 %v1017_v14  ;;  %v1012_v25 = vld [vmem:[%s1144_s28 + $0x4] ss:$8 sps:$4 sm:$0xff]   ;;  %v1035_v26 = vld [vmem:[%s1144_s28 + $0x130] ss:$8 sps:$4 sm:$0xff]   ;;  %v1014_v28 = vld [vmem:[%s1144_s28] ss:$8 sps:$4 sm:$0xff]  }
  0x1f   : > { %678 = vmatprep.subr.bf16.mxu1 %v1021_v16  ;;  %v1039_v27 = vld [vmem:[%s1144_s28 + $0x124] ss:$8 sps:$4 sm:$0xff]   ;;  %v1018_v29 = vld [vmem:[%s1144_s28 + $0xf4] ss:$8 sps:$4 sm:$0xff]   ;;  %v1041_v30 = vld [vmem:[%s1144_s28 + $0x120] ss:$8 sps:$4 sm:$0xff]  }
  0x20   : > { %638 = vmatpush1.bf16.msra.mxu0 %v996_v7  ;;  %v1045_v31 = vld [vmem:[%s1144_s28 + $0x114] ss:$8 sps:$4 sm:$0xff]   ;;  %v1020_v32 = vld [vmem:[%s1144_s28 + $0xf0] ss:$8 sps:$4 sm:$0xff]   ;;  %v1024_v33 = vld [vmem:[%s1144_s28 + $0xe4] ss:$8 sps:$4 sm:$0xff]  }
  0x21   : > { %639 = vmatprep.subr.bf16.mxu0 %v997_v8  ;;  %v1047_v35 = vld [vmem:[%s1144_s28 + $0x110] ss:$8 sps:$4 sm:$0xff]   ;;  %v1051_v37 = vld [vmem:[%s1144_s28 + $0x104] ss:$8 sps:$4 sm:$0xff]   ;;  %v1026_v38 = vld [vmem:[%s1144_s28 + $0xe0] ss:$8 sps:$4 sm:$0xff]  }
  0x22   : > { %679 = vmatpush1.bf16.msra.mxu1 %v1023_v18  ;;  %v1030_v39 = vld [vmem:[%s1144_s28 + $0xd4] ss:$8 sps:$4 sm:$0xff]   ;;  %v1053_v40 = vld [vmem:[%s1144_s28 + $0x100] ss:$8 sps:$4 sm:$0xff]   ;;  %v1032_v41 = vld [vmem:[%s1144_s28 + $0xd0] ss:$8 sps:$4 sm:$0xff]  }
  0x23   : > { %680 = vmatprep.subr.bf16.mxu1 %v1027_v19  ;;  %v1036_v42 = vld [vmem:[%s1144_s28 + $0xc4] ss:$8 sps:$4 sm:$0xff]   ;;  %v1057_v43 = vld [vmem:[%s1139_s24 + $0x8] ss:$0 sps:$4 sm:$0xff]   ;;  %v1042_v45 = vld [vmem:[%s1144_s28 + $0xb4] ss:$8 sps:$4 sm:$0xff]  }
  0x24   : > { %640 = vmatpush1.bf16.msra.mxu0 %v999_v11  ;;  %v1038_v44 = vld [vmem:[%s1144_s28 + $0xc0] ss:$8 sps:$4 sm:$0xff]   ;;  %v1044_v46 = vld [vmem:[%s1144_s28 + $0xb0] ss:$8 sps:$4 sm:$0xff]   ;;  %v1048_v47 = vld [vmem:[%s1144_s28 + $0xa4] ss:$8 sps:$4 sm:$0xff]  }
  0x25   : > { %641 = vmatprep.subr.bf16.mxu0 %v1000_v12  ;;  %v1050_v48 = vld [vmem:[%s1144_s28 + $0xa0] ss:$8 sps:$4 sm:$0xff]   ;;  %v1054_v49 = vld [vmem:[%s1144_s28 + $0x94] ss:$8 sps:$4 sm:$0xff]   ;;  %v1056_v50 = vld [vmem:[%s1144_s28 + $0x90] ss:$8 sps:$4 sm:$0xff]  }
  0x26   : > { %681 = vmatpush1.bf16.msra.mxu1 %v1029_v22  ;;  %v1058_v51 = vld [vmem:[%s1144_s28 + $0x84] ss:$8 sps:$4 sm:$0xff]   ;;  %v1060_v52 = vld [vmem:[%s1144_s28 + $0x80] ss:$8 sps:$4 sm:$0xff]   ;;  %p954_p7 = scmp.ne.s32.totalorder %s1077_s15, 2 }
  0x27   : > { %682 = vmatprep.subr.bf16.mxu1 %v1033_v23  ;;  %v330_v58 = vld [vmem:[#allocation2] sm:$0xff]  ;;  %v331_v61 = vld [vmem:[#allocation2 + $0x8] sm:$0xff] }
  0x28   : > { %642 = vmatpush1.bf16.msra.mxu0 %v1002_v15 }
  0x29   : > { %643 = vmatprep.subr.bf16.mxu0 %v1003_v17 }
  0x2a   : > { %683 = vmatpush1.bf16.msra.mxu1 %v1035_v26 }
  0x2b   : > { %684 = vmatprep.subr.bf16.mxu1 %v1039_v27 }
  0x2c   : > { %644 = vmatpush1.bf16.msra.mxu0 %v1005_v20 }
  0x2d   : > { %645 = vmatprep.subr.bf16.mxu0 %v1006_v21 }
  0x2e   : > { %685 = vmatpush1.bf16.msra.mxu1 %v1041_v30 }
  0x2f   : > { %686 = vmatprep.subr.bf16.mxu1 %v1045_v31 }
  0x30   : > { %646 = vmatpush1.bf16.msra.mxu0 %v1008_v24 }
  0x31   : > { %647 = vmatprep.subr.bf16.mxu0 %v1012_v25 }
  0x32   : > { %687 = vmatpush1.bf16.msra.mxu1 %v1047_v35 }
  0x33   : > { %688 = vmatprep.subr.bf16.mxu1 %v1051_v37 }
  0x34   : > { %648 = vmatpush1.bf16.msra.mxu0 %v1014_v28 }
  0x35   : > { %649 = vmatprep.subr.bf16.mxu0 %v1018_v29 }
  0x36   : > { %689 = vmatpush1.bf16.msra.mxu1 %v1053_v40 }
  0x38   : > { %650 = vmatpush2.bf16.msra.mxu0 %v1020_v32 }
  0x39   : > { %651 = vmatprep.subr.bf16.mxu0 %v1024_v33  ;;  %707 = vmatmul.mubr.bf16.vlgmr.msra.gmra.mxu1 %v1057_v43 }
  0x3c   : > { %652 = vmatpush2.bf16.msra.mxu0 %v1026_v38 }
  0x3d   : > { %653 = vmatprep.subr.bf16.mxu0 %v1030_v39 }
  0x40   : > { %654 = vmatpush2.bf16.msra.mxu0 %v1032_v41 }
  0x41   : > { %655 = vmatprep.subr.bf16.mxu0 %v1036_v42 }
  0x44   : > { %656 = vmatpush2.bf16.msra.mxu0 %v1038_v44 }
  0x45   : > { %657 = vmatprep.subr.bf16.mxu0 %v1042_v45 }
  0x48   : > { %658 = vmatpush2.bf16.msra.mxu0 %v1044_v46 }
  0x49   : > { %659 = vmatprep.subr.bf16.mxu0 %v1048_v47 }
  0x4c   : > { %660 = vmatpush2.bf16.msra.mxu0 %v1050_v48 }
  0x4d   : > { %661 = vmatprep.subr.bf16.mxu0 %v1054_v49 }
  0x50   : > { %662 = vmatpush2.bf16.msra.mxu0 %v1056_v50 }
  0x51   : > { %663 = vmatprep.subr.bf16.mxu0 %v1058_v51 }
  0x54   : > { %664 = vmatpush2.bf16.msra.mxu0 %v1060_v52 }
  0x57   : > { %666 = vmatmul.mubr.bf16.vlgmr.msra.gmra.mxu0 %v903_v53 }
  0xf9   : > { %v708_v54 = vpop.f32.mrf.mxu1 }
  0xfb   : > { %v710_v55 = vpop.f32.mrf.mxu1 }
  0xfd   : > { %v712_v56 = vpop.f32.mrf.mxu1 }
  0xff   : > { %v713_v57 = vpop.f32.mrf.mxu1 }
 0x117   : > { %v667_v59 = vpop.f32.mrf.mxu0 }
 0x118   : > { %v709_v60 = vadd.f32 %v708_v54, %v667_v59 }
 0x119   : > { %v669_v62 = vpop.f32.mrf.mxu0 }
 0x11a   : > { %v715_v63 = vadd.f32 %v709_v60, %v330_v58  ;;  %v711_v0 = vadd.f32 %v710_v55, %v669_v62  ;;  %722 = sbr.rel (%p954_p7) target bundleno = 304 (0x130), region = 44 }
 0x11b   : > { %v671_v1 = vpop.f32.mrf.mxu0 }
 0x11c   : > { %717 = vst [vmem:[#allocation2] sm:$0xff] %v715_v63  ;;  %v716_v2 = vadd.f32 %v711_v0, %v331_v61 }
 0x11d   : > { %v672_v3 = vpop.f32.mrf.mxu0 }
 0x11e   : > { %718 = vst [vmem:[#allocation2 + $0x8] sm:$0xff] %v716_v2 }
 0x11f   : > { %v727_v4 = vlaneseq  ;;  %v725_v6 = vld [vmem:[%s1218_s2] sm:$0x3] }
 0x120   : > { %v739_v7 = vld [vmem:[%s1219_s3] sm:$0x3] }
 0x121   : > { %v728_v5 = vshrl.u32 %v727_v4, 7 }
 0x123   : > { %v729_v8 = vsub.s32 0, %v728_v5  ;;  %v733_v9 = vsub.s32 1, %v728_v5  ;;  %v723_v10 = vld [vmem:[#allocation2] sm:$0xff] }
 0x125   : > { %v724_v11 = vld [vmem:[#allocation2 + $0x8] sm:$0xff]  ;;  %v730_v12 = vrot.slane %v725_v6, %v729_v8  ;;  %v734_v13 = vrot.slane %v725_v6, %v733_v9  ;;  %v744_v14 = vrot.slane %v739_v7, %v729_v8  ;;  %v748_v15 = vrot.slane %v739_v7, %v733_v9 }
 0x127   : > { %v737_v16 = vmul.f32 %v730_v12, %v723_v10  ;;  %v738_v17 = vmul.f32 %v734_v13, %v724_v11 }
 0x129   : > { %v751_v18 = vadd.f32 %v744_v14, %v737_v16  ;;  %v752_v19 = vadd.f32 %v748_v15, %v738_v17 }
 0x12b   : > { %v753_v20 = vmax.f32 %v751_v18, 0.0  ;;  %v754_v21 = vmax.f32 %v752_v19, 0.0 }
 0x12d   : > { %v961_v22 = vpack.c.bf16 %v754_v21, %v753_v20 }
 0x12f   : > { %763 = vst [vmem:[%s1220_s4] sm:$0xff] %v961_v22 }
 0x130 PF: > { %s14_s17 = sadd.s32 1, %s1085_s17   ;;  %s1221_s15 = smov %s1081_s16 }
 0x131   : > { %p11_p8 = scmp.ge.s32.totalorder %s14_s17, 5   ;;  %s1222_s16 = smov %s1224_s18 }
 0x133   :  { %13 = sbr.rel (!%p11_p8) target bundleno = 2 (0x2), region = 83 }

// kernel: student_net_resp_forward.35
= control target key start
LH: loop header
LB: loop body
LE: loop exit
PB: predicated region body
PF: predicated region fallthrough
CT: control target
= control target key end

     0   :  { %v240_v1 = vmov 0   ;;  %v158_v18 = vlaneseq  ;;  %s326_s1 = inlined_call_operand.vmem [shape: bf16[128,256], index: 1, kind: input, shape index: {}]   ;;  %s327_s0 = inlined_call_operand.vmem [shape: bf16[8,128], index: 0, kind: input, shape index: {}]   ;;  %s328_s2 = inlined_call_operand.vmem [shape: f32[1,256], index: 2, kind: input, shape index: {}]   ;;  %s329_s3 = inlined_call_operand.vmem [shape: f32[1,256], index: 3, kind: input, shape index: {}]   ;;  %s330_s4 = inlined_call_operand.vmem [shape: bf16[8,256], index: 4, kind: output, shape index: {}]  }
   0x1   :  { %v216_v0 = vld [vmem:[%s326_s1 + $0x74] ss:$8 sps:$4 sm:$0xff]   ;;  %147 = vmatprep.mubr.bf16.mxu0 %v240_v1  ;;  %v218_v2 = vld [vmem:[%s326_s1 + $0x70] ss:$8 sps:$4 sm:$0xff]   ;;  %v219_v3 = vld [vmem:[%s326_s1 + $0x64] ss:$8 sps:$4 sm:$0xff]  }
   0x2   :  { %115 = vmatprep.subr.bf16.mxu0 %v216_v0  ;;  %v221_v4 = vld [vmem:[%s326_s1 + $0x60] ss:$8 sps:$4 sm:$0xff]   ;;  %v222_v5 = vld [vmem:[%s326_s1 + $0x54] ss:$8 sps:$4 sm:$0xff]   ;;  %v224_v6 = vld [vmem:[%s326_s1 + $0x50] ss:$8 sps:$4 sm:$0xff]  }
   0x3   :  { %116 = vmatpush1.bf16.msra.mxu0 %v218_v2  ;;  %v225_v7 = vld [vmem:[%s326_s1 + $0x44] ss:$8 sps:$4 sm:$0xff]   ;;  %v227_v8 = vld [vmem:[%s326_s1 + $0x40] ss:$8 sps:$4 sm:$0xff]   ;;  %v228_v9 = vld [vmem:[%s326_s1 + $0x34] ss:$8 sps:$4 sm:$0xff]  }
   0x4   :  { %117 = vmatprep.subr.bf16.mxu0 %v219_v3  ;;  %v230_v10 = vld [vmem:[%s326_s1 + $0x30] ss:$8 sps:$4 sm:$0xff]   ;;  %v231_v11 = vld [vmem:[%s326_s1 + $0x24] ss:$8 sps:$4 sm:$0xff]   ;;  %v233_v12 = vld [vmem:[%s326_s1 + $0x20] ss:$8 sps:$4 sm:$0xff]  }
   0x5   :  { %v234_v13 = vld [vmem:[%s326_s1 + $0x14] ss:$8 sps:$4 sm:$0xff]   ;;  %v236_v14 = vld [vmem:[%s326_s1 + $0x10] ss:$8 sps:$4 sm:$0xff]   ;;  %v237_v15 = vld [vmem:[%s326_s1 + $0x4] ss:$8 sps:$4 sm:$0xff]  }
   0x6   :  { %v239_v16 = vld [vmem:[%s326_s1] ss:$8 sps:$4 sm:$0xff]   ;;  %v159_v19 = vshrl.u32 %v158_v18, 7 }
   0x7   :  { %118 = vmatpush1.bf16.msra.mxu0 %v221_v4  ;;  %v18_v17 = vld [vmem:[%s327_s0] sm:$0xf] }
   0x8   :  { %119 = vmatprep.subr.bf16.mxu0 %v222_v5  ;;  %v160_v20 = vsub.s32 0, %v159_v19  ;;  %v156_v21 = vld [vmem:[%s328_s2] sm:$0x3]  ;;  %v164_v22 = vsub.s32 1, %v159_v19 }
   0x9   :  { %v170_v24 = vld [vmem:[%s329_s3] sm:$0x3] }
   0xa   :  { %v161_v23 = vrot.slane %v156_v21, %v160_v20  ;;  %v165_v25 = vrot.slane %v156_v21, %v164_v22  ;;  %v175_v28 = vrot.slane %v170_v24, %v160_v20  ;;  %v179_v29 = vrot.slane %v170_v24, %v164_v22 }
   0xb   :  { %120 = vmatpush1.bf16.msra.mxu0 %v224_v6 }
   0xc   :  { %121 = vmatprep.subr.bf16.mxu0 %v225_v7 }
   0xf   :  { %122 = vmatpush1.bf16.msra.mxu0 %v227_v8 }
  0x10   :  { %123 = vmatprep.subr.bf16.mxu0 %v228_v9 }
  0x13   :  { %124 = vmatpush1.bf16.msra.mxu0 %v230_v10 }
  0x14   :  { %125 = vmatprep.subr.bf16.mxu0 %v231_v11 }
  0x17   :  { %126 = vmatpush1.bf16.msra.mxu0 %v233_v12 }
  0x18   :  { %127 = vmatprep.subr.bf16.mxu0 %v234_v13 }
  0x1b   :  { %128 = vmatpush1.bf16.msra.mxu0 %v236_v14 }
  0x1c   :  { %129 = vmatprep.subr.bf16.mxu0 %v237_v15 }
  0x1f   :  { %130 = vmatpush1.bf16.msra.mxu0 %v239_v16 }
  0x22   :  { %148 = vmatmul.mubr.bf16.vlgmr.msra.gmra.mxu0 %v18_v17 }
  0xe2   :  { %v149_v26 = vpop.f32.mrf.mxu0 }
  0xe3   :  { %v168_v27 = vmul.f32 %v161_v23, %v149_v26 }
  0xe4   :  { %v151_v30 = vpop.f32.mrf.mxu0 }
  0xe5   :  { %v169_v31 = vmul.f32 %v165_v25, %v151_v30  ;;  %v182_v33 = vadd.f32 %v175_v28, %v168_v27 }
  0xe6   :  { %v153_v32 = vpop.f32.mrf.mxu0 }
  0xe7   :  { %v183_v34 = vadd.f32 %v179_v29, %v169_v31 }
  0xe8   :  { %v154_v35 = vpop.f32.mrf.mxu0 }
  0xe9   :  { %v214_v36 = vpack.c.bf16 %v183_v34, %v182_v33 }
  0xeb   :  { %192 = vst [vmem:[%s330_s4] sm:$0xff] %v214_v36 }

// kernel: student_net_resp_forward.36
= control target key start
LH: loop header
LB: loop body
LE: loop exit
PB: predicated region body
PF: predicated region fallthrough
CT: control target
= control target key end

     0   :  { %s1209_s18 = smov 0   ;;  %s1211_s19 = smov 0   ;;  %s1314_s0 = inlined_call_operand.vmem [shape: bf16[8,2304], index: 0, kind: input, shape index: {}]   ;;  %s1315_s1 = inlined_call_operand.vmem [shape: bf16[2304,256], index: 1, kind: input, shape index: {}]   ;;  %s1316_s2 = inlined_call_operand.vmem [shape: f32[1,256], index: 2, kind: input, shape index: {}]   ;;  %s1317_s3 = inlined_call_operand.vmem [shape: f32[1,256], index: 3, kind: input, shape index: {}]   ;;  %s1318_s4 = inlined_call_operand.vmem [shape: bf16[8,256], index: 4, kind: input, shape index: {}]   ;;  %s1319_s5 = inlined_call_operand.vmem [shape: bf16[8,256], index: 5, kind: output, shape index: {}]  }
   0x1   :  { %s1213_s20 = smov 0  }
   0x2 LB: > { %s27_s21 = sadd.s32 1, %s1171_s19  ;;  %p988_p0 = scmp.ge.s32.totalorder %s1175_s20, 1  ;;  %s1175_s20 = sphi %s1213_s20, %s15_s20   ;;  %s1171_s19 = sphi %s1211_s19, %s1321_s19   ;;  %s1167_s18 = sphi %s1209_s18, %s1320_s18  }
   0x3   : > { %p28_p1 = scmp.ge.s32.totalorder %s27_s21, 6  ;;  %p271_p2 = scmp.lt.s32.totalorder %s1175_s20, 7 }
   0x5   : > { %s1323_s21 = smov (%p28_p1, %s27_s21), 0  ;;  %p272_p3 = pnand %p988_p0, %p271_p2 }
   0x6   : > { %s334_s22 = smul.u32 (!%p272_p3), 3, %s1167_s18  ;;  %p992_p6 = scmp.ne.s32.totalorder (!%p272_p3), %s1167_s18, 0 }
   0x7   : > { %275 = sbr.rel (%p272_p3) target bundleno = 306 (0x132), region = 40 }
   0x8   : > { %s344_s23 = smul.u32 (!%p272_p3), 48, %s1167_s18  ;;  %p337_p4 = scmp.lt.s32.totalorder (!%p272_p3), %s334_s22, 17 }
   0xa   : > { %p346_p5 = scmp.lt.s32.totalorder (!%p272_p3), %s344_s23, 287 }
   0xc   : > { %s1325_s22 = smov (!%p337_p4, %s334_s22), 17  ;;  %s1327_s23 = smov (!%p346_p5, %s344_s23), 287 }
   0xd   : > { %s989_s24 = sshll.u32 %s1325_s22, 2  ;;  %s1050_s28 = sshll.u32 %s1327_s23, 3 }
   0xe   : > { %s1234_s27 = scalar_lea.vmem %s1314_s0, %s989_s24  ;;  %s1239_s6 = scalar_lea.vmem %s1315_s1, %s1050_s28 }
   0xf   : > { %390 = sbr.rel (%p992_p6) target bundleno = 22 (0x16), region = 44 }
  0x14   : > { %v1177_v0 = vmov 0.0  }
  0x15   : > { %391 = vst [vmem:[#allocation2] sm:$0xff] %v1177_v0  ;;  %392 = vst [vmem:[#allocation2 + $0x8] sm:$0xff] %v1177_v0 }
  0x16 PF: > { %v1078_v1 = vld [vmem:[%s1239_s6 + $0x74] ss:$8 sps:$4 sm:$0xff]   ;;  %v1080_v2 = vld [vmem:[%s1239_s6 + $0x70] ss:$8 sps:$4 sm:$0xff]   ;;  %v1178_v3 = vmov 0   ;;  %v395_v34 = vld [vmem:[%s1234_s27] sm:$0xff] }
  0x17   : > { %769 = vmatprep.mubr.bf16.mxu1 %v1178_v3  ;;  %696 = vmatprep.subr.bf16.mxu0 %v1078_v1  ;;  %v1081_v4 = vld [vmem:[%s1239_s6 + $0x64] ss:$8 sps:$4 sm:$0xff]   ;;  %v1083_v5 = vld [vmem:[%s1239_s6 + $0x60] ss:$8 sps:$4 sm:$0xff]   ;;  %v1084_v6 = vld [vmem:[%s1239_s6 + $0x54] ss:$8 sps:$4 sm:$0xff]   ;;  %v994_v36 = vcombine.high %v395_v34, %v395_v34  ;;  %v993_v53 = vcombine.low %v395_v34, %v395_v34 }
  0x18   : > { %697 = vmatpush1.bf16.msra.mxu0 %v1080_v2  ;;  %v1086_v7 = vld [vmem:[%s1239_s6 + $0x50] ss:$8 sps:$4 sm:$0xff]   ;;  %v1087_v8 = vld [vmem:[%s1239_s6 + $0x44] ss:$8 sps:$4 sm:$0xff]   ;;  %v1099_v9 = vld [vmem:[%s1239_s6 + $0x174] ss:$8 sps:$4 sm:$0xff]  }
  0x19   : > { %698 = vmatprep.subr.bf16.mxu0 %v1081_v4  ;;  %v1101_v10 = vld [vmem:[%s1239_s6 + $0x170] ss:$8 sps:$4 sm:$0xff]   ;;  %v1089_v11 = vld [vmem:[%s1239_s6 + $0x40] ss:$8 sps:$4 sm:$0xff]   ;;  %v1090_v12 = vld [vmem:[%s1239_s6 + $0x34] ss:$8 sps:$4 sm:$0xff]   ;;  %737 = vmatprep.subr.bf16.mxu1 %v1099_v9 }
  0x1a   : > { %v1105_v13 = vld [vmem:[%s1239_s6 + $0x164] ss:$8 sps:$4 sm:$0xff]   ;;  %738 = vmatpush1.bf16.msra.mxu1 %v1101_v10  ;;  %v1107_v14 = vld [vmem:[%s1239_s6 + $0x160] ss:$8 sps:$4 sm:$0xff]   ;;  %v1092_v15 = vld [vmem:[%s1239_s6 + $0x30] ss:$8 sps:$4 sm:$0xff]   ;;  %728 = vmatprep.mubr.bf16.mxu0 %v994_v36 }
  0x1b   : > { %739 = vmatprep.subr.bf16.mxu1 %v1105_v13  ;;  %v1111_v16 = vld [vmem:[%s1239_s6 + $0x154] ss:$8 sps:$4 sm:$0xff]   ;;  %v1093_v17 = vld [vmem:[%s1239_s6 + $0x24] ss:$8 sps:$4 sm:$0xff]   ;;  %v1113_v18 = vld [vmem:[%s1239_s6 + $0x150] ss:$8 sps:$4 sm:$0xff]  }
  0x1c   : > { %699 = vmatpush1.bf16.msra.mxu0 %v1083_v5  ;;  %v1117_v19 = vld [vmem:[%s1239_s6 + $0x144] ss:$8 sps:$4 sm:$0xff]   ;;  %v1095_v20 = vld [vmem:[%s1239_s6 + $0x20] ss:$8 sps:$4 sm:$0xff]   ;;  %v1096_v21 = vld [vmem:[%s1239_s6 + $0x14] ss:$8 sps:$4 sm:$0xff]  }
  0x1d   : > { %700 = vmatprep.subr.bf16.mxu0 %v1084_v6  ;;  %v1119_v22 = vld [vmem:[%s1239_s6 + $0x140] ss:$8 sps:$4 sm:$0xff]   ;;  %v1123_v23 = vld [vmem:[%s1239_s6 + $0x134] ss:$8 sps:$4 sm:$0xff]   ;;  %v1098_v24 = vld [vmem:[%s1239_s6 + $0x10] ss:$8 sps:$4 sm:$0xff]  }
  0x1e   : > { %740 = vmatpush1.bf16.msra.mxu1 %v1107_v14  ;;  %v1102_v25 = vld [vmem:[%s1239_s6 + $0x4] ss:$8 sps:$4 sm:$0xff]   ;;  %v1125_v26 = vld [vmem:[%s1239_s6 + $0x130] ss:$8 sps:$4 sm:$0xff]   ;;  %v1104_v28 = vld [vmem:[%s1239_s6] ss:$8 sps:$4 sm:$0xff]  }
  0x1f   : > { %741 = vmatprep.subr.bf16.mxu1 %v1111_v16  ;;  %v1129_v27 = vld [vmem:[%s1239_s6 + $0x124] ss:$8 sps:$4 sm:$0xff]   ;;  %v1108_v29 = vld [vmem:[%s1239_s6 + $0xf4] ss:$8 sps:$4 sm:$0xff]   ;;  %v1131_v30 = vld [vmem:[%s1239_s6 + $0x120] ss:$8 sps:$4 sm:$0xff]  }
  0x20   : > { %701 = vmatpush1.bf16.msra.mxu0 %v1086_v7  ;;  %v1135_v31 = vld [vmem:[%s1239_s6 + $0x114] ss:$8 sps:$4 sm:$0xff]   ;;  %v1110_v32 = vld [vmem:[%s1239_s6 + $0xf0] ss:$8 sps:$4 sm:$0xff]   ;;  %v1114_v33 = vld [vmem:[%s1239_s6 + $0xe4] ss:$8 sps:$4 sm:$0xff]  }
  0x21   : > { %702 = vmatprep.subr.bf16.mxu0 %v1087_v8  ;;  %v1137_v35 = vld [vmem:[%s1239_s6 + $0x110] ss:$8 sps:$4 sm:$0xff]   ;;  %v1141_v37 = vld [vmem:[%s1239_s6 + $0x104] ss:$8 sps:$4 sm:$0xff]   ;;  %v1116_v38 = vld [vmem:[%s1239_s6 + $0xe0] ss:$8 sps:$4 sm:$0xff]  }
  0x22   : > { %742 = vmatpush1.bf16.msra.mxu1 %v1113_v18  ;;  %v1120_v39 = vld [vmem:[%s1239_s6 + $0xd4] ss:$8 sps:$4 sm:$0xff]   ;;  %v1143_v40 = vld [vmem:[%s1239_s6 + $0x100] ss:$8 sps:$4 sm:$0xff]   ;;  %v1122_v41 = vld [vmem:[%s1239_s6 + $0xd0] ss:$8 sps:$4 sm:$0xff]  }
  0x23   : > { %743 = vmatprep.subr.bf16.mxu1 %v1117_v19  ;;  %v1126_v42 = vld [vmem:[%s1239_s6 + $0xc4] ss:$8 sps:$4 sm:$0xff]   ;;  %v1147_v43 = vld [vmem:[%s1234_s27 + $0x8] ss:$0 sps:$4 sm:$0xff]   ;;  %v1132_v45 = vld [vmem:[%s1239_s6 + $0xb4] ss:$8 sps:$4 sm:$0xff]  }
  0x24   : > { %703 = vmatpush1.bf16.msra.mxu0 %v1089_v11  ;;  %v1128_v44 = vld [vmem:[%s1239_s6 + $0xc0] ss:$8 sps:$4 sm:$0xff]   ;;  %v1134_v46 = vld [vmem:[%s1239_s6 + $0xb0] ss:$8 sps:$4 sm:$0xff]   ;;  %v1138_v47 = vld [vmem:[%s1239_s6 + $0xa4] ss:$8 sps:$4 sm:$0xff]  }
  0x25   : > { %704 = vmatprep.subr.bf16.mxu0 %v1090_v12  ;;  %v1140_v48 = vld [vmem:[%s1239_s6 + $0xa0] ss:$8 sps:$4 sm:$0xff]   ;;  %v1144_v49 = vld [vmem:[%s1239_s6 + $0x94] ss:$8 sps:$4 sm:$0xff]   ;;  %v1146_v50 = vld [vmem:[%s1239_s6 + $0x90] ss:$8 sps:$4 sm:$0xff]  }
  0x26   : > { %744 = vmatpush1.bf16.msra.mxu1 %v1119_v22  ;;  %v1148_v51 = vld [vmem:[%s1239_s6 + $0x84] ss:$8 sps:$4 sm:$0xff]   ;;  %v1150_v52 = vld [vmem:[%s1239_s6 + $0x80] ss:$8 sps:$4 sm:$0xff]   ;;  %p1044_p7 = scmp.ne.s32.totalorder %s1167_s18, 5 }
  0x27   : > { %745 = vmatprep.subr.bf16.mxu1 %v1123_v23  ;;  %v393_v58 = vld [vmem:[#allocation2] sm:$0xff]  ;;  %v394_v61 = vld [vmem:[#allocation2 + $0x8] sm:$0xff] }
  0x28   : > { %705 = vmatpush1.bf16.msra.mxu0 %v1092_v15 }
  0x29   : > { %706 = vmatprep.subr.bf16.mxu0 %v1093_v17 }
  0x2a   : > { %746 = vmatpush1.bf16.msra.mxu1 %v1125_v26 }
  0x2b   : > { %747 = vmatprep.subr.bf16.mxu1 %v1129_v27 }
  0x2c   : > { %707 = vmatpush1.bf16.msra.mxu0 %v1095_v20 }
  0x2d   : > { %708 = vmatprep.subr.bf16.mxu0 %v1096_v21 }
  0x2e   : > { %748 = vmatpush1.bf16.msra.mxu1 %v1131_v30 }
  0x2f   : > { %749 = vmatprep.subr.bf16.mxu1 %v1135_v31 }
  0x30   : > { %709 = vmatpush1.bf16.msra.mxu0 %v1098_v24 }
  0x31   : > { %710 = vmatprep.subr.bf16.mxu0 %v1102_v25 }
  0x32   : > { %750 = vmatpush1.bf16.msra.mxu1 %v1137_v35 }
  0x33   : > { %751 = vmatprep.subr.bf16.mxu1 %v1141_v37 }
  0x34   : > { %711 = vmatpush1.bf16.msra.mxu0 %v1104_v28 }
  0x35   : > { %712 = vmatprep.subr.bf16.mxu0 %v1108_v29 }
  0x36   : > { %752 = vmatpush1.bf16.msra.mxu1 %v1143_v40 }
  0x38   : > { %713 = vmatpush2.bf16.msra.mxu0 %v1110_v32 }
  0x39   : > { %714 = vmatprep.subr.bf16.mxu0 %v1114_v33  ;;  %770 = vmatmul.mubr.bf16.vlgmr.msra.gmra.mxu1 %v1147_v43 }
  0x3c   : > { %715 = vmatpush2.bf16.msra.mxu0 %v1116_v38 }
  0x3d   : > { %716 = vmatprep.subr.bf16.mxu0 %v1120_v39 }
  0x40   : > { %717 = vmatpush2.bf16.msra.mxu0 %v1122_v41 }
  0x41   : > { %718 = vmatprep.subr.bf16.mxu0 %v1126_v42 }
  0x44   : > { %719 = vmatpush2.bf16.msra.mxu0 %v1128_v44 }
  0x45   : > { %720 = vmatprep.subr.bf16.mxu0 %v1132_v45 }
  0x48   : > { %721 = vmatpush2.bf16.msra.mxu0 %v1134_v46 }
  0x49   : > { %722 = vmatprep.subr.bf16.mxu0 %v1138_v47 }
  0x4c   : > { %723 = vmatpush2.bf16.msra.mxu0 %v1140_v48 }
  0x4d   : > { %724 = vmatprep.subr.bf16.mxu0 %v1144_v49 }
  0x50   : > { %725 = vmatpush2.bf16.msra.mxu0 %v1146_v50 }
  0x51   : > { %726 = vmatprep.subr.bf16.mxu0 %v1148_v51 }
  0x54   : > { %727 = vmatpush2.bf16.msra.mxu0 %v1150_v52 }
  0x57   : > { %729 = vmatmul.mubr.bf16.vlgmr.msra.gmra.mxu0 %v993_v53 }
  0xf9   : > { %v771_v54 = vpop.f32.mrf.mxu1 }
  0xfb   : > { %v773_v55 = vpop.f32.mrf.mxu1 }
  0xfd   : > { %v775_v56 = vpop.f32.mrf.mxu1 }
  0xff   : > { %v776_v57 = vpop.f32.mrf.mxu1 }
 0x117   : > { %v730_v59 = vpop.f32.mrf.mxu0 }
 0x118   : > { %v772_v60 = vadd.f32 %v771_v54, %v730_v59 }
 0x119   : > { %v732_v62 = vpop.f32.mrf.mxu0 }
 0x11a   : > { %v778_v63 = vadd.f32 %v772_v60, %v393_v58  ;;  %v774_v0 = vadd.f32 %v773_v55, %v732_v62  ;;  %785 = sbr.rel (%p1044_p7) target bundleno = 306 (0x132), region = 48 }
 0x11b   : > { %v734_v1 = vpop.f32.mrf.mxu0 }
 0x11c   : > { %780 = vst [vmem:[#allocation2] sm:$0xff] %v778_v63  ;;  %v779_v2 = vadd.f32 %v774_v0, %v394_v61 }
 0x11d   : > { %v735_v3 = vpop.f32.mrf.mxu0 }
 0x11e   : > { %781 = vst [vmem:[#allocation2 + $0x8] sm:$0xff] %v779_v2 }
 0x11f   : > { %v790_v4 = vlaneseq  ;;  %v788_v6 = vld [vmem:[%s1316_s2] sm:$0x3] }
 0x120   : > { %v802_v7 = vld [vmem:[%s1317_s3] sm:$0x3] }
 0x121   : > { %v791_v5 = vshrl.u32 %v790_v4, 7  ;;  %v816_v12 = vld [vmem:[%s1318_s4] sm:$0xff] }
 0x122   : > { %v817_v19 = vunpack.c.l.bf16 %v816_v12  ;;  %v818_v20 = vunpack.c.h.bf16 %v816_v12 }
 0x123   : > { %v792_v8 = vsub.s32 0, %v791_v5  ;;  %v796_v9 = vsub.s32 1, %v791_v5  ;;  %v786_v10 = vld [vmem:[#allocation2] sm:$0xff] }
 0x125   : > { %v787_v11 = vld [vmem:[#allocation2 + $0x8] sm:$0xff]  ;;  %v793_v13 = vrot.slane %v788_v6, %v792_v8  ;;  %v797_v14 = vrot.slane %v788_v6, %v796_v9  ;;  %v807_v15 = vrot.slane %v802_v7, %v792_v8  ;;  %v811_v16 = vrot.slane %v802_v7, %v796_v9 }
 0x127   : > { %v800_v17 = vmul.f32 %v793_v13, %v786_v10  ;;  %v801_v18 = vmul.f32 %v797_v14, %v787_v11 }
 0x129   : > { %v814_v21 = vadd.f32 %v807_v15, %v800_v17  ;;  %v815_v22 = vadd.f32 %v811_v16, %v801_v18 }
 0x12b   : > { %v819_v23 = vadd.f32 %v817_v19, %v814_v21  ;;  %v820_v24 = vadd.f32 %v818_v20, %v815_v22 }
 0x12d   : > { %v821_v25 = vmax.f32 %v819_v23, 0.0  ;;  %v822_v26 = vmax.f32 %v820_v24, 0.0 }
 0x12f   : > { %v1051_v27 = vpack.c.bf16 %v822_v26, %v821_v25 }
 0x131   : > { %831 = vst [vmem:[%s1319_s5] sm:$0xff] %v1051_v27 }
 0x132 PF: > { %s15_s20 = sadd.s32 1, %s1175_s20   ;;  %s1320_s18 = smov %s1171_s19 }
 0x133   : > { %p12_p8 = scmp.ge.s32.totalorder %s15_s20, 8   ;;  %s1321_s19 = smov %s1323_s21 }
 0x135   :  { %14 = sbr.rel (!%p12_p8) target bundleno = 2 (0x2), region = 90 }

// kernel: student_net_resp_forward.37
= control target key start
LH: loop header
LB: loop body
LE: loop exit
PB: predicated region body
PF: predicated region fallthrough
CT: control target
= control target key end

     0   :  { %s1114_s15 = smov 0   ;;  %s1116_s16 = smov 0   ;;  %s1216_s0 = inlined_call_operand.vmem [shape: bf16[8,2304], index: 0, kind: input, shape index: {}]   ;;  %s1217_s1 = inlined_call_operand.vmem [shape: bf16[2304,256], index: 1, kind: input, shape index: {}]   ;;  %s1218_s2 = inlined_call_operand.vmem [shape: f32[1,256], index: 2, kind: input, shape index: {}]   ;;  %s1219_s3 = inlined_call_operand.vmem [shape: f32[1,256], index: 3, kind: input, shape index: {}]   ;;  %s1220_s4 = inlined_call_operand.vmem [shape: bf16[8,256], index: 4, kind: output, shape index: {}]  }
   0x1   :  { %s1118_s17 = smov 0  }
   0x2 LB: > { %s26_s18 = sadd.s32 1, %s1081_s16  ;;  %p898_p0 = scmp.ge.s32.totalorder %s1085_s17, 1  ;;  %s1085_s17 = sphi %s1118_s17, %s14_s17   ;;  %s1081_s16 = sphi %s1116_s16, %s1222_s16   ;;  %s1077_s15 = sphi %s1114_s15, %s1221_s15  }
   0x3   : > { %p27_p1 = scmp.ge.s32.totalorder %s26_s18, 6  ;;  %p229_p2 = scmp.lt.s32.totalorder %s1085_s17, 7 }
   0x5   : > { %s1224_s18 = smov (%p27_p1, %s26_s18), 0  ;;  %p230_p3 = pnand %p898_p0, %p229_p2 }
   0x6   : > { %s281_s19 = smul.u32 (!%p230_p3), 3, %s1077_s15  ;;  %p902_p6 = scmp.ne.s32.totalorder (!%p230_p3), %s1077_s15, 0 }
   0x7   : > { %233 = sbr.rel (%p230_p3) target bundleno = 304 (0x130), region = 36 }
   0x8   : > { %s291_s20 = smul.u32 (!%p230_p3), 48, %s1077_s15  ;;  %p284_p4 = scmp.lt.s32.totalorder (!%p230_p3), %s281_s19, 17 }
   0xa   : > { %p293_p5 = scmp.lt.s32.totalorder (!%p230_p3), %s291_s20, 287 }
   0xc   : > { %s1226_s19 = smov (!%p284_p4, %s281_s19), 17  ;;  %s1228_s20 = smov (!%p293_p5, %s291_s20), 287 }
   0xd   : > { %s899_s21 = sshll.u32 %s1226_s19, 2  ;;  %s960_s25 = sshll.u32 %s1228_s20, 3 }
   0xe   : > { %s1139_s24 = scalar_lea.vmem %s1216_s0, %s899_s21  ;;  %s1144_s28 = scalar_lea.vmem %s1217_s1, %s960_s25 }
   0xf   : > { %327 = sbr.rel (%p902_p6) target bundleno = 22 (0x16), region = 40 }
  0x14   : > { %v1087_v0 = vmov 0.0  }
  0x15   : > { %328 = vst [vmem:[#allocation2] sm:$0xff] %v1087_v0  ;;  %329 = vst [vmem:[#allocation2 + $0x8] sm:$0xff] %v1087_v0 }
  0x16 PF: > { %v988_v1 = vld [vmem:[%s1144_s28 + $0x74] ss:$8 sps:$4 sm:$0xff]   ;;  %v990_v2 = vld [vmem:[%s1144_s28 + $0x70] ss:$8 sps:$4 sm:$0xff]   ;;  %v1088_v3 = vmov 0   ;;  %v332_v34 = vld [vmem:[%s1139_s24] sm:$0xff] }
  0x17   : > { %706 = vmatprep.mubr.bf16.mxu1 %v1088_v3  ;;  %633 = vmatprep.subr.bf16.mxu0 %v988_v1  ;;  %v991_v4 = vld [vmem:[%s1144_s28 + $0x64] ss:$8 sps:$4 sm:$0xff]   ;;  %v993_v5 = vld [vmem:[%s1144_s28 + $0x60] ss:$8 sps:$4 sm:$0xff]   ;;  %v994_v6 = vld [vmem:[%s1144_s28 + $0x54] ss:$8 sps:$4 sm:$0xff]   ;;  %v904_v36 = vcombine.high %v332_v34, %v332_v34  ;;  %v903_v53 = vcombine.low %v332_v34, %v332_v34 }
  0x18   : > { %634 = vmatpush1.bf16.msra.mxu0 %v990_v2  ;;  %v996_v7 = vld [vmem:[%s1144_s28 + $0x50] ss:$8 sps:$4 sm:$0xff]   ;;  %v997_v8 = vld [vmem:[%s1144_s28 + $0x44] ss:$8 sps:$4 sm:$0xff]   ;;  %v1009_v9 = vld [vmem:[%s1144_s28 + $0x174] ss:$8 sps:$4 sm:$0xff]  }
  0x19   : > { %635 = vmatprep.subr.bf16.mxu0 %v991_v4  ;;  %v1011_v10 = vld [vmem:[%s1144_s28 + $0x170] ss:$8 sps:$4 sm:$0xff]   ;;  %v999_v11 = vld [vmem:[%s1144_s28 + $0x40] ss:$8 sps:$4 sm:$0xff]   ;;  %v1000_v12 = vld [vmem:[%s1144_s28 + $0x34] ss:$8 sps:$4 sm:$0xff]   ;;  %674 = vmatprep.subr.bf16.mxu1 %v1009_v9 }
  0x1a   : > { %v1015_v13 = vld [vmem:[%s1144_s28 + $0x164] ss:$8 sps:$4 sm:$0xff]   ;;  %675 = vmatpush1.bf16.msra.mxu1 %v1011_v10  ;;  %v1017_v14 = vld [vmem:[%s1144_s28 + $0x160] ss:$8 sps:$4 sm:$0xff]   ;;  %v1002_v15 = vld [vmem:[%s1144_s28 + $0x30] ss:$8 sps:$4 sm:$0xff]   ;;  %665 = vmatprep.mubr.bf16.mxu0 %v904_v36 }
  0x1b   : > { %676 = vmatprep.subr.bf16.mxu1 %v1015_v13  ;;  %v1021_v16 = vld [vmem:[%s1144_s28 + $0x154] ss:$8 sps:$4 sm:$0xff]   ;;  %v1003_v17 = vld [vmem:[%s1144_s28 + $0x24] ss:$8 sps:$4 sm:$0xff]   ;;  %v1023_v18 = vld [vmem:[%s1144_s28 + $0x150] ss:$8 sps:$4 sm:$0xff]  }
  0x1c   : > { %636 = vmatpush1.bf16.msra.mxu0 %v993_v5  ;;  %v1027_v19 = vld [vmem:[%s1144_s28 + $0x144] ss:$8 sps:$4 sm:$0xff]   ;;  %v1005_v20 = vld [vmem:[%s1144_s28 + $0x20] ss:$8 sps:$4 sm:$0xff]   ;;  %v1006_v21 = vld [vmem:[%s1144_s28 + $0x14] ss:$8 sps:$4 sm:$0xff]  }
  0x1d   : > { %637 = vmatprep.subr.bf16.mxu0 %v994_v6  ;;  %v1029_v22 = vld [vmem:[%s1144_s28 + $0x140] ss:$8 sps:$4 sm:$0xff]   ;;  %v1033_v23 = vld [vmem:[%s1144_s28 + $0x134] ss:$8 sps:$4 sm:$0xff]   ;;  %v1008_v24 = vld [vmem:[%s1144_s28 + $0x10] ss:$8 sps:$4 sm:$0xff]  }
  0x1e   : > { %677 = vmatpush1.bf16.msra.mxu1 %v1017_v14  ;;  %v1012_v25 = vld [vmem:[%s1144_s28 + $0x4] ss:$8 sps:$4 sm:$0xff]   ;;  %v1035_v26 = vld [vmem:[%s1144_s28 + $0x130] ss:$8 sps:$4 sm:$0xff]   ;;  %v1014_v28 = vld [vmem:[%s1144_s28] ss:$8 sps:$4 sm:$0xff]  }
  0x1f   : > { %678 = vmatprep.subr.bf16.mxu1 %v1021_v16  ;;  %v1039_v27 = vld [vmem:[%s1144_s28 + $0x124] ss:$8 sps:$4 sm:$0xff]   ;;  %v1018_v29 = vld [vmem:[%s1144_s28 + $0xf4] ss:$8 sps:$4 sm:$0xff]   ;;  %v1041_v30 = vld [vmem:[%s1144_s28 + $0x120] ss:$8 sps:$4 sm:$0xff]  }
  0x20   : > { %638 = vmatpush1.bf16.msra.mxu0 %v996_v7  ;;  %v1045_v31 = vld [vmem:[%s1144_s28 + $0x114] ss:$8 sps:$4 sm:$0xff]   ;;  %v1020_v32 = vld [vmem:[%s1144_s28 + $0xf0] ss:$8 sps:$4 sm:$0xff]   ;;  %v1024_v33 = vld [vmem:[%s1144_s28 + $0xe4] ss:$8 sps:$4 sm:$0xff]  }
  0x21   : > { %639 = vmatprep.subr.bf16.mxu0 %v997_v8  ;;  %v1047_v35 = vld [vmem:[%s1144_s28 + $0x110] ss:$8 sps:$4 sm:$0xff]   ;;  %v1051_v37 = vld [vmem:[%s1144_s28 + $0x104] ss:$8 sps:$4 sm:$0xff]   ;;  %v1026_v38 = vld [vmem:[%s1144_s28 + $0xe0] ss:$8 sps:$4 sm:$0xff]  }
  0x22   : > { %679 = vmatpush1.bf16.msra.mxu1 %v1023_v18  ;;  %v1030_v39 = vld [vmem:[%s1144_s28 + $0xd4] ss:$8 sps:$4 sm:$0xff]   ;;  %v1053_v40 = vld [vmem:[%s1144_s28 + $0x100] ss:$8 sps:$4 sm:$0xff]   ;;  %v1032_v41 = vld [vmem:[%s1144_s28 + $0xd0] ss:$8 sps:$4 sm:$0xff]  }
  0x23   : > { %680 = vmatprep.subr.bf16.mxu1 %v1027_v19  ;;  %v1036_v42 = vld [vmem:[%s1144_s28 + $0xc4] ss:$8 sps:$4 sm:$0xff]   ;;  %v1057_v43 = vld [vmem:[%s1139_s24 + $0x8] ss:$0 sps:$4 sm:$0xff]   ;;  %v1042_v45 = vld [vmem:[%s1144_s28 + $0xb4] ss:$8 sps:$4 sm:$0xff]  }
  0x24   : > { %640 = vmatpush1.bf16.msra.mxu0 %v999_v11  ;;  %v1038_v44 = vld [vmem:[%s1144_s28 + $0xc0] ss:$8 sps:$4 sm:$0xff]   ;;  %v1044_v46 = vld [vmem:[%s1144_s28 + $0xb0] ss:$8 sps:$4 sm:$0xff]   ;;  %v1048_v47 = vld [vmem:[%s1144_s28 + $0xa4] ss:$8 sps:$4 sm:$0xff]  }
  0x25   : > { %641 = vmatprep.subr.bf16.mxu0 %v1000_v12  ;;  %v1050_v48 = vld [vmem:[%s1144_s28 + $0xa0] ss:$8 sps:$4 sm:$0xff]   ;;  %v1054_v49 = vld [vmem:[%s1144_s28 + $0x94] ss:$8 sps:$4 sm:$0xff]   ;;  %v1056_v50 = vld [vmem:[%s1144_s28 + $0x90] ss:$8 sps:$4 sm:$0xff]  }
  0x26   : > { %681 = vmatpush1.bf16.msra.mxu1 %v1029_v22  ;;  %v1058_v51 = vld [vmem:[%s1144_s28 + $0x84] ss:$8 sps:$4 sm:$0xff]   ;;  %v1060_v52 = vld [vmem:[%s1144_s28 + $0x80] ss:$8 sps:$4 sm:$0xff]   ;;  %p954_p7 = scmp.ne.s32.totalorder %s1077_s15, 5 }
  0x27   : > { %682 = vmatprep.subr.bf16.mxu1 %v1033_v23  ;;  %v330_v58 = vld [vmem:[#allocation2] sm:$0xff]  ;;  %v331_v61 = vld [vmem:[#allocation2 + $0x8] sm:$0xff] }
  0x28   : > { %642 = vmatpush1.bf16.msra.mxu0 %v1002_v15 }
  0x29   : > { %643 = vmatprep.subr.bf16.mxu0 %v1003_v17 }
  0x2a   : > { %683 = vmatpush1.bf16.msra.mxu1 %v1035_v26 }
  0x2b   : > { %684 = vmatprep.subr.bf16.mxu1 %v1039_v27 }
  0x2c   : > { %644 = vmatpush1.bf16.msra.mxu0 %v1005_v20 }
  0x2d   : > { %645 = vmatprep.subr.bf16.mxu0 %v1006_v21 }
  0x2e   : > { %685 = vmatpush1.bf16.msra.mxu1 %v1041_v30 }
  0x2f   : > { %686 = vmatprep.subr.bf16.mxu1 %v1045_v31 }
  0x30   : > { %646 = vmatpush1.bf16.msra.mxu0 %v1008_v24 }
  0x31   : > { %647 = vmatprep.subr.bf16.mxu0 %v1012_v25 }
  0x32   : > { %687 = vmatpush1.bf16.msra.mxu1 %v1047_v35 }
  0x33   : > { %688 = vmatprep.subr.bf16.mxu1 %v1051_v37 }
  0x34   : > { %648 = vmatpush1.bf16.msra.mxu0 %v1014_v28 }
  0x35   : > { %649 = vmatprep.subr.bf16.mxu0 %v1018_v29 }
  0x36   : > { %689 = vmatpush1.bf16.msra.mxu1 %v1053_v40 }
  0x38   : > { %650 = vmatpush2.bf16.msra.mxu0 %v1020_v32 }
  0x39   : > { %651 = vmatprep.subr.bf16.mxu0 %v1024_v33  ;;  %707 = vmatmul.mubr.bf16.vlgmr.msra.gmra.mxu1 %v1057_v43 }
  0x3c   : > { %652 = vmatpush2.bf16.msra.mxu0 %v1026_v38 }
  0x3d   : > { %653 = vmatprep.subr.bf16.mxu0 %v1030_v39 }
  0x40   : > { %654 = vmatpush2.bf16.msra.mxu0 %v1032_v41 }
  0x41   : > { %655 = vmatprep.subr.bf16.mxu0 %v1036_v42 }
  0x44   : > { %656 = vmatpush2.bf16.msra.mxu0 %v1038_v44 }
  0x45   : > { %657 = vmatprep.subr.bf16.mxu0 %v1042_v45 }
  0x48   : > { %658 = vmatpush2.bf16.msra.mxu0 %v1044_v46 }
  0x49   : > { %659 = vmatprep.subr.bf16.mxu0 %v1048_v47 }
  0x4c   : > { %660 = vmatpush2.bf16.msra.mxu0 %v1050_v48 }
  0x4d   : > { %661 = vmatprep.subr.bf16.mxu0 %v1054_v49 }
  0x50   : > { %662 = vmatpush2.bf16.msra.mxu0 %v1056_v50 }
  0x51   : > { %663 = vmatprep.subr.bf16.mxu0 %v1058_v51 }
  0x54   : > { %664 = vmatpush2.bf16.msra.mxu0 %v1060_v52 }
  0x57   : > { %666 = vmatmul.mubr.bf16.vlgmr.msra.gmra.mxu0 %v903_v53 }
  0xf9   : > { %v708_v54 = vpop.f32.mrf.mxu1 }
  0xfb   : > { %v710_v55 = vpop.f32.mrf.mxu1 }
  0xfd   : > { %v712_v56 = vpop.f32.mrf.mxu1 }
  0xff   : > { %v713_v57 = vpop.f32.mrf.mxu1 }
 0x117   : > { %v667_v59 = vpop.f32.mrf.mxu0 }
 0x118   : > { %v709_v60 = vadd.f32 %v708_v54, %v667_v59 }
 0x119   : > { %v669_v62 = vpop.f32.mrf.mxu0 }
 0x11a   : > { %v715_v63 = vadd.f32 %v709_v60, %v330_v58  ;;  %v711_v0 = vadd.f32 %v710_v55, %v669_v62  ;;  %722 = sbr.rel (%p954_p7) target bundleno = 304 (0x130), region = 44 }
 0x11b   : > { %v671_v1 = vpop.f32.mrf.mxu0 }
 0x11c   : > { %717 = vst [vmem:[#allocation2] sm:$0xff] %v715_v63  ;;  %v716_v2 = vadd.f32 %v711_v0, %v331_v61 }
 0x11d   : > { %v672_v3 = vpop.f32.mrf.mxu0 }
 0x11e   : > { %718 = vst [vmem:[#allocation2 + $0x8] sm:$0xff] %v716_v2 }
 0x11f   : > { %v727_v4 = vlaneseq  ;;  %v725_v6 = vld [vmem:[%s1218_s2] sm:$0x3] }
 0x120   : > { %v739_v7 = vld [vmem:[%s1219_s3] sm:$0x3] }
 0x121   : > { %v728_v5 = vshrl.u32 %v727_v4, 7 }
 0x123   : > { %v729_v8 = vsub.s32 0, %v728_v5  ;;  %v733_v9 = vsub.s32 1, %v728_v5  ;;  %v723_v10 = vld [vmem:[#allocation2] sm:$0xff] }
 0x125   : > { %v724_v11 = vld [vmem:[#allocation2 + $0x8] sm:$0xff]  ;;  %v730_v12 = vrot.slane %v725_v6, %v729_v8  ;;  %v734_v13 = vrot.slane %v725_v6, %v733_v9  ;;  %v744_v14 = vrot.slane %v739_v7, %v729_v8  ;;  %v748_v15 = vrot.slane %v739_v7, %v733_v9 }
 0x127   : > { %v737_v16 = vmul.f32 %v730_v12, %v723_v10  ;;  %v738_v17 = vmul.f32 %v734_v13, %v724_v11 }
 0x129   : > { %v751_v18 = vadd.f32 %v744_v14, %v737_v16  ;;  %v752_v19 = vadd.f32 %v748_v15, %v738_v17 }
 0x12b   : > { %v753_v20 = vmax.f32 %v751_v18, 0.0  ;;  %v754_v21 = vmax.f32 %v752_v19, 0.0 }
 0x12d   : > { %v961_v22 = vpack.c.bf16 %v754_v21, %v753_v20 }
 0x12f   : > { %763 = vst [vmem:[%s1220_s4] sm:$0xff] %v961_v22 }
 0x130 PF: > { %s14_s17 = sadd.s32 1, %s1085_s17   ;;  %s1221_s15 = smov %s1081_s16 }
 0x131   : > { %p11_p8 = scmp.ge.s32.totalorder %s14_s17, 8   ;;  %s1222_s16 = smov %s1224_s18 }
 0x133   :  { %13 = sbr.rel (!%p11_p8) target bundleno = 2 (0x2), region = 83 }

// kernel: student_net_resp_forward.39
= control target key start
LH: loop header
LB: loop body
LE: loop exit
PB: predicated region body
PF: predicated region fallthrough
CT: control target
= control target key end

     0   :  { %s1395_s15 = smov 0   ;;  %s1397_s16 = smov 0   ;;  %s1667_s0 = inlined_call_operand.vmem [shape: bf16[8,2304], index: 0, kind: input, shape index: {}]   ;;  %s1668_s1 = inlined_call_operand.vmem [shape: bf16[2304,512], index: 1, kind: input, shape index: {}]   ;;  %s1669_s2 = inlined_call_operand.vmem [shape: f32[1,512], index: 2, kind: input, shape index: {}]   ;;  %s1670_s3 = inlined_call_operand.vmem [shape: f32[1,512], index: 3, kind: input, shape index: {}]   ;;  %s1671_s4 = inlined_call_operand.vmem [shape: bf16[8,512], index: 4, kind: output, shape index: {}]  }
   0x1   :  { %s1399_s17 = smov 0   ;;  %s1401_s18 = smov 0  }
   0x2   :  { %s1403_s19 = smov 0   ;;  %s1405_s20 = smov 0  }
   0x3   :  { %s1407_s21 = smov 0  }
   0x4 LB: > { %s26_s22 = sadd.s32 1, %s1358_s19  ;;  %s29_s23 = sadd.s32 1, %s1362_s20  ;;  %s1366_s21 = sphi %s1407_s21, %s14_s21   ;;  %s1362_s20 = sphi %s1405_s20, %s1677_s20   ;;  %s1358_s19 = sphi %s1403_s19, %s1676_s19   ;;  %s1354_s18 = sphi %s1401_s18, %s1675_s18   ;;  %s1350_s17 = sphi %s1399_s17, %s1674_s17   ;;  %s1346_s16 = sphi %s1397_s16, %s1673_s16   ;;  %s1342_s15 = sphi %s1395_s15, %s1672_s15  }
   0x5   : > { %p27_p0 = scmp.ge.s32.totalorder %s26_s22, 6  ;;  %p77_p1 = scmp.ne.s32.totalorder %s1346_s16, %s1342_s15 }
   0x6   : > { %p78_p2 = scmp.eq.s32.totalorder %s1366_s21, 0  ;;  %s70_s27 = sadd.s32 1, %s1346_s16 }
   0x7   : > { %s1679_s22 = smov (%p27_p0, %s26_s22), 0  ;;  %s1681_s23 = smov (!%p27_p0, %s29_s23), %s1362_s20 }
   0x8   : > { %p79_p3 = por %p78_p2, %p77_p1  ;;  %p31_p4 = scmp.ge.s32.totalorder %s1681_s23, 2 }
   0x9   : > { %s65_s24 = ssub.s32 %s1358_s19, %s1679_s22  ;;  %p1109_p6 = scmp.ge.s32.totalorder %s1366_s21, 12 }
   0xa   : > { %s1683_s23 = smov (%p31_p4, %s1681_s23), 0 }
   0xb   : > { %s66_s25 = ssub.s32 %s1362_s20, %s1683_s23  ;;  %183 = sbr.rel (%p1109_p6) target bundleno = 48 (0x30), region = 16 }
   0xc   : > { %s67_s26 = sor.u32 %s66_s25, %s65_s24 }
   0xd   : > { %p68_p5 = scmp.eq.s32.totalorder %s67_s26, 0 }
   0xf   : > { %s1446_s28 = scalar_select %p68_p5, %s1346_s16, %s70_s27  }
  0x10   : > { %199 = sbr.rel (!%p79_p3) target bundleno = 48 (0x30), region = 24  ;;  %s201_s29 = sand.u32 (%p79_p3), 1, %s1346_s16  }
  0x11   : > { %s1177_s30 = smul.u32 (%p79_p3), 384, %s201_s29  ;;  %s1110_s5 = sshll.u32 (%p79_p3), %s1362_s20, 1 }
  0x12   : > { %s1175_s6 = smul.u32 (%p79_p3), 192, %s1358_s19 }
  0x13   : > { %s1460_s12 = scalar_lea.vmem (%p79_p3), [#allocation3], %s1177_s30 }
  0x14   : > { %s207_s7 = sadd.s32 (%p79_p3), %s1175_s6, %s1110_s5 }
  0x15   : > { %s1112_s8 = sshll.u32 %s207_s7, 2 }
  0x16   : > { %s1455_s11 = scalar_lea.vmem %s1668_s1, %s1112_s8 }
  0x17   : > { %v332_v0 = vld [vmem:[%s1455_s11] sm:$0xff]  ;;  %v334_v1 = vld [vmem:[%s1455_s11 + $0x10] sm:$0xff] }
  0x18   : > { %v336_v2 = vld [vmem:[%s1455_s11 + $0x20] sm:$0xff]  ;;  %333 = vst [vmem:[%s1460_s12] sm:$0xff] %v332_v0  ;;  %335 = vst [vmem:[%s1460_s12 + $0x8] sm:$0xff] %v334_v1  ;;  %v338_v3 = vld [vmem:[%s1455_s11 + $0x30] sm:$0xff] }
  0x19   : > { %337 = vst [vmem:[%s1460_s12 + $0x10] sm:$0xff] %v336_v2  ;;  %v340_v4 = vld [vmem:[%s1455_s11 + $0x40] sm:$0xff]  ;;  %v342_v5 = vld [vmem:[%s1455_s11 + $0x50] sm:$0xff]  ;;  %339 = vst [vmem:[%s1460_s12 + $0x18] sm:$0xff] %v338_v3 }
  0x1a   : > { %341 = vst [vmem:[%s1460_s12 + $0x20] sm:$0xff] %v340_v4  ;;  %343 = vst [vmem:[%s1460_s12 + $0x28] sm:$0xff] %v342_v5  ;;  %v344_v6 = vld [vmem:[%s1455_s11 + $0x60] sm:$0xff]  ;;  %v346_v7 = vld [vmem:[%s1455_s11 + $0x70] sm:$0xff] }
  0x1b   : > { %v348_v8 = vld [vmem:[%s1455_s11 + $0x80] sm:$0xff]  ;;  %345 = vst [vmem:[%s1460_s12 + $0x30] sm:$0xff] %v344_v6  ;;  %347 = vst [vmem:[%s1460_s12 + $0x38] sm:$0xff] %v346_v7  ;;  %v350_v9 = vld [vmem:[%s1455_s11 + $0x90] sm:$0xff] }
  0x1c   : > { %349 = vst [vmem:[%s1460_s12 + $0x40] sm:$0xff] %v348_v8  ;;  %v352_v10 = vld [vmem:[%s1455_s11 + $0xa0] sm:$0xff]  ;;  %v354_v11 = vld [vmem:[%s1455_s11 + $0xb0] sm:$0xff]  ;;  %351 = vst [vmem:[%s1460_s12 + $0x48] sm:$0xff] %v350_v9 }
  0x1d   : > { %353 = vst [vmem:[%s1460_s12 + $0x50] sm:$0xff] %v352_v10  ;;  %355 = vst [vmem:[%s1460_s12 + $0x58] sm:$0xff] %v354_v11  ;;  %v356_v12 = vld [vmem:[%s1455_s11 + $0xc0] sm:$0xff]  ;;  %v358_v13 = vld [vmem:[%s1455_s11 + $0xd0] sm:$0xff] }
  0x1e   : > { %v360_v14 = vld [vmem:[%s1455_s11 + $0xe0] sm:$0xff]  ;;  %357 = vst [vmem:[%s1460_s12 + $0x60] sm:$0xff] %v356_v12  ;;  %359 = vst [vmem:[%s1460_s12 + $0x68] sm:$0xff] %v358_v13  ;;  %v362_v15 = vld [vmem:[%s1455_s11 + $0xf0] sm:$0xff] }
  0x1f   : > { %361 = vst [vmem:[%s1460_s12 + $0x70] sm:$0xff] %v360_v14  ;;  %v364_v16 = vld [vmem:[%s1455_s11 + $0x100] sm:$0xff]  ;;  %v366_v17 = vld [vmem:[%s1455_s11 + $0x110] sm:$0xff]  ;;  %363 = vst [vmem:[%s1460_s12 + $0x78] sm:$0xff] %v362_v15 }
  0x20   : > { %365 = vst [vmem:[%s1460_s12 + $0x80] sm:$0xff] %v364_v16  ;;  %367 = vst [vmem:[%s1460_s12 + $0x88] sm:$0xff] %v366_v17  ;;  %v368_v18 = vld [vmem:[%s1455_s11 + $0x120] sm:$0xff]  ;;  %v370_v19 = vld [vmem:[%s1455_s11 + $0x130] sm:$0xff] }
  0x21   : > { %v372_v20 = vld [vmem:[%s1455_s11 + $0x140] sm:$0xff]  ;;  %369 = vst [vmem:[%s1460_s12 + $0x90] sm:$0xff] %v368_v18  ;;  %371 = vst [vmem:[%s1460_s12 + $0x98] sm:$0xff] %v370_v19  ;;  %v374_v21 = vld [vmem:[%s1455_s11 + $0x150] sm:$0xff] }
  0x22   : > { %373 = vst [vmem:[%s1460_s12 + $0xa0] sm:$0xff] %v372_v20  ;;  %v376_v22 = vld [vmem:[%s1455_s11 + $0x160] sm:$0xff]  ;;  %v378_v23 = vld [vmem:[%s1455_s11 + $0x170] sm:$0xff]  ;;  %375 = vst [vmem:[%s1460_s12 + $0xa8] sm:$0xff] %v374_v21 }
  0x23   : > { %377 = vst [vmem:[%s1460_s12 + $0xb0] sm:$0xff] %v376_v22  ;;  %379 = vst [vmem:[%s1460_s12 + $0xb8] sm:$0xff] %v378_v23  ;;  %v380_v24 = vld [vmem:[%s1455_s11 + $0x180] sm:$0xff]  ;;  %v382_v25 = vld [vmem:[%s1455_s11 + $0x190] sm:$0xff] }
  0x24   : > { %v384_v26 = vld [vmem:[%s1455_s11 + $0x1a0] sm:$0xff]  ;;  %381 = vst [vmem:[%s1460_s12 + $0xc0] sm:$0xff] %v380_v24  ;;  %383 = vst [vmem:[%s1460_s12 + $0xc8] sm:$0xff] %v382_v25  ;;  %v386_v27 = vld [vmem:[%s1455_s11 + $0x1b0] sm:$0xff] }
  0x25   : > { %385 = vst [vmem:[%s1460_s12 + $0xd0] sm:$0xff] %v384_v26  ;;  %v388_v28 = vld [vmem:[%s1455_s11 + $0x1c0] sm:$0xff]  ;;  %v390_v29 = vld [vmem:[%s1455_s11 + $0x1d0] sm:$0xff]  ;;  %387 = vst [vmem:[%s1460_s12 + $0xd8] sm:$0xff] %v386_v27 }
  0x26   : > { %389 = vst [vmem:[%s1460_s12 + $0xe0] sm:$0xff] %v388_v28  ;;  %391 = vst [vmem:[%s1460_s12 + $0xe8] sm:$0xff] %v390_v29  ;;  %v392_v30 = vld [vmem:[%s1455_s11 + $0x1e0] sm:$0xff]  ;;  %v394_v31 = vld [vmem:[%s1455_s11 + $0x1f0] sm:$0xff] }
  0x27   : > { %v396_v32 = vld [vmem:[%s1455_s11 + $0x200] sm:$0xff]  ;;  %393 = vst [vmem:[%s1460_s12 + $0xf0] sm:$0xff] %v392_v30  ;;  %395 = vst [vmem:[%s1460_s12 + $0xf8] sm:$0xff] %v394_v31  ;;  %v398_v33 = vld [vmem:[%s1455_s11 + $0x210] sm:$0xff] }
  0x28   : > { %397 = vst [vmem:[%s1460_s12 + $0x100] sm:$0xff] %v396_v32  ;;  %v400_v34 = vld [vmem:[%s1455_s11 + $0x220] sm:$0xff]  ;;  %v402_v35 = vld [vmem:[%s1455_s11 + $0x230] sm:$0xff]  ;;  %399 = vst [vmem:[%s1460_s12 + $0x108] sm:$0xff] %v398_v33 }
  0x29   : > { %401 = vst [vmem:[%s1460_s12 + $0x110] sm:$0xff] %v400_v34  ;;  %403 = vst [vmem:[%s1460_s12 + $0x118] sm:$0xff] %v402_v35  ;;  %v404_v36 = vld [vmem:[%s1455_s11 + $0x240] sm:$0xff]  ;;  %v406_v37 = vld [vmem:[%s1455_s11 + $0x250] sm:$0xff] }
  0x2a   : > { %v408_v38 = vld [vmem:[%s1455_s11 + $0x260] sm:$0xff]  ;;  %405 = vst [vmem:[%s1460_s12 + $0x120] sm:$0xff] %v404_v36  ;;  %407 = vst [vmem:[%s1460_s12 + $0x128] sm:$0xff] %v406_v37  ;;  %v410_v39 = vld [vmem:[%s1455_s11 + $0x270] sm:$0xff] }
  0x2b   : > { %409 = vst [vmem:[%s1460_s12 + $0x130] sm:$0xff] %v408_v38  ;;  %v412_v40 = vld [vmem:[%s1455_s11 + $0x280] sm:$0xff]  ;;  %v414_v41 = vld [vmem:[%s1455_s11 + $0x290] sm:$0xff]  ;;  %411 = vst [vmem:[%s1460_s12 + $0x138] sm:$0xff] %v410_v39 }
  0x2c   : > { %413 = vst [vmem:[%s1460_s12 + $0x140] sm:$0xff] %v412_v40  ;;  %415 = vst [vmem:[%s1460_s12 + $0x148] sm:$0xff] %v414_v41  ;;  %v416_v42 = vld [vmem:[%s1455_s11 + $0x2a0] sm:$0xff]  ;;  %v418_v43 = vld [vmem:[%s1455_s11 + $0x2b0] sm:$0xff] }
  0x2d   : > { %v420_v44 = vld [vmem:[%s1455_s11 + $0x2c0] sm:$0xff]  ;;  %417 = vst [vmem:[%s1460_s12 + $0x150] sm:$0xff] %v416_v42  ;;  %419 = vst [vmem:[%s1460_s12 + $0x158] sm:$0xff] %v418_v43  ;;  %v422_v45 = vld [vmem:[%s1455_s11 + $0x2d0] sm:$0xff] }
  0x2e   : > { %421 = vst [vmem:[%s1460_s12 + $0x160] sm:$0xff] %v420_v44  ;;  %v424_v46 = vld [vmem:[%s1455_s11 + $0x2e0] sm:$0xff]  ;;  %v426_v47 = vld [vmem:[%s1455_s11 + $0x2f0] sm:$0xff]  ;;  %423 = vst [vmem:[%s1460_s12 + $0x168] sm:$0xff] %v422_v45 }
  0x2f   : > { %425 = vst [vmem:[%s1460_s12 + $0x170] sm:$0xff] %v424_v46  ;;  %427 = vst [vmem:[%s1460_s12 + $0x178] sm:$0xff] %v426_v47 }
  0x30 PF: > { %p1113_p7 = scmp.ge.s32.totalorder %s1366_s21, 1  ;;  %p448_p8 = scmp.lt.s32.totalorder %s1366_s21, 13 }
  0x32   : > { %p449_p9 = pnand %p1113_p7, %p448_p8 }
  0x33   : > { %s455_s13 = sand.u32 (!%p449_p9), 1, %s1342_s15   ;;  %s501_s14 = smul.u32 (!%p449_p9), 3, %s1350_s17 }
  0x34   : > { %452 = sbr.rel (%p449_p9) target bundleno = 349 (0x15d), region = 70  ;;  %s1115_s25 = sshll.u32 (!%p449_p9), %s1354_s18, 1 }
  0x35   : > { %s1178_s24 = smul.u32 (!%p449_p9), 384, %s455_s13  ;;  %p504_p10 = scmp.lt.s32.totalorder (!%p449_p9), %s501_s14, 17 }
  0x36   : > { %p514_p11 = scmp.lt.s32.totalorder (!%p449_p9), %s1115_s25, 3  ;;  %p1119_p12 = scmp.ne.s32.totalorder (!%p449_p9), %s1350_s17, 0 }
  0x37   : > { %s1581_s13 = scalar_lea.vmem (!%p449_p9), [#allocation3], %s1178_s24 }
  0x39   : > { %s1685_s14 = smov (!%p504_p10, %s501_s14), 17  ;;  %s1687_s25 = smov (!%p514_p11, %s1115_s25), 3 }
  0x3a   : > { %s1114_s26 = sshll.u32 %s1685_s14, 2  ;;  %s516_s15 = scalar_lea.vmem %s1669_s2, %s1687_s25 }
  0x3b   : > { %s1565_s30 = scalar_lea.vmem %s1667_s0, %s1114_s26  ;;  %s521_s8 = scalar_lea.vmem %s1670_s3, %s1687_s25 }
  0x3c   : > { %s1118_s9 = sshll.u32 %s1687_s25, 2  ;;  %537 = sbr.rel (%p1119_p12) target bundleno = 67 (0x43), region = 78 }
  0x3d   : > { %s1579_s12 = scalar_lea.vmem %s1671_s4, %s1118_s9 }
  0x41   : > { %v1368_v48 = vmov 0.0  }
  0x42   : > { %538 = vst [vmem:[#allocation2] sm:$0xff] %v1368_v48  ;;  %539 = vst [vmem:[#allocation2 + $0x8] sm:$0xff] %v1368_v48 }
  0x43 PF: > { %v1237_v49 = vld [vmem:[%s1581_s13 + $0x74] ss:$8 sps:$4 sm:$0xff]   ;;  %v1239_v50 = vld [vmem:[%s1581_s13 + $0x70] ss:$8 sps:$4 sm:$0xff]   ;;  %v1369_v51 = vmov 0   ;;  %p1171_p13 = scmp.ne.s32.totalorder %s1350_s17, 5 }
  0x44   : > { %916 = vmatprep.mubr.bf16.mxu1 %v1369_v51  ;;  %843 = vmatprep.subr.bf16.mxu0 %v1237_v49  ;;  %v1240_v52 = vld [vmem:[%s1581_s13 + $0x64] ss:$8 sps:$4 sm:$0xff]   ;;  %v1242_v53 = vld [vmem:[%s1581_s13 + $0x60] ss:$8 sps:$4 sm:$0xff]   ;;  %v1243_v54 = vld [vmem:[%s1581_s13 + $0x54] ss:$8 sps:$4 sm:$0xff]  }
  0x45   : > { %844 = vmatpush1.bf16.msra.mxu0 %v1239_v50  ;;  %v1245_v55 = vld [vmem:[%s1581_s13 + $0x50] ss:$8 sps:$4 sm:$0xff]   ;;  %v1246_v56 = vld [vmem:[%s1581_s13 + $0x44] ss:$8 sps:$4 sm:$0xff]   ;;  %v1258_v57 = vld [vmem:[%s1581_s13 + $0x174] ss:$8 sps:$4 sm:$0xff]  }
  0x46   : > { %845 = vmatprep.subr.bf16.mxu0 %v1240_v52  ;;  %v1260_v58 = vld [vmem:[%s1581_s13 + $0x170] ss:$8 sps:$4 sm:$0xff]   ;;  %v1248_v59 = vld [vmem:[%s1581_s13 + $0x40] ss:$8 sps:$4 sm:$0xff]   ;;  %v1249_v60 = vld [vmem:[%s1581_s13 + $0x34] ss:$8 sps:$4 sm:$0xff]   ;;  %884 = vmatprep.subr.bf16.mxu1 %v1258_v57 }
  0x47   : > { %v1264_v61 = vld [vmem:[%s1581_s13 + $0x164] ss:$8 sps:$4 sm:$0xff]   ;;  %885 = vmatpush1.bf16.msra.mxu1 %v1260_v58  ;;  %v1266_v62 = vld [vmem:[%s1581_s13 + $0x160] ss:$8 sps:$4 sm:$0xff]   ;;  %v1251_v63 = vld [vmem:[%s1581_s13 + $0x30] ss:$8 sps:$4 sm:$0xff]  }
  0x48   : > { %886 = vmatprep.subr.bf16.mxu1 %v1264_v61  ;;  %v1270_v0 = vld [vmem:[%s1581_s13 + $0x154] ss:$8 sps:$4 sm:$0xff]   ;;  %v1252_v1 = vld [vmem:[%s1581_s13 + $0x24] ss:$8 sps:$4 sm:$0xff]   ;;  %v1272_v2 = vld [vmem:[%s1581_s13 + $0x150] ss:$8 sps:$4 sm:$0xff]  }
  0x49   : > { %846 = vmatpush1.bf16.msra.mxu0 %v1242_v53  ;;  %v1276_v3 = vld [vmem:[%s1581_s13 + $0x144] ss:$8 sps:$4 sm:$0xff]   ;;  %v1254_v4 = vld [vmem:[%s1581_s13 + $0x20] ss:$8 sps:$4 sm:$0xff]   ;;  %v1255_v5 = vld [vmem:[%s1581_s13 + $0x14] ss:$8 sps:$4 sm:$0xff]  }
  0x4a   : > { %847 = vmatprep.subr.bf16.mxu0 %v1243_v54  ;;  %v1278_v6 = vld [vmem:[%s1581_s13 + $0x140] ss:$8 sps:$4 sm:$0xff]   ;;  %v1282_v7 = vld [vmem:[%s1581_s13 + $0x134] ss:$8 sps:$4 sm:$0xff]   ;;  %v1257_v8 = vld [vmem:[%s1581_s13 + $0x10] ss:$8 sps:$4 sm:$0xff]  }
  0x4b   : > { %887 = vmatpush1.bf16.msra.mxu1 %v1266_v62  ;;  %v1261_v9 = vld [vmem:[%s1581_s13 + $0x4] ss:$8 sps:$4 sm:$0xff]   ;;  %v1284_v10 = vld [vmem:[%s1581_s13 + $0x130] ss:$8 sps:$4 sm:$0xff]   ;;  %v1263_v12 = vld [vmem:[%s1581_s13] ss:$8 sps:$4 sm:$0xff]  }
  0x4c   : > { %888 = vmatprep.subr.bf16.mxu1 %v1270_v0  ;;  %v1288_v11 = vld [vmem:[%s1581_s13 + $0x124] ss:$8 sps:$4 sm:$0xff]   ;;  %v1267_v13 = vld [vmem:[%s1581_s13 + $0xf4] ss:$8 sps:$4 sm:$0xff]   ;;  %v1290_v14 = vld [vmem:[%s1581_s13 + $0x120] ss:$8 sps:$4 sm:$0xff]  }
  0x4d   : > { %848 = vmatpush1.bf16.msra.mxu0 %v1245_v55  ;;  %v1294_v15 = vld [vmem:[%s1581_s13 + $0x114] ss:$8 sps:$4 sm:$0xff]   ;;  %v1269_v16 = vld [vmem:[%s1581_s13 + $0xf0] ss:$8 sps:$4 sm:$0xff]   ;;  %v1273_v17 = vld [vmem:[%s1581_s13 + $0xe4] ss:$8 sps:$4 sm:$0xff]  }
  0x4e   : > { %849 = vmatprep.subr.bf16.mxu0 %v1246_v56  ;;  %v542_v18 = vld [vmem:[%s1565_s30] sm:$0xff]  ;;  %v1300_v21 = vld [vmem:[%s1581_s13 + $0x104] ss:$8 sps:$4 sm:$0xff]   ;;  %v1275_v22 = vld [vmem:[%s1581_s13 + $0xe0] ss:$8 sps:$4 sm:$0xff]  }
  0x4f   : > { %889 = vmatpush1.bf16.msra.mxu1 %v1272_v2  ;;  %v1296_v19 = vld [vmem:[%s1581_s13 + $0x110] ss:$8 sps:$4 sm:$0xff]   ;;  %v1121_v20 = vcombine.high %v542_v18, %v542_v18  ;;  %v1279_v23 = vld [vmem:[%s1581_s13 + $0xd4] ss:$8 sps:$4 sm:$0xff]   ;;  %v1302_v24 = vld [vmem:[%s1581_s13 + $0x100] ss:$8 sps:$4 sm:$0xff]   ;;  %v1120_v37 = vcombine.low %v542_v18, %v542_v18 }
  0x50   : > { %890 = vmatprep.subr.bf16.mxu1 %v1276_v3  ;;  %v1281_v25 = vld [vmem:[%s1581_s13 + $0xd0] ss:$8 sps:$4 sm:$0xff]   ;;  %v1285_v26 = vld [vmem:[%s1581_s13 + $0xc4] ss:$8 sps:$4 sm:$0xff]   ;;  %v1287_v28 = vld [vmem:[%s1581_s13 + $0xc0] ss:$8 sps:$4 sm:$0xff]  }
  0x51   : > { %850 = vmatpush1.bf16.msra.mxu0 %v1248_v59  ;;  %875 = vmatprep.mubr.bf16.mxu0 %v1121_v20  ;;  %v1306_v27 = vld [vmem:[%s1565_s30 + $0x8] ss:$0 sps:$4 sm:$0xff]   ;;  %v1291_v29 = vld [vmem:[%s1581_s13 + $0xb4] ss:$8 sps:$4 sm:$0xff]   ;;  %v1297_v31 = vld [vmem:[%s1581_s13 + $0xa4] ss:$8 sps:$4 sm:$0xff]  }
  0x52   : > { %851 = vmatprep.subr.bf16.mxu0 %v1249_v60  ;;  %v1293_v30 = vld [vmem:[%s1581_s13 + $0xb0] ss:$8 sps:$4 sm:$0xff]   ;;  %v1299_v32 = vld [vmem:[%s1581_s13 + $0xa0] ss:$8 sps:$4 sm:$0xff]   ;;  %v1303_v33 = vld [vmem:[%s1581_s13 + $0x94] ss:$8 sps:$4 sm:$0xff]  }
  0x53   : > { %891 = vmatpush1.bf16.msra.mxu1 %v1278_v6  ;;  %v1305_v34 = vld [vmem:[%s1581_s13 + $0x90] ss:$8 sps:$4 sm:$0xff]   ;;  %v1307_v35 = vld [vmem:[%s1581_s13 + $0x84] ss:$8 sps:$4 sm:$0xff]   ;;  %v1309_v36 = vld [vmem:[%s1581_s13 + $0x80] ss:$8 sps:$4 sm:$0xff]  }
  0x54   : > { %892 = vmatprep.subr.bf16.mxu1 %v1282_v7  ;;  %v540_v42 = vld [vmem:[#allocation2] sm:$0xff]  ;;  %v541_v45 = vld [vmem:[#allocation2 + $0x8] sm:$0xff] }
  0x55   : > { %852 = vmatpush1.bf16.msra.mxu0 %v1251_v63 }
  0x56   : > { %853 = vmatprep.subr.bf16.mxu0 %v1252_v1 }
  0x57   : > { %893 = vmatpush1.bf16.msra.mxu1 %v1284_v10 }
  0x58   : > { %894 = vmatprep.subr.bf16.mxu1 %v1288_v11 }
  0x59   : > { %854 = vmatpush1.bf16.msra.mxu0 %v1254_v4 }
  0x5a   : > { %855 = vmatprep.subr.bf16.mxu0 %v1255_v5 }
  0x5b   : > { %895 = vmatpush1.bf16.msra.mxu1 %v1290_v14 }
  0x5c   : > { %896 = vmatprep.subr.bf16.mxu1 %v1294_v15 }
  0x5d   : > { %856 = vmatpush1.bf16.msra.mxu0 %v1257_v8 }
  0x5e   : > { %857 = vmatprep.subr.bf16.mxu0 %v1261_v9 }
  0x5f   : > { %897 = vmatpush1.bf16.msra.mxu1 %v1296_v19 }
  0x60   : > { %898 = vmatprep.subr.bf16.mxu1 %v1300_v21 }
  0x61   : > { %858 = vmatpush1.bf16.msra.mxu0 %v1263_v12 }
  0x62   : > { %859 = vmatprep.subr.bf16.mxu0 %v1267_v13 }
  0x63   : > { %899 = vmatpush1.bf16.msra.mxu1 %v1302_v24 }
  0x65   : > { %860 = vmatpush2.bf16.msra.mxu0 %v1269_v16 }
  0x66   : > { %861 = vmatprep.subr.bf16.mxu0 %v1273_v17  ;;  %917 = vmatmul.mubr.bf16.vlgmr.msra.gmra.mxu1 %v1306_v27 }
  0x69   : > { %862 = vmatpush2.bf16.msra.mxu0 %v1275_v22 }
  0x6a   : > { %863 = vmatprep.subr.bf16.mxu0 %v1279_v23 }
  0x6d   : > { %864 = vmatpush2.bf16.msra.mxu0 %v1281_v25 }
  0x6e   : > { %865 = vmatprep.subr.bf16.mxu0 %v1285_v26 }
  0x71   : > { %866 = vmatpush2.bf16.msra.mxu0 %v1287_v28 }
  0x72   : > { %867 = vmatprep.subr.bf16.mxu0 %v1291_v29 }
  0x75   : > { %868 = vmatpush2.bf16.msra.mxu0 %v1293_v30 }
  0x76   : > { %869 = vmatprep.subr.bf16.mxu0 %v1297_v31 }
  0x79   : > { %870 = vmatpush2.bf16.msra.mxu0 %v1299_v32 }
  0x7a   : > { %871 = vmatprep.subr.bf16.mxu0 %v1303_v33 }
  0x7d   : > { %872 = vmatpush2.bf16.msra.mxu0 %v1305_v34 }
  0x7e   : > { %873 = vmatprep.subr.bf16.mxu0 %v1307_v35 }
  0x81   : > { %874 = vmatpush2.bf16.msra.mxu0 %v1309_v36 }
  0x84   : > { %876 = vmatmul.mubr.bf16.vlgmr.msra.gmra.mxu0 %v1120_v37 }
 0x126   : > { %v918_v38 = vpop.f32.mrf.mxu1 }
 0x128   : > { %v920_v39 = vpop.f32.mrf.mxu1 }
 0x12a   : > { %v922_v40 = vpop.f32.mrf.mxu1 }
 0x12c   : > { %v923_v41 = vpop.f32.mrf.mxu1 }
 0x144   : > { %v877_v43 = vpop.f32.mrf.mxu0 }
 0x145   : > { %v919_v44 = vadd.f32 %v918_v38, %v877_v43 }
 0x146   : > { %v879_v46 = vpop.f32.mrf.mxu0 }
 0x147   : > { %v925_v47 = vadd.f32 %v919_v44, %v540_v42  ;;  %v921_v48 = vadd.f32 %v920_v39, %v879_v46  ;;  %932 = sbr.rel (%p1171_p13) target bundleno = 349 (0x15d), region = 82 }
 0x148   : > { %v881_v49 = vpop.f32.mrf.mxu0 }
 0x149   : > { %927 = vst [vmem:[#allocation2] sm:$0xff] %v925_v47  ;;  %v926_v50 = vadd.f32 %v921_v48, %v541_v45 }
 0x14a   : > { %v882_v51 = vpop.f32.mrf.mxu0 }
 0x14b   : > { %928 = vst [vmem:[#allocation2 + $0x8] sm:$0xff] %v926_v50 }
 0x14c   : > { %v937_v52 = vlaneseq  ;;  %v935_v54 = vld [vmem:[%s516_s15] sm:$0x3] }
 0x14d   : > { %v949_v55 = vld [vmem:[%s521_s8] sm:$0x3] }
 0x14e   : > { %v938_v53 = vshrl.u32 %v937_v52, 7 }
 0x150   : > { %v939_v56 = vsub.s32 0, %v938_v53  ;;  %v943_v57 = vsub.s32 1, %v938_v53  ;;  %v933_v58 = vld [vmem:[#allocation2] sm:$0xff] }
 0x152   : > { %v934_v59 = vld [vmem:[#allocation2 + $0x8] sm:$0xff]  ;;  %v940_v60 = vrot.slane %v935_v54, %v939_v56  ;;  %v944_v61 = vrot.slane %v935_v54, %v943_v57  ;;  %v954_v62 = vrot.slane %v949_v55, %v939_v56  ;;  %v958_v63 = vrot.slane %v949_v55, %v943_v57 }
 0x154   : > { %v947_v0 = vmul.f32 %v940_v60, %v933_v58  ;;  %v948_v1 = vmul.f32 %v944_v61, %v934_v59 }
 0x156   : > { %v961_v2 = vadd.f32 %v954_v62, %v947_v0  ;;  %v962_v3 = vadd.f32 %v958_v63, %v948_v1 }
 0x158   : > { %v963_v4 = vmax.f32 %v961_v2, 0.0  ;;  %v964_v5 = vmax.f32 %v962_v3, 0.0 }
 0x15a   : > { %v1176_v6 = vpack.c.bf16 %v964_v5, %v963_v4 }
 0x15c   : > { %973 = vst [vmem:[%s1579_s12] sm:$0xff] %v1176_v6 }
 0x15d PF: > { %s14_s21 = sadd.s32 1, %s1366_s21   ;;  %s1672_s15 = smov %s1346_s16 }
 0x15e   : > { %p11_p0 = scmp.ge.s32.totalorder %s14_s21, 14   ;;  %s1673_s16 = smov %s1446_s28 }
 0x15f   : > { %s1674_s17 = smov %s1358_s19  ;;  %s1675_s18 = smov %s1362_s20 }
 0x160   : > { %s1676_s19 = smov %s1679_s22  ;;  %s1677_s20 = smov %s1683_s23 }
 0x161   :  { %13 = sbr.rel (!%p11_p0) target bundleno = 4 (0x4), region = 126 }

// kernel: student_net_resp_forward.40
= control target key start
LH: loop header
LB: loop body
LE: loop exit
PB: predicated region body
PF: predicated region fallthrough
CT: control target
= control target key end

     0   :  { %s1046_s15 = smov 0   ;;  %s1048_s16 = smov 0   ;;  %s1228_s0 = inlined_call_operand.vmem [shape: bf16[8,256], index: 0, kind: input, shape index: {}]   ;;  %s1229_s1 = inlined_call_operand.vmem [shape: bf16[256,512], index: 1, kind: input, shape index: {}]   ;;  %s1230_s2 = inlined_call_operand.vmem [shape: f32[1,512], index: 2, kind: input, shape index: {}]   ;;  %s1231_s3 = inlined_call_operand.vmem [shape: f32[1,512], index: 3, kind: input, shape index: {}]   ;;  %s1232_s4 = inlined_call_operand.vmem [shape: bf16[8,512], index: 4, kind: output, shape index: {}]  }
   0x1   :  { %s1050_s17 = smov 0   ;;  %s1052_s18 = smov 0  }
   0x2   :  { %s1054_s19 = smov 0  }
   0x3 LB: > { %s23_s20 = sadd.s32 1, %s1015_s18  ;;  %p66_p1 = scmp.ne.s32.totalorder %s1007_s16, %s1003_s15  ;;  %s1019_s19 = sphi %s1054_s19, %s14_s19   ;;  %s1015_s18 = sphi %s1052_s18, %s1236_s18   ;;  %s1011_s17 = sphi %s1050_s17, %s1235_s17   ;;  %s1007_s16 = sphi %s1048_s16, %s1234_s16   ;;  %s1003_s15 = sphi %s1046_s15, %s1233_s15  }
   0x4   : > { %p24_p0 = scmp.ge.s32.totalorder %s23_s20, 2  ;;  %p67_p2 = scmp.eq.s32.totalorder %s1019_s19, 0 }
   0x5   : > { %s59_s22 = sadd.s32 1, %s1007_s16  ;;  %p842_p5 = scmp.ge.s32.totalorder %s1019_s19, 2 }
   0x6   : > { %s1238_s20 = smov (%p24_p0, %s23_s20), 0  ;;  %p68_p3 = por %p67_p2, %p66_p1 }
   0x7   : > { %s56_s21 = ssub.s32 %s1015_s18, %s1238_s20  ;;  %180 = sbr.rel (%p842_p5) target bundleno = 32 (0x20), region = 20 }
   0x8   : > { %p57_p4 = scmp.eq.s32.totalorder %s56_s21, 0 }
   0xa   : > { %s1081_s23 = scalar_select %p57_p4, %s1007_s16, %s59_s22  }
   0xc   : > { %183 = sbr.rel (!%p68_p3) target bundleno = 32 (0x20), region = 24  ;;  %s185_s24 = sand.u32 (%p68_p3), 1, %s1007_s16  }
   0xd   : > { %s889_s25 = sshll.u32 (%p68_p3), %s1015_s18, 3  ;;  %s843_s26 = sshll.u32 (%p68_p3), %s185_s24, 8 }
   0xe   : > { %s1089_s29 = scalar_lea.vmem (%p68_p3), %s1229_s1, %s889_s25  ;;  %s1094_s30 = scalar_lea.vmem (%p68_p3), [#allocation2], %s843_s26 }
   0xf   : > { %v281_v0 = vld [vmem:[%s1089_s29] sm:$0xff] (%p68_p3)  ;;  %v283_v1 = vld [vmem:[%s1089_s29 + $0x10] sm:$0xff] (%p68_p3) }
  0x10   : > { %v285_v2 = vld [vmem:[%s1089_s29 + $0x20] sm:$0xff] (%p68_p3)  ;;  %282 = vst [vmem:[%s1094_s30] sm:$0xff] (%p68_p3), %v281_v0  ;;  %284 = vst [vmem:[%s1094_s30 + $0x8] sm:$0xff] (%p68_p3), %v283_v1  ;;  %v287_v3 = vld [vmem:[%s1089_s29 + $0x30] sm:$0xff] (%p68_p3) }
  0x11   : > { %286 = vst [vmem:[%s1094_s30 + $0x10] sm:$0xff] %v285_v2  ;;  %v289_v4 = vld [vmem:[%s1089_s29 + $0x40] sm:$0xff]  ;;  %v291_v5 = vld [vmem:[%s1089_s29 + $0x50] sm:$0xff]  ;;  %288 = vst [vmem:[%s1094_s30 + $0x18] sm:$0xff] %v287_v3 }
  0x12   : > { %290 = vst [vmem:[%s1094_s30 + $0x20] sm:$0xff] %v289_v4  ;;  %292 = vst [vmem:[%s1094_s30 + $0x28] sm:$0xff] %v291_v5  ;;  %v293_v6 = vld [vmem:[%s1089_s29 + $0x60] sm:$0xff]  ;;  %v295_v7 = vld [vmem:[%s1089_s29 + $0x70] sm:$0xff] }
  0x13   : > { %v297_v8 = vld [vmem:[%s1089_s29 + $0x80] sm:$0xff]  ;;  %294 = vst [vmem:[%s1094_s30 + $0x30] sm:$0xff] %v293_v6  ;;  %296 = vst [vmem:[%s1094_s30 + $0x38] sm:$0xff] %v295_v7  ;;  %v299_v9 = vld [vmem:[%s1089_s29 + $0x90] sm:$0xff] }
  0x14   : > { %298 = vst [vmem:[%s1094_s30 + $0x40] sm:$0xff] %v297_v8  ;;  %v301_v10 = vld [vmem:[%s1089_s29 + $0xa0] sm:$0xff]  ;;  %v303_v11 = vld [vmem:[%s1089_s29 + $0xb0] sm:$0xff]  ;;  %300 = vst [vmem:[%s1094_s30 + $0x48] sm:$0xff] %v299_v9 }
  0x15   : > { %302 = vst [vmem:[%s1094_s30 + $0x50] sm:$0xff] %v301_v10  ;;  %304 = vst [vmem:[%s1094_s30 + $0x58] sm:$0xff] %v303_v11  ;;  %v305_v12 = vld [vmem:[%s1089_s29 + $0xc0] sm:$0xff]  ;;  %v307_v13 = vld [vmem:[%s1089_s29 + $0xd0] sm:$0xff] }
  0x16   : > { %v309_v14 = vld [vmem:[%s1089_s29 + $0xe0] sm:$0xff]  ;;  %306 = vst [vmem:[%s1094_s30 + $0x60] sm:$0xff] %v305_v12  ;;  %308 = vst [vmem:[%s1094_s30 + $0x68] sm:$0xff] %v307_v13  ;;  %v311_v15 = vld [vmem:[%s1089_s29 + $0xf0] sm:$0xff] }
  0x17   : > { %310 = vst [vmem:[%s1094_s30 + $0x70] sm:$0xff] %v309_v14  ;;  %v313_v16 = vld [vmem:[%s1089_s29 + $0x100] sm:$0xff]  ;;  %v315_v17 = vld [vmem:[%s1089_s29 + $0x110] sm:$0xff]  ;;  %312 = vst [vmem:[%s1094_s30 + $0x78] sm:$0xff] %v311_v15 }
  0x18   : > { %314 = vst [vmem:[%s1094_s30 + $0x80] sm:$0xff] %v313_v16  ;;  %316 = vst [vmem:[%s1094_s30 + $0x88] sm:$0xff] %v315_v17  ;;  %v317_v18 = vld [vmem:[%s1089_s29 + $0x120] sm:$0xff]  ;;  %v319_v19 = vld [vmem:[%s1089_s29 + $0x130] sm:$0xff] }
  0x19   : > { %v321_v20 = vld [vmem:[%s1089_s29 + $0x140] sm:$0xff]  ;;  %318 = vst [vmem:[%s1094_s30 + $0x90] sm:$0xff] %v317_v18  ;;  %320 = vst [vmem:[%s1094_s30 + $0x98] sm:$0xff] %v319_v19  ;;  %v323_v21 = vld [vmem:[%s1089_s29 + $0x150] sm:$0xff] }
  0x1a   : > { %322 = vst [vmem:[%s1094_s30 + $0xa0] sm:$0xff] %v321_v20  ;;  %v325_v22 = vld [vmem:[%s1089_s29 + $0x160] sm:$0xff]  ;;  %v327_v23 = vld [vmem:[%s1089_s29 + $0x170] sm:$0xff]  ;;  %324 = vst [vmem:[%s1094_s30 + $0xa8] sm:$0xff] %v323_v21 }
  0x1b   : > { %326 = vst [vmem:[%s1094_s30 + $0xb0] sm:$0xff] %v325_v22  ;;  %328 = vst [vmem:[%s1094_s30 + $0xb8] sm:$0xff] %v327_v23  ;;  %v329_v24 = vld [vmem:[%s1089_s29 + $0x180] sm:$0xff]  ;;  %v331_v25 = vld [vmem:[%s1089_s29 + $0x190] sm:$0xff] }
  0x1c   : > { %v333_v26 = vld [vmem:[%s1089_s29 + $0x1a0] sm:$0xff]  ;;  %330 = vst [vmem:[%s1094_s30 + $0xc0] sm:$0xff] %v329_v24  ;;  %332 = vst [vmem:[%s1094_s30 + $0xc8] sm:$0xff] %v331_v25  ;;  %v335_v27 = vld [vmem:[%s1089_s29 + $0x1b0] sm:$0xff] }
  0x1d   : > { %334 = vst [vmem:[%s1094_s30 + $0xd0] sm:$0xff] %v333_v26  ;;  %v337_v28 = vld [vmem:[%s1089_s29 + $0x1c0] sm:$0xff]  ;;  %v339_v29 = vld [vmem:[%s1089_s29 + $0x1d0] sm:$0xff]  ;;  %336 = vst [vmem:[%s1094_s30 + $0xd8] sm:$0xff] %v335_v27 }
  0x1e   : > { %338 = vst [vmem:[%s1094_s30 + $0xe0] sm:$0xff] %v337_v28  ;;  %340 = vst [vmem:[%s1094_s30 + $0xe8] sm:$0xff] %v339_v29  ;;  %v341_v30 = vld [vmem:[%s1089_s29 + $0x1e0] sm:$0xff]  ;;  %v343_v31 = vld [vmem:[%s1089_s29 + $0x1f0] sm:$0xff] }
  0x1f   : > { %342 = vst [vmem:[%s1094_s30 + $0xf0] sm:$0xff] %v341_v30  ;;  %344 = vst [vmem:[%s1094_s30 + $0xf8] sm:$0xff] %v343_v31 }
  0x20 PF: > { %p846_p6 = scmp.ge.s32.totalorder %s1019_s19, 1  ;;  %p365_p7 = scmp.lt.s32.totalorder %s1019_s19, 3 }
  0x22   : > { %p366_p8 = pnand %p846_p6, %p365_p7 }
  0x23   : > { %s372_s5 = sand.u32 (!%p366_p8), 1, %s1003_s15   ;;  %s848_s10 = sshll.u32 (!%p366_p8), %s1011_s17, 1 }
  0x24   : > { %369 = sbr.rel (%p366_p8) target bundleno = 308 (0x134), region = 70  ;;  %s847_s8 = sshll.u32 (!%p366_p8), %s372_s5, 8 }
  0x25   : > { %s1167_s9 = scalar_lea.vmem (!%p366_p8), [#allocation2], %s847_s8  ;;  %p421_p9 = scmp.lt.s32.totalorder (!%p366_p8), %s848_s10, 3 }
  0x29   : > { %v1163_v32 = vld [vmem:[%s1228_s0] sm:$0xff]  ;;  %v931_v34 = vld [vmem:[%s1167_s9 + $0x74] ss:$8 sps:$4 sm:$0xff]   ;;  %v933_v35 = vld [vmem:[%s1167_s9 + $0x70] ss:$8 sps:$4 sm:$0xff]   ;;  %v683_v3 = vlaneseq  ;;  %s1240_s10 = smov (!%p421_p9, %s848_s10), 3 }
  0x2a   : > { %v853_v33 = vcombine.high %v1163_v32, %v1163_v32  ;;  %640 = vmatprep.subr.bf16.mxu0 %v931_v34  ;;  %v934_v36 = vld [vmem:[%s1167_s9 + $0x64] ss:$8 sps:$4 sm:$0xff]   ;;  %v936_v37 = vld [vmem:[%s1167_s9 + $0x60] ss:$8 sps:$4 sm:$0xff]   ;;  %v937_v38 = vld [vmem:[%s1167_s9 + $0x54] ss:$8 sps:$4 sm:$0xff]   ;;  %v852_v2 = vcombine.low %v1163_v32, %v1163_v32  ;;  %s423_s13 = scalar_lea.vmem %s1230_s2, %s1240_s10  ;;  %s428_s21 = scalar_lea.vmem %s1231_s3, %s1240_s10 }
  0x2b   : > { %641 = vmatpush1.bf16.msra.mxu0 %v933_v35  ;;  %v939_v39 = vld [vmem:[%s1167_s9 + $0x50] ss:$8 sps:$4 sm:$0xff]   ;;  %v940_v40 = vld [vmem:[%s1167_s9 + $0x44] ss:$8 sps:$4 sm:$0xff]   ;;  %v942_v41 = vld [vmem:[%s1167_s9 + $0x40] ss:$8 sps:$4 sm:$0xff]  }
  0x2c   : > { %672 = vmatprep.mubr.bf16.mxu0 %v853_v33  ;;  %642 = vmatprep.subr.bf16.mxu0 %v934_v36  ;;  %v943_v42 = vld [vmem:[%s1167_s9 + $0x34] ss:$8 sps:$4 sm:$0xff]   ;;  %v945_v43 = vld [vmem:[%s1167_s9 + $0x30] ss:$8 sps:$4 sm:$0xff]   ;;  %v946_v44 = vld [vmem:[%s1167_s9 + $0x24] ss:$8 sps:$4 sm:$0xff]  }
  0x2d   : > { %v948_v45 = vld [vmem:[%s1167_s9 + $0x20] ss:$8 sps:$4 sm:$0xff]   ;;  %v949_v46 = vld [vmem:[%s1167_s9 + $0x14] ss:$8 sps:$4 sm:$0xff]   ;;  %v951_v47 = vld [vmem:[%s1167_s9 + $0x10] ss:$8 sps:$4 sm:$0xff]  }
  0x2e   : > { %v952_v48 = vld [vmem:[%s1167_s9 + $0x4] ss:$8 sps:$4 sm:$0xff]   ;;  %v954_v49 = vld [vmem:[%s1167_s9] ss:$8 sps:$4 sm:$0xff]   ;;  %v955_v50 = vld [vmem:[%s1167_s9 + $0xf4] ss:$8 sps:$4 sm:$0xff]  }
  0x2f   : > { %643 = vmatpush1.bf16.msra.mxu0 %v936_v37  ;;  %v957_v51 = vld [vmem:[%s1167_s9 + $0xf0] ss:$8 sps:$4 sm:$0xff]   ;;  %v958_v52 = vld [vmem:[%s1167_s9 + $0xe4] ss:$8 sps:$4 sm:$0xff]   ;;  %v960_v53 = vld [vmem:[%s1167_s9 + $0xe0] ss:$8 sps:$4 sm:$0xff]  }
  0x30   : > { %644 = vmatprep.subr.bf16.mxu0 %v937_v38  ;;  %v961_v54 = vld [vmem:[%s1167_s9 + $0xd4] ss:$8 sps:$4 sm:$0xff]   ;;  %v963_v55 = vld [vmem:[%s1167_s9 + $0xd0] ss:$8 sps:$4 sm:$0xff]   ;;  %v964_v56 = vld [vmem:[%s1167_s9 + $0xc4] ss:$8 sps:$4 sm:$0xff]  }
  0x31   : > { %v966_v57 = vld [vmem:[%s1167_s9 + $0xc0] ss:$8 sps:$4 sm:$0xff]   ;;  %v967_v58 = vld [vmem:[%s1167_s9 + $0xb4] ss:$8 sps:$4 sm:$0xff]   ;;  %v969_v59 = vld [vmem:[%s1167_s9 + $0xb0] ss:$8 sps:$4 sm:$0xff]  }
  0x32   : > { %v970_v60 = vld [vmem:[%s1167_s9 + $0xa4] ss:$8 sps:$4 sm:$0xff]   ;;  %v972_v61 = vld [vmem:[%s1167_s9 + $0xa0] ss:$8 sps:$4 sm:$0xff]   ;;  %v973_v62 = vld [vmem:[%s1167_s9 + $0x94] ss:$8 sps:$4 sm:$0xff]  }
  0x33   : > { %645 = vmatpush1.bf16.msra.mxu0 %v939_v39  ;;  %v975_v63 = vld [vmem:[%s1167_s9 + $0x90] ss:$8 sps:$4 sm:$0xff]   ;;  %v976_v0 = vld [vmem:[%s1167_s9 + $0x84] ss:$8 sps:$4 sm:$0xff]   ;;  %v978_v1 = vld [vmem:[%s1167_s9 + $0x80] ss:$8 sps:$4 sm:$0xff]  }
  0x34   : > { %646 = vmatprep.subr.bf16.mxu0 %v940_v40  ;;  %v684_v4 = vshrl.u32 %v683_v3, 7  ;;  %v681_v6 = vld [vmem:[%s423_s13] sm:$0x3]  ;;  %s851_s17 = sshll.u32 %s1240_s10, 2 }
  0x35   : > { %v695_v9 = vld [vmem:[%s428_s21] sm:$0x3]  ;;  %s438_s25 = scalar_lea.vmem %s1232_s4, %s851_s17 }
  0x36   : > { %v685_v5 = vsub.s32 0, %v684_v4  ;;  %v689_v7 = vsub.s32 1, %v684_v4 }
  0x37   : > { %647 = vmatpush1.bf16.msra.mxu0 %v942_v41 }
  0x38   : > { %648 = vmatprep.subr.bf16.mxu0 %v943_v42  ;;  %v686_v8 = vrot.slane %v681_v6, %v685_v5  ;;  %v690_v10 = vrot.slane %v681_v6, %v689_v7  ;;  %v700_v13 = vrot.slane %v695_v9, %v685_v5  ;;  %v704_v14 = vrot.slane %v695_v9, %v689_v7 }
  0x3b   : > { %649 = vmatpush1.bf16.msra.mxu0 %v945_v43 }
  0x3c   : > { %650 = vmatprep.subr.bf16.mxu0 %v946_v44 }
  0x3f   : > { %651 = vmatpush1.bf16.msra.mxu0 %v948_v45 }
  0x40   : > { %652 = vmatprep.subr.bf16.mxu0 %v949_v46 }
  0x43   : > { %653 = vmatpush1.bf16.msra.mxu0 %v951_v47 }
  0x44   : > { %654 = vmatprep.subr.bf16.mxu0 %v952_v48 }
  0x47   : > { %655 = vmatpush1.bf16.msra.mxu0 %v954_v49 }
  0x48   : > { %656 = vmatprep.subr.bf16.mxu0 %v955_v50 }
  0x4b   : > { %657 = vmatpush2.bf16.msra.mxu0 %v957_v51 }
  0x4c   : > { %658 = vmatprep.subr.bf16.mxu0 %v958_v52 }
  0x4f   : > { %659 = vmatpush2.bf16.msra.mxu0 %v960_v53 }
  0x50   : > { %660 = vmatprep.subr.bf16.mxu0 %v961_v54 }
  0x53   : > { %661 = vmatpush2.bf16.msra.mxu0 %v963_v55 }
  0x54   : > { %662 = vmatprep.subr.bf16.mxu0 %v964_v56 }
  0x57   : > { %663 = vmatpush2.bf16.msra.mxu0 %v966_v57 }
  0x58   : > { %664 = vmatprep.subr.bf16.mxu0 %v967_v58 }
  0x5b   : > { %665 = vmatpush2.bf16.msra.mxu0 %v969_v59 }
  0x5c   : > { %666 = vmatprep.subr.bf16.mxu0 %v970_v60 }
  0x5f   : > { %667 = vmatpush2.bf16.msra.mxu0 %v972_v61 }
  0x60   : > { %668 = vmatprep.subr.bf16.mxu0 %v973_v62 }
  0x63   : > { %669 = vmatpush2.bf16.msra.mxu0 %v975_v63 }
  0x64   : > { %670 = vmatprep.subr.bf16.mxu0 %v976_v0 }
  0x67   : > { %671 = vmatpush2.bf16.msra.mxu0 %v978_v1 }
  0x6a   : > { %673 = vmatmul.mubr.bf16.vlgmr.msra.gmra.mxu0 %v852_v2 }
 0x12a   : > { %v674_v11 = vpop.f32.mrf.mxu0 }
 0x12b   : > { %v693_v12 = vmul.f32 %v686_v8, %v674_v11 }
 0x12c   : > { %v676_v15 = vpop.f32.mrf.mxu0 }
 0x12d   : > { %v694_v16 = vmul.f32 %v690_v10, %v676_v15  ;;  %v707_v18 = vadd.f32 %v700_v13, %v693_v12 }
 0x12e   : > { %v678_v17 = vpop.f32.mrf.mxu0 }
 0x12f   : > { %v708_v19 = vadd.f32 %v704_v14, %v694_v16 }
 0x130   : > { %v679_v20 = vpop.f32.mrf.mxu0 }
 0x131   : > { %v890_v21 = vpack.c.bf16 %v708_v19, %v707_v18 }
 0x133   : > { %717 = vst [vmem:[%s438_s25] sm:$0xff] %v890_v21 }
 0x134 PF: > { %s14_s19 = sadd.s32 1, %s1019_s19   ;;  %s1233_s15 = smov %s1007_s16 }
 0x135   : > { %p11_p10 = scmp.ge.s32.totalorder %s14_s19, 4   ;;  %s1234_s16 = smov %s1081_s23 }
 0x136   : > { %s1235_s17 = smov %s1015_s18  ;;  %s1236_s18 = smov %s1238_s20 }
 0x137   :  { %13 = sbr.rel (!%p11_p10) target bundleno = 3 (0x3), region = 118 }

// kernel: student_net_resp_forward.41
= control target key start
LH: loop header
LB: loop body
LE: loop exit
PB: predicated region body
PF: predicated region fallthrough
CT: control target
= control target key end

     0   :  { %s1692_s18 = smov 0   ;;  %s1694_s19 = smov 0   ;;  %s2018_s0 = inlined_call_operand.vmem [shape: bf16[8,4608], index: 0, kind: input, shape index: {}]   ;;  %s2019_s1 = inlined_call_operand.vmem [shape: bf16[4608,512], index: 1, kind: input, shape index: {}]   ;;  %s2020_s2 = inlined_call_operand.vmem [shape: f32[1,512], index: 2, kind: input, shape index: {}]   ;;  %s2021_s3 = inlined_call_operand.vmem [shape: f32[1,512], index: 3, kind: input, shape index: {}]   ;;  %s2022_s4 = inlined_call_operand.vmem [shape: bf16[8,512], index: 4, kind: input, shape index: {}]   ;;  %s2023_s5 = inlined_call_operand.vmem [shape: bf16[8,512], index: 5, kind: output, shape index: {}]  }
   0x1   :  { %s1696_s20 = smov 0   ;;  %s1698_s21 = smov 0  }
   0x2   :  { %s1700_s22 = smov 0   ;;  %s1702_s23 = smov 0  }
   0x3   :  { %s1704_s24 = smov 0  }
   0x4 LB: > { %s27_s25 = sadd.s32 1, %s1651_s22  ;;  %s30_s26 = sadd.s32 1, %s1655_s23  ;;  %s1659_s24 = sphi %s1704_s24, %s15_s24   ;;  %s1655_s23 = sphi %s1702_s23, %s2029_s23   ;;  %s1651_s22 = sphi %s1700_s22, %s2028_s22   ;;  %s1647_s21 = sphi %s1698_s21, %s2027_s21   ;;  %s1643_s20 = sphi %s1696_s20, %s2026_s20   ;;  %s1639_s19 = sphi %s1694_s19, %s2025_s19   ;;  %s1635_s18 = sphi %s1692_s18, %s2024_s18  }
   0x5   : > { %p28_p0 = scmp.ge.s32.totalorder %s27_s25, 9  ;;  %p78_p1 = scmp.ne.s32.totalorder %s1639_s19, %s1635_s18 }
   0x6   : > { %p79_p2 = scmp.eq.s32.totalorder %s1659_s24, 0  ;;  %s71_s30 = sadd.s32 1, %s1639_s19 }
   0x7   : > { %s2031_s25 = smov (%p28_p0, %s27_s25), 0  ;;  %s2033_s26 = smov (!%p28_p0, %s30_s26), %s1655_s23 }
   0x8   : > { %p80_p3 = por %p79_p2, %p78_p1  ;;  %p32_p4 = scmp.ge.s32.totalorder %s2033_s26, 2 }
   0x9   : > { %s66_s27 = ssub.s32 %s1651_s22, %s2031_s25  ;;  %p1357_p6 = scmp.ge.s32.totalorder %s1659_s24, 18 }
   0xa   : > { %s2035_s26 = smov (%p32_p4, %s2033_s26), 0 }
   0xb   : > { %s67_s28 = ssub.s32 %s1655_s23, %s2035_s26  ;;  %212 = sbr.rel (%p1357_p6) target bundleno = 55 (0x37), region = 16 }
   0xc   : > { %s68_s29 = sor.u32 %s67_s28, %s66_s27 }
   0xd   : > { %p69_p5 = scmp.eq.s32.totalorder %s68_s29, 0 }
   0xf   : > { %s1743_s6 = scalar_select %p69_p5, %s1639_s19, %s71_s30  }
  0x10   : > { %228 = sbr.rel (!%p80_p3) target bundleno = 55 (0x37), region = 24  ;;  %s230_s7 = sand.u32 (%p80_p3), 1, %s1639_s19  }
  0x11   : > { %s1360_s8 = sshll.u32 (%p80_p3), %s1655_s23, 1  ;;  %s1358_s9 = sshll.u32 (%p80_p3), %s230_s7, 9 }
  0x12   : > { %s1446_s10 = sshll.u32 (%p80_p3), %s1651_s22, 8  ;;  %s1757_s16 = scalar_lea.vmem (%p80_p3), [#allocation3], %s1358_s9 }
  0x13   : > { %s236_s11 = sadd.s32 (%p80_p3), %s1446_s10, %s1360_s8 }
  0x14   : > { %s1362_s12 = sshll.u32 (%p80_p3), %s236_s11, 2 }
  0x15   : > { %s1752_s15 = scalar_lea.vmem %s2019_s1, %s1362_s12 }
  0x16   : > { %v393_v0 = vld [vmem:[%s1752_s15] sm:$0xff]  ;;  %v395_v1 = vld [vmem:[%s1752_s15 + $0x10] sm:$0xff] }
  0x17   : > { %v397_v2 = vld [vmem:[%s1752_s15 + $0x20] sm:$0xff]  ;;  %394 = vst [vmem:[%s1757_s16] sm:$0xff] %v393_v0  ;;  %396 = vst [vmem:[%s1757_s16 + $0x8] sm:$0xff] %v395_v1  ;;  %v399_v3 = vld [vmem:[%s1752_s15 + $0x30] sm:$0xff] }
  0x18   : > { %398 = vst [vmem:[%s1757_s16 + $0x10] sm:$0xff] %v397_v2  ;;  %v401_v4 = vld [vmem:[%s1752_s15 + $0x40] sm:$0xff]  ;;  %v403_v5 = vld [vmem:[%s1752_s15 + $0x50] sm:$0xff]  ;;  %400 = vst [vmem:[%s1757_s16 + $0x18] sm:$0xff] %v399_v3 }
  0x19   : > { %402 = vst [vmem:[%s1757_s16 + $0x20] sm:$0xff] %v401_v4  ;;  %404 = vst [vmem:[%s1757_s16 + $0x28] sm:$0xff] %v403_v5  ;;  %v405_v6 = vld [vmem:[%s1752_s15 + $0x60] sm:$0xff]  ;;  %v407_v7 = vld [vmem:[%s1752_s15 + $0x70] sm:$0xff] }
  0x1a   : > { %v409_v8 = vld [vmem:[%s1752_s15 + $0x80] sm:$0xff]  ;;  %406 = vst [vmem:[%s1757_s16 + $0x30] sm:$0xff] %v405_v6  ;;  %408 = vst [vmem:[%s1757_s16 + $0x38] sm:$0xff] %v407_v7  ;;  %v411_v9 = vld [vmem:[%s1752_s15 + $0x90] sm:$0xff] }
  0x1b   : > { %410 = vst [vmem:[%s1757_s16 + $0x40] sm:$0xff] %v409_v8  ;;  %v413_v10 = vld [vmem:[%s1752_s15 + $0xa0] sm:$0xff]  ;;  %v415_v11 = vld [vmem:[%s1752_s15 + $0xb0] sm:$0xff]  ;;  %412 = vst [vmem:[%s1757_s16 + $0x48] sm:$0xff] %v411_v9 }
  0x1c   : > { %414 = vst [vmem:[%s1757_s16 + $0x50] sm:$0xff] %v413_v10  ;;  %416 = vst [vmem:[%s1757_s16 + $0x58] sm:$0xff] %v415_v11  ;;  %v417_v12 = vld [vmem:[%s1752_s15 + $0xc0] sm:$0xff]  ;;  %v419_v13 = vld [vmem:[%s1752_s15 + $0xd0] sm:$0xff] }
  0x1d   : > { %v421_v14 = vld [vmem:[%s1752_s15 + $0xe0] sm:$0xff]  ;;  %418 = vst [vmem:[%s1757_s16 + $0x60] sm:$0xff] %v417_v12  ;;  %420 = vst [vmem:[%s1757_s16 + $0x68] sm:$0xff] %v419_v13  ;;  %v423_v15 = vld [vmem:[%s1752_s15 + $0xf0] sm:$0xff] }
  0x1e   : > { %422 = vst [vmem:[%s1757_s16 + $0x70] sm:$0xff] %v421_v14  ;;  %v425_v16 = vld [vmem:[%s1752_s15 + $0x100] sm:$0xff]  ;;  %v427_v17 = vld [vmem:[%s1752_s15 + $0x110] sm:$0xff]  ;;  %424 = vst [vmem:[%s1757_s16 + $0x78] sm:$0xff] %v423_v15 }
  0x1f   : > { %426 = vst [vmem:[%s1757_s16 + $0x80] sm:$0xff] %v425_v16  ;;  %428 = vst [vmem:[%s1757_s16 + $0x88] sm:$0xff] %v427_v17  ;;  %v429_v18 = vld [vmem:[%s1752_s15 + $0x120] sm:$0xff]  ;;  %v431_v19 = vld [vmem:[%s1752_s15 + $0x130] sm:$0xff] }
  0x20   : > { %v433_v20 = vld [vmem:[%s1752_s15 + $0x140] sm:$0xff]  ;;  %430 = vst [vmem:[%s1757_s16 + $0x90] sm:$0xff] %v429_v18  ;;  %432 = vst [vmem:[%s1757_s16 + $0x98] sm:$0xff] %v431_v19  ;;  %v435_v21 = vld [vmem:[%s1752_s15 + $0x150] sm:$0xff] }
  0x21   : > { %434 = vst [vmem:[%s1757_s16 + $0xa0] sm:$0xff] %v433_v20  ;;  %v437_v22 = vld [vmem:[%s1752_s15 + $0x160] sm:$0xff]  ;;  %v439_v23 = vld [vmem:[%s1752_s15 + $0x170] sm:$0xff]  ;;  %436 = vst [vmem:[%s1757_s16 + $0xa8] sm:$0xff] %v435_v21 }
  0x22   : > { %438 = vst [vmem:[%s1757_s16 + $0xb0] sm:$0xff] %v437_v22  ;;  %440 = vst [vmem:[%s1757_s16 + $0xb8] sm:$0xff] %v439_v23  ;;  %v441_v24 = vld [vmem:[%s1752_s15 + $0x180] sm:$0xff]  ;;  %v443_v25 = vld [vmem:[%s1752_s15 + $0x190] sm:$0xff] }
  0x23   : > { %v445_v26 = vld [vmem:[%s1752_s15 + $0x1a0] sm:$0xff]  ;;  %442 = vst [vmem:[%s1757_s16 + $0xc0] sm:$0xff] %v441_v24  ;;  %444 = vst [vmem:[%s1757_s16 + $0xc8] sm:$0xff] %v443_v25  ;;  %v447_v27 = vld [vmem:[%s1752_s15 + $0x1b0] sm:$0xff] }
  0x24   : > { %446 = vst [vmem:[%s1757_s16 + $0xd0] sm:$0xff] %v445_v26  ;;  %v449_v28 = vld [vmem:[%s1752_s15 + $0x1c0] sm:$0xff]  ;;  %v451_v29 = vld [vmem:[%s1752_s15 + $0x1d0] sm:$0xff]  ;;  %448 = vst [vmem:[%s1757_s16 + $0xd8] sm:$0xff] %v447_v27 }
  0x25   : > { %450 = vst [vmem:[%s1757_s16 + $0xe0] sm:$0xff] %v449_v28  ;;  %452 = vst [vmem:[%s1757_s16 + $0xe8] sm:$0xff] %v451_v29  ;;  %v453_v30 = vld [vmem:[%s1752_s15 + $0x1e0] sm:$0xff]  ;;  %v455_v31 = vld [vmem:[%s1752_s15 + $0x1f0] sm:$0xff] }
  0x26   : > { %v457_v32 = vld [vmem:[%s1752_s15 + $0x200] sm:$0xff]  ;;  %454 = vst [vmem:[%s1757_s16 + $0xf0] sm:$0xff] %v453_v30  ;;  %456 = vst [vmem:[%s1757_s16 + $0xf8] sm:$0xff] %v455_v31  ;;  %v459_v33 = vld [vmem:[%s1752_s15 + $0x210] sm:$0xff] }
  0x27   : > { %458 = vst [vmem:[%s1757_s16 + $0x100] sm:$0xff] %v457_v32  ;;  %v461_v34 = vld [vmem:[%s1752_s15 + $0x220] sm:$0xff]  ;;  %v463_v35 = vld [vmem:[%s1752_s15 + $0x230] sm:$0xff]  ;;  %460 = vst [vmem:[%s1757_s16 + $0x108] sm:$0xff] %v459_v33 }
  0x28   : > { %462 = vst [vmem:[%s1757_s16 + $0x110] sm:$0xff] %v461_v34  ;;  %464 = vst [vmem:[%s1757_s16 + $0x118] sm:$0xff] %v463_v35  ;;  %v465_v36 = vld [vmem:[%s1752_s15 + $0x240] sm:$0xff]  ;;  %v467_v37 = vld [vmem:[%s1752_s15 + $0x250] sm:$0xff] }
  0x29   : > { %v469_v38 = vld [vmem:[%s1752_s15 + $0x260] sm:$0xff]  ;;  %466 = vst [vmem:[%s1757_s16 + $0x120] sm:$0xff] %v465_v36  ;;  %468 = vst [vmem:[%s1757_s16 + $0x128] sm:$0xff] %v467_v37  ;;  %v471_v39 = vld [vmem:[%s1752_s15 + $0x270] sm:$0xff] }
  0x2a   : > { %470 = vst [vmem:[%s1757_s16 + $0x130] sm:$0xff] %v469_v38  ;;  %v473_v40 = vld [vmem:[%s1752_s15 + $0x280] sm:$0xff]  ;;  %v475_v41 = vld [vmem:[%s1752_s15 + $0x290] sm:$0xff]  ;;  %472 = vst [vmem:[%s1757_s16 + $0x138] sm:$0xff] %v471_v39 }
  0x2b   : > { %474 = vst [vmem:[%s1757_s16 + $0x140] sm:$0xff] %v473_v40  ;;  %476 = vst [vmem:[%s1757_s16 + $0x148] sm:$0xff] %v475_v41  ;;  %v477_v42 = vld [vmem:[%s1752_s15 + $0x2a0] sm:$0xff]  ;;  %v479_v43 = vld [vmem:[%s1752_s15 + $0x2b0] sm:$0xff] }
  0x2c   : > { %v481_v44 = vld [vmem:[%s1752_s15 + $0x2c0] sm:$0xff]  ;;  %478 = vst [vmem:[%s1757_s16 + $0x150] sm:$0xff] %v477_v42  ;;  %480 = vst [vmem:[%s1757_s16 + $0x158] sm:$0xff] %v479_v43  ;;  %v483_v45 = vld [vmem:[%s1752_s15 + $0x2d0] sm:$0xff] }
  0x2d   : > { %482 = vst [vmem:[%s1757_s16 + $0x160] sm:$0xff] %v481_v44  ;;  %v485_v46 = vld [vmem:[%s1752_s15 + $0x2e0] sm:$0xff]  ;;  %v487_v47 = vld [vmem:[%s1752_s15 + $0x2f0] sm:$0xff]  ;;  %484 = vst [vmem:[%s1757_s16 + $0x168] sm:$0xff] %v483_v45 }
  0x2e   : > { %486 = vst [vmem:[%s1757_s16 + $0x170] sm:$0xff] %v485_v46  ;;  %488 = vst [vmem:[%s1757_s16 + $0x178] sm:$0xff] %v487_v47  ;;  %v489_v48 = vld [vmem:[%s1752_s15 + $0x300] sm:$0xff]  ;;  %v491_v49 = vld [vmem:[%s1752_s15 + $0x310] sm:$0xff] }
  0x2f   : > { %v493_v50 = vld [vmem:[%s1752_s15 + $0x320] sm:$0xff]  ;;  %490 = vst [vmem:[%s1757_s16 + $0x180] sm:$0xff] %v489_v48  ;;  %492 = vst [vmem:[%s1757_s16 + $0x188] sm:$0xff] %v491_v49  ;;  %v495_v51 = vld [vmem:[%s1752_s15 + $0x330] sm:$0xff] }
  0x30   : > { %494 = vst [vmem:[%s1757_s16 + $0x190] sm:$0xff] %v493_v50  ;;  %v497_v52 = vld [vmem:[%s1752_s15 + $0x340] sm:$0xff]  ;;  %v499_v53 = vld [vmem:[%s1752_s15 + $0x350] sm:$0xff]  ;;  %496 = vst [vmem:[%s1757_s16 + $0x198] sm:$0xff] %v495_v51 }
  0x31   : > { %498 = vst [vmem:[%s1757_s16 + $0x1a0] sm:$0xff] %v497_v52  ;;  %500 = vst [vmem:[%s1757_s16 + $0x1a8] sm:$0xff] %v499_v53  ;;  %v501_v54 = vld [vmem:[%s1752_s15 + $0x360] sm:$0xff]  ;;  %v503_v55 = vld [vmem:[%s1752_s15 + $0x370] sm:$0xff] }
  0x32   : > { %v505_v56 = vld [vmem:[%s1752_s15 + $0x380] sm:$0xff]  ;;  %502 = vst [vmem:[%s1757_s16 + $0x1b0] sm:$0xff] %v501_v54  ;;  %504 = vst [vmem:[%s1757_s16 + $0x1b8] sm:$0xff] %v503_v55  ;;  %v507_v57 = vld [vmem:[%s1752_s15 + $0x390] sm:$0xff] }
  0x33   : > { %506 = vst [vmem:[%s1757_s16 + $0x1c0] sm:$0xff] %v505_v56  ;;  %v509_v58 = vld [vmem:[%s1752_s15 + $0x3a0] sm:$0xff]  ;;  %v511_v59 = vld [vmem:[%s1752_s15 + $0x3b0] sm:$0xff]  ;;  %508 = vst [vmem:[%s1757_s16 + $0x1c8] sm:$0xff] %v507_v57 }
  0x34   : > { %510 = vst [vmem:[%s1757_s16 + $0x1d0] sm:$0xff] %v509_v58  ;;  %512 = vst [vmem:[%s1757_s16 + $0x1d8] sm:$0xff] %v511_v59  ;;  %v513_v60 = vld [vmem:[%s1752_s15 + $0x3c0] sm:$0xff]  ;;  %v515_v61 = vld [vmem:[%s1752_s15 + $0x3d0] sm:$0xff] }
  0x35   : > { %v517_v62 = vld [vmem:[%s1752_s15 + $0x3e0] sm:$0xff]  ;;  %514 = vst [vmem:[%s1757_s16 + $0x1e0] sm:$0xff] %v513_v60  ;;  %516 = vst [vmem:[%s1757_s16 + $0x1e8] sm:$0xff] %v515_v61  ;;  %v519_v63 = vld [vmem:[%s1752_s15 + $0x3f0] sm:$0xff] }
  0x36   : > { %518 = vst [vmem:[%s1757_s16 + $0x1f0] sm:$0xff] %v517_v62  ;;  %520 = vst [vmem:[%s1757_s16 + $0x1f8] sm:$0xff] %v519_v63 }
  0x37 PF: > { %p1363_p7 = scmp.ge.s32.totalorder %s1659_s24, 1  ;;  %p554_p8 = scmp.lt.s32.totalorder %s1659_s24, 19 }
  0x39   : > { %p555_p9 = pnand %p1363_p7, %p554_p8 }
  0x3a   : > { %s561_s17 = sand.u32 (!%p555_p9), 1, %s1635_s18   ;;  %s1365_s27 = sshll.u32 (!%p555_p9), %s1643_s20, 2 }
  0x3b   : > { %558 = sbr.rel (%p555_p9) target bundleno = 359 (0x167), region = 74  ;;  %s1364_s28 = sshll.u32 (!%p555_p9), %s561_s17, 9 }
  0x3c   : > { %p621_p10 = scmp.lt.s32.totalorder (!%p555_p9), %s1365_s27, 35  ;;  %s1367_s29 = sshll.u32 (!%p555_p9), %s1647_s21, 1 }
  0x3d   : > { %p631_p11 = scmp.lt.s32.totalorder (!%p555_p9), %s1367_s29, 3  ;;  %s1915_s8 = scalar_lea.vmem (!%p555_p9), [#allocation3], %s1364_s28 }
  0x3e   : > { %p1373_p12 = scmp.ne.s32.totalorder (!%p555_p9), %s1643_s20, 0 }
  0x40   : > { %s2037_s27 = smov (!%p621_p10, %s1365_s27), 35  ;;  %s2039_s29 = smov (!%p631_p11, %s1367_s29), 3 }
  0x41   : > { %s1366_s30 = sshll.u32 %s2037_s27, 2  ;;  %s633_s18 = scalar_lea.vmem %s2020_s2, %s2039_s29 }
  0x42   : > { %s1892_s9 = scalar_lea.vmem %s2018_s0, %s1366_s30  ;;  %s638_s21 = scalar_lea.vmem %s2021_s3, %s2039_s29 }
  0x43   : > { %s1370_s14 = sshll.u32 %s2039_s29, 2  ;;  %663 = sbr.rel (%p1373_p12) target bundleno = 74 (0x4a), region = 82 }
  0x44   : > { %s1908_s17 = scalar_lea.vmem %s2022_s4, %s1370_s14  ;;  %s1913_s7 = scalar_lea.vmem %s2023_s5, %s1370_s14 }
  0x48   : > { %v1661_v0 = vmov 0.0  }
  0x49   : > { %664 = vst [vmem:[#allocation2] sm:$0xff] %v1661_v0  ;;  %665 = vst [vmem:[#allocation2 + $0x8] sm:$0xff] %v1661_v0 }
  0x4a PF: > { %v1505_v1 = vld [vmem:[%s1915_s8 + $0x74] ss:$8 sps:$4 sm:$0xff]   ;;  %v1509_v3 = vld [vmem:[%s1915_s8 + $0x70] ss:$8 sps:$4 sm:$0xff]   ;;  %v1511_v5 = vld [vmem:[%s1915_s8 + $0x64] ss:$8 sps:$4 sm:$0xff]  }
  0x4b   : > { %v1507_v2 = vld [vmem:[%s1915_s8 + $0x174] ss:$8 sps:$4 sm:$0xff]   ;;  %1068 = vmatprep.subr.bf16.mxu0 %v1505_v1  ;;  %v1510_v4 = vld [vmem:[%s1915_s8 + $0x170] ss:$8 sps:$4 sm:$0xff]   ;;  %v1513_v6 = vld [vmem:[%s1915_s8 + $0x164] ss:$8 sps:$4 sm:$0xff]  }
  0x4c   : > { %1109 = vmatprep.subr.bf16.mxu1 %v1507_v2  ;;  %1069 = vmatpush1.bf16.msra.mxu0 %v1509_v3  ;;  %v1515_v7 = vld [vmem:[%s1915_s8 + $0x60] ss:$8 sps:$4 sm:$0xff]   ;;  %v1517_v9 = vld [vmem:[%s1915_s8 + $0x54] ss:$8 sps:$4 sm:$0xff]   ;;  %v1521_v11 = vld [vmem:[%s1915_s8 + $0x50] ss:$8 sps:$4 sm:$0xff]  }
  0x4d   : > { %1110 = vmatpush1.bf16.msra.mxu1 %v1510_v4  ;;  %1070 = vmatprep.subr.bf16.mxu0 %v1511_v5  ;;  %v1516_v8 = vld [vmem:[%s1915_s8 + $0x160] ss:$8 sps:$4 sm:$0xff]   ;;  %v1519_v10 = vld [vmem:[%s1915_s8 + $0x154] ss:$8 sps:$4 sm:$0xff]   ;;  %v1522_v12 = vld [vmem:[%s1915_s8 + $0x150] ss:$8 sps:$4 sm:$0xff]  }
  0x4e   : > { %1111 = vmatprep.subr.bf16.mxu1 %v1513_v6  ;;  %v1523_v13 = vld [vmem:[%s1915_s8 + $0x44] ss:$8 sps:$4 sm:$0xff]   ;;  %v1527_v15 = vld [vmem:[%s1915_s8 + $0x40] ss:$8 sps:$4 sm:$0xff]   ;;  %v1529_v17 = vld [vmem:[%s1915_s8 + $0x34] ss:$8 sps:$4 sm:$0xff]  }
  0x4f   : > { %v1525_v14 = vld [vmem:[%s1915_s8 + $0x144] ss:$8 sps:$4 sm:$0xff]   ;;  %v1528_v16 = vld [vmem:[%s1915_s8 + $0x140] ss:$8 sps:$4 sm:$0xff]   ;;  %v1531_v18 = vld [vmem:[%s1915_s8 + $0x134] ss:$8 sps:$4 sm:$0xff]  }
  0x50   : > { %1071 = vmatpush1.bf16.msra.mxu0 %v1515_v7  ;;  %v1533_v19 = vld [vmem:[%s1915_s8 + $0x30] ss:$8 sps:$4 sm:$0xff]   ;;  %v1535_v21 = vld [vmem:[%s1915_s8 + $0x24] ss:$8 sps:$4 sm:$0xff]   ;;  %v1539_v23 = vld [vmem:[%s1915_s8 + $0x20] ss:$8 sps:$4 sm:$0xff]  }
  0x51   : > { %1112 = vmatpush1.bf16.msra.mxu1 %v1516_v8  ;;  %1072 = vmatprep.subr.bf16.mxu0 %v1517_v9  ;;  %v1534_v20 = vld [vmem:[%s1915_s8 + $0x130] ss:$8 sps:$4 sm:$0xff]   ;;  %v1537_v22 = vld [vmem:[%s1915_s8 + $0x124] ss:$8 sps:$4 sm:$0xff]   ;;  %v1540_v24 = vld [vmem:[%s1915_s8 + $0x120] ss:$8 sps:$4 sm:$0xff]  }
  0x52   : > { %1113 = vmatprep.subr.bf16.mxu1 %v1519_v10  ;;  %v1541_v25 = vld [vmem:[%s1915_s8 + $0x14] ss:$8 sps:$4 sm:$0xff]   ;;  %v1545_v27 = vld [vmem:[%s1915_s8 + $0x10] ss:$8 sps:$4 sm:$0xff]   ;;  %v1547_v29 = vld [vmem:[%s1915_s8 + $0x4] ss:$8 sps:$4 sm:$0xff]  }
  0x53   : > { %v1543_v26 = vld [vmem:[%s1915_s8 + $0x114] ss:$8 sps:$4 sm:$0xff]   ;;  %v1546_v28 = vld [vmem:[%s1915_s8 + $0x110] ss:$8 sps:$4 sm:$0xff]   ;;  %v1549_v30 = vld [vmem:[%s1915_s8 + $0x104] ss:$8 sps:$4 sm:$0xff]  }
  0x54   : > { %1073 = vmatpush1.bf16.msra.mxu0 %v1521_v11  ;;  %v1551_v31 = vld [vmem:[%s1915_s8] ss:$8 sps:$4 sm:$0xff]   ;;  %v1553_v33 = vld [vmem:[%s1915_s8 + $0xf4] ss:$8 sps:$4 sm:$0xff]   ;;  %v1557_v35 = vld [vmem:[%s1915_s8 + $0xf0] ss:$8 sps:$4 sm:$0xff]  }
  0x55   : > { %1114 = vmatpush1.bf16.msra.mxu1 %v1522_v12  ;;  %1074 = vmatprep.subr.bf16.mxu0 %v1523_v13  ;;  %v1552_v32 = vld [vmem:[%s1915_s8 + $0x100] ss:$8 sps:$4 sm:$0xff]   ;;  %v1555_v34 = vld [vmem:[%s1915_s8 + $0x1f4] ss:$8 sps:$4 sm:$0xff]   ;;  %v1558_v36 = vld [vmem:[%s1915_s8 + $0x1f0] ss:$8 sps:$4 sm:$0xff]  }
  0x56   : > { %1115 = vmatprep.subr.bf16.mxu1 %v1525_v14  ;;  %v1559_v37 = vld [vmem:[%s1915_s8 + $0xe4] ss:$8 sps:$4 sm:$0xff]   ;;  %v1563_v39 = vld [vmem:[%s1915_s8 + $0xe0] ss:$8 sps:$4 sm:$0xff]   ;;  %v1565_v41 = vld [vmem:[%s1915_s8 + $0xd4] ss:$8 sps:$4 sm:$0xff]  }
  0x57   : > { %v1561_v38 = vld [vmem:[%s1915_s8 + $0x1e4] ss:$8 sps:$4 sm:$0xff]   ;;  %v1564_v40 = vld [vmem:[%s1915_s8 + $0x1e0] ss:$8 sps:$4 sm:$0xff]   ;;  %v1567_v42 = vld [vmem:[%s1915_s8 + $0x1d4] ss:$8 sps:$4 sm:$0xff]  }
  0x58   : > { %1075 = vmatpush1.bf16.msra.mxu0 %v1527_v15  ;;  %v1569_v43 = vld [vmem:[%s1915_s8 + $0xd0] ss:$8 sps:$4 sm:$0xff]   ;;  %v1571_v45 = vld [vmem:[%s1915_s8 + $0xc4] ss:$8 sps:$4 sm:$0xff]   ;;  %v1575_v50 = vld [vmem:[%s1915_s8 + $0xc0] ss:$8 sps:$4 sm:$0xff]  }
  0x59   : > { %1116 = vmatpush1.bf16.msra.mxu1 %v1528_v16  ;;  %1076 = vmatprep.subr.bf16.mxu0 %v1529_v17  ;;  %v1570_v44 = vld [vmem:[%s1915_s8 + $0x1d0] ss:$8 sps:$4 sm:$0xff]   ;;  %v1573_v46 = vld [vmem:[%s1915_s8 + $0x1c4] ss:$8 sps:$4 sm:$0xff]   ;;  %v1576_v51 = vld [vmem:[%s1915_s8 + $0x1c0] ss:$8 sps:$4 sm:$0xff]  }
  0x5a   : > { %1117 = vmatprep.subr.bf16.mxu1 %v1531_v18  ;;  %v668_v47 = vld [vmem:[%s1892_s9] sm:$0xff]  ;;  %v669_v49 = vld [vmem:[%s1892_s9 + $0x8] sm:$0xff]  ;;  %v1583_v57 = vld [vmem:[%s1915_s8 + $0xa4] ss:$8 sps:$4 sm:$0xff]   ;;  %p1442_p13 = scmp.ne.s32.totalorder %s1643_s20, 8 }
  0x5b   : > { %v1375_v48 = vcombine.high %v668_v47, %v668_v47  ;;  %v1377_v52 = vcombine.high %v669_v49, %v669_v49  ;;  %v1577_v53 = vld [vmem:[%s1915_s8 + $0xb4] ss:$8 sps:$4 sm:$0xff]   ;;  %v1581_v55 = vld [vmem:[%s1915_s8 + $0xb0] ss:$8 sps:$4 sm:$0xff]   ;;  %v1585_v58 = vld [vmem:[%s1915_s8 + $0x1a4] ss:$8 sps:$4 sm:$0xff]   ;;  %v1374_v5 = vcombine.low %v668_v47, %v668_v47  ;;  %v1376_v6 = vcombine.low %v669_v49, %v669_v49 }
  0x5c   : > { %1077 = vmatpush1.bf16.msra.mxu0 %v1533_v19  ;;  %v1579_v54 = vld [vmem:[%s1915_s8 + $0x1b4] ss:$8 sps:$4 sm:$0xff]   ;;  %v1582_v56 = vld [vmem:[%s1915_s8 + $0x1b0] ss:$8 sps:$4 sm:$0xff]   ;;  %v1587_v59 = vld [vmem:[%s1915_s8 + $0xa0] ss:$8 sps:$4 sm:$0xff]  }
  0x5d   : > { %1118 = vmatpush1.bf16.msra.mxu1 %v1534_v20  ;;  %1078 = vmatprep.subr.bf16.mxu0 %v1535_v21  ;;  %v1588_v60 = vld [vmem:[%s1915_s8 + $0x1a0] ss:$8 sps:$4 sm:$0xff]   ;;  %v1589_v61 = vld [vmem:[%s1915_s8 + $0x94] ss:$8 sps:$4 sm:$0xff]   ;;  %v1593_v63 = vld [vmem:[%s1915_s8 + $0x90] ss:$8 sps:$4 sm:$0xff]  }
  0x5e   : > { %1119 = vmatprep.subr.bf16.mxu1 %v1537_v22  ;;  %1100 = vmatprep.mubr.bf16.mxu0 %v1375_v48  ;;  %v1591_v62 = vld [vmem:[%s1915_s8 + $0x194] ss:$8 sps:$4 sm:$0xff]   ;;  %v1594_v0 = vld [vmem:[%s1915_s8 + $0x190] ss:$8 sps:$4 sm:$0xff]   ;;  %v1595_v1 = vld [vmem:[%s1915_s8 + $0x84] ss:$8 sps:$4 sm:$0xff]  }
  0x5f   : > { %1141 = vmatprep.mubr.bf16.mxu1 %v1377_v52  ;;  %v1597_v2 = vld [vmem:[%s1915_s8 + $0x184] ss:$8 sps:$4 sm:$0xff]   ;;  %v1599_v3 = vld [vmem:[%s1915_s8 + $0x80] ss:$8 sps:$4 sm:$0xff]   ;;  %v666_v8 = vld [vmem:[#allocation2] sm:$0xff] }
  0x60   : > { %1079 = vmatpush1.bf16.msra.mxu0 %v1539_v23  ;;  %v1600_v4 = vld [vmem:[%s1915_s8 + $0x180] ss:$8 sps:$4 sm:$0xff]   ;;  %v667_v12 = vld [vmem:[#allocation2 + $0x8] sm:$0xff] }
  0x61   : > { %1120 = vmatpush1.bf16.msra.mxu1 %v1540_v24  ;;  %1080 = vmatprep.subr.bf16.mxu0 %v1541_v25 }
  0x62   : > { %1121 = vmatprep.subr.bf16.mxu1 %v1543_v26 }
  0x64   : > { %1081 = vmatpush1.bf16.msra.mxu0 %v1545_v27 }
  0x65   : > { %1122 = vmatpush1.bf16.msra.mxu1 %v1546_v28  ;;  %1082 = vmatprep.subr.bf16.mxu0 %v1547_v29 }
  0x66   : > { %1123 = vmatprep.subr.bf16.mxu1 %v1549_v30 }
  0x68   : > { %1083 = vmatpush1.bf16.msra.mxu0 %v1551_v31 }
  0x69   : > { %1124 = vmatpush1.bf16.msra.mxu1 %v1552_v32  ;;  %1084 = vmatprep.subr.bf16.mxu0 %v1553_v33 }
  0x6a   : > { %1125 = vmatprep.subr.bf16.mxu1 %v1555_v34 }
  0x6c   : > { %1085 = vmatpush2.bf16.msra.mxu0 %v1557_v35 }
  0x6d   : > { %1126 = vmatpush2.bf16.msra.mxu1 %v1558_v36  ;;  %1086 = vmatprep.subr.bf16.mxu0 %v1559_v37 }
  0x6e   : > { %1127 = vmatprep.subr.bf16.mxu1 %v1561_v38 }
  0x70   : > { %1087 = vmatpush2.bf16.msra.mxu0 %v1563_v39 }
  0x71   : > { %1128 = vmatpush2.bf16.msra.mxu1 %v1564_v40  ;;  %1088 = vmatprep.subr.bf16.mxu0 %v1565_v41 }
  0x72   : > { %1129 = vmatprep.subr.bf16.mxu1 %v1567_v42 }
  0x74   : > { %1089 = vmatpush2.bf16.msra.mxu0 %v1569_v43 }
  0x75   : > { %1130 = vmatpush2.bf16.msra.mxu1 %v1570_v44  ;;  %1090 = vmatprep.subr.bf16.mxu0 %v1571_v45 }
  0x76   : > { %1131 = vmatprep.subr.bf16.mxu1 %v1573_v46 }
  0x78   : > { %1091 = vmatpush2.bf16.msra.mxu0 %v1575_v50 }
  0x79   : > { %1132 = vmatpush2.bf16.msra.mxu1 %v1576_v51  ;;  %1092 = vmatprep.subr.bf16.mxu0 %v1577_v53 }
  0x7a   : > { %1133 = vmatprep.subr.bf16.mxu1 %v1579_v54 }
  0x7c   : > { %1093 = vmatpush2.bf16.msra.mxu0 %v1581_v55 }
  0x7d   : > { %1134 = vmatpush2.bf16.msra.mxu1 %v1582_v56  ;;  %1094 = vmatprep.subr.bf16.mxu0 %v1583_v57 }
  0x7e   : > { %1135 = vmatprep.subr.bf16.mxu1 %v1585_v58 }
  0x80   : > { %1095 = vmatpush2.bf16.msra.mxu0 %v1587_v59 }
  0x81   : > { %1136 = vmatpush2.bf16.msra.mxu1 %v1588_v60  ;;  %1096 = vmatprep.subr.bf16.mxu0 %v1589_v61 }
  0x82   : > { %1137 = vmatprep.subr.bf16.mxu1 %v1591_v62 }
  0x84   : > { %1097 = vmatpush2.bf16.msra.mxu0 %v1593_v63 }
  0x85   : > { %1138 = vmatpush2.bf16.msra.mxu1 %v1594_v0  ;;  %1098 = vmatprep.subr.bf16.mxu0 %v1595_v1 }
  0x86   : > { %1139 = vmatprep.subr.bf16.mxu1 %v1597_v2 }
  0x88   : > { %1099 = vmatpush2.bf16.msra.mxu0 %v1599_v3 }
  0x89   : > { %1140 = vmatpush2.bf16.msra.mxu1 %v1600_v4 }
  0x8b   : > { %1101 = vmatmul.mubr.bf16.vlgmr.msra.gmra.mxu0 %v1374_v5 }
  0x8c   : > { %1142 = vmatmul.mubr.bf16.vlgmr.msra.gmra.mxu1 %v1376_v6 }
 0x14b   : > { %v1102_v7 = vpop.f32.mrf.mxu0 }
 0x14c   : > { %v1143_v9 = vpop.f32.mrf.mxu1 }
 0x14d   : > { %v1144_v10 = vadd.f32 %v1143_v9, %v1102_v7  ;;  %v1104_v11 = vpop.f32.mrf.mxu0 }
 0x14e   : > { %v1145_v13 = vpop.f32.mrf.mxu1 }
 0x14f   : > { %v1150_v14 = vadd.f32 %v1144_v10, %v666_v8  ;;  %v1146_v15 = vadd.f32 %v1145_v13, %v1104_v11  ;;  %v1106_v16 = vpop.f32.mrf.mxu0  ;;  %1157 = sbr.rel (%p1442_p13) target bundleno = 359 (0x167), region = 86 }
 0x150   : > { %v1147_v17 = vpop.f32.mrf.mxu1 }
 0x151   : > { %1152 = vst [vmem:[#allocation2] sm:$0xff] %v1150_v14  ;;  %v1151_v18 = vadd.f32 %v1146_v15, %v667_v12  ;;  %v1107_v19 = vpop.f32.mrf.mxu0 }
 0x152   : > { %v1148_v20 = vpop.f32.mrf.mxu1 }
 0x153   : > { %1153 = vst [vmem:[#allocation2 + $0x8] sm:$0xff] %v1151_v18 }
 0x154   : > { %v1162_v21 = vlaneseq  ;;  %v1160_v23 = vld [vmem:[%s633_s18] sm:$0x3] }
 0x155   : > { %v1174_v24 = vld [vmem:[%s638_s21] sm:$0x3] }
 0x156   : > { %v1163_v22 = vshrl.u32 %v1162_v21, 7  ;;  %v1188_v29 = vld [vmem:[%s1908_s17] sm:$0xff] }
 0x157   : > { %v1189_v36 = vunpack.c.l.bf16 %v1188_v29  ;;  %v1190_v37 = vunpack.c.h.bf16 %v1188_v29 }
 0x158   : > { %v1164_v25 = vsub.s32 0, %v1163_v22  ;;  %v1168_v26 = vsub.s32 1, %v1163_v22  ;;  %v1158_v27 = vld [vmem:[#allocation2] sm:$0xff] }
 0x15a   : > { %v1159_v28 = vld [vmem:[#allocation2 + $0x8] sm:$0xff]  ;;  %v1165_v30 = vrot.slane %v1160_v23, %v1164_v25  ;;  %v1169_v31 = vrot.slane %v1160_v23, %v1168_v26  ;;  %v1179_v32 = vrot.slane %v1174_v24, %v1164_v25  ;;  %v1183_v33 = vrot.slane %v1174_v24, %v1168_v26 }
 0x15c   : > { %v1172_v34 = vmul.f32 %v1165_v30, %v1158_v27  ;;  %v1173_v35 = vmul.f32 %v1169_v31, %v1159_v28 }
 0x15e   : > { %v1186_v38 = vadd.f32 %v1179_v32, %v1172_v34  ;;  %v1187_v39 = vadd.f32 %v1183_v33, %v1173_v35 }
 0x160   : > { %v1191_v40 = vadd.f32 %v1189_v36, %v1186_v38  ;;  %v1192_v41 = vadd.f32 %v1190_v37, %v1187_v39 }
 0x162   : > { %v1193_v42 = vmax.f32 %v1191_v40, 0.0  ;;  %v1194_v43 = vmax.f32 %v1192_v41, 0.0 }
 0x164   : > { %v1447_v44 = vpack.c.bf16 %v1194_v43, %v1193_v42 }
 0x166   : > { %1203 = vst [vmem:[%s1913_s7] sm:$0xff] %v1447_v44 }
 0x167 PF: > { %s15_s24 = sadd.s32 1, %s1659_s24   ;;  %s2024_s18 = smov %s1639_s19 }
 0x168   : > { %p12_p0 = scmp.ge.s32.totalorder %s15_s24, 20   ;;  %s2025_s19 = smov %s1743_s6 }
 0x169   : > { %s2026_s20 = smov %s1651_s22  ;;  %s2027_s21 = smov %s1655_s23 }
 0x16a   : > { %s2028_s22 = smov %s2031_s25  ;;  %s2029_s23 = smov %s2035_s26 }
 0x16b   :  { %14 = sbr.rel (!%p12_p0) target bundleno = 4 (0x4), region = 133 }

// kernel: student_net_resp_forward.42
= control target key start
LH: loop header
LB: loop body
LE: loop exit
PB: predicated region body
PF: predicated region fallthrough
CT: control target
= control target key end

     0   :  { %s1599_s15 = smov 0   ;;  %s1601_s16 = smov 0   ;;  %s1919_s0 = inlined_call_operand.vmem [shape: bf16[8,4608], index: 0, kind: input, shape index: {}]   ;;  %s1920_s1 = inlined_call_operand.vmem [shape: bf16[4608,512], index: 1, kind: input, shape index: {}]   ;;  %s1921_s2 = inlined_call_operand.vmem [shape: f32[1,512], index: 2, kind: input, shape index: {}]   ;;  %s1922_s3 = inlined_call_operand.vmem [shape: f32[1,512], index: 3, kind: input, shape index: {}]   ;;  %s1923_s4 = inlined_call_operand.vmem [shape: bf16[8,512], index: 4, kind: output, shape index: {}]  }
   0x1   :  { %s1603_s17 = smov 0   ;;  %s1605_s18 = smov 0  }
   0x2   :  { %s1607_s19 = smov 0   ;;  %s1609_s20 = smov 0  }
   0x3   :  { %s1611_s21 = smov 0  }
   0x4 LB: > { %s26_s22 = sadd.s32 1, %s1563_s19  ;;  %s29_s23 = sadd.s32 1, %s1567_s20  ;;  %s1571_s21 = sphi %s1611_s21, %s14_s21   ;;  %s1567_s20 = sphi %s1609_s20, %s1929_s20   ;;  %s1563_s19 = sphi %s1607_s19, %s1928_s19   ;;  %s1559_s18 = sphi %s1605_s18, %s1927_s18   ;;  %s1555_s17 = sphi %s1603_s17, %s1926_s17   ;;  %s1551_s16 = sphi %s1601_s16, %s1925_s16   ;;  %s1547_s15 = sphi %s1599_s15, %s1924_s15  }
   0x5   : > { %p27_p0 = scmp.ge.s32.totalorder %s26_s22, 9  ;;  %p77_p1 = scmp.ne.s32.totalorder %s1551_s16, %s1547_s15 }
   0x6   : > { %p78_p2 = scmp.eq.s32.totalorder %s1571_s21, 0  ;;  %s70_s27 = sadd.s32 1, %s1551_s16 }
   0x7   : > { %s1931_s22 = smov (%p27_p0, %s26_s22), 0  ;;  %s1933_s23 = smov (!%p27_p0, %s29_s23), %s1567_s20 }
   0x8   : > { %p79_p3 = por %p78_p2, %p77_p1  ;;  %p31_p4 = scmp.ge.s32.totalorder %s1933_s23, 2 }
   0x9   : > { %s65_s24 = ssub.s32 %s1563_s19, %s1931_s22  ;;  %p1271_p6 = scmp.ge.s32.totalorder %s1571_s21, 18 }
   0xa   : > { %s1935_s23 = smov (%p31_p4, %s1933_s23), 0 }
   0xb   : > { %s66_s25 = ssub.s32 %s1567_s20, %s1935_s23  ;;  %183 = sbr.rel (%p1271_p6) target bundleno = 55 (0x37), region = 16 }
   0xc   : > { %s67_s26 = sor.u32 %s66_s25, %s65_s24 }
   0xd   : > { %p68_p5 = scmp.eq.s32.totalorder %s67_s26, 0 }
   0xf   : > { %s1650_s28 = scalar_select %p68_p5, %s1551_s16, %s70_s27  }
  0x10   : > { %199 = sbr.rel (!%p79_p3) target bundleno = 55 (0x37), region = 24  ;;  %s201_s29 = sand.u32 (%p79_p3), 1, %s1551_s16  }
  0x11   : > { %s1274_s30 = sshll.u32 (%p79_p3), %s1567_s20, 1  ;;  %s1272_s5 = sshll.u32 (%p79_p3), %s201_s29, 9 }
  0x12   : > { %s1358_s6 = sshll.u32 (%p79_p3), %s1563_s19, 8  ;;  %s1664_s12 = scalar_lea.vmem (%p79_p3), [#allocation3], %s1272_s5 }
  0x13   : > { %s207_s7 = sadd.s32 (%p79_p3), %s1358_s6, %s1274_s30 }
  0x14   : > { %s1276_s8 = sshll.u32 (%p79_p3), %s207_s7, 2 }
  0x15   : > { %s1659_s11 = scalar_lea.vmem %s1920_s1, %s1276_s8 }
  0x16   : > { %v364_v0 = vld [vmem:[%s1659_s11] sm:$0xff]  ;;  %v366_v1 = vld [vmem:[%s1659_s11 + $0x10] sm:$0xff] }
  0x17   : > { %v368_v2 = vld [vmem:[%s1659_s11 + $0x20] sm:$0xff]  ;;  %365 = vst [vmem:[%s1664_s12] sm:$0xff] %v364_v0  ;;  %367 = vst [vmem:[%s1664_s12 + $0x8] sm:$0xff] %v366_v1  ;;  %v370_v3 = vld [vmem:[%s1659_s11 + $0x30] sm:$0xff] }
  0x18   : > { %369 = vst [vmem:[%s1664_s12 + $0x10] sm:$0xff] %v368_v2  ;;  %v372_v4 = vld [vmem:[%s1659_s11 + $0x40] sm:$0xff]  ;;  %v374_v5 = vld [vmem:[%s1659_s11 + $0x50] sm:$0xff]  ;;  %371 = vst [vmem:[%s1664_s12 + $0x18] sm:$0xff] %v370_v3 }
  0x19   : > { %373 = vst [vmem:[%s1664_s12 + $0x20] sm:$0xff] %v372_v4  ;;  %375 = vst [vmem:[%s1664_s12 + $0x28] sm:$0xff] %v374_v5  ;;  %v376_v6 = vld [vmem:[%s1659_s11 + $0x60] sm:$0xff]  ;;  %v378_v7 = vld [vmem:[%s1659_s11 + $0x70] sm:$0xff] }
  0x1a   : > { %v380_v8 = vld [vmem:[%s1659_s11 + $0x80] sm:$0xff]  ;;  %377 = vst [vmem:[%s1664_s12 + $0x30] sm:$0xff] %v376_v6  ;;  %379 = vst [vmem:[%s1664_s12 + $0x38] sm:$0xff] %v378_v7  ;;  %v382_v9 = vld [vmem:[%s1659_s11 + $0x90] sm:$0xff] }
  0x1b   : > { %381 = vst [vmem:[%s1664_s12 + $0x40] sm:$0xff] %v380_v8  ;;  %v384_v10 = vld [vmem:[%s1659_s11 + $0xa0] sm:$0xff]  ;;  %v386_v11 = vld [vmem:[%s1659_s11 + $0xb0] sm:$0xff]  ;;  %383 = vst [vmem:[%s1664_s12 + $0x48] sm:$0xff] %v382_v9 }
  0x1c   : > { %385 = vst [vmem:[%s1664_s12 + $0x50] sm:$0xff] %v384_v10  ;;  %387 = vst [vmem:[%s1664_s12 + $0x58] sm:$0xff] %v386_v11  ;;  %v388_v12 = vld [vmem:[%s1659_s11 + $0xc0] sm:$0xff]  ;;  %v390_v13 = vld [vmem:[%s1659_s11 + $0xd0] sm:$0xff] }
  0x1d   : > { %v392_v14 = vld [vmem:[%s1659_s11 + $0xe0] sm:$0xff]  ;;  %389 = vst [vmem:[%s1664_s12 + $0x60] sm:$0xff] %v388_v12  ;;  %391 = vst [vmem:[%s1664_s12 + $0x68] sm:$0xff] %v390_v13  ;;  %v394_v15 = vld [vmem:[%s1659_s11 + $0xf0] sm:$0xff] }
  0x1e   : > { %393 = vst [vmem:[%s1664_s12 + $0x70] sm:$0xff] %v392_v14  ;;  %v396_v16 = vld [vmem:[%s1659_s11 + $0x100] sm:$0xff]  ;;  %v398_v17 = vld [vmem:[%s1659_s11 + $0x110] sm:$0xff]  ;;  %395 = vst [vmem:[%s1664_s12 + $0x78] sm:$0xff] %v394_v15 }
  0x1f   : > { %397 = vst [vmem:[%s1664_s12 + $0x80] sm:$0xff] %v396_v16  ;;  %399 = vst [vmem:[%s1664_s12 + $0x88] sm:$0xff] %v398_v17  ;;  %v400_v18 = vld [vmem:[%s1659_s11 + $0x120] sm:$0xff]  ;;  %v402_v19 = vld [vmem:[%s1659_s11 + $0x130] sm:$0xff] }
  0x20   : > { %v404_v20 = vld [vmem:[%s1659_s11 + $0x140] sm:$0xff]  ;;  %401 = vst [vmem:[%s1664_s12 + $0x90] sm:$0xff] %v400_v18  ;;  %403 = vst [vmem:[%s1664_s12 + $0x98] sm:$0xff] %v402_v19  ;;  %v406_v21 = vld [vmem:[%s1659_s11 + $0x150] sm:$0xff] }
  0x21   : > { %405 = vst [vmem:[%s1664_s12 + $0xa0] sm:$0xff] %v404_v20  ;;  %v408_v22 = vld [vmem:[%s1659_s11 + $0x160] sm:$0xff]  ;;  %v410_v23 = vld [vmem:[%s1659_s11 + $0x170] sm:$0xff]  ;;  %407 = vst [vmem:[%s1664_s12 + $0xa8] sm:$0xff] %v406_v21 }
  0x22   : > { %409 = vst [vmem:[%s1664_s12 + $0xb0] sm:$0xff] %v408_v22  ;;  %411 = vst [vmem:[%s1664_s12 + $0xb8] sm:$0xff] %v410_v23  ;;  %v412_v24 = vld [vmem:[%s1659_s11 + $0x180] sm:$0xff]  ;;  %v414_v25 = vld [vmem:[%s1659_s11 + $0x190] sm:$0xff] }
  0x23   : > { %v416_v26 = vld [vmem:[%s1659_s11 + $0x1a0] sm:$0xff]  ;;  %413 = vst [vmem:[%s1664_s12 + $0xc0] sm:$0xff] %v412_v24  ;;  %415 = vst [vmem:[%s1664_s12 + $0xc8] sm:$0xff] %v414_v25  ;;  %v418_v27 = vld [vmem:[%s1659_s11 + $0x1b0] sm:$0xff] }
  0x24   : > { %417 = vst [vmem:[%s1664_s12 + $0xd0] sm:$0xff] %v416_v26  ;;  %v420_v28 = vld [vmem:[%s1659_s11 + $0x1c0] sm:$0xff]  ;;  %v422_v29 = vld [vmem:[%s1659_s11 + $0x1d0] sm:$0xff]  ;;  %419 = vst [vmem:[%s1664_s12 + $0xd8] sm:$0xff] %v418_v27 }
  0x25   : > { %421 = vst [vmem:[%s1664_s12 + $0xe0] sm:$0xff] %v420_v28  ;;  %423 = vst [vmem:[%s1664_s12 + $0xe8] sm:$0xff] %v422_v29  ;;  %v424_v30 = vld [vmem:[%s1659_s11 + $0x1e0] sm:$0xff]  ;;  %v426_v31 = vld [vmem:[%s1659_s11 + $0x1f0] sm:$0xff] }
  0x26   : > { %v428_v32 = vld [vmem:[%s1659_s11 + $0x200] sm:$0xff]  ;;  %425 = vst [vmem:[%s1664_s12 + $0xf0] sm:$0xff] %v424_v30  ;;  %427 = vst [vmem:[%s1664_s12 + $0xf8] sm:$0xff] %v426_v31  ;;  %v430_v33 = vld [vmem:[%s1659_s11 + $0x210] sm:$0xff] }
  0x27   : > { %429 = vst [vmem:[%s1664_s12 + $0x100] sm:$0xff] %v428_v32  ;;  %v432_v34 = vld [vmem:[%s1659_s11 + $0x220] sm:$0xff]  ;;  %v434_v35 = vld [vmem:[%s1659_s11 + $0x230] sm:$0xff]  ;;  %431 = vst [vmem:[%s1664_s12 + $0x108] sm:$0xff] %v430_v33 }
  0x28   : > { %433 = vst [vmem:[%s1664_s12 + $0x110] sm:$0xff] %v432_v34  ;;  %435 = vst [vmem:[%s1664_s12 + $0x118] sm:$0xff] %v434_v35  ;;  %v436_v36 = vld [vmem:[%s1659_s11 + $0x240] sm:$0xff]  ;;  %v438_v37 = vld [vmem:[%s1659_s11 + $0x250] sm:$0xff] }
  0x29   : > { %v440_v38 = vld [vmem:[%s1659_s11 + $0x260] sm:$0xff]  ;;  %437 = vst [vmem:[%s1664_s12 + $0x120] sm:$0xff] %v436_v36  ;;  %439 = vst [vmem:[%s1664_s12 + $0x128] sm:$0xff] %v438_v37  ;;  %v442_v39 = vld [vmem:[%s1659_s11 + $0x270] sm:$0xff] }
  0x2a   : > { %441 = vst [vmem:[%s1664_s12 + $0x130] sm:$0xff] %v440_v38  ;;  %v444_v40 = vld [vmem:[%s1659_s11 + $0x280] sm:$0xff]  ;;  %v446_v41 = vld [vmem:[%s1659_s11 + $0x290] sm:$0xff]  ;;  %443 = vst [vmem:[%s1664_s12 + $0x138] sm:$0xff] %v442_v39 }
  0x2b   : > { %445 = vst [vmem:[%s1664_s12 + $0x140] sm:$0xff] %v444_v40  ;;  %447 = vst [vmem:[%s1664_s12 + $0x148] sm:$0xff] %v446_v41  ;;  %v448_v42 = vld [vmem:[%s1659_s11 + $0x2a0] sm:$0xff]  ;;  %v450_v43 = vld [vmem:[%s1659_s11 + $0x2b0] sm:$0xff] }
  0x2c   : > { %v452_v44 = vld [vmem:[%s1659_s11 + $0x2c0] sm:$0xff]  ;;  %449 = vst [vmem:[%s1664_s12 + $0x150] sm:$0xff] %v448_v42  ;;  %451 = vst [vmem:[%s1664_s12 + $0x158] sm:$0xff] %v450_v43  ;;  %v454_v45 = vld [vmem:[%s1659_s11 + $0x2d0] sm:$0xff] }
  0x2d   : > { %453 = vst [vmem:[%s1664_s12 + $0x160] sm:$0xff] %v452_v44  ;;  %v456_v46 = vld [vmem:[%s1659_s11 + $0x2e0] sm:$0xff]  ;;  %v458_v47 = vld [vmem:[%s1659_s11 + $0x2f0] sm:$0xff]  ;;  %455 = vst [vmem:[%s1664_s12 + $0x168] sm:$0xff] %v454_v45 }
  0x2e   : > { %457 = vst [vmem:[%s1664_s12 + $0x170] sm:$0xff] %v456_v46  ;;  %459 = vst [vmem:[%s1664_s12 + $0x178] sm:$0xff] %v458_v47  ;;  %v460_v48 = vld [vmem:[%s1659_s11 + $0x300] sm:$0xff]  ;;  %v462_v49 = vld [vmem:[%s1659_s11 + $0x310] sm:$0xff] }
  0x2f   : > { %v464_v50 = vld [vmem:[%s1659_s11 + $0x320] sm:$0xff]  ;;  %461 = vst [vmem:[%s1664_s12 + $0x180] sm:$0xff] %v460_v48  ;;  %463 = vst [vmem:[%s1664_s12 + $0x188] sm:$0xff] %v462_v49  ;;  %v466_v51 = vld [vmem:[%s1659_s11 + $0x330] sm:$0xff] }
  0x30   : > { %465 = vst [vmem:[%s1664_s12 + $0x190] sm:$0xff] %v464_v50  ;;  %v468_v52 = vld [vmem:[%s1659_s11 + $0x340] sm:$0xff]  ;;  %v470_v53 = vld [vmem:[%s1659_s11 + $0x350] sm:$0xff]  ;;  %467 = vst [vmem:[%s1664_s12 + $0x198] sm:$0xff] %v466_v51 }
  0x31   : > { %469 = vst [vmem:[%s1664_s12 + $0x1a0] sm:$0xff] %v468_v52  ;;  %471 = vst [vmem:[%s1664_s12 + $0x1a8] sm:$0xff] %v470_v53  ;;  %v472_v54 = vld [vmem:[%s1659_s11 + $0x360] sm:$0xff]  ;;  %v474_v55 = vld [vmem:[%s1659_s11 + $0x370] sm:$0xff] }
  0x32   : > { %v476_v56 = vld [vmem:[%s1659_s11 + $0x380] sm:$0xff]  ;;  %473 = vst [vmem:[%s1664_s12 + $0x1b0] sm:$0xff] %v472_v54  ;;  %475 = vst [vmem:[%s1664_s12 + $0x1b8] sm:$0xff] %v474_v55  ;;  %v478_v57 = vld [vmem:[%s1659_s11 + $0x390] sm:$0xff] }
  0x33   : > { %477 = vst [vmem:[%s1664_s12 + $0x1c0] sm:$0xff] %v476_v56  ;;  %v480_v58 = vld [vmem:[%s1659_s11 + $0x3a0] sm:$0xff]  ;;  %v482_v59 = vld [vmem:[%s1659_s11 + $0x3b0] sm:$0xff]  ;;  %479 = vst [vmem:[%s1664_s12 + $0x1c8] sm:$0xff] %v478_v57 }
  0x34   : > { %481 = vst [vmem:[%s1664_s12 + $0x1d0] sm:$0xff] %v480_v58  ;;  %483 = vst [vmem:[%s1664_s12 + $0x1d8] sm:$0xff] %v482_v59  ;;  %v484_v60 = vld [vmem:[%s1659_s11 + $0x3c0] sm:$0xff]  ;;  %v486_v61 = vld [vmem:[%s1659_s11 + $0x3d0] sm:$0xff] }
  0x35   : > { %v488_v62 = vld [vmem:[%s1659_s11 + $0x3e0] sm:$0xff]  ;;  %485 = vst [vmem:[%s1664_s12 + $0x1e0] sm:$0xff] %v484_v60  ;;  %487 = vst [vmem:[%s1664_s12 + $0x1e8] sm:$0xff] %v486_v61  ;;  %v490_v63 = vld [vmem:[%s1659_s11 + $0x3f0] sm:$0xff] }
  0x36   : > { %489 = vst [vmem:[%s1664_s12 + $0x1f0] sm:$0xff] %v488_v62  ;;  %491 = vst [vmem:[%s1664_s12 + $0x1f8] sm:$0xff] %v490_v63 }
  0x37 PF: > { %p1277_p7 = scmp.ge.s32.totalorder %s1571_s21, 1  ;;  %p512_p8 = scmp.lt.s32.totalorder %s1571_s21, 19 }
  0x39   : > { %p513_p9 = pnand %p1277_p7, %p512_p8 }
  0x3a   : > { %s519_s13 = sand.u32 (!%p513_p9), 1, %s1547_s15   ;;  %s1279_s14 = sshll.u32 (!%p513_p9), %s1555_s17, 2 }
  0x3b   : > { %516 = sbr.rel (%p513_p9) target bundleno = 357 (0x165), region = 70  ;;  %s1278_s24 = sshll.u32 (!%p513_p9), %s519_s13, 9 }
  0x3c   : > { %p568_p10 = scmp.lt.s32.totalorder (!%p513_p9), %s1279_s14, 35  ;;  %s1281_s25 = sshll.u32 (!%p513_p9), %s1559_s18, 1 }
  0x3d   : > { %p578_p11 = scmp.lt.s32.totalorder (!%p513_p9), %s1281_s25, 3  ;;  %s1817_s13 = scalar_lea.vmem (!%p513_p9), [#allocation3], %s1278_s24 }
  0x3e   : > { %p1285_p12 = scmp.ne.s32.totalorder (!%p513_p9), %s1555_s17, 0 }
  0x40   : > { %s1937_s14 = smov (!%p568_p10, %s1279_s14), 35  ;;  %s1939_s25 = smov (!%p578_p11, %s1281_s25), 3 }
  0x41   : > { %s1280_s26 = sshll.u32 %s1937_s14, 2  ;;  %s580_s15 = scalar_lea.vmem %s1921_s2, %s1939_s25 }
  0x42   : > { %s1799_s30 = scalar_lea.vmem %s1919_s0, %s1280_s26  ;;  %s585_s18 = scalar_lea.vmem %s1922_s3, %s1939_s25 }
  0x43   : > { %s1284_s9 = sshll.u32 %s1939_s25, 2  ;;  %600 = sbr.rel (%p1285_p12) target bundleno = 74 (0x4a), region = 78 }
  0x44   : > { %s1815_s12 = scalar_lea.vmem %s1923_s4, %s1284_s9 }
  0x48   : > { %v1573_v0 = vmov 0.0  }
  0x49   : > { %601 = vst [vmem:[#allocation2] sm:$0xff] %v1573_v0  ;;  %602 = vst [vmem:[#allocation2 + $0x8] sm:$0xff] %v1573_v0 }
  0x4a PF: > { %v1417_v1 = vld [vmem:[%s1817_s13 + $0x74] ss:$8 sps:$4 sm:$0xff]   ;;  %v1421_v3 = vld [vmem:[%s1817_s13 + $0x70] ss:$8 sps:$4 sm:$0xff]   ;;  %v1423_v5 = vld [vmem:[%s1817_s13 + $0x64] ss:$8 sps:$4 sm:$0xff]  }
  0x4b   : > { %v1419_v2 = vld [vmem:[%s1817_s13 + $0x174] ss:$8 sps:$4 sm:$0xff]   ;;  %1005 = vmatprep.subr.bf16.mxu0 %v1417_v1  ;;  %v1422_v4 = vld [vmem:[%s1817_s13 + $0x170] ss:$8 sps:$4 sm:$0xff]   ;;  %v1425_v6 = vld [vmem:[%s1817_s13 + $0x164] ss:$8 sps:$4 sm:$0xff]  }
  0x4c   : > { %1046 = vmatprep.subr.bf16.mxu1 %v1419_v2  ;;  %1006 = vmatpush1.bf16.msra.mxu0 %v1421_v3  ;;  %v1427_v7 = vld [vmem:[%s1817_s13 + $0x60] ss:$8 sps:$4 sm:$0xff]   ;;  %v1429_v9 = vld [vmem:[%s1817_s13 + $0x54] ss:$8 sps:$4 sm:$0xff]   ;;  %v1433_v11 = vld [vmem:[%s1817_s13 + $0x50] ss:$8 sps:$4 sm:$0xff]  }
  0x4d   : > { %1047 = vmatpush1.bf16.msra.mxu1 %v1422_v4  ;;  %1007 = vmatprep.subr.bf16.mxu0 %v1423_v5  ;;  %v1428_v8 = vld [vmem:[%s1817_s13 + $0x160] ss:$8 sps:$4 sm:$0xff]   ;;  %v1431_v10 = vld [vmem:[%s1817_s13 + $0x154] ss:$8 sps:$4 sm:$0xff]   ;;  %v1434_v12 = vld [vmem:[%s1817_s13 + $0x150] ss:$8 sps:$4 sm:$0xff]  }
  0x4e   : > { %1048 = vmatprep.subr.bf16.mxu1 %v1425_v6  ;;  %v1435_v13 = vld [vmem:[%s1817_s13 + $0x44] ss:$8 sps:$4 sm:$0xff]   ;;  %v1439_v15 = vld [vmem:[%s1817_s13 + $0x40] ss:$8 sps:$4 sm:$0xff]   ;;  %v1441_v17 = vld [vmem:[%s1817_s13 + $0x34] ss:$8 sps:$4 sm:$0xff]  }
  0x4f   : > { %v1437_v14 = vld [vmem:[%s1817_s13 + $0x144] ss:$8 sps:$4 sm:$0xff]   ;;  %v1440_v16 = vld [vmem:[%s1817_s13 + $0x140] ss:$8 sps:$4 sm:$0xff]   ;;  %v1443_v18 = vld [vmem:[%s1817_s13 + $0x134] ss:$8 sps:$4 sm:$0xff]  }
  0x50   : > { %1008 = vmatpush1.bf16.msra.mxu0 %v1427_v7  ;;  %v1445_v19 = vld [vmem:[%s1817_s13 + $0x30] ss:$8 sps:$4 sm:$0xff]   ;;  %v1447_v21 = vld [vmem:[%s1817_s13 + $0x24] ss:$8 sps:$4 sm:$0xff]   ;;  %v1451_v23 = vld [vmem:[%s1817_s13 + $0x20] ss:$8 sps:$4 sm:$0xff]  }
  0x51   : > { %1049 = vmatpush1.bf16.msra.mxu1 %v1428_v8  ;;  %1009 = vmatprep.subr.bf16.mxu0 %v1429_v9  ;;  %v1446_v20 = vld [vmem:[%s1817_s13 + $0x130] ss:$8 sps:$4 sm:$0xff]   ;;  %v1449_v22 = vld [vmem:[%s1817_s13 + $0x124] ss:$8 sps:$4 sm:$0xff]   ;;  %v1452_v24 = vld [vmem:[%s1817_s13 + $0x120] ss:$8 sps:$4 sm:$0xff]  }
  0x52   : > { %1050 = vmatprep.subr.bf16.mxu1 %v1431_v10  ;;  %v1453_v25 = vld [vmem:[%s1817_s13 + $0x14] ss:$8 sps:$4 sm:$0xff]   ;;  %v1457_v27 = vld [vmem:[%s1817_s13 + $0x10] ss:$8 sps:$4 sm:$0xff]   ;;  %v1459_v29 = vld [vmem:[%s1817_s13 + $0x4] ss:$8 sps:$4 sm:$0xff]  }
  0x53   : > { %v1455_v26 = vld [vmem:[%s1817_s13 + $0x114] ss:$8 sps:$4 sm:$0xff]   ;;  %v1458_v28 = vld [vmem:[%s1817_s13 + $0x110] ss:$8 sps:$4 sm:$0xff]   ;;  %v1461_v30 = vld [vmem:[%s1817_s13 + $0x104] ss:$8 sps:$4 sm:$0xff]  }
  0x54   : > { %1010 = vmatpush1.bf16.msra.mxu0 %v1433_v11  ;;  %v1463_v31 = vld [vmem:[%s1817_s13] ss:$8 sps:$4 sm:$0xff]   ;;  %v1465_v33 = vld [vmem:[%s1817_s13 + $0xf4] ss:$8 sps:$4 sm:$0xff]   ;;  %v1469_v35 = vld [vmem:[%s1817_s13 + $0xf0] ss:$8 sps:$4 sm:$0xff]  }
  0x55   : > { %1051 = vmatpush1.bf16.msra.mxu1 %v1434_v12  ;;  %1011 = vmatprep.subr.bf16.mxu0 %v1435_v13  ;;  %v1464_v32 = vld [vmem:[%s1817_s13 + $0x100] ss:$8 sps:$4 sm:$0xff]   ;;  %v1467_v34 = vld [vmem:[%s1817_s13 + $0x1f4] ss:$8 sps:$4 sm:$0xff]   ;;  %v1470_v36 = vld [vmem:[%s1817_s13 + $0x1f0] ss:$8 sps:$4 sm:$0xff]  }
  0x56   : > { %1052 = vmatprep.subr.bf16.mxu1 %v1437_v14  ;;  %v1471_v37 = vld [vmem:[%s1817_s13 + $0xe4] ss:$8 sps:$4 sm:$0xff]   ;;  %v1475_v39 = vld [vmem:[%s1817_s13 + $0xe0] ss:$8 sps:$4 sm:$0xff]   ;;  %v1477_v41 = vld [vmem:[%s1817_s13 + $0xd4] ss:$8 sps:$4 sm:$0xff]  }
  0x57   : > { %v1473_v38 = vld [vmem:[%s1817_s13 + $0x1e4] ss:$8 sps:$4 sm:$0xff]   ;;  %v1476_v40 = vld [vmem:[%s1817_s13 + $0x1e0] ss:$8 sps:$4 sm:$0xff]   ;;  %v1479_v42 = vld [vmem:[%s1817_s13 + $0x1d4] ss:$8 sps:$4 sm:$0xff]  }
  0x58   : > { %1012 = vmatpush1.bf16.msra.mxu0 %v1439_v15  ;;  %v1481_v43 = vld [vmem:[%s1817_s13 + $0xd0] ss:$8 sps:$4 sm:$0xff]   ;;  %v1483_v45 = vld [vmem:[%s1817_s13 + $0xc4] ss:$8 sps:$4 sm:$0xff]   ;;  %v1487_v50 = vld [vmem:[%s1817_s13 + $0xc0] ss:$8 sps:$4 sm:$0xff]  }
  0x59   : > { %1053 = vmatpush1.bf16.msra.mxu1 %v1440_v16  ;;  %1013 = vmatprep.subr.bf16.mxu0 %v1441_v17  ;;  %v1482_v44 = vld [vmem:[%s1817_s13 + $0x1d0] ss:$8 sps:$4 sm:$0xff]   ;;  %v1485_v46 = vld [vmem:[%s1817_s13 + $0x1c4] ss:$8 sps:$4 sm:$0xff]   ;;  %v1488_v51 = vld [vmem:[%s1817_s13 + $0x1c0] ss:$8 sps:$4 sm:$0xff]  }
  0x5a   : > { %1054 = vmatprep.subr.bf16.mxu1 %v1443_v18  ;;  %v605_v47 = vld [vmem:[%s1799_s30] sm:$0xff]  ;;  %v606_v49 = vld [vmem:[%s1799_s30 + $0x8] sm:$0xff]  ;;  %v1495_v57 = vld [vmem:[%s1817_s13 + $0xa4] ss:$8 sps:$4 sm:$0xff]   ;;  %p1354_p13 = scmp.ne.s32.totalorder %s1555_s17, 8 }
  0x5b   : > { %v1287_v48 = vcombine.high %v605_v47, %v605_v47  ;;  %v1289_v52 = vcombine.high %v606_v49, %v606_v49  ;;  %v1489_v53 = vld [vmem:[%s1817_s13 + $0xb4] ss:$8 sps:$4 sm:$0xff]   ;;  %v1493_v55 = vld [vmem:[%s1817_s13 + $0xb0] ss:$8 sps:$4 sm:$0xff]   ;;  %v1497_v58 = vld [vmem:[%s1817_s13 + $0x1a4] ss:$8 sps:$4 sm:$0xff]   ;;  %v1286_v5 = vcombine.low %v605_v47, %v605_v47  ;;  %v1288_v6 = vcombine.low %v606_v49, %v606_v49 }
  0x5c   : > { %1014 = vmatpush1.bf16.msra.mxu0 %v1445_v19  ;;  %v1491_v54 = vld [vmem:[%s1817_s13 + $0x1b4] ss:$8 sps:$4 sm:$0xff]   ;;  %v1494_v56 = vld [vmem:[%s1817_s13 + $0x1b0] ss:$8 sps:$4 sm:$0xff]   ;;  %v1499_v59 = vld [vmem:[%s1817_s13 + $0xa0] ss:$8 sps:$4 sm:$0xff]  }
  0x5d   : > { %1055 = vmatpush1.bf16.msra.mxu1 %v1446_v20  ;;  %1015 = vmatprep.subr.bf16.mxu0 %v1447_v21  ;;  %v1500_v60 = vld [vmem:[%s1817_s13 + $0x1a0] ss:$8 sps:$4 sm:$0xff]   ;;  %v1501_v61 = vld [vmem:[%s1817_s13 + $0x94] ss:$8 sps:$4 sm:$0xff]   ;;  %v1505_v63 = vld [vmem:[%s1817_s13 + $0x90] ss:$8 sps:$4 sm:$0xff]  }
  0x5e   : > { %1056 = vmatprep.subr.bf16.mxu1 %v1449_v22  ;;  %1037 = vmatprep.mubr.bf16.mxu0 %v1287_v48  ;;  %v1503_v62 = vld [vmem:[%s1817_s13 + $0x194] ss:$8 sps:$4 sm:$0xff]   ;;  %v1506_v0 = vld [vmem:[%s1817_s13 + $0x190] ss:$8 sps:$4 sm:$0xff]   ;;  %v1507_v1 = vld [vmem:[%s1817_s13 + $0x84] ss:$8 sps:$4 sm:$0xff]  }
  0x5f   : > { %1078 = vmatprep.mubr.bf16.mxu1 %v1289_v52  ;;  %v1509_v2 = vld [vmem:[%s1817_s13 + $0x184] ss:$8 sps:$4 sm:$0xff]   ;;  %v1511_v3 = vld [vmem:[%s1817_s13 + $0x80] ss:$8 sps:$4 sm:$0xff]   ;;  %v603_v8 = vld [vmem:[#allocation2] sm:$0xff] }
  0x60   : > { %1016 = vmatpush1.bf16.msra.mxu0 %v1451_v23  ;;  %v1512_v4 = vld [vmem:[%s1817_s13 + $0x180] ss:$8 sps:$4 sm:$0xff]   ;;  %v604_v12 = vld [vmem:[#allocation2 + $0x8] sm:$0xff] }
  0x61   : > { %1057 = vmatpush1.bf16.msra.mxu1 %v1452_v24  ;;  %1017 = vmatprep.subr.bf16.mxu0 %v1453_v25 }
  0x62   : > { %1058 = vmatprep.subr.bf16.mxu1 %v1455_v26 }
  0x64   : > { %1018 = vmatpush1.bf16.msra.mxu0 %v1457_v27 }
  0x65   : > { %1059 = vmatpush1.bf16.msra.mxu1 %v1458_v28  ;;  %1019 = vmatprep.subr.bf16.mxu0 %v1459_v29 }
  0x66   : > { %1060 = vmatprep.subr.bf16.mxu1 %v1461_v30 }
  0x68   : > { %1020 = vmatpush1.bf16.msra.mxu0 %v1463_v31 }
  0x69   : > { %1061 = vmatpush1.bf16.msra.mxu1 %v1464_v32  ;;  %1021 = vmatprep.subr.bf16.mxu0 %v1465_v33 }
  0x6a   : > { %1062 = vmatprep.subr.bf16.mxu1 %v1467_v34 }
  0x6c   : > { %1022 = vmatpush2.bf16.msra.mxu0 %v1469_v35 }
  0x6d   : > { %1063 = vmatpush2.bf16.msra.mxu1 %v1470_v36  ;;  %1023 = vmatprep.subr.bf16.mxu0 %v1471_v37 }
  0x6e   : > { %1064 = vmatprep.subr.bf16.mxu1 %v1473_v38 }
  0x70   : > { %1024 = vmatpush2.bf16.msra.mxu0 %v1475_v39 }
  0x71   : > { %1065 = vmatpush2.bf16.msra.mxu1 %v1476_v40  ;;  %1025 = vmatprep.subr.bf16.mxu0 %v1477_v41 }
  0x72   : > { %1066 = vmatprep.subr.bf16.mxu1 %v1479_v42 }
  0x74   : > { %1026 = vmatpush2.bf16.msra.mxu0 %v1481_v43 }
  0x75   : > { %1067 = vmatpush2.bf16.msra.mxu1 %v1482_v44  ;;  %1027 = vmatprep.subr.bf16.mxu0 %v1483_v45 }
  0x76   : > { %1068 = vmatprep.subr.bf16.mxu1 %v1485_v46 }
  0x78   : > { %1028 = vmatpush2.bf16.msra.mxu0 %v1487_v50 }
  0x79   : > { %1069 = vmatpush2.bf16.msra.mxu1 %v1488_v51  ;;  %1029 = vmatprep.subr.bf16.mxu0 %v1489_v53 }
  0x7a   : > { %1070 = vmatprep.subr.bf16.mxu1 %v1491_v54 }
  0x7c   : > { %1030 = vmatpush2.bf16.msra.mxu0 %v1493_v55 }
  0x7d   : > { %1071 = vmatpush2.bf16.msra.mxu1 %v1494_v56  ;;  %1031 = vmatprep.subr.bf16.mxu0 %v1495_v57 }
  0x7e   : > { %1072 = vmatprep.subr.bf16.mxu1 %v1497_v58 }
  0x80   : > { %1032 = vmatpush2.bf16.msra.mxu0 %v1499_v59 }
  0x81   : > { %1073 = vmatpush2.bf16.msra.mxu1 %v1500_v60  ;;  %1033 = vmatprep.subr.bf16.mxu0 %v1501_v61 }
  0x82   : > { %1074 = vmatprep.subr.bf16.mxu1 %v1503_v62 }
  0x84   : > { %1034 = vmatpush2.bf16.msra.mxu0 %v1505_v63 }
  0x85   : > { %1075 = vmatpush2.bf16.msra.mxu1 %v1506_v0  ;;  %1035 = vmatprep.subr.bf16.mxu0 %v1507_v1 }
  0x86   : > { %1076 = vmatprep.subr.bf16.mxu1 %v1509_v2 }
  0x88   : > { %1036 = vmatpush2.bf16.msra.mxu0 %v1511_v3 }
  0x89   : > { %1077 = vmatpush2.bf16.msra.mxu1 %v1512_v4 }
  0x8b   : > { %1038 = vmatmul.mubr.bf16.vlgmr.msra.gmra.mxu0 %v1286_v5 }
  0x8c   : > { %1079 = vmatmul.mubr.bf16.vlgmr.msra.gmra.mxu1 %v1288_v6 }
 0x14b   : > { %v1039_v7 = vpop.f32.mrf.mxu0 }
 0x14c   : > { %v1080_v9 = vpop.f32.mrf.mxu1 }
 0x14d   : > { %v1081_v10 = vadd.f32 %v1080_v9, %v1039_v7  ;;  %v1041_v11 = vpop.f32.mrf.mxu0 }
 0x14e   : > { %v1082_v13 = vpop.f32.mrf.mxu1 }
 0x14f   : > { %v1087_v14 = vadd.f32 %v1081_v10, %v603_v8  ;;  %v1083_v15 = vadd.f32 %v1082_v13, %v1041_v11  ;;  %v1043_v16 = vpop.f32.mrf.mxu0  ;;  %1094 = sbr.rel (%p1354_p13) target bundleno = 357 (0x165), region = 82 }
 0x150   : > { %v1084_v17 = vpop.f32.mrf.mxu1 }
 0x151   : > { %1089 = vst [vmem:[#allocation2] sm:$0xff] %v1087_v14  ;;  %v1088_v18 = vadd.f32 %v1083_v15, %v604_v12  ;;  %v1044_v19 = vpop.f32.mrf.mxu0 }
 0x152   : > { %v1085_v20 = vpop.f32.mrf.mxu1 }
 0x153   : > { %1090 = vst [vmem:[#allocation2 + $0x8] sm:$0xff] %v1088_v18 }
 0x154   : > { %v1099_v21 = vlaneseq  ;;  %v1097_v23 = vld [vmem:[%s580_s15] sm:$0x3] }
 0x155   : > { %v1111_v24 = vld [vmem:[%s585_s18] sm:$0x3] }
 0x156   : > { %v1100_v22 = vshrl.u32 %v1099_v21, 7 }
 0x158   : > { %v1101_v25 = vsub.s32 0, %v1100_v22  ;;  %v1105_v26 = vsub.s32 1, %v1100_v22  ;;  %v1095_v27 = vld [vmem:[#allocation2] sm:$0xff] }
 0x15a   : > { %v1096_v28 = vld [vmem:[#allocation2 + $0x8] sm:$0xff]  ;;  %v1102_v29 = vrot.slane %v1097_v23, %v1101_v25  ;;  %v1106_v30 = vrot.slane %v1097_v23, %v1105_v26  ;;  %v1116_v31 = vrot.slane %v1111_v24, %v1101_v25  ;;  %v1120_v32 = vrot.slane %v1111_v24, %v1105_v26 }
 0x15c   : > { %v1109_v33 = vmul.f32 %v1102_v29, %v1095_v27  ;;  %v1110_v34 = vmul.f32 %v1106_v30, %v1096_v28 }
 0x15e   : > { %v1123_v35 = vadd.f32 %v1116_v31, %v1109_v33  ;;  %v1124_v36 = vadd.f32 %v1120_v32, %v1110_v34 }
 0x160   : > { %v1125_v37 = vmax.f32 %v1123_v35, 0.0  ;;  %v1126_v38 = vmax.f32 %v1124_v36, 0.0 }
 0x162   : > { %v1359_v39 = vpack.c.bf16 %v1126_v38, %v1125_v37 }
 0x164   : > { %1135 = vst [vmem:[%s1815_s12] sm:$0xff] %v1359_v39 }
 0x165 PF: > { %s14_s21 = sadd.s32 1, %s1571_s21   ;;  %s1924_s15 = smov %s1551_s16 }
 0x166   : > { %p11_p0 = scmp.ge.s32.totalorder %s14_s21, 20   ;;  %s1925_s16 = smov %s1650_s28 }
 0x167   : > { %s1926_s17 = smov %s1563_s19  ;;  %s1927_s18 = smov %s1567_s20 }
 0x168   : > { %s1928_s19 = smov %s1931_s22  ;;  %s1929_s20 = smov %s1935_s23 }
 0x169   :  { %13 = sbr.rel (!%p11_p0) target bundleno = 4 (0x4), region = 126 }

// kernel: student_net_resp_forward.44
= control target key start
LH: loop header
LB: loop body
LE: loop exit
PB: predicated region body
PF: predicated region fallthrough
CT: control target
= control target key end

     0   :  { %v16_v0 = vlaneseq  ;;  %v222_v2 = vmov 1966171168   ;;  %v223_v13 = vmov 1935823168   ;;  %vm173_vm0 = vcmask 1041409   ;;  %s240_s0 = inlined_call_operand.vmem [shape: bf16[2,1,512], index: 0, kind: input, shape index: {}]   ;;  %s241_s1 = inlined_call_operand.vmem [shape: bf16[2,512], index: 1, kind: output, shape index: {}]  }
   0x1   :  { %v217_v1 = vld [vmem:[%s240_s0] sm:$0xff]   ;;  %v75_v3 = vunpack.c.l.s4 %v222_v2  ;;  %v121_v14 = vunpack.c.l.s4 %v223_v13 }
   0x2   :  { %v218_v4 = vunpack.c.l.bf16 %v217_v1  ;;  %v17_v5 = vshrl.u32 %v16_v0, 7  ;;  %v219_v6 = vunpack.c.h.bf16 %v217_v1 }
   0x3   :  { %v76_v7 = vunpack.c.0.s8 %v75_v3  ;;  %v122_v27 = vunpack.c.0.s8 %v121_v14 }
   0x4   :  { %v18_v8 = vsub.s32 0, %v17_v5  ;;  %v22_v9 = vsub.s32 2, %v17_v5  ;;  %v26_v10 = vsub.s32 4, %v17_v5  ;;  %v30_v11 = vsub.s32 6, %v17_v5 }
   0x5   :  { %v79_v12 = vsub.s32 %v76_v7, %v17_v5  ;;  %v125_v34 = vsub.s32 %v122_v27, %v17_v5 }
   0x6   :  { %v19_v15 = vrot.slane %v218_v4, %v18_v8  ;;  %v23_v16 = vrot.slane %v218_v4, %v22_v9  ;;  %v27_v17 = vrot.slane %v218_v4, %v26_v10  ;;  %v31_v18 = vrot.slane %v218_v4, %v30_v11 }
   0x7   :  { %v35_v19 = vrot.slane %v219_v6, %v18_v8  ;;  %v39_v20 = vrot.slane %v219_v6, %v22_v9  ;;  %v43_v21 = vrot.slane %v219_v6, %v26_v10  ;;  %v47_v22 = vrot.slane %v219_v6, %v30_v11 }
   0x8   :  { %v211_v23 = vpack.c.bf16 %v23_v16, %v19_v15  ;;  %v212_v24 = vpack.c.bf16 %v31_v18, %v27_v17 }
   0x9   :  { %v213_v25 = vpack.c.bf16 %v39_v20, %v35_v19  ;;  %v214_v26 = vpack.c.bf16 %v47_v22, %v43_v21 }
   0xa   :  { %v80_v28 = vrot.slane %v211_v23, %v79_v12  ;;  %v87_v29 = vrot.slane %v212_v24, %v79_v12 }
   0xb   :  { %v104_v30 = vrot.slane %v213_v25, %v79_v12  ;;  %v111_v31 = vrot.slane %v214_v26, %v79_v12 }
   0xc   :  { %v88_v32 = vcombine.low %v80_v28, %v87_v29 }
   0xd   :  { %v112_v33 = vcombine.low %v104_v30, %v111_v31 }
   0xe   :  { %v95_v35 = vrot.slane %v88_v32, %v79_v12 }
   0xf   :  { %v119_v36 = vrot.slane %v112_v33, %v79_v12 }
  0x10   :  { %v126_v37 = vrot.slane %v95_v35, %v125_v34 }
  0x11   :  { %v148_v38 = vrot.slane %v119_v36, %v125_v34 }
  0x12   :  { %v127_v39 = vcombine.high %v126_v37, %v126_v37  ;;  %v134_v40 = vrot.slane %v126_v37, %v125_v34 }
  0x13   :  { %v149_v41 = vcombine.high %v148_v38, %v148_v38  ;;  %v156_v42 = vrot.slane %v148_v38, %v125_v34 }
  0x14   :  { %v141_v43 = vrot.slane %v127_v39, %v125_v34  ;;  %v164_v44 = vunpack.c.l.b16 %v134_v40  ;;  %v165_v46 = vunpack.c.h.b16 %v134_v40 }
  0x15   :  { %v163_v45 = vrot.slane %v149_v41, %v125_v34  ;;  %v168_v47 = vunpack.c.l.b16 %v156_v42  ;;  %v169_v48 = vunpack.c.h.b16 %v156_v42 }
  0x16   :  { %v166_v49 = vunpack.c.l.b16 %v141_v43  ;;  %v167_v50 = vunpack.c.h.b16 %v141_v43 }
  0x17   :  { %v170_v51 = vunpack.c.l.b16 %v163_v45  ;;  %v171_v52 = vunpack.c.h.b16 %v163_v45  ;;  %v172_v53 = vrot.slane %v168_v47, 7  ;;  %v175_v54 = vrot.slane %v169_v48, 7 }
  0x19   :  { %v174_v55 = vsel %vm173_vm0, %v172_v53, %v164_v44  ;;  %v176_v56 = vsel %vm173_vm0, %v175_v54, %v165_v46  ;;  %v177_v57 = vrot.slane %v170_v51, 7  ;;  %v179_v58 = vrot.slane %v171_v52, 7 }
  0x1a   :  { %v181_v59 = vpack.c.b16 %v176_v56, %v174_v55 }
  0x1b   :  { %v178_v60 = vsel %vm173_vm0, %v177_v57, %v166_v49  ;;  %v180_v61 = vsel %vm173_vm0, %v179_v58, %v167_v50 }
  0x1c   :  { %v182_v62 = vpack.c.b16 %v180_v61, %v178_v60  ;;  %v189_v63 = vrot.slane %v181_v59, %v79_v12 }
  0x1e   :  { %v196_v0 = vrot.slane %v182_v62, %v79_v12 }
  0x20   :  { %v197_v1 = vcombine.low %v189_v63, %v196_v0 }
  0x22   :  { %215 = vst.sshfl [vmem:[%s241_s1] sm:$0x55 pattern:$0x73625140] %v197_v1 }

// kernel: student_net_resp_forward.45
= control target key start
LH: loop header
LB: loop body
LE: loop exit
PB: predicated region body
PF: predicated region fallthrough
CT: control target
= control target key end

     0   :  { %s645_s1 = inlined_call_operand.vmem [shape: bf16[512,128], index: 1, kind: input, shape index: {}]   ;;  %s646_s0 = inlined_call_operand.vmem [shape: bf16[8,512], index: 0, kind: input, shape index: {}]   ;;  %s647_s2 = inlined_call_operand.vmem [shape: f32[1,128], index: 2, kind: input, shape index: {}]   ;;  %s648_s3 = inlined_call_operand.vmem [shape: f32[1,128], index: 3, kind: input, shape index: {}]   ;;  %s649_s4 = inlined_call_operand.vmem [shape: f32[8,128], index: 4, kind: output, shape index: {}]  }
   0x1   :  { %v473_v0 = vld [vmem:[%s645_s1 + $0x78] sm:$0xff]   ;;  %v477_v4 = vld [vmem:[%s645_s1 + $0x70] sm:$0xff]   ;;  %v481_v8 = vld [vmem:[%s645_s1 + $0x68] sm:$0xff]  }
   0x2   :  { %v474_v1 = vld [vmem:[%s645_s1 + $0xf8] sm:$0xff]   ;;  %429 = vmatprep.subr.bf16.mxu0 %v473_v0  ;;  %v478_v5 = vld [vmem:[%s645_s1 + $0xf0] sm:$0xff]   ;;  %v482_v9 = vld [vmem:[%s645_s1 + $0xe8] sm:$0xff]  }
   0x3   :  { %v475_v2 = vld [vmem:[%s645_s1 + $0x38] sm:$0xff]   ;;  %451 = vmatprep.subr.bf16.mxu1 %v474_v1  ;;  %v479_v6 = vld [vmem:[%s645_s1 + $0x30] sm:$0xff]   ;;  %v483_v10 = vld [vmem:[%s645_s1 + $0x28] sm:$0xff]  }
   0x4   :  { %v476_v3 = vld [vmem:[%s645_s1 + $0xb8] sm:$0xff]   ;;  %430 = vmatpush3.bf16.msra.mxu0 %v475_v2  ;;  %v480_v7 = vld [vmem:[%s645_s1 + $0xb0] sm:$0xff]   ;;  %v484_v11 = vld [vmem:[%s645_s1 + $0xa8] sm:$0xff]  }
   0x5   :  { %452 = vmatpush3.bf16.msra.mxu1 %v476_v3  ;;  %431 = vmatprep.subr.bf16.mxu0 %v477_v4  ;;  %v485_v12 = vld [vmem:[%s645_s1 + $0x60] sm:$0xff]   ;;  %v489_v16 = vld [vmem:[%s645_s1 + $0x58] sm:$0xff]   ;;  %v493_v20 = vld [vmem:[%s645_s1 + $0x50] sm:$0xff]  }
   0x6   :  { %453 = vmatprep.subr.bf16.mxu1 %v478_v5  ;;  %v486_v13 = vld [vmem:[%s645_s1 + $0xe0] sm:$0xff]   ;;  %v490_v17 = vld [vmem:[%s645_s1 + $0xd8] sm:$0xff]   ;;  %v494_v21 = vld [vmem:[%s645_s1 + $0xd0] sm:$0xff]  }
   0x7   :  { %v487_v14 = vld [vmem:[%s645_s1 + $0x20] sm:$0xff]   ;;  %v491_v18 = vld [vmem:[%s645_s1 + $0x18] sm:$0xff]   ;;  %v495_v22 = vld [vmem:[%s645_s1 + $0x10] sm:$0xff]  }
   0x8   :  { %432 = vmatpush3.bf16.msra.mxu0 %v479_v6  ;;  %v488_v15 = vld [vmem:[%s645_s1 + $0xa0] sm:$0xff]   ;;  %v492_v19 = vld [vmem:[%s645_s1 + $0x98] sm:$0xff]   ;;  %v496_v23 = vld [vmem:[%s645_s1 + $0x90] sm:$0xff]  }
   0x9   :  { %454 = vmatpush3.bf16.msra.mxu1 %v480_v7  ;;  %433 = vmatprep.subr.bf16.mxu0 %v481_v8  ;;  %v497_v24 = vld [vmem:[%s645_s1 + $0x48] sm:$0xff]   ;;  %v501_v28 = vld [vmem:[%s645_s1 + $0x40] sm:$0xff]  }
   0xa   :  { %455 = vmatprep.subr.bf16.mxu1 %v482_v9  ;;  %v498_v25 = vld [vmem:[%s645_s1 + $0xc8] sm:$0xff]   ;;  %v502_v29 = vld [vmem:[%s645_s1 + $0xc0] sm:$0xff]  }
   0xb   :  { %v499_v26 = vld [vmem:[%s645_s1 + $0x8] sm:$0xff]   ;;  %v503_v30 = vld [vmem:[%s645_s1] sm:$0xff]  }
   0xc   :  { %434 = vmatpush3.bf16.msra.mxu0 %v483_v10  ;;  %v500_v27 = vld [vmem:[%s645_s1 + $0x88] sm:$0xff]   ;;  %v504_v31 = vld [vmem:[%s645_s1 + $0x80] sm:$0xff]  }
   0xd   :  { %456 = vmatpush3.bf16.msra.mxu1 %v484_v11  ;;  %435 = vmatprep.subr.bf16.mxu0 %v485_v12  ;;  %v18_v32 = vld [vmem:[%s646_s0] sm:$0xff]  ;;  %v19_v33 = vld [vmem:[%s646_s0 + $0x8] sm:$0xff] }
   0xe   :  { %457 = vmatprep.subr.bf16.mxu1 %v486_v13  ;;  %v391_v34 = vcombine.low %v18_v32, %v18_v32  ;;  %v392_v35 = vcombine.high %v18_v32, %v18_v32  ;;  %v393_v36 = vcombine.low %v19_v33, %v19_v33  ;;  %v394_v37 = vcombine.high %v19_v33, %v19_v33  ;;  %v427_v44 = vld [vmem:[%s647_s2] ss:$0 sm:$0xff] }
   0xf   :  { %v428_v48 = vld [vmem:[%s648_s3] ss:$0 sm:$0xff] }
  0x10   :  { %436 = vmatpush3.bf16.msra.mxu0 %v487_v14  ;;  %322 = vmatprep.mubr.bf16.mxu0 %v392_v35 }
  0x11   :  { %458 = vmatpush3.bf16.msra.mxu1 %v488_v15  ;;  %437 = vmatprep.subr.bf16.mxu0 %v489_v16 }
  0x12   :  { %459 = vmatprep.subr.bf16.mxu1 %v490_v17  ;;  %362 = vmatprep.mubr.bf16.mxu1 %v394_v37 }
  0x14   :  { %438 = vmatpush3.bf16.msra.mxu0 %v491_v18 }
  0x15   :  { %460 = vmatpush3.bf16.msra.mxu1 %v492_v19  ;;  %439 = vmatprep.subr.bf16.mxu0 %v493_v20 }
  0x16   :  { %461 = vmatprep.subr.bf16.mxu1 %v494_v21 }
  0x18   :  { %440 = vmatpush3.bf16.msra.mxu0 %v495_v22 }
  0x19   :  { %462 = vmatpush3.bf16.msra.mxu1 %v496_v23  ;;  %441 = vmatprep.subr.bf16.mxu0 %v497_v24 }
  0x1a   :  { %463 = vmatprep.subr.bf16.mxu1 %v498_v25 }
  0x1c   :  { %442 = vmatpush3.bf16.msra.mxu0 %v499_v26 }
  0x1d   :  { %464 = vmatpush3.bf16.msra.mxu1 %v500_v27  ;;  %443 = vmatprep.subr.bf16.mxu0 %v501_v28 }
  0x1e   :  { %465 = vmatprep.subr.bf16.mxu1 %v502_v29 }
  0x20   :  { %444 = vmatpush3.bf16.msra.mxu0 %v503_v30 }
  0x21   :  { %466 = vmatpush3.bf16.msra.mxu1 %v504_v31 }
  0x23   :  { %323 = vmatmul.mubr.bf16.vlgmr.msra.gmra.mxu0 %v391_v34 }
  0x24   :  { %363 = vmatmul.mubr.bf16.vlgmr.msra.gmra.mxu1 %v393_v36 }
  0xe3   :  { %v445_v38 = vpop.f32.mrf.mxu0 }
  0xe4   :  { %v467_v39 = vpop.f32.mrf.mxu1 }
  0xe5   :  { %v446_v40 = vpop.f32.mrf.mxu0 }
  0xe6   :  { %v468_v41 = vpop.f32.mrf.mxu1  ;;  %v447_v42 = vadd.f32 %v446_v40, %v445_v38 }
  0xe7   :  { %v469_v43 = vadd.f32 %v468_v41, %v467_v39  ;;  %v448_v45 = vpop.f32.mrf.mxu0 }
  0xe8   :  { %v470_v46 = vpop.f32.mrf.mxu1 }
  0xe9   :  { %v365_v47 = vadd.f32 %v469_v43, %v447_v42  ;;  %v449_v49 = vpop.f32.mrf.mxu0 }
  0xea   :  { %v471_v50 = vpop.f32.mrf.mxu1 }
  0xeb   :  { %v377_v51 = vmul.f32 %v427_v44, %v365_v47 }
  0xed   :  { %v385_v52 = vadd.f32 %v428_v48, %v377_v51 }
  0xef   :  { %386 = vst [vmem:[%s649_s4] sm:$0xff] %v385_v52 }

</bundles_post_ra>
